<compile_context>
chip_gen: v7x
topology: tpu7x:2x2x1
jax: 0.10.0
libtpu: 0.0.40
codegen_flags: <defaults>
</compile_context>

<pallas_src>
import math
from functools import partial

import numpy as np

import jax
import jax.numpy as jnp
from jax import lax
from jax.experimental import pallas as pl
from jax.experimental.pallas import tpu as pltpu

# ----------------------------- model config (synthetic) -----------------------------
IN_DIM = 16                 # model_cfg.IN_DIM  (must be % 4 == 0 for the pos-enc)
NUM_BEV_FEATURES = 16       # model_cfg.NUM_BEV_FEATURES (== IN_DIM here)
GROUPS = 4                  # SA_block groups
LN_EPS = 1e-6
GN_EPS = 1e-5
NUM_VEC_COLS = 6 + GROUPS   # [ln_w, ln_b, gn_w1, gn_b1, gn_w2, gn_b2, gind(4)]


# ----------------------------- positional encoding table ----------------------------
def positional_encoding_3d(d_model, height, width, depth):
    """NumPy port of PositionalEncoding._positionalencoding3d (including its quirks)."""
    if d_model % 4 != 0:
        raise ValueError("d_model must be divisible by 4")
    pe = np.zeros((d_model, height, width, depth), dtype=np.float32)
    dm = int(math.ceil(d_model / 3))
    if dm % 2:
        dm += 1
    div_term = np.exp(np.arange(0.0, dm, 2) * -(math.log(10000.0) / dm))
    # NOTE: parenthesization quirk reproduced on purpose (matches the PyTorch source).
    div_term_depth = np.exp(np.arange(0.0, dm - 2, 2) * -(math.log(10000.0) / dm - 2))
    pos_w = np.arange(0.0, width)[:, None]
    pos_h = np.arange(0.0, height)[:, None]
    pos_d = np.arange(0.0, depth)[:, None]

    sw = np.sin(pos_w * div_term).T[:, None, :, None]
    pe[0:dm:2] = np.tile(sw, (1, height, 1, depth))
    cw = np.cos(pos_w * div_term).T[:, None, :, None]
    pe[1:dm:2] = np.tile(cw, (1, height, 1, depth))

    sh = np.sin(pos_h * div_term).T[:, :, None, None]
    pe[dm:2 * dm:2] = np.tile(sh, (1, 1, width, depth))
    ch = np.cos(pos_h * div_term).T[:, :, None, None]
    pe[dm + 1:2 * dm:2] = np.tile(ch, (1, 1, width, depth))

    sd = np.sin(pos_d * div_term_depth).T[:, None, None, :]
    pe[2 * dm::2] = np.tile(sd, (1, height, width, 1))
    cd = np.cos(pos_d * div_term_depth).T[:, None, None, :]
    pe[2 * dm + 1::2] = np.tile(cd, (1, height, width, 1))
    return pe


def _group_indicator(C):
    cg = C // GROUPS
    return np.kron(np.eye(GROUPS, dtype=np.float32), np.ones((cg, 1), np.float32))


# ----------------------------- Pallas kernels ---------------------------------------
def _sa_block(x, w_tpg, gind, gind_t, gn_w, gn_b, mxu_dt, exp_dt):
    """SA_block on a channel-major (C, N) tile.

    The grouped 1x1 z-conv is pre-folded into the value rows of `w_tpg` (host side),
    and all GROUPS attention heads are handled by exactly two wide MXU matmuls over
    group-masked stacked operands. The softmax divide is folded into an approximate
    EUP reciprocal of the f32-accumulated denominator.
    """
    C, N = x.shape

    # Fused value/query/key 1x1 convs: one (3C, C) @ (C, N) MXU matmul (f32).
    tpg = jnp.dot(w_tpg, x, preferred_element_type=jnp.float32)          # (3C, N)
    t_fold = tpg[0:C, :]                                                  # values (z folded)
    p_all = tpg[C:2 * C, :]                                               # queries (C, N)
    # One small explicit key transpose per block (known-good lowering); everything
    # downstream is a plain (M, K) @ (K, N) MXU matmul.
    gT = tpg[2 * C:3 * C, :].T                                            # keys (N, C)

    # ---- all 4 attention groups as two wide MXU matmuls -----------------------------
    # Stacked group-masked keys: sublane block gi only sees group gi's channels.
    g_stk = jnp.concatenate(
        [gT * gind_t[gi:gi + 1, :] for gi in range(GROUPS)], axis=0)      # (4N, C)
    energy = jnp.dot(g_stk.astype(mxu_dt), p_all.astype(mxu_dt),
                     preferred_element_type=jnp.float32)                  # (4N, N) f32
    e3 = energy.reshape(GROUPS, N, N)                                     # layout-free split
    col_max = jnp.max(e3, axis=1, keepdims=True)                          # (G, 1, N)
    e = jnp.exp((e3 - col_max).astype(exp_dt))                            # (G, N, N)
    denom = jnp.sum(e, axis=1, dtype=jnp.float32)                         # (G, N) f32 accum
    # softmax divide -> EUP approx reciprocal, broadcast to channels via gind matmul.
    recip_cn = jnp.dot(gind, pl.reciprocal(denom, approx=True),
                       preferred_element_type=jnp.float32)                # (C, N)

    # Stacked group-masked (z-folded) values: (C, 4N) @ (4N, N) with K = 4N.
    t_stk = jnp.concatenate(
        [t_fold * gind[:, gi:gi + 1] for gi in range(GROUPS)], axis=1)    # (C, 4N)
    z = jnp.dot(t_stk.astype(mxu_dt), e.reshape(GROUPS * N, N).astype(mxu_dt),
                preferred_element_type=jnp.float32) * recip_cn            # (C, N)

    # ---- GroupNorm(GROUPS): lane reductions + tiny group-indicator matmuls ----------
    inv_cnt = 1.0 / float((C // GROUPS) * N)
    s1 = jnp.sum(z, axis=1, keepdims=True)                                # (C, 1)
    s2 = jnp.sum(z * z, axis=1, keepdims=True)                            # (C, 1)
    g_mean = jnp.dot(gind_t, s1, preferred_element_type=jnp.float32) * inv_cnt   # (G, 1)
    g_msq = jnp.dot(gind_t, s2, preferred_element_type=jnp.float32) * inv_cnt    # (G, 1)
    g_rstd = lax.rsqrt(g_msq - g_mean * g_mean + GN_EPS)                  # (G, 1)
    mu_c = jnp.dot(gind, g_mean, preferred_element_type=jnp.float32)      # (C, 1)
    rstd_c = jnp.dot(gind, g_rstd, preferred_element_type=jnp.float32)    # (C, 1)
    zn = (z - mu_c) * rstd_c
    return zn * gn_w + gn_b + x


def fsa_kernel(x_ref, vec_ref, w_ref, o_ref, *, mxu_dtype, exp_dtype):
    C = x_ref.shape[0]
    x = x_ref[...]                                   # (C, N) channel-major pillar tile
    vec = vec_ref[...]                               # packed per-channel constants
    ln_w, ln_b = vec[:, 0:1], vec[:, 1:2]
    gn_w1, gn_b1 = vec[:, 2:3], vec[:, 3:4]
    gn_w2, gn_b2 = vec[:, 4:5], vec[:, 5:6]
    gind = vec[:, 6:6 + GROUPS]                      # (C, G) group-indicator columns
    w = w_ref[...]                                   # packed weight slab (6C+G, C)
    w1, w2 = w[0:3 * C, :], w[3 * C:6 * C, :]        # fused t(z-folded)/p/g per block
    gind_t = w[6 * C:6 * C + GROUPS, :]              # (G, C)

    # LayerNorm over channels (eps=1e-6); nn.Dropout(p=0.1) is identity in eval mode.
    mu = jnp.mean(x, axis=0, keepdims=True)
    var = jnp.mean(jnp.square(x - mu), axis=0, keepdims=True)
    xn = (x - mu) * lax.rsqrt(var + LN_EPS) * ln_w + ln_b

    y = _sa_block(xn, w1, gind, gind_t, gn_w1, gn_b1, mxu_dtype, exp_dtype)
    y = _sa_block(y, w2, gind, gind_t, gn_w2, gn_b2, mxu_dtype, exp_dtype)
    o_ref[...] = y                                   # lane-dense (C, N) store


def run_fsa(x_bcn, params, mxu_dtype, exp_dtype):
    """x_bcn: (B, C, N) channel-major pos-encoded features -> (B, C, N) context."""
    B, C, N = x_bcn.shape
    kern = partial(fsa_kernel, mxu_dtype=mxu_dtype, exp_dtype=exp_dtype)
    return pl.pallas_call(
        kern,
        out_shape=jax.ShapeDtypeStruct((B, C, N), jnp.float32),
        grid=(B,),
        in_specs=[pl.BlockSpec((None, C, N), lambda b: (b, 0, 0)),
                  pl.BlockSpec((C, NUM_VEC_COLS), lambda b: (0, 0)),
                  pl.BlockSpec((6 * C + GROUPS, C), lambda b: (0, 0))],
        out_specs=pl.BlockSpec((None, C, N), lambda b: (b, 0, 0)),
        compiler_params=pltpu.CompilerParams(dimension_semantics=("parallel",)),
    )(x_bcn, params["vecs"], params["w_all"])


def pool_kernel(x_ref, a_ref, o_ref):
    # Each input row holds [image row 2i | image row 2i+1]; the (2W, Wo) matrix sums
    # every 2x2 window with weight 0.25 == F.interpolate(scale_factor=0.5, 'bilinear').
    o_ref[...] = jnp.dot(x_ref[...], a_ref[...], preferred_element_type=jnp.float32)


def bilinear_half(x):
    """x: (B, C2, H, W), even H and W -> (B, C2, H//2, W//2).

    Single grid step, one matmul: rows are vertical row-pairs (pure host reshape),
    the pooling matrix is (2W, Wo) -> scales O(W*Wo), unlike a dense (HW, HoWo) matrix.
    """
    B, C2, H, W = x.shape
    assert H % 2 == 0 and W % 2 == 0, "0.5x bilinear pooling requires even H and W"
    Ho, Wo = H // 2, W // 2
    aw2 = np.zeros((2 * W, Wo), np.float32)
    j = np.arange(Wo)
    for off in (0, 1):
        aw2[2 * j + off, j] = 0.25
        aw2[W + 2 * j + off, j] = 0.25
    M = B * C2 * Ho
    xr = x.reshape(M, 2 * W)                     # free reshape: [row 2i | row 2i+1]
    out = pl.pallas_call(
        pool_kernel,
        out_shape=jax.ShapeDtypeStruct((M, Wo), jnp.float32),
        grid=(1,),
        in_specs=[pl.BlockSpec((M, 2 * W), lambda i: (0, 0)),
                  pl.BlockSpec((2 * W, Wo), lambda i: (0, 0))],
        out_specs=pl.BlockSpec((M, Wo), lambda i: (0, 0)),
    )(xr, jnp.asarray(aw2))
    return out.reshape(B, C2, Ho, Wo)


# ----------------------------- parameter init ---------------------------------------
def init_params(key, C, height, width, depth=2):
    cg = C // GROUPS
    gind = jnp.asarray(_group_indicator(C))                      # (C, G)
    k_sa1, k_sa2, k_aff = jax.random.split(key, 3)
    ka = jax.random.split(k_aff, 6)

    def w(k, shape):
        return 0.1 * jax.random.normal(k, shape, dtype=jnp.float32)

    # Randomized LN/GN affines (torch defaults are 1/0) so the correctness check is
    # meaningful; semantics are unchanged.
    ln_w = 1.0 + w(ka[0], (C, 1))
    ln_b = w(ka[1], (C, 1))
    raw = {"ln_w": ln_w, "ln_b": ln_b}
    w_slabs, gn_cols = [], []
    for name, ks, kw, kb in (("sa1", k_sa1, ka[2], ka[3]),
                             ("sa2", k_sa2, ka[4], ka[5])):
        k4 = jax.random.split(ks, 4)
        wt, wp, wg = w(k4[0], (C, C)), w(k4[1], (C, C)), w(k4[2], (C, C))
        wz = w(k4[3], (C, cg))          # Conv1d(C, C, 1, groups=4, bias=False) weight
        wz_bd = jnp.zeros((C, C), jnp.float32)
        for gi in range(GROUPS):
            s0, s1 = gi * cg, (gi + 1) * cg
            wz_bd = wz_bd.at[s0:s1, s0:s1].set(wz[s0:s1, :])
        gn_w = 1.0 + w(kw, (C, 1))
        gn_b = w(kb, (C, 1))
        raw[name] = {"wt": wt, "wp": wp, "wg": wg, "wz_bd": wz_bd,
                     "gn_w": gn_w, "gn_b": gn_b}
        # host-side fold of the grouped z-conv into the value projection (exact).
        w_slabs.append(jnp.concatenate([wz_bd @ wt, wp, wg], axis=0))     # (3C, C)
        gn_cols += [gn_w, gn_b]

    params = {
        # row-major pos table (H, W, D, C) -> contiguous per-pillar gather rows
        "pos_table_rows": jnp.asarray(
            positional_encoding_3d(C, height, width, depth).transpose(1, 2, 3, 0)),
        # per-channel pack: [ln_w, ln_b, gn_w1, gn_b1, gn_w2, gn_b2, gind(4 cols)]
        "vecs": jnp.concatenate([ln_w, ln_b] + gn_cols + [gind], axis=1),  # (C, 10)
        # weight slab: [w_tpg(sa1); w_tpg(sa2); gind^T]
        "w_all": jnp.concatenate(w_slabs + [gind.T], axis=0),              # (6C+G, C)
        "raw": raw,                                                        # reference-only
    }
    return params


def pick_dtypes():
    """(mxu_dtype, exp_dtype).

    The MXU is bf16-native on every generation, so attention-matmul operands are cast
    to bf16 everywhere (f32 accumulation). The softmax exp runs in bf16 only on chips
    with a bf16 EUP (v6e / v7x); elsewhere (v5e and older) it stays f32.
    """
    kind = ""
    try:
        kind = jax.devices()[0].device_kind.lower()
    except Exception:
        pass
    try:  # prefer the structured query when available
        info = pltpu.get_tpu_info()
        kind = (str(getattr(info, "chip_version", "")) or kind).lower()
    except Exception:
        pass
    bf16_eup = any(tag in kind for tag in ("v6", "v7", "tpu7"))
    return jnp.bfloat16, (jnp.bfloat16 if bf16_eup else jnp.float32)


# ----------------------------- pure-JAX reference (validation) ----------------------
def fsa_reference(x_bcn, raw):
    """Pure-JAX reference of LayerNorm + 2x SA_block with UNFOLDED weights (PyTorch math)."""
    def sa(x, p):
        C, N = x.shape
        cg = C // GROUPS
        t, q, g = p["wt"] @ x, p["wp"] @ x, p["wg"] @ x
        outs = []
        for gi in range(GROUPS):
            s0, s1 = gi * cg, (gi + 1) * cg
            energy = q[s0:s1].T @ g[s0:s1]                 # (N, N)
            att = jax.nn.softmax(energy, axis=-1)
            outs.append(t[s0:s1] @ att.T)                  # (cg, N)
        z = p["wz_bd"] @ jnp.concatenate(outs, axis=0)
        zr = z.reshape(GROUPS, cg, N)
        mu = zr.mean(axis=(1, 2), keepdims=True)
        var = ((zr - mu) ** 2).mean(axis=(1, 2), keepdims=True)
        zn = ((zr - mu) / jnp.sqrt(var + GN_EPS)).reshape(C, N)
        return zn * p["gn_w"] + p["gn_b"] + x

    def one(xb):
        mu = xb.mean(axis=0, keepdims=True)
        var = ((xb - mu) ** 2).mean(axis=0, keepdims=True)
        xn = (xb - mu) / jnp.sqrt(var + LN_EPS) * raw["ln_w"] + raw["ln_b"]
        return sa(sa(xn, raw["sa1"]), raw["sa2"])

    return jax.vmap(one)(x_bcn)


# ----------------------------- forward (module equivalent) --------------------------
def voxel_context_3d_fsa(voxel_feats, coords, nx, ny, nz, params, batch_size,
                         n_per_batch, mxu_dtype, exp_dtype):
    C = voxel_feats.shape[-1]
    # PositionalEncoding.forward: row-major gather (contiguous C-wide rows per pillar).
    pos = params["pos_table_rows"][coords[:, 2], coords[:, 3], coords[:, 1], :]  # (Nt, C)
    x_rows = voxel_feats + pos
    # TODO(synk): nn.Dropout(p=0.1) — eval-mode identity here (no RNG mask applied).
    x_bcn = x_rows.reshape(batch_size, n_per_batch, C).transpose(0, 2, 1)  # (B, C, Nb)

    ctx = run_fsa(x_bcn, params, mxu_dtype, exp_dtype)                     # (B, C, Nb)

    # add_context_to_voxels: row-major scatter (contiguous rows), one transpose to NCHW.
    # TODO(synk): could become a Pallas DMA scatter via PrefetchScalarGridSpec; kept as
    # an XLA row scatter here.
    L = nz * nx * ny
    idx = coords[:, 1] + coords[:, 2] * nx + coords[:, 3]                  # torch formula
    gidx = coords[:, 0] * L + idx                                          # (N_total,)
    feats_rows = ctx.transpose(0, 2, 1).reshape(batch_size * n_per_batch, C)
    bev_rows = jnp.zeros((batch_size * L, NUM_BEV_FEATURES),
                         jnp.float32).at[gidx].set(feats_rows)
    bev = bev_rows.reshape(batch_size, L, NUM_BEV_FEATURES).transpose(0, 2, 1).reshape(
        batch_size, NUM_BEV_FEATURES * nz, ny, nx)                         # NCHW

    bev_half = bilinear_half(bev)                                          # Pallas pool
    return bev, bev_half


# ----------------------------- main --------------------------------------------------
if __name__ == "__main__":
    B = 2
    ny, nx, nz = 16, 16, 2
    C = IN_DIM
    Nb = ny * nx                                                   # 256 pillars / batch

    key = jax.random.PRNGKey(0)
    k_feat, k_w, k_chk = jax.random.split(key, 3)

    # coords: every (y, x) cell occupied once per batch, z = 0  -> unique scatter indices
    ys, xs = jnp.meshgrid(jnp.arange(ny), jnp.arange(nx), indexing="ij")
    ys, xs = ys.reshape(-1), xs.reshape(-1)
    coords = jnp.concatenate(
        [jnp.stack([jnp.full_like(ys, b), jnp.zeros_like(ys), ys, xs], axis=1)
         for b in range(B)], axis=0).astype(jnp.int32)             # (B*Nb, 4) [b, z, y, x]

    voxel_feats = jax.random.normal(k_feat, (B * Nb, C), dtype=jnp.float32)
    params = init_params(k_w, C, height=ny, width=nx, depth=2)
    mxu_dt, exp_dt = pick_dtypes()

    # --- correctness: Pallas FSA kernel vs. unfolded pure-JAX reference (relative) ---
    x_chk = jax.random.normal(k_chk, (B, C, Nb), dtype=jnp.float32)
    got = run_fsa(x_chk, params, mxu_dt, exp_dt)
    ref = fsa_reference(x_chk, params["raw"])
    err = float(jnp.max(jnp.abs(got - ref)))
    scale = float(jnp.max(jnp.abs(ref)))
    assert scale > 0.0 and err <= 0.05 * scale, (
        f"FSA kernel mismatch: max|err|={err:.4e} vs 5% of max|ref|={scale:.3f}")

    # --- full forward ---
    bev, bev_half = voxel_context_3d_fsa(
        voxel_feats, coords, nx, ny, nz, params,
        batch_size=B, n_per_batch=Nb, mxu_dtype=mxu_dt, exp_dtype=exp_dt)
    jax.block_until_ready(bev)
    jax.block_until_ready(bev_half)

    assert bev.shape == (B, NUM_BEV_FEATURES * nz, ny, nx)
    assert bev_half.shape == (B, NUM_BEV_FEATURES * nz, ny // 2, nx // 2)
    assert bool(jnp.all(jnp.isfinite(bev)))

    # bilinear 0.5x == exact 2x2 average for even H, W
    ref_half = bev.reshape(B, NUM_BEV_FEATURES * nz, ny // 2, 2, nx // 2, 2).mean(axis=(3, 5))
    assert float(jnp.max(jnp.abs(bev_half - ref_half))) < 1e-4

    print("KERNEL_OK")
</pallas_src>

<mosaic_0001>
module attributes {stable_mosaic.version = 11 : i64} {
  func.func @fsa_kernel(%arg0: i32, %arg1: memref<1x16x256xf32, #tpu.memory_space<vmem>>, %arg2: memref<16x10xf32, #tpu.memory_space<vmem>>, %arg3: memref<100x16xf32, #tpu.memory_space<vmem>>, %arg4: memref<1x16x256xf32, #tpu.memory_space<vmem>>) attributes {dimension_semantics = [#tpu.dimension_semantics<parallel>], iteration_bounds = array<i64: 2>, scalar_prefetch = 0 : i64, scratch_operands = 0 : i64, tpu.core_type = #tpu.core_type<tc>, window_params = [{transform_indices = @transform_0, window_bounds = array<i64: 1, 16, 256>}, {pipeline_mode = #tpu.pipeline_mode<synchronous>, transform_indices = @transform_1, window_bounds = array<i64: 16, 10>}, {pipeline_mode = #tpu.pipeline_mode<synchronous>, transform_indices = @transform_2, window_bounds = array<i64: 100, 16>}, {transform_indices = @transform_3, window_bounds = array<i64: 1, 16, 256>}]} {
    %c0 = arith.constant 0 : index
    %c0_0 = arith.constant 0 : index
    %c0_1 = arith.constant 0 : index
    %0 = vector.load %arg1[%c0, %c0_0, %c0_1] : memref<1x16x256xf32, #tpu.memory_space<vmem>>, vector<1x16x256xf32>
    %1 = vector.shape_cast %0 : vector<1x16x256xf32> to vector<16x256xf32>
    %c0_2 = arith.constant 0 : index
    %c0_3 = arith.constant 0 : index
    %2 = vector.load %arg2[%c0_2, %c0_3] : memref<16x10xf32, #tpu.memory_space<vmem>>, vector<16x10xf32>
    %3 = vector.extract_strided_slice %2 {offsets = [0, 0], sizes = [16, 1], strides = [1, 1]} : vector<16x10xf32> to vector<16x1xf32>
    %4 = vector.extract_strided_slice %2 {offsets = [0, 1], sizes = [16, 1], strides = [1, 1]} : vector<16x10xf32> to vector<16x1xf32>
    %5 = vector.extract_strided_slice %2 {offsets = [0, 2], sizes = [16, 1], strides = [1, 1]} : vector<16x10xf32> to vector<16x1xf32>
    %6 = vector.extract_strided_slice %2 {offsets = [0, 3], sizes = [16, 1], strides = [1, 1]} : vector<16x10xf32> to vector<16x1xf32>
    %7 = vector.extract_strided_slice %2 {offsets = [0, 4], sizes = [16, 1], strides = [1, 1]} : vector<16x10xf32> to vector<16x1xf32>
    %8 = vector.extract_strided_slice %2 {offsets = [0, 5], sizes = [16, 1], strides = [1, 1]} : vector<16x10xf32> to vector<16x1xf32>
    %9 = vector.extract_strided_slice %2 {offsets = [0, 6], sizes = [16, 4], strides = [1, 1]} : vector<16x10xf32> to vector<16x4xf32>
    %c0_4 = arith.constant 0 : index
    %c0_5 = arith.constant 0 : index
    %10 = vector.load %arg3[%c0_4, %c0_5] : memref<100x16xf32, #tpu.memory_space<vmem>>, vector<100x16xf32>
    %11 = vector.extract_strided_slice %10 {offsets = [0, 0], sizes = [48, 16], strides = [1, 1]} : vector<100x16xf32> to vector<48x16xf32>
    %12 = vector.extract_strided_slice %10 {offsets = [48, 0], sizes = [48, 16], strides = [1, 1]} : vector<100x16xf32> to vector<48x16xf32>
    %13 = vector.extract_strided_slice %10 {offsets = [96, 0], sizes = [4, 16], strides = [1, 1]} : vector<100x16xf32> to vector<4x16xf32>
    %cst = arith.constant dense<0.000000e+00> : vector<256xf32>
    %14 = vector.multi_reduction <add>, %1, %cst [0] : vector<16x256xf32> to vector<256xf32>
    %15 = vector.shape_cast %14 : vector<256xf32> to vector<1x256xf32>
    %cst_6 = arith.constant 1.600000e+01 : f32
    %16 = vector.broadcast %cst_6 : f32 to vector<1x256xf32>
    %17 = arith.divf %15, %16 : vector<1x256xf32>
    %18 = vector.broadcast %17 : vector<1x256xf32> to vector<16x256xf32>
    %19 = arith.subf %1, %18 : vector<16x256xf32>
    %20 = arith.mulf %19, %19 : vector<16x256xf32>
    %cst_7 = arith.constant dense<0.000000e+00> : vector<256xf32>
    %21 = vector.multi_reduction <add>, %20, %cst_7 [0] : vector<16x256xf32> to vector<256xf32>
    %22 = vector.shape_cast %21 : vector<256xf32> to vector<1x256xf32>
    %cst_8 = arith.constant 1.600000e+01 : f32
    %23 = vector.broadcast %cst_8 : f32 to vector<1x256xf32>
    %24 = arith.divf %22, %23 : vector<1x256xf32>
    %25 = vector.broadcast %17 : vector<1x256xf32> to vector<16x256xf32>
    %26 = arith.subf %1, %25 : vector<16x256xf32>
    %cst_9 = arith.constant 9.99999997E-7 : f32
    %27 = vector.broadcast %cst_9 : f32 to vector<1x256xf32>
    %28 = arith.addf %24, %27 : vector<1x256xf32>
    %29 = math.rsqrt %28 : vector<1x256xf32>
    %30 = vector.broadcast %29 : vector<1x256xf32> to vector<16x256xf32>
    %31 = arith.mulf %26, %30 : vector<16x256xf32>
    %32 = vector.broadcast %3 : vector<16x1xf32> to vector<16x256xf32>
    %33 = arith.mulf %31, %32 : vector<16x256xf32>
    %34 = vector.broadcast %4 : vector<16x1xf32> to vector<16x256xf32>
    %35 = arith.addf %33, %34 : vector<16x256xf32>
    %cst_10 = arith.constant dense<0.000000e+00> : vector<48x256xf32>
    %36 = tpu.matmul %11, %35, %cst_10 {dimension_numbers = #tpu.dot_dimension_numbers<[1], [0], [0], [1], [0, 0, 1, 1], [], []>} : vector<48x16xf32>, vector<16x256xf32>, vector<48x256xf32> -> vector<48x256xf32>
    %37 = vector.extract_strided_slice %36 {offsets = [0, 0], sizes = [16, 256], strides = [1, 1]} : vector<48x256xf32> to vector<16x256xf32>
    %38 = vector.extract_strided_slice %36 {offsets = [16, 0], sizes = [16, 256], strides = [1, 1]} : vector<48x256xf32> to vector<16x256xf32>
    %39 = vector.extract_strided_slice %36 {offsets = [32, 0], sizes = [16, 256], strides = [1, 1]} : vector<48x256xf32> to vector<16x256xf32>
    %40 = tpu.transpose %39, [1, 0] : vector<16x256xf32> -> vector<256x16xf32>
    %41 = vector.extract_strided_slice %13 {offsets = [0, 0], sizes = [1, 16], strides = [1, 1]} : vector<4x16xf32> to vector<1x16xf32>
    %42 = vector.broadcast %41 : vector<1x16xf32> to vector<256x16xf32>
    %43 = arith.mulf %40, %42 : vector<256x16xf32>
    %44 = vector.extract_strided_slice %13 {offsets = [1, 0], sizes = [1, 16], strides = [1, 1]} : vector<4x16xf32> to vector<1x16xf32>
    %45 = vector.broadcast %44 : vector<1x16xf32> to vector<256x16xf32>
    %46 = arith.mulf %40, %45 : vector<256x16xf32>
    %47 = vector.extract_strided_slice %13 {offsets = [2, 0], sizes = [1, 16], strides = [1, 1]} : vector<4x16xf32> to vector<1x16xf32>
    %48 = vector.broadcast %47 : vector<1x16xf32> to vector<256x16xf32>
    %49 = arith.mulf %40, %48 : vector<256x16xf32>
    %50 = vector.extract_strided_slice %13 {offsets = [3, 0], sizes = [1, 16], strides = [1, 1]} : vector<4x16xf32> to vector<1x16xf32>
    %51 = vector.broadcast %50 : vector<1x16xf32> to vector<256x16xf32>
    %52 = arith.mulf %40, %51 : vector<256x16xf32>
    %53 = tpu.concatenate %43, %46, %49, %52 in 0 : vector<256x16xf32>, vector<256x16xf32>, vector<256x16xf32>, vector<256x16xf32> -> vector<1024x16xf32>
    %54 = arith.truncf %53 : vector<1024x16xf32> to vector<1024x16xbf16>
    %55 = arith.truncf %38 : vector<16x256xf32> to vector<16x256xbf16>
    %cst_11 = arith.constant dense<0.000000e+00> : vector<1024x256xf32>
    %56 = tpu.matmul %54, %55, %cst_11 {dimension_numbers = #tpu.dot_dimension_numbers<[1], [0], [0], [1], [0, 0, 1, 1], [], []>} : vector<1024x16xbf16>, vector<16x256xbf16>, vector<1024x256xf32> -> vector<1024x256xf32>
    %57 = vector.shape_cast %56 : vector<1024x256xf32> to vector<4x256x256xf32>
    %cst_12 = arith.constant dense<0xFF800000> : vector<4x256xf32>
    %58 = vector.multi_reduction <maximumf>, %57, %cst_12 [1] : vector<4x256x256xf32> to vector<4x256xf32>
    %59 = vector.shape_cast %58 : vector<4x256xf32> to vector<4x1x256xf32>
    %60 = vector.broadcast %59 : vector<4x1x256xf32> to vector<4x256x256xf32>
    %61 = arith.subf %57, %60 : vector<4x256x256xf32>
    %62 = math.exp %61 : vector<4x256x256xf32>
    %cst_13 = arith.constant dense<0.000000e+00> : vector<4x256xf32>
    %63 = vector.multi_reduction <add>, %62, %cst_13 [1] : vector<4x256x256xf32> to vector<4x256xf32>
    %64 = tpu.reciprocal %63 {approx = true} : vector<4x256xf32> -> vector<4x256xf32>
    %cst_14 = arith.constant dense<0.000000e+00> : vector<16x256xf32>
    %65 = tpu.matmul %9, %64, %cst_14 {dimension_numbers = #tpu.dot_dimension_numbers<[1], [0], [0], [1], [0, 0, 1, 1], [], []>} : vector<16x4xf32>, vector<4x256xf32>, vector<16x256xf32> -> vector<16x256xf32>
    %66 = vector.extract_strided_slice %9 {offsets = [0, 0], sizes = [16, 1], strides = [1, 1]} : vector<16x4xf32> to vector<16x1xf32>
    %67 = vector.broadcast %66 : vector<16x1xf32> to vector<16x256xf32>
    %68 = arith.mulf %37, %67 : vector<16x256xf32>
    %69 = vector.extract_strided_slice %9 {offsets = [0, 1], sizes = [16, 1], strides = [1, 1]} : vector<16x4xf32> to vector<16x1xf32>
    %70 = vector.broadcast %69 : vector<16x1xf32> to vector<16x256xf32>
    %71 = arith.mulf %37, %70 : vector<16x256xf32>
    %72 = vector.extract_strided_slice %9 {offsets = [0, 2], sizes = [16, 1], strides = [1, 1]} : vector<16x4xf32> to vector<16x1xf32>
    %73 = vector.broadcast %72 : vector<16x1xf32> to vector<16x256xf32>
    %74 = arith.mulf %37, %73 : vector<16x256xf32>
    %75 = vector.extract_strided_slice %9 {offsets = [0, 3], sizes = [16, 1], strides = [1, 1]} : vector<16x4xf32> to vector<16x1xf32>
    %76 = vector.broadcast %75 : vector<16x1xf32> to vector<16x256xf32>
    %77 = arith.mulf %37, %76 : vector<16x256xf32>
    %78 = tpu.concatenate %68, %71, %74, %77 in 1 : vector<16x256xf32>, vector<16x256xf32>, vector<16x256xf32>, vector<16x256xf32> -> vector<16x1024xf32>
    %79 = arith.truncf %78 : vector<16x1024xf32> to vector<16x1024xbf16>
    %80 = vector.shape_cast %62 : vector<4x256x256xf32> to vector<1024x256xf32>
    %81 = arith.truncf %80 : vector<1024x256xf32> to vector<1024x256xbf16>
    %cst_15 = arith.constant dense<0.000000e+00> : vector<16x256xf32>
    %82 = tpu.matmul %79, %81, %cst_15 {dimension_numbers = #tpu.dot_dimension_numbers<[1], [0], [0], [1], [0, 0, 1, 1], [], []>} : vector<16x1024xbf16>, vector<1024x256xbf16>, vector<16x256xf32> -> vector<16x256xf32>
    %83 = arith.mulf %82, %65 : vector<16x256xf32>
    %cst_16 = arith.constant dense<0.000000e+00> : vector<16xf32>
    %84 = vector.multi_reduction <add>, %83, %cst_16 [1] : vector<16x256xf32> to vector<16xf32>
    %85 = vector.shape_cast %84 : vector<16xf32> to vector<16x1xf32>
    %86 = arith.mulf %83, %83 : vector<16x256xf32>
    %cst_17 = arith.constant dense<0.000000e+00> : vector<16xf32>
    %87 = vector.multi_reduction <add>, %86, %cst_17 [1] : vector<16x256xf32> to vector<16xf32>
    %88 = vector.shape_cast %87 : vector<16xf32> to vector<16x1xf32>
    %cst_18 = arith.constant dense<0.000000e+00> : vector<4x1xf32>
    %89 = tpu.matmul %13, %85, %cst_18 {dimension_numbers = #tpu.dot_dimension_numbers<[1], [0], [0], [1], [0, 0, 1, 1], [], []>} : vector<4x16xf32>, vector<16x1xf32>, vector<4x1xf32> -> vector<4x1xf32>
    %cst_19 = arith.constant 9.765625E-4 : f32
    %90 = vector.broadcast %cst_19 : f32 to vector<4x1xf32>
    %91 = arith.mulf %89, %90 : vector<4x1xf32>
    %cst_20 = arith.constant dense<0.000000e+00> : vector<4x1xf32>
    %92 = tpu.matmul %13, %88, %cst_20 {dimension_numbers = #tpu.dot_dimension_numbers<[1], [0], [0], [1], [0, 0, 1, 1], [], []>} : vector<4x16xf32>, vector<16x1xf32>, vector<4x1xf32> -> vector<4x1xf32>
    %cst_21 = arith.constant 9.765625E-4 : f32
    %93 = vector.broadcast %cst_21 : f32 to vector<4x1xf32>
    %94 = arith.mulf %92, %93 : vector<4x1xf32>
    %95 = arith.mulf %91, %91 : vector<4x1xf32>
    %96 = arith.subf %94, %95 : vector<4x1xf32>
    %cst_22 = arith.constant 9.99999974E-6 : f32
    %97 = vector.broadcast %cst_22 : f32 to vector<4x1xf32>
    %98 = arith.addf %96, %97 : vector<4x1xf32>
    %99 = math.rsqrt %98 : vector<4x1xf32>
    %cst_23 = arith.constant dense<0.000000e+00> : vector<16x1xf32>
    %100 = tpu.matmul %9, %91, %cst_23 {dimension_numbers = #tpu.dot_dimension_numbers<[1], [0], [0], [1], [0, 0, 1, 1], [], []>} : vector<16x4xf32>, vector<4x1xf32>, vector<16x1xf32> -> vector<16x1xf32>
    %cst_24 = arith.constant dense<0.000000e+00> : vector<16x1xf32>
    %101 = tpu.matmul %9, %99, %cst_24 {dimension_numbers = #tpu.dot_dimension_numbers<[1], [0], [0], [1], [0, 0, 1, 1], [], []>} : vector<16x4xf32>, vector<4x1xf32>, vector<16x1xf32> -> vector<16x1xf32>
    %102 = vector.broadcast %100 : vector<16x1xf32> to vector<16x256xf32>
    %103 = arith.subf %83, %102 : vector<16x256xf32>
    %104 = vector.broadcast %101 : vector<16x1xf32> to vector<16x256xf32>
    %105 = arith.mulf %103, %104 : vector<16x256xf32>
    %106 = vector.broadcast %5 : vector<16x1xf32> to vector<16x256xf32>
    %107 = arith.mulf %105, %106 : vector<16x256xf32>
    %108 = vector.broadcast %6 : vector<16x1xf32> to vector<16x256xf32>
    %109 = arith.addf %107, %108 : vector<16x256xf32>
    %110 = arith.addf %109, %35 : vector<16x256xf32>
    %cst_25 = arith.constant dense<0.000000e+00> : vector<48x256xf32>
    %111 = tpu.matmul %12, %110, %cst_25 {dimension_numbers = #tpu.dot_dimension_numbers<[1], [0], [0], [1], [0, 0, 1, 1], [], []>} : vector<48x16xf32>, vector<16x256xf32>, vector<48x256xf32> -> vector<48x256xf32>
    %112 = vector.extract_strided_slice %111 {offsets = [0, 0], sizes = [16, 256], strides = [1, 1]} : vector<48x256xf32> to vector<16x256xf32>
    %113 = vector.extract_strided_slice %111 {offsets = [16, 0], sizes = [16, 256], strides = [1, 1]} : vector<48x256xf32> to vector<16x256xf32>
    %114 = vector.extract_strided_slice %111 {offsets = [32, 0], sizes = [16, 256], strides = [1, 1]} : vector<48x256xf32> to vector<16x256xf32>
    %115 = tpu.transpose %114, [1, 0] : vector<16x256xf32> -> vector<256x16xf32>
    %116 = vector.extract_strided_slice %13 {offsets = [0, 0], sizes = [1, 16], strides = [1, 1]} : vector<4x16xf32> to vector<1x16xf32>
    %117 = vector.broadcast %116 : vector<1x16xf32> to vector<256x16xf32>
    %118 = arith.mulf %115, %117 : vector<256x16xf32>
    %119 = vector.extract_strided_slice %13 {offsets = [1, 0], sizes = [1, 16], strides = [1, 1]} : vector<4x16xf32> to vector<1x16xf32>
    %120 = vector.broadcast %119 : vector<1x16xf32> to vector<256x16xf32>
    %121 = arith.mulf %115, %120 : vector<256x16xf32>
    %122 = vector.extract_strided_slice %13 {offsets = [2, 0], sizes = [1, 16], strides = [1, 1]} : vector<4x16xf32> to vector<1x16xf32>
    %123 = vector.broadcast %122 : vector<1x16xf32> to vector<256x16xf32>
    %124 = arith.mulf %115, %123 : vector<256x16xf32>
    %125 = vector.extract_strided_slice %13 {offsets = [3, 0], sizes = [1, 16], strides = [1, 1]} : vector<4x16xf32> to vector<1x16xf32>
    %126 = vector.broadcast %125 : vector<1x16xf32> to vector<256x16xf32>
    %127 = arith.mulf %115, %126 : vector<256x16xf32>
    %128 = tpu.concatenate %118, %121, %124, %127 in 0 : vector<256x16xf32>, vector<256x16xf32>, vector<256x16xf32>, vector<256x16xf32> -> vector<1024x16xf32>
    %129 = arith.truncf %128 : vector<1024x16xf32> to vector<1024x16xbf16>
    %130 = arith.truncf %113 : vector<16x256xf32> to vector<16x256xbf16>
    %cst_26 = arith.constant dense<0.000000e+00> : vector<1024x256xf32>
    %131 = tpu.matmul %129, %130, %cst_26 {dimension_numbers = #tpu.dot_dimension_numbers<[1], [0], [0], [1], [0, 0, 1, 1], [], []>} : vector<1024x16xbf16>, vector<16x256xbf16>, vector<1024x256xf32> -> vector<1024x256xf32>
    %132 = vector.shape_cast %131 : vector<1024x256xf32> to vector<4x256x256xf32>
    %cst_27 = arith.constant dense<0xFF800000> : vector<4x256xf32>
    %133 = vector.multi_reduction <maximumf>, %132, %cst_27 [1] : vector<4x256x256xf32> to vector<4x256xf32>
    %134 = vector.shape_cast %133 : vector<4x256xf32> to vector<4x1x256xf32>
    %135 = vector.broadcast %134 : vector<4x1x256xf32> to vector<4x256x256xf32>
    %136 = arith.subf %132, %135 : vector<4x256x256xf32>
    %137 = math.exp %136 : vector<4x256x256xf32>
    %cst_28 = arith.constant dense<0.000000e+00> : vector<4x256xf32>
    %138 = vector.multi_reduction <add>, %137, %cst_28 [1] : vector<4x256x256xf32> to vector<4x256xf32>
    %139 = tpu.reciprocal %138 {approx = true} : vector<4x256xf32> -> vector<4x256xf32>
    %cst_29 = arith.constant dense<0.000000e+00> : vector<16x256xf32>
    %140 = tpu.matmul %9, %139, %cst_29 {dimension_numbers = #tpu.dot_dimension_numbers<[1], [0], [0], [1], [0, 0, 1, 1], [], []>} : vector<16x4xf32>, vector<4x256xf32>, vector<16x256xf32> -> vector<16x256xf32>
    %141 = vector.extract_strided_slice %9 {offsets = [0, 0], sizes = [16, 1], strides = [1, 1]} : vector<16x4xf32> to vector<16x1xf32>
    %142 = vector.broadcast %141 : vector<16x1xf32> to vector<16x256xf32>
    %143 = arith.mulf %112, %142 : vector<16x256xf32>
    %144 = vector.extract_strided_slice %9 {offsets = [0, 1], sizes = [16, 1], strides = [1, 1]} : vector<16x4xf32> to vector<16x1xf32>
    %145 = vector.broadcast %144 : vector<16x1xf32> to vector<16x256xf32>
    %146 = arith.mulf %112, %145 : vector<16x256xf32>
    %147 = vector.extract_strided_slice %9 {offsets = [0, 2], sizes = [16, 1], strides = [1, 1]} : vector<16x4xf32> to vector<16x1xf32>
    %148 = vector.broadcast %147 : vector<16x1xf32> to vector<16x256xf32>
    %149 = arith.mulf %112, %148 : vector<16x256xf32>
    %150 = vector.extract_strided_slice %9 {offsets = [0, 3], sizes = [16, 1], strides = [1, 1]} : vector<16x4xf32> to vector<16x1xf32>
    %151 = vector.broadcast %150 : vector<16x1xf32> to vector<16x256xf32>
    %152 = arith.mulf %112, %151 : vector<16x256xf32>
    %153 = tpu.concatenate %143, %146, %149, %152 in 1 : vector<16x256xf32>, vector<16x256xf32>, vector<16x256xf32>, vector<16x256xf32> -> vector<16x1024xf32>
    %154 = arith.truncf %153 : vector<16x1024xf32> to vector<16x1024xbf16>
    %155 = vector.shape_cast %137 : vector<4x256x256xf32> to vector<1024x256xf32>
    %156 = arith.truncf %155 : vector<1024x256xf32> to vector<1024x256xbf16>
    %cst_30 = arith.constant dense<0.000000e+00> : vector<16x256xf32>
    %157 = tpu.matmul %154, %156, %cst_30 {dimension_numbers = #tpu.dot_dimension_numbers<[1], [0], [0], [1], [0, 0, 1, 1], [], []>} : vector<16x1024xbf16>, vector<1024x256xbf16>, vector<16x256xf32> -> vector<16x256xf32>
    %158 = arith.mulf %157, %140 : vector<16x256xf32>
    %cst_31 = arith.constant dense<0.000000e+00> : vector<16xf32>
    %159 = vector.multi_reduction <add>, %158, %cst_31 [1] : vector<16x256xf32> to vector<16xf32>
    %160 = vector.shape_cast %159 : vector<16xf32> to vector<16x1xf32>
    %161 = arith.mulf %158, %158 : vector<16x256xf32>
    %cst_32 = arith.constant dense<0.000000e+00> : vector<16xf32>
    %162 = vector.multi_reduction <add>, %161, %cst_32 [1] : vector<16x256xf32> to vector<16xf32>
    %163 = vector.shape_cast %162 : vector<16xf32> to vector<16x1xf32>
    %cst_33 = arith.constant dense<0.000000e+00> : vector<4x1xf32>
    %164 = tpu.matmul %13, %160, %cst_33 {dimension_numbers = #tpu.dot_dimension_numbers<[1], [0], [0], [1], [0, 0, 1, 1], [], []>} : vector<4x16xf32>, vector<16x1xf32>, vector<4x1xf32> -> vector<4x1xf32>
    %cst_34 = arith.constant 9.765625E-4 : f32
    %165 = vector.broadcast %cst_34 : f32 to vector<4x1xf32>
    %166 = arith.mulf %164, %165 : vector<4x1xf32>
    %cst_35 = arith.constant dense<0.000000e+00> : vector<4x1xf32>
    %167 = tpu.matmul %13, %163, %cst_35 {dimension_numbers = #tpu.dot_dimension_numbers<[1], [0], [0], [1], [0, 0, 1, 1], [], []>} : vector<4x16xf32>, vector<16x1xf32>, vector<4x1xf32> -> vector<4x1xf32>
    %cst_36 = arith.constant 9.765625E-4 : f32
    %168 = vector.broadcast %cst_36 : f32 to vector<4x1xf32>
    %169 = arith.mulf %167, %168 : vector<4x1xf32>
    %170 = arith.mulf %166, %166 : vector<4x1xf32>
    %171 = arith.subf %169, %170 : vector<4x1xf32>
    %cst_37 = arith.constant 9.99999974E-6 : f32
    %172 = vector.broadcast %cst_37 : f32 to vector<4x1xf32>
    %173 = arith.addf %171, %172 : vector<4x1xf32>
    %174 = math.rsqrt %173 : vector<4x1xf32>
    %cst_38 = arith.constant dense<0.000000e+00> : vector<16x1xf32>
    %175 = tpu.matmul %9, %166, %cst_38 {dimension_numbers = #tpu.dot_dimension_numbers<[1], [0], [0], [1], [0, 0, 1, 1], [], []>} : vector<16x4xf32>, vector<4x1xf32>, vector<16x1xf32> -> vector<16x1xf32>
    %cst_39 = arith.constant dense<0.000000e+00> : vector<16x1xf32>
    %176 = tpu.matmul %9, %174, %cst_39 {dimension_numbers = #tpu.dot_dimension_numbers<[1], [0], [0], [1], [0, 0, 1, 1], [], []>} : vector<16x4xf32>, vector<4x1xf32>, vector<16x1xf32> -> vector<16x1xf32>
    %177 = vector.broadcast %175 : vector<16x1xf32> to vector<16x256xf32>
    %178 = arith.subf %158, %177 : vector<16x256xf32>
    %179 = vector.broadcast %176 : vector<16x1xf32> to vector<16x256xf32>
    %180 = arith.mulf %178, %179 : vector<16x256xf32>
    %181 = vector.broadcast %7 : vector<16x1xf32> to vector<16x256xf32>
    %182 = arith.mulf %180, %181 : vector<16x256xf32>
    %183 = vector.broadcast %8 : vector<16x1xf32> to vector<16x256xf32>
    %184 = arith.addf %182, %183 : vector<16x256xf32>
    %185 = arith.addf %184, %110 : vector<16x256xf32>
    %c0_40 = arith.constant 0 : index
    %c0_41 = arith.constant 0 : index
    %c0_42 = arith.constant 0 : index
    %186 = vector.load %arg4[%c0_40, %c0_41, %c0_42] : memref<1x16x256xf32, #tpu.memory_space<vmem>>, vector<1x16x256xf32>
    %187 = vector.shape_cast %186 : vector<1x16x256xf32> to vector<16x256xf32>
    %188 = vector.shape_cast %185 : vector<16x256xf32> to vector<1x16x256xf32>
    tpu.vector_store %arg4[%c0_40, %c0_41, %c0_42], %188 {strides = array<i32>} : memref<1x16x256xf32, #tpu.memory_space<vmem>>, vector<1x16x256xf32>,
    return
  }
  func.func @transform_0(%arg0: i32) -> (i32, i32, i32) {
    %c0_i32 = arith.constant 0 : i32
    %c0_i32_0 = arith.constant 0 : i32
    %c0_i32_1 = arith.constant 0 : i32
    return %arg0, %c0_i32, %c0_i32_0 : i32, i32, i32
  }
  func.func @transform_1(%arg0: i32) -> (i32, i32) {
    %c0_i32 = arith.constant 0 : i32
    %c0_i32_0 = arith.constant 0 : i32
    %c0_i32_1 = arith.constant 0 : i32
    return %c0_i32, %c0_i32_0 : i32, i32
  }
  func.func @transform_2(%arg0: i32) -> (i32, i32) {
    %c0_i32 = arith.constant 0 : i32
    %c0_i32_0 = arith.constant 0 : i32
    %c0_i32_1 = arith.constant 0 : i32
    return %c0_i32, %c0_i32_0 : i32, i32
  }
  func.func @transform_3(%arg0: i32) -> (i32, i32, i32) {
    %c0_i32 = arith.constant 0 : i32
    %c0_i32_0 = arith.constant 0 : i32
    %c0_i32_1 = arith.constant 0 : i32
    return %arg0, %c0_i32, %c0_i32_0 : i32, i32, i32
  }
}

</mosaic_0001>

<bundles_post_ra>
// kernel: tpu_custom_call.1
= control target key start
LH: loop header
LB: loop body
LE: loop exit
PB: predicated region body
PF: predicated region fallthrough
CT: control target
= control target key end

     0   :  { %8 = vsyncpa [#allocation3], 0  ;;  %s17707_s0 = inlined_call_operand.vmem [shape: f32[2,16,256], index: 0, kind: input, shape index: {}]   ;;  %s17708_s1 = inlined_call_operand.vmem [shape: f32[16,10], index: 1, kind: input, shape index: {}]   ;;  %s17709_s2 = inlined_call_operand.vmem [shape: f32[100,16], index: 2, kind: input, shape index: {}]   ;;  %s17710_s3 = inlined_call_operand.hbm [shape: f32[2,16,256], index: 3, kind: output, shape index: {}]  }
   0x1   :  { %10 = vsyncpa [#allocation3 + $0x1], 0  ;;  %s8765_s12 = smov 0   ;;  %s8767_s13 = smov 0  }
   0x2   :  { %s8769_s14 = smov 0   ;;  %s8771_s15 = smov 0  }
   0x3 LB: > { %s8786_s16 = sadd.s32 4294967295, %s8726_s15   ;;  %s7223_s17 = sadd.s32 4294967294, %s8726_s15   ;;  %s8726_s15 = sphi %s8771_s15, %s21023_s15   ;;  %s8722_s14 = sphi %s8769_s14, %s21022_s14   ;;  %s8718_s13 = sphi %s8767_s13, %s21021_s13   ;;  %s8714_s12 = sphi %s8765_s12, %s21020_s12  }
   0x4   : > { %s8790_s18 = sadd.s32 1, %s8726_s15   ;;  %s91_s19 = sadd.s32 1, %s8722_s14 }
   0x5   : > { %s88_s20 = ssub.s32 %s8726_s15, %s8790_s18  ;;  %p101_p0 = scmp.ne.s32.totalorder %s8722_s14, %s8718_s13 }
   0x6   : > { %p89_p1 = scmp.eq.s32.totalorder %s88_s20, 0  ;;  %p102_p2 = scmp.eq.s32.totalorder %s8786_s16, 1 }
   0x7   : > { %p107_p3 = scmp.ne.s32.totalorder %s8718_s13, %s8714_s12  ;;  %p108_p4 = scmp.eq.s32.totalorder %s7223_s17, 1 }
   0x8   : > { %s8801_s21 = scalar_select %p89_p1, %s8722_s14, %s91_s19  }
   0x9   : > { %p8803_p5 = por %p102_p2, %p101_p0  ;;  %p8807_p6 = por %p108_p4, %p107_p3 }
   0xa   : > { %p7226_p7 = scmp.ge.s32.totalorder %s8726_s15, 1  ;;  %p140_p8 = scmp.lt.s32.totalorder %s8726_s15, 3 }
   0xc   : > { %p141_p9 = pnand %p7226_p7, %p140_p8 }
   0xe   : > { %144 = sbr.rel (%p141_p9) target bundleno = 4974 (0x136e), region = 32 }
  0x15   : > { %v8816_v0 = vld [vmem:[%s17708_s1] sm:$0xff]  ;;  %v8728_v1 = vmov 1   ;;  %v17713_v2 = vmov 0   ;;  %v8824_v3 = vld [vmem:[%s17708_s1 + $0x8] sm:$0xff]  ;;  %v17711_v4 = vmov 0.0   ;;  %p164_p10 = scmp.lt.s32.totalorder %s8786_s16, 1 }
  0x16   : > { %7573 = vset.pattern.permute.xlu1 %v8728_v1  ;;  %7572 = vset.pattern.permute.xlu0 %v17713_v2  ;;  %vm264_vm0 = vcmask 130048   ;;  %s8732_s27 = smov 122   ;;  %vm2903_vm1 = vcmask 1041409   ;;  %vm2905_vm2 = vcmask 1042434   ;;  %vm2907_vm3 = vcmask 1043459   ;;  %s161_s9 = sand.u32 1, %s8718_s13  }
  0x17   : > { %253 = vperm.xlu1 %7573, %v8816_v0   ;;  %240 = vperm.xlu0 %7572, %v8816_v0   ;;  %s165_s28 = scalar_select %p164_p10, %s8786_s16, 1  ;;  %vm2917_vm4 = vcmask 1043456   ;;  %vm2912_vm5 = vcmask 31744   ;;  %vm8737_vm6 = vmmov 0  }
  0x18   : > { %347 = vmatprep.mubr.f32.mxu1 %v17711_v4  ;;  %2986 = vmatprep.mubr.f32.mxu0 %v17711_v4  ;;  %s7227_s10 = sshll.u32 %s161_s9, 5  ;;  %s7400_s11 = sshll.u32 %s8786_s16, 9 }
  0x19   : > { %s7399_s29 = sshll.u32 %s165_s28, 5  ;;  %s163_s17 = scalar_lea.vmem [#allocation2], %s7227_s10 }
  0x1a   : > { %s168_s5 = scalar_lea.vmem %s17707_s0, %s7399_s29  ;;  %s7161_s19 = sshll.u32 %s163_s17, 4  ;;  %s17660_s19 = int_to_ptr.vmem [resolvable:$true] %s7161_s19 }
  0x1b   : > { %257 = vperm.xlu1 %7573, %v8824_v3   ;;  %245 = vperm.xlu0 %7572, %v8824_v3   ;;  %v170_v5 = vld [vmem:[%s168_s5] sm:$0xff]  ;;  %v172_v6 = vld [vmem:[%s168_s5 + $0x10] sm:$0xff]  ;;  %v171_v7 = vld [vmem:[%s168_s5 + $0x8] sm:$0xff]  ;;  %s17658_s25 = scalar_lea.hbm %s17710_s3, %s7400_s11  ;;  %s17666_s16 = scalar_lea.sflag [#allocation3], %s161_s9 }
  0x1c   : > { %v173_v8 = vld [vmem:[%s168_s5 + $0x18] sm:$0xff]  ;;  %v189_v9 = vadd.f32 %v172_v6, %v170_v5  ;;  %s8664_s26 = scalar_lea.vmem %s17660_s19, 512 }
  0x1d   : > { %v196_v10 = vadd.f32 %v173_v8, %v171_v7  ;;  %p8665_p11 = scmp.ne.s32.totalorder %s17660_s19, %s8664_s26 }
  0x1e   : > { %v190_v11 = vrot.slane %v189_v9, 4 }
  0x1f   : > { %v197_v12 = vrot.slane %v196_v10, 4  ;;  %p8666_p12 = pnand %p8665_p11, %p8803_p5 }
  0x20   : > { %v191_v13 = vadd.f32 %v190_v11, %v189_v9  ;;  %v176_v11 = vld [vmem:[%s17709_s2] sm:$0xff] }
  0x21   : > { %v198_v14 = vadd.f32 %v197_v12, %v196_v10  ;;  %v177_v12 = vld [vmem:[%s17709_s2 + $0x8] sm:$0xff]  ;;  %p8667_p13 = pneg %p8666_p12 }
  0x22   : > { %v192_v15 = vrot.slane %v191_v13, 2 }
  0x23   : > { %v199_v16 = vrot.slane %v198_v14, 2 }
  0x24   : > { %v193_v17 = vadd.f32 %v192_v15, %v191_v13  ;;  %v178_v13 = vld [vmem:[%s17709_s2 + $0x10] sm:$0xff]  ;;  %v180_v15 = vld [vmem:[%s17709_s2 + $0x20] sm:$0xff] }
  0x25   : > { %v200_v18 = vadd.f32 %v199_v16, %v198_v14  ;;  %v179_v14 = vld [vmem:[%s17709_s2 + $0x18] sm:$0xff]  ;;  %v181_v16 = vld [vmem:[%s17709_s2 + $0x28] sm:$0xff] }
  0x26   : > { %v194_v19 = vrot.slane %v193_v17, 1 }
  0x27   : > { %v201_v20 = vrot.slane %v200_v18, 1 }
  0x28   : > { %v195_v21 = vadd.f32 %v194_v19, %v193_v17 }
  0x29   : > { %v202_v22 = vadd.f32 %v201_v20, %v200_v18 }
  0x2a   : > { %v204_v23 = vmul.f32 0.0625, %v195_v21 }
  0x2b   : > { %v205_v24 = vmul.f32 0.0625, %v202_v22 }
  0x2c   : > { %v206_v25 = vsub.f32 %v170_v5, %v204_v23  ;;  %v208_v26 = vsub.f32 %v172_v6, %v204_v23 }
  0x2d   : > { %v207_v27 = vsub.f32 %v171_v7, %v205_v24  ;;  %v209_v28 = vsub.f32 %v173_v8, %v205_v24 }
  0x2e   : > { %v210_v29 = vmul.f32 %v206_v25, %v206_v25  ;;  %v212_v30 = vmul.f32 %v208_v26, %v208_v26 }
  0x2f   : > { %v211_v31 = vmul.f32 %v207_v27, %v207_v27  ;;  %v213_v32 = vmul.f32 %v209_v28, %v209_v28 }
  0x30   : > { %v214_v33 = vadd.f32 %v212_v30, %v210_v29 }
  0x31   : > { %v221_v34 = vadd.f32 %v213_v32, %v211_v31  ;;  %v8731_v31 = vmov 7   ;;  %v8733_v32 = vmov 8  }
  0x32   : > { %v215_v35 = vrot.slane %v214_v33, 4 }
  0x33   : > { %v222_v36 = vrot.slane %v221_v34, 4 }
  0x34   : > { %v216_v37 = vadd.f32 %v215_v35, %v214_v33  ;;  %v8734_v33 = vmov 6   ;;  %v448_v35 = vlaneseq }
  0x35   : > { %v223_v38 = vadd.f32 %v222_v36, %v221_v34  ;;  %v8735_v34 = vmov 9  }
  0x36   : > { %v217_v39 = vrot.slane %v216_v37, 2  ;;  %v449_v36 = vshrl.u32 %v448_v35, 7 }
  0x37   : > { %v224_v40 = vrot.slane %v223_v38, 2 }
  0x38   : > { %v218_v41 = vadd.f32 %v217_v39, %v216_v37  ;;  %v450_v37 = vsub.s32 0, %v449_v36  ;;  %v522_v39 = vsub.s32 2, %v449_v36 }
  0x39   : > { %v225_v42 = vadd.f32 %v224_v40, %v223_v38  ;;  %v486_v38 = vsub.s32 1, %v449_v36  ;;  %v558_v40 = vsub.s32 3, %v449_v36 }
  0x3a   : > { %v219_v43 = vrot.slane %v218_v41, 1 }
  0x3b   : > { %v226_v44 = vrot.slane %v225_v42, 1 }
  0x3c   : > { %v220_v45 = vadd.f32 %v219_v43, %v218_v41  ;;  %v188_v41 = vld [vmem:[%s17709_s2 + $0x60] sm:$0xf] }
  0x3d   : > { %v227_v46 = vadd.f32 %v226_v44, %v225_v42  ;;  %v8900_v42 = vrot.slane %v188_v41, %v450_v37  ;;  %v8904_v43 = vrot.slane %v188_v41, %v522_v39 }
  0x3e   : > { %v228_v47 = vmul.f32 0.0625, %v220_v45 }
  0x3f   : > { %v229_v48 = vmul.f32 0.0625, %v227_v46  ;;  %18645 = vst [vmem:[#allocation9_spill] sm:$0xff] %v8900_v42  ;;  %18647 = vst [vmem:[#allocation11_spill] sm:$0xff] %v8904_v43 }
  0x40   : > { %v230_v49 = vadd.f32 1e-06, %v228_v47 }
  0x41   : > { %v231_v50 = vadd.f32 1e-06, %v229_v48 }
  0x42   : > { %7594 = vrsqrt.f32 %v230_v49 }
  0x43   : > { %7596 = vrsqrt.f32 %v231_v50 }
  0x4c   : > { %v7595_v51 = vpop.eup %7594 }
  0x4d   : > { %v7597_v52 = vpop.eup %7596  ;;  %v234_v53 = vmul.f32 %v7595_v51, %v206_v25  ;;  %v236_v57 = vmul.f32 %v7595_v51, %v208_v26 }
  0x4e   : > { %v235_v54 = vmul.f32 %v7597_v52, %v207_v27  ;;  %v237_v58 = vmul.f32 %v7597_v52, %v209_v28 }
  0x96   : > { %v254_v55 = vpop.permute.xlu1 %253  ;;  %v241_v56 = vpop.permute.xlu0 %240 }
  0x97   : > { %v248_v59 = vmul.f32 %v241_v56, %v234_v53  ;;  %v249_v60 = vmul.f32 %v241_v56, %v235_v54 }
  0x99   : > { %v8835_v5 = vadd.f32 %v254_v55, %v249_v60  ;;  %v8839_v7 = vadd.f32 %v254_v55, %v248_v59 }
  0x9a   : > { %v246_v61 = vpop.permute.xlu0 %245  ;;  %v258_v1 = vpop.permute.xlu1 %257 }
  0x9b   : > { %v250_v62 = vmul.f32 %v246_v61, %v236_v57  ;;  %v251_v63 = vmul.f32 %v246_v61, %v237_v58  ;;  %18641 = vst [vmem:[#allocation5_spill] sm:$0xff] %v8835_v5  ;;  %18643 = vst [vmem:[#allocation7_spill] sm:$0xff] %v8839_v7 }
  0x9d   : > { %v8837_v6 = vadd.f32 %v258_v1, %v251_v63  ;;  %v8841_v8 = vadd.f32 %v258_v1, %v250_v62 }
  0x9f   : > { %18642 = vst [vmem:[#allocation6_spill] sm:$0xff] %v8837_v6  ;;  %18644 = vst [vmem:[#allocation8_spill] sm:$0xff] %v8841_v8  ;;  %v7473_v9 = vpack.c.bf16 %v8837_v6, %v8835_v5  ;;  %v7475_v10 = vpack.c.bf16 %v8841_v8, %v8839_v7 }
  0xa1   : > { %7474 = vmatprep.subr.bf16.mxu1 %v7473_v9 }
  0xa2   : > { %7476 = vmatpush1.bf16.msra.mxu1 %v7475_v10 }
  0xa5   : > { %7230 = vmatmul.mubr.msk.f32.vlgmr.msra.gmra.mrb[0].mxu1 %vm264_vm0, %v176_v11 }
  0xa6   : > { %353 = vmatprep.mubr.f32.mxu1 %v17711_v4 }
  0xa9   : > { %7231 = vmatmul.mubr.msk.f32.gmra.mrb[2].mxu1 %vm264_vm0, %v177_v12 }
  0xaa   : > { %359 = vmatprep.mubr.f32.mxu1 %v17711_v4 }
  0xad   : > { %7232 = vmatmul.mubr.msk.f32.gmra.mrb[4].mxu1 %vm264_vm0, %v178_v13 }
  0xae   : > { %365 = vmatprep.mubr.f32.mxu1 %v17711_v4 }
  0xb1   : > { %7233 = vmatmul.mubr.msk.f32.gmra.mrb[6].mxu1 %vm264_vm0, %v179_v14 }
  0xb2   : > { %371 = vmatprep.mubr.f32.mxu1 %v17711_v4 }
  0xb5   : > { %7234 = vmatmul.mubr.msk.f32.gmra.mrb[8].mxu1 %vm264_vm0, %v180_v15 }
  0xb6   : > { %377 = vmatprep.mubr.f32.mxu1 %v17711_v4 }
  0xb9   : > { %7235 = vmatmul.mubr.msk.f32.gmra.mrb[10].mxu1 %vm264_vm0, %v181_v16 }
  0xba   : > { %882 = vmatprep.mubr.bf16.mxu1 %v17713_v2 }
 0x178   : > { %v8877_v17 = vpop.f32.mrb[0].mxu1 }
 0x179   : > { %v8879_v18 = vpop.f32.mrb[1].mxu1 }
 0x17c   : > { %v8881_v19 = vpop.f32.mrb[2].mxu1 }
 0x17d   : > { %v8883_v20 = vpop.f32.mrb[3].mxu1 }
 0x180   : > { %v361_v21 = vpop.f32.mrb[4].mxu1 }
 0x181   : > { %v363_v22 = vpop.f32.mrb[5].mxu1 }
 0x184   : > { %v367_v23 = vpop.f32.mrb[6].mxu1 }
 0x185   : > { %v656_v24 = vpack.c.bf16 %v367_v23, %v361_v21  ;;  %v369_v25 = vpop.f32.mrb[7].mxu1 }
 0x186   : > { %v657_v26 = vpack.c.bf16 %v369_v25, %v363_v22 }
 0x188   : > { %v373_v27 = vpop.f32.mrb[8].mxu1  ;;  %850 = vmatprep.subr.bf16.mxu1 %v657_v26 }
 0x189   : > { %851 = vmatpush1.bf16.msra.mxu1 %v656_v24  ;;  %384 = vxpose.xlu0.b32.start [1/2] (short) %v373_v27, 128  ;;  %v375_v28 = vpop.f32.mrb[9].mxu1 }
 0x18a   : > { %416 = vxpose.xlu1.b32.start [1/2] (short) %v375_v28, 128 }
 0x18c   : > { %v379_v29 = vpop.f32.mrb[10].mxu1 }
 0x18d   : > { %385 = vxpose.xlu0.b32.end [2/2] (short) %v379_v29, 128  ;;  %v381_v30 = vpop.f32.mrb[11].mxu1 }
 0x18e   : > { %417 = vxpose.xlu1.b32.end [2/2] (short) %v381_v30, 128 }
 0x1ac   : > { %7574 = vset.pattern.permute.xlu1 %v8731_v31 }
 0x1b6   : > { %7575 = vset.pattern.permute.xlu0 %v8731_v31 }
 0x1e4   : > { %3012 = vperm.xlu1 %7574, %v8816_v0  }
 0x1e8   : > { %2893 = vrot.lane.b32.xlu1 %v8824_v3, %s8732_s27 }
 0x1e9   : > { %7576 = vset.pattern.permute.xlu1 %v8733_v32 }
 0x1ec   : > { %3024 = vperm.xlu1 %7576, %v8816_v0  }
 0x1ee   : > { %2891 = vrot.lane.b32.xlu0 %v8816_v0, %s8732_s27  ;;  %s8742_s27 = smov [#allocation2]  }
 0x1ef   : > { %s8668_s28 = sshll.u32 %s8742_s27, 4  ;;  %s8669_s28 = int_to_ptr.vmem [resolvable:$false] %s8668_s28 }
 0x1f0   : > { %7578 = vset.pattern.permute.xlu1 %v8734_v33  ;;  %s8670_s29 = scalar_lea.vmem %s8669_s28, 1024  ;;  %p8671_p0 = scmp.lt.s32.totalorder %s17660_s19, %s8669_s28 }
 0x1f1   : > { %3000 = vperm.xlu1 %7578, %v8816_v0   ;;  %p8672_p1 = scmp.lt.s32.totalorder %s8670_s29, %s8664_s26 }
 0x1f2   : > { %3016 = vperm.xlu0 %7575, %v8824_v3  }
 0x1f3   : > { %p8673_p2 = por %p8672_p1, %p8671_p0 }
 0x1f5   : > { %3004 = vperm.xlu1 %7578, %v8824_v3   ;;  %p8674_p3 = pnand %p8673_p2, %p8667_p13 }
 0x1f6   : > { %7577 = vset.pattern.permute.xlu0 %v8733_v32 }
 0x1f7   : > { %3028 = vperm.xlu0 %7577, %v8824_v3  }
 0x1f9   : > { %7580 = vset.pattern.permute.xlu1 %v8735_v34 }
 0x1fa   : > { %3040 = vperm.xlu1 %7580, %v8824_v3   ;;  %v8902_v3 = vrot.slane %v188_v41, %v486_v38 }
 0x1fb   : > { %7579 = vset.pattern.permute.xlu0 %v8735_v34 }
 0x1fc   : > { %3036 = vperm.xlu0 %7579, %v8816_v0   ;;  %18646 = vst [vmem:[#allocation10_spill] sm:$0xff] %v8902_v3  ;;  %v8906_v0 = vrot.slane %v188_v41, %v558_v40 }
 0x1fe   : > { %7582 = vset.pattern.permute.xlu1 %v17713_v2  ;;  %18648 = vst [vmem:[#allocation12_spill] sm:$0xff] %v8906_v0 }
 0x200   : > { %7581 = vset.pattern.permute.xlu0 %v17713_v2 }
 0x209   : > { %v400_v44 = vpop.trf.xlu0 }
 0x20a   : > { %v8908_v45 = vpop.trf.xlu1  ;;  %v452_v46 = vmul.f32 %v8900_v42, %v400_v44  ;;  %v8912_v47 = vmul.f32 %v8902_v3, %v400_v44  ;;  %v8915_v48 = vmul.f32 %v8904_v43, %v400_v44  ;;  %v8918_v49 = vmul.f32 %v8906_v0, %v400_v44 }
 0x20b   : > { %18649 = vst [vmem:[#allocation13_spill] sm:$0xff] %v8908_v45 }
 0x20c   : > { %18650 = vst [vmem:[#allocation14_spill] sm:$0xff] %v8915_v48  ;;  %18651 = vst [vmem:[#allocation15_spill] sm:$0xff] %v8918_v49 }
 0x20d   : > { %v401_v50 = vpop.trf.xlu0 }
 0x20e   : > { %v453_v51 = vmul.f32 %v8900_v42, %v401_v50  ;;  %v8922_v52 = vmul.f32 %v8902_v3, %v401_v50  ;;  %v8925_v53 = vmul.f32 %v8904_v43, %v401_v50  ;;  %v8928_v54 = vmul.f32 %v8906_v0, %v401_v50  ;;  %v8930_v55 = vpop.trf.xlu1 }
 0x20f   : > { %18654 = vst [vmem:[#allocation18_spill] sm:$0xff] %v8930_v55 }
 0x210   : > { %18652 = vst [vmem:[#allocation16_spill] sm:$0xff] %v8925_v53  ;;  %18653 = vst [vmem:[#allocation17_spill] sm:$0xff] %v8928_v54  ;;  %v592_v56 = vpack.c.bf16 %v453_v51, %v452_v46 }
 0x211   : > { %v402_v60 = vpop.trf.xlu0 }
 0x212   : > { %7236 = vmatmul.mubr.msk.bf16.vlgmr.msra.gmra.mrb[12].mxu1 %vm264_vm0, %v592_v56  ;;  %v8939_v61 = vpop.trf.xlu1  ;;  %v454_v62 = vmul.f32 %v8900_v42, %v402_v60  ;;  %v8944_v63 = vmul.f32 %v8902_v3, %v402_v60  ;;  %v8947_v1 = vmul.f32 %v8904_v43, %v402_v60  ;;  %v8950_v9 = vmul.f32 %v8906_v0, %v402_v60 }
 0x213   : > { %18655 = vst [vmem:[#allocation19_spill] sm:$0xff] %v8939_v61  ;;  %892 = vmatprep.mubr.bf16.mxu1 %v17713_v2 }
 0x214   : > { %18656 = vst [vmem:[#allocation20_spill] sm:$0xff] %v8947_v1  ;;  %18657 = vst [vmem:[#allocation21_spill] sm:$0xff] %v8950_v9 }
 0x215   : > { %v403_v10 = vpop.trf.xlu0 }
 0x216   : > { %v455_v11 = vmul.f32 %v8900_v42, %v403_v10  ;;  %v8954_v12 = vmul.f32 %v8902_v3, %v403_v10  ;;  %v8957_v13 = vmul.f32 %v8904_v43, %v403_v10  ;;  %v8960_v14 = vmul.f32 %v8906_v0, %v403_v10  ;;  %v8962_v15 = vpop.trf.xlu1 }
 0x217   : > { %18660 = vst [vmem:[#allocation24_spill] sm:$0xff] %v8962_v15 }
 0x218   : > { %18658 = vst [vmem:[#allocation22_spill] sm:$0xff] %v8957_v13  ;;  %18659 = vst [vmem:[#allocation23_spill] sm:$0xff] %v8960_v14  ;;  %v593_v16 = vpack.c.bf16 %v455_v11, %v454_v62 }
 0x219   : > { %v404_v24 = vpop.trf.xlu0 }
 0x21a   : > { %7237 = vmatmul.mubr.msk.bf16.gmra.mrb[16].mxu1 %vm264_vm0, %v593_v16  ;;  %v8971_v25 = vpop.trf.xlu1  ;;  %v456_v26 = vmul.f32 %v8900_v42, %v404_v24  ;;  %v8976_v27 = vmul.f32 %v8902_v3, %v404_v24  ;;  %v8979_v28 = vmul.f32 %v8904_v43, %v404_v24  ;;  %v8982_v29 = vmul.f32 %v8906_v0, %v404_v24 }
 0x21b   : > { %18661 = vst [vmem:[#allocation25_spill] sm:$0xff] %v8971_v25  ;;  %902 = vmatprep.mubr.bf16.mxu1 %v17713_v2 }
 0x21c   : > { %18662 = vst [vmem:[#allocation26_spill] sm:$0xff] %v8979_v28  ;;  %18663 = vst [vmem:[#allocation27_spill] sm:$0xff] %v8982_v29 }
 0x21d   : > { %v405_v30 = vpop.trf.xlu0 }
 0x21e   : > { %v457_v31 = vmul.f32 %v8900_v42, %v405_v30  ;;  %v8986_v32 = vmul.f32 %v8902_v3, %v405_v30  ;;  %v8989_v33 = vmul.f32 %v8904_v43, %v405_v30  ;;  %v8992_v34 = vmul.f32 %v8906_v0, %v405_v30  ;;  %v8994_v35 = vpop.trf.xlu1 }
 0x21f   : > { %18666 = vst [vmem:[#allocation30_spill] sm:$0xff] %v8994_v35 }
 0x220   : > { %18664 = vst [vmem:[#allocation28_spill] sm:$0xff] %v8989_v33  ;;  %18665 = vst [vmem:[#allocation29_spill] sm:$0xff] %v8992_v34  ;;  %v594_v36 = vpack.c.bf16 %v457_v31, %v456_v26 }
 0x221   : > { %v406_v40 = vpop.trf.xlu0 }
 0x222   : > { %7238 = vmatmul.mubr.msk.bf16.gmra.mrb[20].mxu1 %vm264_vm0, %v594_v36  ;;  %v9003_v41 = vpop.trf.xlu1  ;;  %v458_v44 = vmul.f32 %v8900_v42, %v406_v40  ;;  %v9008_v46 = vmul.f32 %v8902_v3, %v406_v40  ;;  %v9011_v50 = vmul.f32 %v8904_v43, %v406_v40  ;;  %v9014_v51 = vmul.f32 %v8906_v0, %v406_v40 }
 0x223   : > { %912 = vmatprep.mubr.bf16.mxu1 %v17713_v2  ;;  %v9018_v60 = vmul.f32 %v8902_v3, %v9003_v41  ;;  %v9022_v62 = vmul.f32 %v8904_v43, %v9003_v41  ;;  %v9026_v10 = vmul.f32 %v8906_v0, %v9003_v41 }
 0x224   : > { %18667 = vst [vmem:[#allocation31_spill] sm:$0xff] %v9011_v50  ;;  %18668 = vst [vmem:[#allocation32_spill] sm:$0xff] %v9014_v51 }
 0x225   : > { %v407_v56 = vpop.trf.xlu0  ;;  %18669 = vst [vmem:[#allocation33_spill] sm:$0xff] %v9022_v62  ;;  %18670 = vst [vmem:[#allocation34_spill] sm:$0xff] %v9026_v10 }
 0x226   : > { %v459_v11 = vmul.f32 %v8900_v42, %v407_v56  ;;  %v9030_v16 = vmul.f32 %v8902_v3, %v407_v56  ;;  %v9033_v24 = vmul.f32 %v8904_v43, %v407_v56  ;;  %v9036_v26 = vmul.f32 %v8906_v0, %v407_v56  ;;  %v9038_v30 = vpop.trf.xlu1 }
 0x227   : > { %v9042_v31 = vmul.f32 %v8902_v3, %v9038_v30  ;;  %v9046_v36 = vmul.f32 %v8904_v43, %v9038_v30  ;;  %v9050_v40 = vmul.f32 %v8906_v0, %v9038_v30 }
 0x228   : > { %18671 = vst [vmem:[#allocation35_spill] sm:$0xff] %v9033_v24  ;;  %18672 = vst [vmem:[#allocation36_spill] sm:$0xff] %v9036_v26  ;;  %v595_v4 = vpack.c.bf16 %v459_v11, %v458_v44 }
 0x229   : > { %18673 = vst [vmem:[#allocation37_spill] sm:$0xff] %v9046_v36  ;;  %18674 = vst [vmem:[#allocation38_spill] sm:$0xff] %v9050_v40  ;;  %v408_v59 = vpop.trf.xlu0 }
 0x22a   : > { %7239 = vmatmul.mubr.msk.bf16.gmra.mrb[24].mxu1 %vm264_vm0, %v595_v4  ;;  %v9065_v44 = vpop.trf.xlu1  ;;  %v460_v11 = vmul.f32 %v8900_v42, %v408_v59  ;;  %v9070_v23 = vmul.f32 %v8902_v3, %v408_v59  ;;  %v9073_v56 = vmul.f32 %v8904_v43, %v408_v59  ;;  %v9076_v38 = vmul.f32 %v8906_v0, %v408_v59 }
 0x22b   : > { %922 = vmatprep.mubr.bf16.mxu1 %v17713_v2  ;;  %v9080_v58 = vmul.f32 %v8902_v3, %v9065_v44  ;;  %v9084_v4 = vmul.f32 %v8904_v43, %v9065_v44  ;;  %v9088_v39 = vmul.f32 %v8906_v0, %v9065_v44 }
 0x22c   : > { %18675 = vst [vmem:[#allocation39_spill] sm:$0xff] %v9073_v56  ;;  %18676 = vst [vmem:[#allocation40_spill] sm:$0xff] %v9076_v38 }
 0x22d   : > { %v409_v22 = vpop.trf.xlu0  ;;  %18677 = vst [vmem:[#allocation41_spill] sm:$0xff] %v9084_v4  ;;  %18678 = vst [vmem:[#allocation42_spill] sm:$0xff] %v9088_v39 }
 0x22e   : > { %v461_v37 = vmul.f32 %v8900_v42, %v409_v22  ;;  %v9092_v21 = vmul.f32 %v8902_v3, %v409_v22  ;;  %v9095_v59 = vmul.f32 %v8904_v43, %v409_v22  ;;  %v9098_v57 = vmul.f32 %v8906_v0, %v409_v22  ;;  %v9100_v2 = vpop.trf.xlu1 }
 0x22f   : > { %v9104_v6 = vmul.f32 %v8902_v3, %v9100_v2  ;;  %v9108_v8 = vmul.f32 %v8904_v43, %v9100_v2  ;;  %v9112_v5 = vmul.f32 %v8906_v0, %v9100_v2 }
 0x230   : > { %18679 = vst [vmem:[#allocation43_spill] sm:$0xff] %v9095_v59  ;;  %18680 = vst [vmem:[#allocation44_spill] sm:$0xff] %v9098_v57  ;;  %v596_v7 = vpack.c.bf16 %v461_v37, %v460_v11  ;;  %v18683_v11 = vmov 0  }
 0x231   : > { %18681 = vst [vmem:[#allocation45_spill] sm:$0xff] %v9108_v8  ;;  %18682 = vst [vmem:[#allocation46_spill] sm:$0xff] %v9112_v5  ;;  %v410_v51 = vpop.trf.xlu0 }
 0x232   : > { %7240 = vmatmul.mubr.msk.bf16.gmra.mrb[28].mxu1 %vm264_vm0, %v596_v7  ;;  %v9127_v37 = vpop.trf.xlu1  ;;  %v462_v22 = vmul.f32 %v8900_v42, %v410_v51  ;;  %v9132_v40 = vmul.f32 %v8902_v3, %v410_v51  ;;  %v9135_v10 = vmul.f32 %v8904_v43, %v410_v51  ;;  %v9138_v26 = vmul.f32 %v8906_v0, %v410_v51 }
 0x233   : > { %932 = vmatprep.mubr.bf16.mxu1 %v18683_v11  ;;  %v9142_v34 = vmul.f32 %v8902_v3, %v9127_v37  ;;  %v9146_v7 = vmul.f32 %v8904_v43, %v9127_v37  ;;  %v9150_v39 = vmul.f32 %v8906_v0, %v9127_v37 }
 0x234   : > { %18684 = vst [vmem:[#allocation47_spill] sm:$0xff] %v9135_v10  ;;  %18685 = vst [vmem:[#allocation48_spill] sm:$0xff] %v9138_v26 }
 0x235   : > { %v411_v29 = vpop.trf.xlu0  ;;  %18686 = vst [vmem:[#allocation49_spill] sm:$0xff] %v9146_v7  ;;  %18687 = vst [vmem:[#allocation50_spill] sm:$0xff] %v9150_v39 }
 0x236   : > { %v463_v5 = vmul.f32 %v8900_v42, %v411_v29  ;;  %v9154_v38 = vmul.f32 %v8902_v3, %v411_v29  ;;  %v9157_v51 = vmul.f32 %v8904_v43, %v411_v29  ;;  %v9160_v57 = vmul.f32 %v8906_v0, %v411_v29  ;;  %v9162_v9 = vpop.trf.xlu1 }
 0x237   : > { %v9166_v14 = vmul.f32 %v8902_v3, %v9162_v9  ;;  %v9170_v49 = vmul.f32 %v8904_v43, %v9162_v9  ;;  %v9174_v54 = vmul.f32 %v8906_v0, %v9162_v9 }
 0x238   : > { %18688 = vst [vmem:[#allocation51_spill] sm:$0xff] %v9157_v51  ;;  %18689 = vst [vmem:[#allocation52_spill] sm:$0xff] %v9160_v57  ;;  %v597_v4 = vpack.c.bf16 %v463_v5, %v462_v22 }
 0x239   : > { %18690 = vst [vmem:[#allocation53_spill] sm:$0xff] %v9170_v49  ;;  %18691 = vst [vmem:[#allocation54_spill] sm:$0xff] %v9174_v54  ;;  %v412_v36 = vpop.trf.xlu0 }
 0x23a   : > { %7241 = vmatmul.mubr.msk.bf16.gmra.mrb[32].mxu1 %vm264_vm0, %v597_v4  ;;  %v9189_v5 = vpop.trf.xlu1  ;;  %v464_v22 = vmul.f32 %v8900_v42, %v412_v36  ;;  %v9194_v62 = vmul.f32 %v8902_v3, %v412_v36  ;;  %v9197_v29 = vmul.f32 %v8904_v43, %v412_v36  ;;  %v9200_v56 = vmul.f32 %v8906_v0, %v412_v36 }
 0x23b   : > { %942 = vmatprep.mubr.bf16.mxu1 %v18683_v11  ;;  %v9204_v50 = vmul.f32 %v8902_v3, %v9189_v5  ;;  %v9208_v4 = vmul.f32 %v8904_v43, %v9189_v5  ;;  %v9212_v8 = vmul.f32 %v8906_v0, %v9189_v5 }
 0x23c   : > { %18692 = vst [vmem:[#allocation55_spill] sm:$0xff] %v9197_v29  ;;  %18693 = vst [vmem:[#allocation56_spill] sm:$0xff] %v9200_v56 }
 0x23d   : > { %v413_v59 = vpop.trf.xlu0  ;;  %18694 = vst [vmem:[#allocation57_spill] sm:$0xff] %v9204_v50  ;;  %18695 = vst [vmem:[#allocation58_spill] sm:$0xff] %v9208_v4 }
 0x23e   : > { %18696 = vst [vmem:[#allocation59_spill] sm:$0xff] %v9212_v8  ;;  %v465_v39 = vmul.f32 %v8900_v42, %v413_v59  ;;  %v9216_v54 = vmul.f32 %v8902_v3, %v413_v59  ;;  %v9219_v36 = vmul.f32 %v8904_v43, %v413_v59  ;;  %v9222_v26 = vmul.f32 %v8906_v0, %v413_v59  ;;  %v9224_v57 = vpop.trf.xlu1 }
 0x23f   : > { %v9228_v7 = vmul.f32 %v8902_v3, %v9224_v57  ;;  %v9232_v49 = vmul.f32 %v8904_v43, %v9224_v57  ;;  %v9236_v10 = vmul.f32 %v8906_v0, %v9224_v57 }
 0x240   : > { %18697 = vst [vmem:[#allocation60_spill] sm:$0xff] %v9219_v36  ;;  %18698 = vst [vmem:[#allocation61_spill] sm:$0xff] %v9222_v26  ;;  %v598_v51 = vpack.c.bf16 %v465_v39, %v464_v22 }
 0x241   : > { %18699 = vst [vmem:[#allocation62_spill] sm:$0xff] %v9228_v7  ;;  %18700 = vst [vmem:[#allocation63_spill] sm:$0xff] %v9232_v49  ;;  %v414_v33 = vpop.trf.xlu0  ;;  %v470_v7 = vmul.f32 %v8900_v42, %v8939_v61 }
 0x242   : > { %18701 = vst [vmem:[#allocation64_spill] sm:$0xff] %v9236_v10  ;;  %7242 = vmatmul.mubr.msk.bf16.gmra.mrb[36].mxu1 %vm264_vm0, %v598_v51  ;;  %v9251_v39 = vpop.trf.xlu1  ;;  %v466_v22 = vmul.f32 %v8900_v42, %v414_v33  ;;  %v9256_v28 = vmul.f32 %v8902_v3, %v414_v33  ;;  %v9259_v59 = vmul.f32 %v8904_v43, %v414_v33 }
 0x243   : > { %952 = vmatprep.mubr.bf16.mxu1 %v18683_v11  ;;  %v9262_v1 = vmul.f32 %v8906_v0, %v414_v33  ;;  %v9266_v48 = vmul.f32 %v8902_v3, %v9251_v39  ;;  %v9270_v51 = vmul.f32 %v8904_v43, %v9251_v39  ;;  %v9274_v24 = vmul.f32 %v8906_v0, %v9251_v39 }
 0x245   : > { %18702 = vst [vmem:[#allocation65_spill] sm:$0xff] %v9262_v1  ;;  %v415_v13 = vpop.trf.xlu0  ;;  %18703 = vst [vmem:[#allocation66_spill] sm:$0xff] %v9270_v51 }
 0x246   : > { %18704 = vst [vmem:[#allocation67_spill] sm:$0xff] %v9274_v24  ;;  %v467_v8 = vmul.f32 %v8900_v42, %v415_v13  ;;  %v9278_v10 = vmul.f32 %v8902_v3, %v415_v13  ;;  %v9281_v33 = vmul.f32 %v8904_v43, %v415_v13  ;;  %v9284_v56 = vmul.f32 %v8906_v0, %v415_v13  ;;  %v9286_v26 = vpop.trf.xlu1 }
 0x247   : > { %v9290_v4 = vmul.f32 %v8902_v3, %v9286_v26  ;;  %v9294_v49 = vmul.f32 %v8904_v43, %v9286_v26  ;;  %v9298_v29 = vmul.f32 %v8906_v0, %v9286_v26  ;;  %v471_v0 = vmul.f32 %v8900_v42, %v8962_v15 }
 0x248   : > { %18705 = vst [vmem:[#allocation68_spill] sm:$0xff] %v9284_v56  ;;  %v599_v36 = vpack.c.bf16 %v467_v8, %v466_v22  ;;  %v468_v8 = vmul.f32 %v8900_v42, %v8908_v45  ;;  %v469_v22 = vmul.f32 %v8900_v42, %v8930_v55  ;;  %v472_v13 = vmul.f32 %v8900_v42, %v8971_v25 }
 0x249   : > { %18706 = vst [vmem:[#allocation69_spill] sm:$0xff] %v9294_v49  ;;  %18707 = vst [vmem:[#allocation70_spill] sm:$0xff] %v9298_v29 }
 0x24a   : > { %7243 = vmatmul.mubr.msk.bf16.gmra.mrb[40].mxu1 %vm264_vm0, %v599_v36  ;;  %v600_v50 = vpack.c.bf16 %v469_v22, %v468_v8  ;;  %v601_v36 = vpack.c.bf16 %v471_v0, %v470_v7  ;;  %v473_v8 = vmul.f32 %v8900_v42, %v8994_v35  ;;  %v474_v0 = vmul.f32 %v8900_v42, %v9003_v41 }
 0x24b   : > { %962 = vmatprep.mubr.bf16.mxu1 %v18683_v11  ;;  %v475_v7 = vmul.f32 %v8900_v42, %v9038_v30  ;;  %v477_v41 = vmul.f32 %v8900_v42, %v9100_v2 }
 0x24d   : > { %v603_v43 = vpack.c.bf16 %v475_v7, %v474_v0 }
 0x252   : > { %7244 = vmatmul.mubr.msk.bf16.gmra.mrb[44].mxu1 %vm264_vm0, %v600_v50  ;;  %v602_v50 = vpack.c.bf16 %v473_v8, %v472_v13  ;;  %v476_v8 = vmul.f32 %v8900_v42, %v9065_v44  ;;  %v478_v44 = vmul.f32 %v8900_v42, %v9127_v37 }
 0x253   : > { %972 = vmatprep.mubr.bf16.mxu1 %v18683_v11 }
 0x254   : > { %v604_v30 = vpack.c.bf16 %v477_v41, %v476_v8  ;;  %v479_v8 = vmul.f32 %v8900_v42, %v9162_v9 }
 0x25a   : > { %7245 = vmatmul.mubr.msk.bf16.gmra.mrb[48].mxu1 %vm264_vm0, %v601_v36 }
 0x25b   : > { %982 = vmatprep.mubr.bf16.mxu1 %v18683_v11 }
 0x260   : > { %v9343_v13 = vpop.permute.xlu0 %2891 }
 0x261   : > { %18711 = vst [vmem:[#allocation74_spill] sm:$0xff] %v9343_v13 }
 0x262   : > { %7246 = vmatmul.mubr.msk.bf16.gmra.mrb[52].mxu1 %vm264_vm0, %v602_v50 }
 0x263   : > { %v9331_v22 = vpop.permute.xlu1 %3012  ;;  %992 = vmatprep.mubr.bf16.mxu1 %v18683_v11 }
 0x264   : > { %18708 = vst [vmem:[#allocation71_spill] sm:$0xff] %v9331_v22  ;;  %v9360_v0 = vmul.f32 %v9331_v22, %v8879_v18 }
 0x266   : > { %18715 = vst [vmem:[#allocation78_spill] sm:$0xff] %v9360_v0 }
 0x267   : > { %v9338_v36 = vpop.permute.xlu1 %2893 }
 0x268   : > { %18709 = vst [vmem:[#allocation72_spill] sm:$0xff] %v9338_v36 }
 0x26a   : > { %7247 = vmatmul.mubr.msk.bf16.gmra.mrb[56].mxu1 %vm264_vm0, %v603_v43  ;;  %v9356_v43 = vmul.f32 %v9331_v22, %v8877_v17 }
 0x26b   : > { %v9341_v53 = vpop.permute.xlu1 %3024  ;;  %1002 = vmatprep.mubr.bf16.mxu1 %v18683_v11 }
 0x26c   : > { %18710 = vst [vmem:[#allocation73_spill] sm:$0xff] %v9341_v53  ;;  %18714 = vst [vmem:[#allocation77_spill] sm:$0xff] %v9356_v43  ;;  %v9400_v41 = vmul.f32 %v9341_v53, %v8877_v17  ;;  %v9404_v36 = vmul.f32 %v9341_v53, %v8879_v18 }
 0x26e   : > { %18723 = vst [vmem:[#allocation86_spill] sm:$0xff] %v9400_v41  ;;  %18724 = vst [vmem:[#allocation87_spill] sm:$0xff] %v9404_v36 }
 0x270   : > { %v9350_v50 = vpop.permute.xlu1 %3000 }
 0x271   : > { %18712 = vst [vmem:[#allocation75_spill] sm:$0xff] %v9350_v50  ;;  %v9352_v24 = vpop.permute.xlu0 %3016 }
 0x272   : > { %18713 = vst [vmem:[#allocation76_spill] sm:$0xff] %v9352_v24  ;;  %v9364_v7 = vmul.f32 %v9352_v24, %v8881_v19  ;;  %v9368_v2 = vmul.f32 %v9352_v24, %v8883_v20  ;;  %7248 = vmatmul.mubr.msk.bf16.gmra.mrb[60].mxu1 %vm264_vm0, %v604_v30  ;;  %v9384_v24 = vmul.f32 %v9350_v50, %v8877_v17 }
 0x273   : > { %1012 = vmatprep.mubr.bf16.mxu1 %v18683_v11  ;;  %v9388_v30 = vmul.f32 %v9350_v50, %v8879_v18 }
 0x274   : > { %18716 = vst [vmem:[#allocation79_spill] sm:$0xff] %v9364_v7  ;;  %18717 = vst [vmem:[#allocation80_spill] sm:$0xff] %v9368_v2  ;;  %v9378_v22 = vpop.permute.xlu1 %3004  ;;  %v605_v2 = vpack.c.bf16 %v479_v8, %v478_v44 }
 0x275   : > { %18718 = vst [vmem:[#allocation81_spill] sm:$0xff] %v9378_v22  ;;  %18719 = vst [vmem:[#allocation82_spill] sm:$0xff] %v9384_v24  ;;  %v9392_v37 = vmul.f32 %v9378_v22, %v8881_v19  ;;  %v9396_v9 = vmul.f32 %v9378_v22, %v8883_v20  ;;  %v480_v24 = vmul.f32 %v8900_v42, %v9189_v5 }
 0x276   : > { %18720 = vst [vmem:[#allocation83_spill] sm:$0xff] %v9388_v30  ;;  %v9406_v43 = vpop.permute.xlu0 %3028 }
 0x277   : > { %18721 = vst [vmem:[#allocation84_spill] sm:$0xff] %v9392_v37  ;;  %18722 = vst [vmem:[#allocation85_spill] sm:$0xff] %v9396_v9  ;;  %v9412_v7 = vmul.f32 %v9406_v43, %v8881_v19  ;;  %v9416_v22 = vmul.f32 %v9406_v43, %v8883_v20 }
 0x278   : > { %18725 = vst [vmem:[#allocation88_spill] sm:$0xff] %v9406_v43  ;;  %v481_v43 = vmul.f32 %v8900_v42, %v9224_v57 }
 0x279   : > { %18726 = vst [vmem:[#allocation89_spill] sm:$0xff] %v9412_v7  ;;  %18727 = vst [vmem:[#allocation90_spill] sm:$0xff] %v9416_v22  ;;  %v9420_v13 = vpop.permute.xlu1 %3040 }
 0x27a   : > { %18728 = vst [vmem:[#allocation91_spill] sm:$0xff] %v9420_v13  ;;  %7249 = vmatmul.mubr.msk.bf16.gmra.mrb[64].mxu1 %vm264_vm0, %v605_v2  ;;  %v9436_v44 = vmul.f32 %v9420_v13, %v8881_v19  ;;  %v9440_v8 = vmul.f32 %v9420_v13, %v8883_v20  ;;  %v606_v19 = vpack.c.bf16 %v481_v43, %v480_v24 }
 0x27b   : > { %v9431_v37 = vpop.permute.xlu0 %3036  ;;  %1022 = vmatprep.mubr.bf16.mxu1 %v18683_v11  ;;  %v482_v20 = vmul.f32 %v8900_v42, %v9251_v39  ;;  %v18735_v24 = vpack.c.bf16 %v8954_v12, %v8944_v63  ;;  %v18740_v63 = vpack.c.bf16 %v9216_v54, %v9194_v62  ;;  %v18741_v12 = vpack.c.bf16 %v9278_v10, %v9256_v28 }
 0x27c   : > { %18729 = vst [vmem:[#allocation92_spill] sm:$0xff] %v9431_v37  ;;  %18730 = vst [vmem:[#allocation93_spill] sm:$0xff] %v9436_v44  ;;  %v9444_v2 = vmul.f32 %v9431_v37, %v8877_v17  ;;  %v9448_v5 = vmul.f32 %v9431_v37, %v8879_v18  ;;  %v483_v17 = vmul.f32 %v8900_v42, %v9286_v26 }
 0x27d   : > { %18731 = vst [vmem:[#allocation94_spill] sm:$0xff] %v9440_v8  ;;  %v18734_v18 = vpack.c.bf16 %v8922_v52, %v8912_v47  ;;  %v18736_v26 = vpack.c.bf16 %v8986_v32, %v8976_v27  ;;  %v18737_v47 = vpack.c.bf16 %v9030_v16, %v9008_v46  ;;  %v18738_v52 = vpack.c.bf16 %v9092_v21, %v9070_v23 }
 0x27e   : > { %18732 = vst [vmem:[#allocation95_spill] sm:$0xff] %v9444_v2  ;;  %18733 = vst [vmem:[#allocation96_spill] sm:$0xff] %v9448_v5  ;;  %v607_v53 = vpack.c.bf16 %v483_v17, %v482_v20  ;;  %v504_v21 = vmul.f32 %v8902_v3, %v8908_v45  ;;  %v505_v23 = vmul.f32 %v8902_v3, %v8930_v55 }
 0x27f   : > { %v506_v54 = vmul.f32 %v8902_v3, %v8939_v61  ;;  %v507_v28 = vmul.f32 %v8902_v3, %v8962_v15  ;;  %v509_v46 = vmul.f32 %v8902_v3, %v8994_v35  ;;  %v18742_v20 = vpack.c.bf16 %v9042_v31, %v9018_v60 }
 0x280   : > { %v616_v27 = vpack.c.bf16 %v505_v23, %v504_v21  ;;  %v18743_v31 = vpack.c.bf16 %v9104_v6, %v9080_v58  ;;  %v18744_v58 = vpack.c.bf16 %v9166_v14, %v9142_v34  ;;  %v18745_v34 = vld [vmem:[#allocation62_spill] sm:$0xff] }
 0x281   : > { %v617_v32 = vpack.c.bf16 %v507_v28, %v506_v54 }
 0x282   : > { %7250 = vmatmul.mubr.msk.bf16.gmra.mrb[68].mxu1 %vm264_vm0, %v606_v19 }
 0x283   : > { %1032 = vmatprep.mubr.bf16.mxu1 %v18683_v11 }
 0x28a   : > { %7251 = vmatmul.mubr.msk.bf16.gmra.mrb[72].mxu1 %vm264_vm0, %v607_v53  ;;  %v18739_v53 = vpack.c.bf16 %v9154_v38, %v9132_v40  ;;  %v508_v38 = vmul.f32 %v8902_v3, %v8971_v25 }
 0x28b   : > { %1042 = vmatprep.mubr.bf16.mxu1 %v18683_v11 }
 0x28c   : > { %v618_v62 = vpack.c.bf16 %v509_v46, %v508_v38 }
 0x292   : > { %7252 = vmatmul.mubr.msk.bf16.gmra.mrb[76].mxu1 %vm264_vm0, %v18734_v18 }
 0x293   : > { %1052 = vmatprep.mubr.bf16.mxu1 %v18683_v11 }
 0x29a   : > { %7253 = vmatmul.mubr.msk.bf16.gmra.mrb[80].mxu1 %vm264_vm0, %v18735_v24 }
 0x29b   : > { %1062 = vmatprep.mubr.bf16.mxu1 %v18683_v11 }
 0x2a2   : > { %7254 = vmatmul.mubr.msk.bf16.gmra.mrb[84].mxu1 %vm264_vm0, %v18736_v26 }
 0x2a3   : > { %1072 = vmatprep.mubr.bf16.mxu1 %v18683_v11 }
 0x2aa   : > { %7255 = vmatmul.mubr.msk.bf16.gmra.mrb[88].mxu1 %vm264_vm0, %v18737_v47 }
 0x2ab   : > { %1082 = vmatprep.mubr.bf16.mxu1 %v18683_v11 }
 0x2b2   : > { %7256 = vmatmul.mubr.msk.bf16.gmra.mrb[92].mxu1 %vm264_vm0, %v18738_v52 }
 0x2b3   : > { %1092 = vmatprep.mubr.bf16.mxu1 %v18683_v11 }
 0x2ba   : > { %7257 = vmatmul.mubr.msk.bf16.gmra.mrb[96].mxu1 %vm264_vm0, %v18739_v53 }
 0x2bb   : > { %1102 = vmatprep.mubr.bf16.mxu1 %v18683_v11 }
 0x2c2   : > { %7258 = vmatmul.mubr.msk.bf16.gmra.mrb[100].mxu1 %vm264_vm0, %v18740_v63 }
 0x2c3   : > { %1112 = vmatprep.mubr.bf16.mxu1 %v18683_v11 }
 0x2ca   : > { %7259 = vmatmul.mubr.msk.bf16.gmra.mrb[104].mxu1 %vm264_vm0, %v18741_v12 }
 0x2cb   : > { %1122 = vmatprep.mubr.bf16.mxu1 %v18683_v11 }
 0x2d2   : > { %7260 = vmatmul.mubr.msk.bf16.gmra.mrb[108].mxu1 %vm264_vm0, %v616_v27 }
 0x2d3   : > { %1132 = vmatprep.mubr.bf16.mxu1 %v18683_v11 }
 0x2da   : > { %7261 = vmatmul.mubr.msk.bf16.gmra.mrb[112].mxu1 %vm264_vm0, %v617_v32 }
 0x2db   : > { %1142 = vmatprep.mubr.bf16.mxu1 %v18683_v11 }
 0x2e2   : > { %7262 = vmatmul.mubr.msk.bf16.gmra.mrb[116].mxu1 %vm264_vm0, %v618_v62 }
 0x2e3   : > { %1152 = vmatprep.mubr.bf16.mxu1 %v18683_v11 }
 0x2e5   : > { %v9520_v10 = vpop.f32.mrb[12].mxu1 }
 0x2e6   : > { %v9522_v16 = vpop.f32.mrb[13].mxu1 }
 0x2e7   : > { %v9524_v40 = vpop.f32.mrb[14].mxu1 }
 0x2e8   : > { %v1523_v39 = vmax.f32 %v9520_v10, %v9524_v40  ;;  %v9528_v43 = vpop.f32.mrb[15].mxu1 }
 0x2e9   : > { %v1560_v19 = vmax.f32 %v9522_v16, %v9528_v43 }
 0x2ea   : > { %7263 = vmatmul.mubr.msk.bf16.gmra.mrb[120].mxu1 %vm264_vm0, %v18742_v20 }
 0x2eb   : > { %1162 = vmatprep.mubr.bf16.mxu1 %v18683_v11 }
 0x2ed   : > { %v9537_v17 = vpop.f32.mrb[16].mxu1 }
 0x2ee   : > { %v1524_v18 = vmax.f32 %v1523_v39, %v9537_v17  ;;  %v9540_v24 = vpop.f32.mrb[17].mxu1 }
 0x2ef   : > { %v1561_v26 = vmax.f32 %v1560_v19, %v9540_v24  ;;  %v9543_v47 = vpop.f32.mrb[18].mxu1 }
 0x2f0   : > { %v1525_v52 = vmax.f32 %v1524_v18, %v9543_v47  ;;  %v9546_v53 = vpop.f32.mrb[19].mxu1  ;;  %v18746_v18 = vld [vmem:[#allocation57_spill] sm:$0xff] }
 0x2f1   : > { %v1562_v60 = vmax.f32 %v1561_v26, %v9546_v53  ;;  %v18747_v26 = vpack.c.bf16 %v18745_v34, %v18746_v18 }
 0x2f2   : > { %7264 = vmatmul.mubr.msk.bf16.gmra.mrb[124].mxu1 %vm264_vm0, %v18743_v31 }
 0x2f3   : > { %1172 = vmatprep.mubr.bf16.mxu1 %v18683_v11 }
 0x2f5   : > { %v9554_v63 = vpop.f32.mrb[20].mxu1 }
 0x2f6   : > { %v9556_v12 = vpop.f32.mrb[21].mxu1  ;;  %v1526_v21 = vmax.f32 %v1525_v52, %v9554_v63 }
 0x2f7   : > { %v9559_v23 = vpop.f32.mrb[22].mxu1  ;;  %v1563_v27 = vmax.f32 %v1562_v60, %v9556_v12 }
 0x2f8   : > { %v9562_v54 = vpop.f32.mrb[23].mxu1  ;;  %v1527_v28 = vmax.f32 %v1526_v21, %v9559_v23 }
 0x2f9   : > { %v1564_v6 = vmax.f32 %v1563_v27, %v9562_v54 }
 0x2fa   : > { %7265 = vmatmul.mubr.msk.bf16.gmra.mrb[128].mxu1 %vm264_vm0, %v18744_v58 }
 0x2fb   : > { %1182 = vmatprep.mubr.bf16.mxu1 %v18683_v11 }
 0x2fd   : > { %v9571_v32 = vpop.f32.mrb[24].mxu1 }
 0x2fe   : > { %v1528_v38 = vmax.f32 %v1527_v28, %v9571_v32  ;;  %v9574_v46 = vpop.f32.mrb[25].mxu1 }
 0x2ff   : > { %v1565_v62 = vmax.f32 %v1564_v6, %v9574_v46  ;;  %v9577_v39 = vpop.f32.mrb[26].mxu1 }
 0x300   : > { %v1529_v19 = vmax.f32 %v1528_v38, %v9577_v39  ;;  %v9580_v20 = vpop.f32.mrb[27].mxu1  ;;  %v18748_v38 = vpack.c.bf16 %v9290_v4, %v9266_v48  ;;  %v18749_v4 = vld [vmem:[#allocation16_spill] sm:$0xff] }
 0x301   : > { %v1566_v14 = vmax.f32 %v1565_v62, %v9580_v20 }
 0x302   : > { %7266 = vmatmul.mubr.msk.bf16.gmra.mrb[132].mxu1 %vm264_vm0, %v18747_v26 }
 0x303   : > { %1192 = vmatprep.mubr.bf16.mxu1 %v18683_v11 }
 0x305   : > { %v9588_v52 = vpop.f32.mrb[28].mxu1 }
 0x306   : > { %v9590_v60 = vpop.f32.mrb[29].mxu1  ;;  %v1530_v31 = vmax.f32 %v1529_v19, %v9588_v52 }
 0x307   : > { %v9593_v21 = vpop.f32.mrb[30].mxu1  ;;  %v1567_v27 = vmax.f32 %v1566_v14, %v9590_v60 }
 0x308   : > { %v9596_v28 = vpop.f32.mrb[31].mxu1  ;;  %v1531_v6 = vmax.f32 %v1530_v31, %v9593_v21 }
 0x309   : > { %v1568_v58 = vmax.f32 %v1567_v27, %v9596_v28  ;;  %v18750_v27 = vld [vmem:[#allocation14_spill] sm:$0xff] }
 0x30a   : > { %7267 = vmatmul.mubr.msk.bf16.gmra.mrb[136].mxu1 %vm264_vm0, %v18748_v38  ;;  %v18751_v38 = vpack.c.bf16 %v18749_v4, %v18750_v27  ;;  %v18753_v27 = vld [vmem:[#allocation22_spill] sm:$0xff] }
 0x30b   : > { %1202 = vmatprep.mubr.bf16.mxu1 %v18683_v11 }
 0x30d   : > { %v9605_v62 = vpop.f32.mrb[32].mxu1 }
 0x30e   : > { %v1532_v19 = vmax.f32 %v1531_v6, %v9605_v62  ;;  %v9608_v34 = vpop.f32.mrb[33].mxu1 }
 0x30f   : > { %v1569_v14 = vmax.f32 %v1568_v58, %v9608_v34  ;;  %v9611_v18 = vpop.f32.mrb[34].mxu1 }
 0x310   : > { %v1533_v26 = vmax.f32 %v1532_v19, %v9611_v18  ;;  %v9614_v31 = vpop.f32.mrb[35].mxu1 }
 0x311   : > { %v1570_v48 = vmax.f32 %v1569_v14, %v9614_v31 }
 0x312   : > { %7268 = vmatmul.mubr.msk.bf16.gmra.mrb[140].mxu1 %vm264_vm0, %v18751_v38  ;;  %v18754_v38 = vld [vmem:[#allocation20_spill] sm:$0xff] }
 0x313   : > { %1212 = vmatprep.mubr.bf16.mxu1 %v18683_v11  ;;  %v18755_v3 = vpack.c.bf16 %v18753_v27, %v18754_v38  ;;  %v18758_v38 = vld [vmem:[#allocation28_spill] sm:$0xff] }
 0x315   : > { %v9622_v6 = vpop.f32.mrb[36].mxu1 }
 0x316   : > { %v1534_v50 = vmax.f32 %v1533_v26, %v9622_v6  ;;  %v9625_v58 = vpop.f32.mrb[37].mxu1 }
 0x317   : > { %v1571_v57 = vmax.f32 %v1570_v48, %v9625_v58  ;;  %v9628_v19 = vpop.f32.mrb[38].mxu1 }
 0x318   : > { %v1535_v0 = vmax.f32 %v1534_v50, %v9628_v19  ;;  %v9631_v14 = vpop.f32.mrb[39].mxu1 }
 0x319   : > { %18752 = vst [vmem:[#allocation62_spill] sm:$0xff] %v9631_v14  ;;  %v1572_v4 = vmax.f32 %v1571_v57, %v9631_v14 }
 0x31a   : > { %7269 = vmatmul.mubr.msk.bf16.gmra.mrb[144].mxu1 %vm264_vm0, %v18755_v3  ;;  %v18759_v3 = vld [vmem:[#allocation26_spill] sm:$0xff] }
 0x31b   : > { %1222 = vmatprep.mubr.bf16.mxu1 %v18683_v11  ;;  %v18760_v2 = vpack.c.bf16 %v18758_v38, %v18759_v3  ;;  %v18763_v3 = vld [vmem:[#allocation35_spill] sm:$0xff] }
 0x31d   : > { %v9639_v26 = vpop.f32.mrb[40].mxu1 }
 0x31e   : > { %v1536_v42 = vmax.f32 %v1535_v0, %v9639_v26  ;;  %v9642_v48 = vpop.f32.mrb[41].mxu1 }
 0x31f   : > { %18756 = vst [vmem:[#allocation57_spill] sm:$0xff] %v9642_v48  ;;  %v1573_v13 = vmax.f32 %v1572_v4, %v9642_v48  ;;  %v9645_v50 = vpop.f32.mrb[42].mxu1 }
 0x320   : > { %v1537_v37 = vmax.f32 %v1536_v42, %v9645_v50  ;;  %v9648_v57 = vpop.f32.mrb[43].mxu1 }
 0x321   : > { %18757 = vst [vmem:[#allocation16_spill] sm:$0xff] %v9648_v57  ;;  %v1574_v27 = vmax.f32 %v1573_v13, %v9648_v57 }
 0x322   : > { %7270 = vmatmul.mubr.msk.bf16.gmra.mrb[148].mxu1 %vm264_vm0, %v18760_v2  ;;  %v18764_v2 = vld [vmem:[#allocation31_spill] sm:$0xff] }
 0x323   : > { %1232 = vmatprep.mubr.bf16.mxu1 %v18683_v11  ;;  %v18765_v41 = vpack.c.bf16 %v18763_v3, %v18764_v2  ;;  %v18768_v2 = vld [vmem:[#allocation43_spill] sm:$0xff] }
 0x325   : > { %v9656_v0 = vpop.f32.mrb[44].mxu1 }
 0x326   : > { %v1538_v44 = vmax.f32 %v1537_v37, %v9656_v0  ;;  %v9659_v4 = vpop.f32.mrb[45].mxu1 }
 0x327   : > { %18761 = vst [vmem:[#allocation14_spill] sm:$0xff] %v9659_v4  ;;  %v1575_v5 = vmax.f32 %v1574_v27, %v9659_v4  ;;  %v9662_v42 = vpop.f32.mrb[46].mxu1 }
 0x328   : > { %v1539_v8 = vmax.f32 %v1538_v44, %v9662_v42  ;;  %v9665_v13 = vpop.f32.mrb[47].mxu1 }
 0x329   : > { %18762 = vst [vmem:[#allocation22_spill] sm:$0xff] %v9665_v13  ;;  %v1576_v38 = vmax.f32 %v1575_v5, %v9665_v13 }
 0x32a   : > { %7271 = vmatmul.mubr.msk.bf16.gmra.mrb[152].mxu1 %vm264_vm0, %v18765_v41  ;;  %v18769_v41 = vld [vmem:[#allocation39_spill] sm:$0xff] }
 0x32b   : > { %1242 = vmatprep.mubr.bf16.mxu1 %v18683_v11  ;;  %v18770_v30 = vpack.c.bf16 %v18768_v2, %v18769_v41  ;;  %v18773_v41 = vld [vmem:[#allocation51_spill] sm:$0xff] }
 0x32d   : > { %v9673_v37 = vpop.f32.mrb[48].mxu1 }
 0x32e   : > { %v1540_v7 = vmax.f32 %v1539_v8, %v9673_v37  ;;  %v9676_v27 = vpop.f32.mrb[49].mxu1 }
 0x32f   : > { %18766 = vst [vmem:[#allocation20_spill] sm:$0xff] %v9676_v27  ;;  %v1577_v36 = vmax.f32 %v1576_v38, %v9676_v27  ;;  %v9679_v44 = vpop.f32.mrb[50].mxu1 }
 0x330   : > { %v1541_v22 = vmax.f32 %v1540_v7, %v9679_v44  ;;  %v9682_v5 = vpop.f32.mrb[51].mxu1 }
 0x331   : > { %18767 = vst [vmem:[#allocation28_spill] sm:$0xff] %v9682_v5  ;;  %v1578_v3 = vmax.f32 %v1577_v36, %v9682_v5 }
 0x332   : > { %7272 = vmatmul.mubr.msk.bf16.gmra.mrb[156].mxu1 %vm264_vm0, %v18770_v30  ;;  %v18774_v30 = vld [vmem:[#allocation47_spill] sm:$0xff] }
 0x333   : > { %1252 = vmatprep.mubr.bf16.mxu1 %v18683_v11  ;;  %v18775_v56 = vpack.c.bf16 %v18773_v41, %v18774_v30  ;;  %v18778_v30 = vld [vmem:[#allocation60_spill] sm:$0xff] }
 0x335   : > { %v9690_v8 = vpop.f32.mrb[52].mxu1 }
 0x336   : > { %v1542_v9 = vmax.f32 %v1541_v22, %v9690_v8  ;;  %v9693_v38 = vpop.f32.mrb[53].mxu1 }
 0x337   : > { %18771 = vst [vmem:[#allocation26_spill] sm:$0xff] %v9693_v38  ;;  %v1579_v29 = vmax.f32 %v1578_v3, %v9693_v38  ;;  %v9696_v7 = vpop.f32.mrb[54].mxu1 }
 0x338   : > { %v1543_v1 = vmax.f32 %v1542_v9, %v9696_v7  ;;  %v9699_v36 = vpop.f32.mrb[55].mxu1 }
 0x339   : > { %18772 = vst [vmem:[#allocation35_spill] sm:$0xff] %v9699_v36  ;;  %v1580_v2 = vmax.f32 %v1579_v29, %v9699_v36 }
 0x33a   : > { %7273 = vmatmul.mubr.msk.bf16.gmra.mrb[160].mxu1 %vm264_vm0, %v18775_v56  ;;  %v18779_v56 = vld [vmem:[#allocation55_spill] sm:$0xff] }
 0x33b   : > { %1262 = vmatprep.mubr.bf16.mxu1 %v18683_v11  ;;  %v18780_v36 = vpack.c.bf16 %v18778_v30, %v18779_v56 }
 0x33d   : > { %v9707_v22 = vpop.f32.mrb[56].mxu1 }
 0x33e   : > { %v1544_v51 = vmax.f32 %v1543_v1, %v9707_v22  ;;  %v9710_v3 = vpop.f32.mrb[57].mxu1 }
 0x33f   : > { %18776 = vst [vmem:[#allocation31_spill] sm:$0xff] %v9710_v3  ;;  %v1581_v49 = vmax.f32 %v1580_v2, %v9710_v3  ;;  %v9713_v9 = vpop.f32.mrb[58].mxu1 }
 0x340   : > { %v1545_v38 = vmax.f32 %v1544_v51, %v9713_v9  ;;  %v9716_v29 = vpop.f32.mrb[59].mxu1 }
 0x341   : > { %18777 = vst [vmem:[#allocation43_spill] sm:$0xff] %v9716_v29  ;;  %v1582_v41 = vmax.f32 %v1581_v49, %v9716_v29 }
 0x342   : > { %7274 = vmatmul.mubr.msk.bf16.gmra.mrb[164].mxu1 %vm264_vm0, %v18780_v36  ;;  %v18783_v36 = vpack.c.bf16 %v9281_v33, %v9259_v59 }
 0x343   : > { %1272 = vmatprep.mubr.bf16.mxu1 %v18683_v11 }
 0x345   : > { %v9724_v1 = vpop.f32.mrb[60].mxu1 }
 0x346   : > { %v1546_v5 = vmax.f32 %v1545_v38, %v9724_v1  ;;  %v9727_v2 = vpop.f32.mrb[61].mxu1  ;;  %v18784_v38 = vld [vmem:[#allocation11_spill] sm:$0xff] }
 0x347   : > { %18781 = vst [vmem:[#allocation39_spill] sm:$0xff] %v9727_v2  ;;  %v1583_v3 = vmax.f32 %v1582_v41, %v9727_v2  ;;  %v9730_v51 = vpop.f32.mrb[62].mxu1  ;;  %v540_v56 = vmul.f32 %v18784_v38, %v8908_v45  ;;  %v541_v41 = vmul.f32 %v18784_v38, %v8930_v55  ;;  %v543_v55 = vmul.f32 %v18784_v38, %v8962_v15 }
 0x348   : > { %v1547_v27 = vmax.f32 %v1546_v5, %v9730_v51  ;;  %v9733_v49 = vpop.f32.mrb[63].mxu1  ;;  %v545_v15 = vmul.f32 %v18784_v38, %v8994_v35 }
 0x349   : > { %18782 = vst [vmem:[#allocation51_spill] sm:$0xff] %v9733_v49  ;;  %v1584_v30 = vmax.f32 %v1583_v3, %v9733_v49 }
 0x34a   : > { %7275 = vmatmul.mubr.msk.bf16.gmra.mrb[168].mxu1 %vm264_vm0, %v18783_v36  ;;  %v632_v36 = vpack.c.bf16 %v541_v41, %v540_v56 }
 0x34b   : > { %1282 = vmatprep.mubr.bf16.mxu1 %v18683_v11 }
 0x34d   : > { %v9745_v2 = vpop.f32.mrb[64].mxu1 }
 0x34e   : > { %v1548_v5 = vmax.f32 %v1547_v27, %v9745_v2  ;;  %v9748_v29 = vpop.f32.mrb[65].mxu1  ;;  %v542_v27 = vmul.f32 %v18784_v38, %v8939_v61 }
 0x34f   : > { %18785 = vst [vmem:[#allocation47_spill] sm:$0xff] %v9748_v29  ;;  %v1585_v3 = vmax.f32 %v1584_v30, %v9748_v29  ;;  %v9751_v49 = vpop.f32.mrb[66].mxu1 }
 0x350   : > { %v1549_v59 = vmax.f32 %v1548_v5, %v9751_v49  ;;  %v9754_v33 = vpop.f32.mrb[67].mxu1 }
 0x351   : > { %18786 = vst [vmem:[#allocation60_spill] sm:$0xff] %v9754_v33  ;;  %v1586_v45 = vmax.f32 %v1585_v3, %v9754_v33  ;;  %v633_v33 = vpack.c.bf16 %v543_v55, %v542_v27 }
 0x352   : > { %7276 = vmatmul.mubr.msk.bf16.gmra.mrb[172].mxu1 %vm264_vm0, %v632_v36 }
 0x353   : > { %1292 = vmatprep.mubr.bf16.mxu1 %v18683_v11 }
 0x355   : > { %v9763_v30 = vpop.f32.mrb[68].mxu1 }
 0x356   : > { %v1550_v29 = vmax.f32 %v1549_v59, %v9763_v30  ;;  %v9766_v5 = vpop.f32.mrb[69].mxu1  ;;  %v544_v59 = vmul.f32 %v18784_v38, %v8971_v25 }
 0x357   : > { %18787 = vst [vmem:[#allocation55_spill] sm:$0xff] %v9766_v5  ;;  %v1587_v56 = vmax.f32 %v1586_v45, %v9766_v5  ;;  %v9769_v41 = vpop.f32.mrb[70].mxu1 }
 0x358   : > { %v1551_v3 = vmax.f32 %v1550_v29, %v9769_v41  ;;  %v9772_v36 = vpop.f32.mrb[71].mxu1 }
 0x359   : > { %18788 = vst [vmem:[#allocation97_spill] sm:$0xff] %v9772_v36  ;;  %v1588_v61 = vmax.f32 %v1587_v56, %v9772_v36  ;;  %v634_v36 = vpack.c.bf16 %v545_v15, %v544_v59  ;;  %v18802_v15 = vld [vmem:[#allocation45_spill] sm:$0xff] }
 0x35a   : > { %7277 = vmatmul.mubr.msk.bf16.gmra.mrb[176].mxu1 %vm264_vm0, %v633_v33 }
 0x35b   : > { %1302 = vmatprep.mubr.bf16.mxu1 %v18683_v11 }
 0x35d   : > { %v9781_v45 = vpop.f32.mrb[72].mxu1 }
 0x35e   : > { %v1552_v5 = vmax.f32 %v1551_v3, %v9781_v45  ;;  %v9784_v29 = vpop.f32.mrb[73].mxu1 }
 0x35f   : > { %18789 = vst [vmem:[#allocation98_spill] sm:$0xff] %v9784_v29  ;;  %v1589_v55 = vmax.f32 %v1588_v61, %v9784_v29  ;;  %v9787_v27 = vpop.f32.mrb[74].mxu1 }
 0x360   : > { %v1553_v33 = vmax.f32 %v1552_v5, %v9787_v27  ;;  %v9790_v56 = vpop.f32.mrb[75].mxu1 }
 0x361   : > { %18790 = vst [vmem:[#allocation99_spill] sm:$0xff] %v9790_v56  ;;  %v1590_v25 = vmax.f32 %v1589_v55, %v9790_v56 }
 0x362   : > { %v1554_v13 = vrot.slane %v1553_v33, 4  ;;  %7278 = vmatmul.mubr.msk.bf16.gmra.mrb[180].mxu1 %vm264_vm0, %v634_v36 }
 0x363   : > { %v1591_v38 = vrot.slane %v1590_v25, 4  ;;  %1312 = vmatprep.mubr.bf16.mxu1 %v18683_v11 }
 0x364   : > { %v1555_v3 = vmax.f32 %v1553_v33, %v1554_v13 }
 0x365   : > { %v1592_v35 = vmax.f32 %v1590_v25, %v1591_v38  ;;  %v9795_v4 = vpop.f32.mrb[76].mxu1  ;;  %v18795_v25 = vld [vmem:[#allocation37_spill] sm:$0xff] }
 0x366   : > { %18791 = vst [vmem:[#allocation100_spill] sm:$0xff] %v9795_v4  ;;  %v1556_v61 = vrot.slane %v1555_v3, 2  ;;  %v9797_v29 = vpop.f32.mrb[77].mxu1  ;;  %v18796_v38 = vld [vmem:[#allocation33_spill] sm:$0xff] }
 0x367   : > { %18792 = vst [vmem:[#allocation101_spill] sm:$0xff] %v9797_v29  ;;  %v1593_v57 = vrot.slane %v1592_v35, 2  ;;  %v9799_v5 = vpop.f32.mrb[78].mxu1  ;;  %v18797_v33 = vpack.c.bf16 %v18795_v25, %v18796_v38  ;;  %v18806_v29 = vld [vmem:[#allocation53_spill] sm:$0xff] }
 0x368   : > { %18793 = vst [vmem:[#allocation102_spill] sm:$0xff] %v9799_v5  ;;  %v1557_v48 = vmax.f32 %v1555_v3, %v1556_v61  ;;  %v9803_v59 = vpop.f32.mrb[79].mxu1 }
 0x369   : > { %18794 = vst [vmem:[#allocation103_spill] sm:$0xff] %v9803_v59  ;;  %v1594_v36 = vmax.f32 %v1592_v35, %v1593_v57 }
 0x36a   : > { %v1558_v13 = vrot.slane %v1557_v48, 1  ;;  %7279 = vmatmul.mubr.msk.bf16.gmra.mrb[184].mxu1 %vm264_vm0, %v18797_v33 }
 0x36b   : > { %v1595_v56 = vrot.slane %v1594_v36, 1  ;;  %1322 = vmatprep.mubr.bf16.mxu1 %v18683_v11 }
 0x36c   : > { %v9812_v14 = vmax.f32 %v1557_v48, %v1558_v13 }
 0x36d   : > { %v9814_v3 = vmax.f32 %v1594_v36, %v1595_v56  ;;  %v9816_v61 = vpop.f32.mrb[80].mxu1 }
 0x36e   : > { %18798 = vst [vmem:[#allocation37_spill] sm:$0xff] %v9816_v61  ;;  %v1819_v35 = vsub.f32 %v9520_v10, %v9812_v14  ;;  %v1821_v57 = vsub.f32 %v9524_v40, %v9812_v14  ;;  %v1823_v25 = vsub.f32 %v9537_v17, %v9812_v14  ;;  %v1825_v38 = vsub.f32 %v9543_v47, %v9812_v14  ;;  %v9826_v33 = vpop.f32.mrb[81].mxu1 }
 0x36f   : > { %18799 = vst [vmem:[#allocation33_spill] sm:$0xff] %v9826_v33  ;;  %v1827_v48 = vsub.f32 %v9554_v63, %v9812_v14  ;;  %v1829_v56 = vsub.f32 %v9559_v23, %v9812_v14  ;;  %v1831_v10 = vsub.f32 %v9571_v32, %v9812_v14  ;;  %v1833_v40 = vsub.f32 %v9577_v39, %v9812_v14  ;;  %v9836_v36 = vpop.f32.mrb[82].mxu1 }
 0x370   : > { %18800 = vst [vmem:[#allocation104_spill] sm:$0xff] %v9836_v36  ;;  %v1835_v17 = vsub.f32 %v9588_v52, %v9812_v14  ;;  %v1837_v47 = vsub.f32 %v9593_v21, %v9812_v14  ;;  %v1839_v63 = vsub.f32 %v9605_v62, %v9812_v14  ;;  %v1841_v23 = vsub.f32 %v9611_v18, %v9812_v14  ;;  %v9846_v13 = vpop.f32.mrb[83].mxu1 }
 0x371   : > { %18801 = vst [vmem:[#allocation105_spill] sm:$0xff] %v9846_v13  ;;  %v1843_v32 = vsub.f32 %v9622_v6, %v9812_v14  ;;  %v1845_v39 = vsub.f32 %v9628_v19, %v9812_v14  ;;  %v1847_v52 = vsub.f32 %v9639_v26, %v9812_v14  ;;  %v1849_v21 = vsub.f32 %v9645_v50, %v9812_v14  ;;  %v18803_v19 = vld [vmem:[#allocation41_spill] sm:$0xff] }
 0x372   : > { %v1851_v62 = vsub.f32 %v9656_v0, %v9812_v14  ;;  %v1853_v18 = vsub.f32 %v9662_v42, %v9812_v14  ;;  %v1855_v55 = vsub.f32 %v9673_v37, %v9812_v14  ;;  %v1857_v6 = vsub.f32 %v9679_v44, %v9812_v14 }
 0x373   : > { %v18804_v13 = vpack.c.bf16 %v18802_v15, %v18803_v19  ;;  %v1859_v26 = vsub.f32 %v9690_v8, %v9812_v14  ;;  %v1861_v50 = vsub.f32 %v9696_v7, %v9812_v14  ;;  %v1863_v0 = vsub.f32 %v9707_v22, %v9812_v14  ;;  %v18828_v7 = vld [vmem:[#allocation26_spill] sm:$0xff] }
 0x374   : > { %v1865_v42 = vsub.f32 %v9713_v9, %v9812_v14  ;;  %v2075_v44 = vmul.f32 1.442695, %v1819_v35  ;;  %v2079_v37 = vmul.f32 1.442695, %v1821_v57  ;;  %v2083_v8 = vmul.f32 1.442695, %v1823_v25 }
 0x375   : > { %7280 = vmatmul.mubr.msk.bf16.gmra.mrb[188].mxu1 %vm264_vm0, %v18804_v13  ;;  %v9893_v19 = vpop.f32.mrb[84].mxu1  ;;  %v2087_v36 = vmul.f32 1.442695, %v1825_v38  ;;  %v2091_v9 = vmul.f32 1.442695, %v1827_v48  ;;  %v18807_v13 = vld [vmem:[#allocation49_spill] sm:$0xff] }
 0x376   : > { %1332 = vmatprep.mubr.bf16.mxu1 %v18683_v11  ;;  %18805 = vst [vmem:[#allocation45_spill] sm:$0xff] %v9893_v19  ;;  %7598 = vpow2.f32 %v2075_v44  ;;  %v2095_v59 = vmul.f32 1.442695, %v1829_v56  ;;  %v2099_v15 = vmul.f32 1.442695, %v1831_v10  ;;  %v18808_v33 = vpack.c.bf16 %v18806_v29, %v18807_v13  ;;  %v18820_v13 = vld [vmem:[#allocation57_spill] sm:$0xff] }
 0x377   : > { %7600 = vpow2.f32 %v2079_v37  ;;  %v2103_v35 = vmul.f32 1.442695, %v1833_v40  ;;  %v2107_v57 = vmul.f32 1.442695, %v1835_v17  ;;  %v2111_v25 = vmul.f32 1.442695, %v1837_v47 }
 0x378   : > { %7602 = vpow2.f32 %v2083_v8  ;;  %v2115_v38 = vmul.f32 1.442695, %v1839_v63  ;;  %v2119_v22 = vmul.f32 1.442695, %v1841_v23  ;;  %v2123_v44 = vmul.f32 1.442695, %v1843_v32 }
 0x379   : > { %7604 = vpow2.f32 %v2087_v36  ;;  %v2127_v48 = vmul.f32 1.442695, %v1845_v39  ;;  %v2131_v56 = vmul.f32 1.442695, %v1847_v52  ;;  %v2135_v37 = vmul.f32 1.442695, %v1849_v21 }
 0x37a   : > { %7606 = vpow2.f32 %v2091_v9  ;;  %v2139_v10 = vmul.f32 1.442695, %v1851_v62  ;;  %v2143_v8 = vmul.f32 1.442695, %v1853_v18  ;;  %v9904_v29 = vmul.f32 1.442695, %v1855_v55 }
 0x37b   : > { %7608 = vpow2.f32 %v2095_v59  ;;  %v9908_v40 = vmul.f32 1.442695, %v1859_v26  ;;  %v9910_v36 = vmul.f32 1.442695, %v1861_v50  ;;  %v9912_v17 = vmul.f32 1.442695, %v1863_v0 }
 0x37c   : > { %7610 = vpow2.f32 %v2099_v15  ;;  %v9914_v47 = vmul.f32 1.442695, %v1865_v42  ;;  %v9918_v63 = vpop.f32.mrb[85].mxu1  ;;  %v18812_v26 = vld [vmem:[#allocation63_spill] sm:$0xff]  ;;  %v18813_v50 = vld [vmem:[#allocation58_spill] sm:$0xff]  ;;  %v18821_v9 = vld [vmem:[#allocation16_spill] sm:$0xff] }
 0x37d   : > { %7281 = vmatmul.mubr.msk.bf16.gmra.mrb[192].mxu1 %vm264_vm0, %v18808_v33  ;;  %7612 = vpow2.f32 %v2103_v35  ;;  %v9906_v33 = vmul.f32 1.442695, %v1857_v6  ;;  %18809 = vst [vmem:[#allocation41_spill] sm:$0xff] %v9918_v63  ;;  %v9926_v39 = vpop.f32.mrb[86].mxu1  ;;  %v18814_v0 = vpack.c.bf16 %v18812_v26, %v18813_v50  ;;  %v18822_v18 = vld [vmem:[#allocation14_spill] sm:$0xff]  ;;  %v18827_v62 = vld [vmem:[#allocation28_spill] sm:$0xff] }
 0x37e   : > { %1342 = vmatprep.mubr.bf16.mxu1 %v18683_v11  ;;  %7614 = vpow2.f32 %v2107_v57  ;;  %18810 = vst [vmem:[#allocation53_spill] sm:$0xff] %v9926_v39  ;;  %v9936_v6 = vpop.f32.mrb[87].mxu1  ;;  %v18824_v32 = vld [vmem:[#allocation22_spill] sm:$0xff]  ;;  %v18841_v63 = vld [vmem:[#allocation69_spill] sm:$0xff] }
 0x37f   : > { %7616 = vpow2.f32 %v2111_v25  ;;  %18811 = vst [vmem:[#allocation49_spill] sm:$0xff] %v9936_v6  ;;  %v9950_v35 = vpop.f32.mrb[88].mxu1 }
 0x380   : > { %v9928_v52 = vpop.eup %7598  ;;  %7618 = vpow2.f32 %v2115_v38  ;;  %18815 = vst [vmem:[#allocation63_spill] sm:$0xff] %v9950_v35  ;;  %v18817_v38 = vld [vmem:[#allocation62_spill] sm:$0xff]  ;;  %v9961_v50 = vpop.f32.mrb[89].mxu1 }
 0x381   : > { %v9942_v42 = vpop.eup %7600  ;;  %7620 = vpow2.f32 %v2119_v22  ;;  %18818 = vst [vmem:[#allocation62_spill] sm:$0xff] %v9961_v50  ;;  %v9971_v21 = vpop.f32.mrb[90].mxu1 }
 0x382   : > { %v9953_v57 = vpop.eup %7602  ;;  %7622 = vpow2.f32 %v2123_v44  ;;  %v2587_v25 = vadd.f32 %v9942_v42, %v9928_v52  ;;  %18823 = vst [vmem:[#allocation57_spill] sm:$0xff] %v9971_v21  ;;  %v9980_v15 = vpop.f32.mrb[91].mxu1  ;;  %v18850_v21 = vsub.f32 %v9745_v2, %v9812_v14  ;;  %v18855_v2 = vsub.f32 %v9781_v45, %v9812_v14 }
 0x383   : > { %18816 = vst [vmem:[#allocation58_spill] sm:$0xff] %v9953_v57  ;;  %7624 = vpow2.f32 %v2127_v48  ;;  %v18825_v48 = vld [vmem:[#allocation20_spill] sm:$0xff]  ;;  %18826 = vst [vmem:[#allocation16_spill] sm:$0xff] %v9980_v15  ;;  %v18831_v15 = vld [vmem:[#allocation31_spill] sm:$0xff]  ;;  %v18860_v45 = vsub.f32 %v9528_v43, %v9814_v3  ;;  %v18866_v43 = vsub.f32 %v9556_v12, %v9814_v3  ;;  %v18870_v12 = vsub.f32 %v9580_v20, %v9814_v3 }
 0x384   : > { %7626 = vpow2.f32 %v2131_v56  ;;  %v2588_v26 = vadd.f32 %v9953_v57, %v2587_v25  ;;  %v18829_v56 = vld [vmem:[#allocation35_spill] sm:$0xff]  ;;  %v18876_v20 = vsub.f32 %v9596_v28, %v9814_v3  ;;  %v18879_v28 = vsub.f32 %v9625_v58, %v9814_v3 }
 0x385   : > { %7282 = vmatmul.mubr.msk.bf16.gmra.mrb[196].mxu1 %vm264_vm0, %v18814_v0  ;;  %v9963_v0 = vpop.eup %7604  ;;  %7628 = vpow2.f32 %v2135_v37  ;;  %v9990_v50 = vpop.f32.mrb[92].mxu1  ;;  %v18832_v37 = vld [vmem:[#allocation43_spill] sm:$0xff]  ;;  %v18883_v58 = vsub.f32 %v18821_v9, %v9814_v3  ;;  %v18886_v9 = vsub.f32 %v18825_v48, %v9814_v3  ;;  %v18891_v48 = vsub.f32 %v18829_v56, %v9814_v3 }
 0x386   : > { %1352 = vmatprep.mubr.bf16.mxu1 %v18683_v11  ;;  %18819 = vst [vmem:[#allocation106_spill] sm:$0xff] %v9963_v0  ;;  %v9973_v22 = vpop.eup %7606  ;;  %18830 = vst [vmem:[#allocation14_spill] sm:$0xff] %v9990_v50  ;;  %7630 = vpow2.f32 %v2139_v10  ;;  %v2589_v55 = vadd.f32 %v9963_v0, %v2588_v26  ;;  %v9999_v44 = vpop.f32.mrb[93].mxu1  ;;  %v18842_v50 = vld [vmem:[#allocation66_spill] sm:$0xff] }
 0x387   : > { %v9982_v59 = vpop.eup %7608  ;;  %18833 = vst [vmem:[#allocation22_spill] sm:$0xff] %v9999_v44  ;;  %7632 = vpow2.f32 %v2143_v8  ;;  %v10009_v19 = vpop.f32.mrb[94].mxu1  ;;  %v18843_v57 = vpack.c.bf16 %v18841_v63, %v18842_v50  ;;  %v18848_v63 = vsub.f32 %v9724_v1, %v9812_v14  ;;  %v2179_v44 = vmul.f32 1.442695, %v18850_v21 }
 0x388   : > { %v9992_v23 = vpop.eup %7610  ;;  %18837 = vst [vmem:[#allocation20_spill] sm:$0xff] %v10009_v19  ;;  %7634 = vpow2.f32 %v9904_v29  ;;  %v2590_v6 = vadd.f32 %v9973_v22, %v2589_v55  ;;  %v10019_v25 = vpop.f32.mrb[95].mxu1  ;;  %v18852_v1 = vsub.f32 %v9763_v30, %v9812_v14  ;;  %v2195_v21 = vmul.f32 1.442695, %v18855_v2 }
 0x389   : > { %v10001_v39 = vpop.eup %7612  ;;  %18840 = vst [vmem:[#allocation28_spill] sm:$0xff] %v10019_v25  ;;  %7636 = vpow2.f32 %v9906_v33  ;;  %v18849_v33 = vsub.f32 %v9730_v51, %v9812_v14  ;;  %v18858_v30 = vsub.f32 %v9787_v27, %v9812_v14 }
 0x38a   : > { %v10011_v35 = vpop.eup %7614  ;;  %7638 = vpow2.f32 %v9908_v40  ;;  %v2591_v55 = vadd.f32 %v9982_v59, %v2590_v6  ;;  %v18851_v40 = vsub.f32 %v9751_v49, %v9812_v14  ;;  %v18854_v6 = vsub.f32 %v9769_v41, %v9812_v14 }
 0x38b   : > { %v10025_v26 = vpop.eup %7616  ;;  %v2175_v50 = vmul.f32 1.442695, %v18849_v33  ;;  %7640 = vpow2.f32 %v9910_v36  ;;  %v18859_v41 = vsub.f32 %v9522_v16, %v9814_v3  ;;  %v18863_v14 = vsub.f32 %v9546_v53, %v9814_v3 }
 0x38c   : > { %v10035_v0 = vpop.eup %7618  ;;  %v2183_v10 = vmul.f32 1.442695, %v18851_v40  ;;  %7642 = vpow2.f32 %v9912_v17  ;;  %v2191_v36 = vmul.f32 1.442695, %v18854_v6  ;;  %v2592_v33 = vadd.f32 %v9992_v23, %v2591_v55 }
 0x38d   : > { %7283 = vmatmul.mubr.msk.bf16.gmra.mrb[200].mxu1 %vm264_vm0, %v18843_v57  ;;  %18847 = vst [vmem:[#allocation26_spill] sm:$0xff] %v10035_v0  ;;  %v2171_v57 = vmul.f32 1.442695, %v18848_v63  ;;  %v10045_v8 = vpop.eup %7620  ;;  %v2187_v63 = vmul.f32 1.442695, %v18852_v1  ;;  %v10067_v49 = vpop.f32.mrb[96].mxu1  ;;  %7644 = vpow2.f32 %v9914_v47  ;;  %v18862_v47 = vsub.f32 %v9540_v24, %v9814_v3 }
 0x38e   : > { %1362 = vmatprep.mubr.bf16.mxu1 %v18683_v11  ;;  %v10057_v51 = vpop.eup %7622  ;;  %18856 = vst [vmem:[#allocation31_spill] sm:$0xff] %v10067_v49  ;;  %v2199_v17 = vmul.f32 1.442695, %v18858_v30  ;;  %v2077_v1 = vmul.f32 1.442695, %v18859_v41  ;;  %v2593_v55 = vadd.f32 %v10001_v39, %v2592_v33  ;;  %v10090_v30 = vpop.f32.mrb[97].mxu1  ;;  %v18868_v24 = vsub.f32 %v9574_v46, %v9814_v3 }
 0x38f   : > { %18853 = vst [vmem:[#allocation35_spill] sm:$0xff] %v10057_v51  ;;  %v10069_v40 = vpop.eup %7624  ;;  %v2081_v6 = vmul.f32 1.442695, %v18860_v45  ;;  %7646 = vpow2.f32 %v2171_v57  ;;  %v2085_v29 = vmul.f32 1.442695, %v18862_v47  ;;  %18864 = vst [vmem:[#allocation66_spill] sm:$0xff] %v10090_v30  ;;  %v18867_v57 = vsub.f32 %v9562_v54, %v9814_v3 }
 0x390   : > { %18857 = vst [vmem:[#allocation43_spill] sm:$0xff] %v10069_v40  ;;  %v10081_v2 = vpop.eup %7626  ;;  %v2089_v27 = vmul.f32 1.442695, %v18863_v14  ;;  %7648 = vpow2.f32 %v2175_v50  ;;  %v10097_v41 = vmul.f32 1.442695, %v18866_v43  ;;  %v2594_v50 = vadd.f32 %v10011_v35, %v2593_v55  ;;  %v10122_v43 = vpop.f32.mrb[98].mxu1 }
 0x391   : > { %18861 = vst [vmem:[#allocation69_spill] sm:$0xff] %v10081_v2  ;;  %v10092_v16 = vpop.eup %7628  ;;  %v10102_v33 = vmul.f32 1.442695, %v18867_v57  ;;  %v10107_v53 = vmul.f32 1.442695, %v18868_v24  ;;  %7650 = vpow2.f32 %v2179_v44  ;;  %v18871_v54 = vsub.f32 %v9590_v60, %v9814_v3  ;;  %18872 = vst [vmem:[#allocation109_spill] sm:$0xff] %v10122_v43 }
 0x392   : > { %18865 = vst [vmem:[#allocation107_spill] sm:$0xff] %v10092_v16  ;;  %v10109_v45 = vpop.eup %7630  ;;  %v10115_v47 = vmul.f32 1.442695, %v18870_v12  ;;  %v18873_v46 = vld [vmem:[#allocation17_spill] sm:$0xff]  ;;  %v18874_v57 = vld [vmem:[#allocation15_spill] sm:$0xff]  ;;  %7652 = vpow2.f32 %v2183_v10  ;;  %v18877_v60 = vsub.f32 %v9608_v34, %v9814_v3  ;;  %v2595_v10 = vadd.f32 %v10025_v26, %v2594_v50 }
 0x393   : > { %18869 = vst [vmem:[#allocation108_spill] sm:$0xff] %v10109_v45  ;;  %v10120_v14 = vmul.f32 1.442695, %v18871_v54  ;;  %v18875_v24 = vpack.c.bf16 %v18873_v46, %v18874_v57  ;;  %v10128_v44 = vpop.eup %7632  ;;  %v10133_v55 = vmul.f32 1.442695, %v18876_v20  ;;  %v18878_v54 = vsub.f32 %v9614_v31, %v9814_v3  ;;  %v10159_v31 = vpop.f32.mrb[99].mxu1 }
 0x394   : > { %v10138_v12 = vmul.f32 1.442695, %v18877_v60  ;;  %v10146_v46 = vpop.eup %7634  ;;  %7654 = vpow2.f32 %v2187_v63  ;;  %v10152_v57 = vmul.f32 1.442695, %v18879_v28  ;;  %v18880_v34 = vsub.f32 %v18817_v38, %v9814_v3  ;;  %18881 = vst [vmem:[#allocation17_spill] sm:$0xff] %v10159_v31 }
 0x395   : > { %7284 = vmatmul.mubr.msk.bf16.gmra.mrb[204].mxu1 %vm264_vm0, %v18875_v24  ;;  %v10143_v43 = vmul.f32 1.442695, %v18878_v54  ;;  %v10161_v20 = vpop.eup %7636  ;;  %7656 = vpow2.f32 %v2191_v36  ;;  %v18882_v63 = vsub.f32 %v18820_v13, %v9814_v3  ;;  %v10171_v50 = vmul.f32 1.442695, %v18883_v58  ;;  %v10191_v58 = vpop.f32.mrb[100].mxu1 }
 0x396   : > { %1372 = vmatprep.mubr.bf16.mxu1 %v18683_v11  ;;  %v10157_v24 = vmul.f32 1.442695, %v18880_v34  ;;  %v18884_v38 = vsub.f32 %v18822_v18, %v9814_v3  ;;  %v10178_v28 = vpop.eup %7638  ;;  %7658 = vpow2.f32 %v2195_v21  ;;  %v2596_v36 = vadd.f32 %v10035_v0, %v2595_v10  ;;  %18887 = vst [vmem:[#allocation15_spill] sm:$0xff] %v10191_v58 }
 0x397   : > { %v10166_v60 = vmul.f32 1.442695, %v18882_v63  ;;  %v18885_v13 = vsub.f32 %v18824_v32, %v9814_v3  ;;  %v10189_v63 = vmul.f32 1.442695, %v18886_v9  ;;  %v10193_v18 = vpop.eup %7640  ;;  %7660 = vpow2.f32 %v2199_v17 }
 0x398   : > { %v10176_v54 = vmul.f32 1.442695, %v18884_v38  ;;  %v18888_v21 = vsub.f32 %v18827_v62, %v9814_v3  ;;  %v18889_v32 = vsub.f32 %v18828_v7, %v9814_v3  ;;  %v10210_v9 = vpop.eup %7642  ;;  %v2597_v58 = vadd.f32 %v10045_v8, %v2596_v36 }
 0x399   : > { %v10184_v34 = vmul.f32 1.442695, %v18885_v13  ;;  %v10208_v13 = vmul.f32 1.442695, %v18891_v48  ;;  %7662 = vpow2.f32 %v2077_v1  ;;  %v18893_v62 = vsub.f32 %v18831_v15, %v9814_v3  ;;  %v10225_v56 = vpop.eup %7644  ;;  %v18899_v48 = vld [vmem:[#allocation33_spill] sm:$0xff]  ;;  %v18901_v15 = vld [vmem:[#allocation103_spill] sm:$0xff] }
 0x39a   : > { %v10198_v38 = vmul.f32 1.442695, %v18888_v21  ;;  %v10203_v10 = vmul.f32 1.442695, %v18889_v32  ;;  %v18895_v7 = vsub.f32 %v18832_v37, %v9814_v3  ;;  %v10223_v32 = vpop.f32.mrb[101].mxu1  ;;  %7664 = vpow2.f32 %v2081_v6  ;;  %v18903_v6 = vld [vmem:[#allocation58_spill] sm:$0xff] }
 0x39b   : > { %18892 = vst [vmem:[#allocation111_spill] sm:$0xff] %v10208_v13  ;;  %v10216_v17 = vmul.f32 1.442695, %v18893_v62  ;;  %18897 = vst [vmem:[#allocation114_spill] sm:$0xff] %v10223_v32  ;;  %v18898_v36 = vmax.f32 %v9795_v4, %v9799_v5  ;;  %v18900_v13 = vld [vmem:[#allocation101_spill] sm:$0xff]  ;;  %v2598_v32 = vadd.f32 %v10057_v51, %v2597_v58  ;;  %7666 = vpow2.f32 %v2085_v29 }
 0x39c   : > { %18890 = vst [vmem:[#allocation110_spill] sm:$0xff] %v10203_v10  ;;  %v10221_v21 = vmul.f32 1.442695, %v18895_v7  ;;  %v18902_v62 = vmax.f32 %v18900_v13, %v18901_v15  ;;  %v10237_v7 = vpop.f32.mrb[102].mxu1  ;;  %v18904_v10 = vld [vmem:[#allocation106_spill] sm:$0xff]  ;;  %v18906_v15 = vld [vmem:[#allocation23_spill] sm:$0xff]  ;;  %7668 = vpow2.f32 %v2089_v27 }
 0x39d   : > { %18894 = vst [vmem:[#allocation112_spill] sm:$0xff] %v10216_v17  ;;  %v1598_v1 = vmax.f32 %v18898_v36, %v9816_v61  ;;  %v10246_v61 = vpop.f32.mrb[103].mxu1  ;;  %v18909_v13 = vld [vmem:[#allocation104_spill] sm:$0xff]  ;;  %v18910_v58 = vld [vmem:[#allocation105_spill] sm:$0xff]  ;;  %v2599_v4 = vadd.f32 %v10069_v40, %v2598_v32  ;;  %7670 = vpow2.f32 %v10097_v41  ;;  %v18919_v40 = vld [vmem:[#allocation27_spill] sm:$0xff] }
 0x39e   : > { %18896 = vst [vmem:[#allocation113_spill] sm:$0xff] %v10221_v21  ;;  %v1635_v17 = vmax.f32 %v18902_v62, %v18899_v48  ;;  %v10239_v21 = vpop.eup %7646  ;;  %18905 = vst [vmem:[#allocation58_spill] sm:$0xff] %v10246_v61  ;;  %v18907_v62 = vld [vmem:[#allocation21_spill] sm:$0xff]  ;;  %7672 = vpow2.f32 %v10102_v33  ;;  %v10274_v32 = vpop.f32.mrb[104].mxu1 }
 0x39f   : > { %v18908_v48 = vpack.c.bf16 %v18906_v15, %v18907_v62  ;;  %v10252_v37 = vpop.eup %7648  ;;  %v1599_v5 = vmax.f32 %v1598_v1, %v18909_v13  ;;  %v18912_v62 = vld [vmem:[#allocation41_spill] sm:$0xff]  ;;  %7674 = vpow2.f32 %v10107_v53  ;;  %v10282_v13 = vpop.f32.mrb[105].mxu1 }
 0x3a0   : > { %v1636_v29 = vmax.f32 %v1635_v17, %v18910_v58  ;;  %v10259_v36 = vpop.eup %7650  ;;  %v18911_v17 = vld [vmem:[#allocation45_spill] sm:$0xff]  ;;  %7676 = vpow2.f32 %v10115_v47  ;;  %v10291_v51 = vpop.f32.mrb[106].mxu1 }
 0x3a1   : > { %7285 = vmatmul.mubr.msk.bf16.gmra.mrb[208].mxu1 %vm264_vm0, %v18908_v48  ;;  %v10267_v1 = vpop.eup %7652  ;;  %v1600_v15 = vmax.f32 %v1599_v5, %v18911_v17  ;;  %v2600_v48 = vadd.f32 %v10081_v2, %v2599_v4  ;;  %7678 = vpow2.f32 %v10120_v14  ;;  %v10299_v5 = vpop.f32.mrb[107].mxu1  ;;  %v18918_v47 = vld [vmem:[#allocation29_spill] sm:$0xff] }
 0x3a2   : > { %1382 = vmatprep.mubr.bf16.mxu1 %v18683_v11  ;;  %v1637_v31 = vmax.f32 %v1636_v29, %v18912_v62  ;;  %v10276_v41 = vpop.eup %7654  ;;  %v18913_v29 = vld [vmem:[#allocation53_spill] sm:$0xff]  ;;  %7680 = vpow2.f32 %v10133_v55  ;;  %v18920_v0 = vpack.c.bf16 %v18918_v47, %v18919_v40 }
 0x3a3   : > { %v10286_v33 = vpop.eup %7656  ;;  %v1601_v58 = vmax.f32 %v1600_v15, %v18913_v29  ;;  %v18914_v62 = vld [vmem:[#allocation49_spill] sm:$0xff]  ;;  %v2601_v27 = vadd.f32 %v10092_v16, %v2600_v48  ;;  %v18917_v29 = vld [vmem:[#allocation62_spill] sm:$0xff]  ;;  %7682 = vpow2.f32 %v10138_v12 }
 0x3a4   : > { %v1638_v17 = vmax.f32 %v1637_v31, %v18914_v62  ;;  %v10295_v53 = vpop.eup %7658  ;;  %v18916_v62 = vld [vmem:[#allocation63_spill] sm:$0xff]  ;;  %7684 = vpow2.f32 %v10143_v43  ;;  %v18921_v48 = vld [vmem:[#allocation57_spill] sm:$0xff] }
 0x3a5   : > { %v10305_v31 = vpop.eup %7660  ;;  %v1602_v4 = vmax.f32 %v1601_v58, %v18916_v62  ;;  %v2602_v16 = vadd.f32 %v10109_v45, %v2601_v27  ;;  %7686 = vpow2.f32 %v10152_v57  ;;  %v18923_v43 = vld [vmem:[#allocation39_spill] sm:$0xff]  ;;  %v18926_v62 = vld [vmem:[#allocation22_spill] sm:$0xff]  ;;  %v10338_v40 = vpop.f32.mrb[108].mxu1 }
 0x3a6   : > { %18915 = vst [vmem:[#allocation106_spill] sm:$0xff] %v10305_v31  ;;  %v1639_v2 = vmax.f32 %v1638_v17, %v18917_v29  ;;  %v7663_v14 = vpop.eup %7662  ;;  %v18922_v29 = vld [vmem:[#allocation16_spill] sm:$0xff]  ;;  %7688 = vpow2.f32 %v10157_v24  ;;  %v10342_v24 = vpop.f32.mrb[109].mxu1 }
 0x3a7   : > { %v7665_v17 = vpop.eup %7664  ;;  %v1603_v15 = vmax.f32 %v1602_v4, %v18921_v48  ;;  %v18924_v4 = vsub.f32 %v18923_v43, %v9814_v3  ;;  %7690 = vpow2.f32 %v10166_v60  ;;  %v18927_v43 = vld [vmem:[#allocation51_spill] sm:$0xff] }
 0x3a8   : > { %v1640_v27 = vmax.f32 %v1639_v2, %v18922_v29  ;;  %v7667_v12 = vpop.eup %7666  ;;  %v2624_v47 = vadd.f32 %v7665_v17, %v7663_v14  ;;  %v3056_v55 = vpack.c.bf16 %v7665_v17, %v7663_v14  ;;  %v18925_v2 = vld [vmem:[#allocation14_spill] sm:$0xff]  ;;  %7692 = vpow2.f32 %v10171_v50 }
 0x3a9   : > { %7286 = vmatmul.mubr.msk.bf16.gmra.mrb[212].mxu1 %vm264_vm0, %v18920_v0  ;;  %v2603_v0 = vadd.f32 %v10128_v44, %v2602_v16  ;;  %v7669_v58 = vpop.eup %7668  ;;  %v10334_v48 = vmul.f32 1.442695, %v18924_v4  ;;  %v1604_v29 = vmax.f32 %v1603_v15, %v18925_v2  ;;  %v18928_v15 = vsub.f32 %v18927_v43, %v9814_v3 }
 0x3aa   : > { %1392 = vmatprep.mubr.bf16.mxu1 %v18683_v11  ;;  %v1641_v45 = vmax.f32 %v1640_v27, %v18926_v62  ;;  %v7671_v31 = vpop.eup %7670  ;;  %v2625_v57 = vadd.f32 %v7667_v12, %v2624_v47  ;;  %3183 = vmatprep.subr.bf16.mxu1 %v3056_v55  ;;  %v3058_v14 = vpack.c.bf16 %v7669_v58, %v7667_v12  ;;  %v10353_v47 = vpop.f32.mrb[110].mxu1  ;;  %7694 = vpow2.f32 %v10176_v54 }
 0x3ab   : > { %v2604_v16 = vadd.f32 %v10146_v46, %v2603_v0  ;;  %v7673_v17 = vpop.eup %7672  ;;  %v2177_v4 = vmul.f32 1.442695, %v18928_v15  ;;  %v18929_v27 = vpack.c.bf16 %v9942_v42, %v9928_v52  ;;  %v1605_v0 = vmax.f32 %v1604_v29, %v10009_v19  ;;  %v10357_v43 = vpop.f32.mrb[111].mxu1  ;;  %v18930_v52 = vld [vmem:[#allocation47_spill] sm:$0xff] }
 0x3ac   : > { %v1642_v60 = vmax.f32 %v1641_v45, %v10019_v25  ;;  %v7675_v55 = vpop.eup %7674  ;;  %v2626_v50 = vadd.f32 %v7669_v58, %v2625_v57  ;;  %v3060_v62 = vpack.c.bf16 %v7673_v17, %v7671_v31  ;;  %7696 = vpow2.f32 %v10184_v34  ;;  %v18932_v57 = vld [vmem:[#allocation36_spill] sm:$0xff] }
 0x3ad   : > { %3184 = vmatpush1.bf16.msra.mxu1 %v18929_v27  ;;  %v2605_v12 = vadd.f32 %v10161_v20, %v2604_v16  ;;  %v7677_v15 = vpop.eup %7676  ;;  %v18931_v42 = vsub.f32 %v18930_v52, %v9814_v3  ;;  %v1606_v45 = vmax.f32 %v1605_v0, %v10067_v49  ;;  %7698 = vpow2.f32 %v10189_v63  ;;  %v18935_v52 = vld [vmem:[#allocation60_spill] sm:$0xff]  ;;  %v10396_v49 = vpop.f32.mrb[112].mxu1 }
 0x3ae   : > { %3185 = vmatprep.subr.bf16.mxu1 %v3058_v14  ;;  %v1643_v27 = vmax.f32 %v1642_v60, %v10090_v30  ;;  %v10365_v25 = vpop.eup %7678  ;;  %v2627_v58 = vadd.f32 %v7671_v31, %v2626_v50  ;;  %v3062_v16 = vpack.c.bf16 %v7677_v15, %v7675_v55  ;;  %v18933_v14 = vld [vmem:[#allocation32_spill] sm:$0xff]  ;;  %7700 = vpow2.f32 %v10198_v38  ;;  %v18939_v31 = vld [vmem:[#allocation17_spill] sm:$0xff]  ;;  %v18945_v30 = vld [vmem:[#allocation114_spill] sm:$0xff] }
 0x3af   : > { %v2181_v29 = vmul.f32 1.442695, %v18931_v42  ;;  %v2606_v54 = vadd.f32 %v10178_v28, %v2605_v12  ;;  %v18934_v19 = vpack.c.bf16 %v18932_v57, %v18933_v14  ;;  %v7681_v34 = vpop.eup %7680  ;;  %v18936_v0 = vsub.f32 %v18935_v52, %v9814_v3  ;;  %v18938_v12 = vld [vmem:[#allocation109_spill] sm:$0xff]  ;;  %v18940_v14 = vld [vmem:[#allocation110_spill] sm:$0xff] }
 0x3b0   : > { %v18937_v42 = vpack.c.bf16 %v18904_v10, %v18903_v6  ;;  %v1607_v63 = vmax.f32 %v1606_v45, %v18938_v12  ;;  %v1644_v50 = vmax.f32 %v1643_v27, %v18939_v31  ;;  %v10383_v57 = vpop.eup %7682  ;;  %7702 = vpow2.f32 %v18940_v14  ;;  %v18941_v10 = vld [vmem:[#allocation111_spill] sm:$0xff] }
 0x3b1   : > { %7287 = vmatmul.mubr.msk.bf16.gmra.mrb[216].mxu1 %vm264_vm0, %v18934_v19  ;;  %v2185_v60 = vmul.f32 1.442695, %v18936_v0  ;;  %v2607_v19 = vadd.f32 %v10193_v18, %v2606_v54  ;;  %v2628_v38 = vadd.f32 %v7673_v17, %v2627_v58  ;;  %v3064_v52 = vpack.c.bf16 %v7681_v34, %v10365_v25  ;;  %v10388_v0 = vpop.eup %7684  ;;  %v18942_v6 = vld [vmem:[#allocation55_spill] sm:$0xff]  ;;  %v18946_v17 = vld [vmem:[#allocation112_spill] sm:$0xff] }
 0x3b2   : > { %3186 = vmatpush1.bf16.msra.mxu1 %v18937_v42  ;;  %1402 = vmatprep.mubr.bf16.mxu1 %v18683_v11  ;;  %7704 = vpow2.f32 %v18941_v10  ;;  %v18943_v45 = vsub.f32 %v18942_v6, %v9814_v3  ;;  %v18944_v42 = vld [vmem:[#allocation15_spill] sm:$0xff]  ;;  %v1645_v12 = vmax.f32 %v1644_v50, %v18945_v30  ;;  %v10398_v54 = vpop.eup %7686  ;;  %v3066_v14 = vpack.c.bf16 %v10388_v0, %v10383_v57  ;;  %v10404_v10 = vpop.f32.mrb[113].mxu1 }
 0x3b3   : > { %3187 = vmatprep.subr.bf16.mxu1 %v3060_v62  ;;  %v1608_v31 = vmax.f32 %v1607_v63, %v18944_v42  ;;  %v2608_v62 = vadd.f32 %v10210_v9, %v2607_v19  ;;  %7706 = vpow2.f32 %v18946_v17  ;;  %v2629_v58 = vadd.f32 %v7675_v55, %v2628_v38  ;;  %v10406_v6 = vpop.eup %7688  ;;  %v18948_v63 = vld [vmem:[#allocation97_spill] sm:$0xff]  ;;  %v10417_v38 = vpop.f32.mrb[114].mxu1 }
 0x3b4   : > { %v2189_v27 = vmul.f32 1.442695, %v18943_v45  ;;  %v18947_v45 = vld [vmem:[#allocation113_spill] sm:$0xff]  ;;  %v18949_v50 = vsub.f32 %v18948_v63, %v9814_v3  ;;  %v18950_v42 = vpack.c.bf16 %v9982_v59, %v9973_v22  ;;  %v1646_v55 = vmax.f32 %v1645_v12, %v10246_v61  ;;  %v10419_v17 = vpop.eup %7690  ;;  %v18952_v22 = vld [vmem:[#allocation98_spill] sm:$0xff] }
 0x3b5   : > { %7708 = vpow2.f32 %v18947_v45  ;;  %v1609_v19 = vmax.f32 %v1608_v31, %v10237_v7  ;;  %v2609_v2 = vadd.f32 %v10225_v56, %v2608_v62  ;;  %v2630_v45 = vadd.f32 %v7677_v15, %v2629_v58  ;;  %v10427_v59 = vpop.eup %7692  ;;  %v18954_v58 = vld [vmem:[#allocation44_spill] sm:$0xff] }
 0x3b6   : > { %v2193_v30 = vmul.f32 1.442695, %v18949_v50  ;;  %3188 = vmatpush1.bf16.msra.mxu1 %v18950_v42  ;;  %7710 = vpow2.f32 %v10334_v48  ;;  %v10425_v50 = vpop.f32.mrb[115].mxu1  ;;  %v18953_v12 = vsub.f32 %v18952_v22, %v9814_v3  ;;  %v1647_v62 = vmax.f32 %v1646_v55, %v10282_v13  ;;  %v10434_v61 = vpop.eup %7694 }
 0x3b7   : > { %3189 = vmatprep.subr.bf16.mxu1 %v3062_v16  ;;  %18951 = vst [vmem:[#allocation23_spill] sm:$0xff] %v10425_v50  ;;  %7712 = vpow2.f32 %v2177_v4  ;;  %v1610_v42 = vmax.f32 %v1609_v19, %v10274_v32  ;;  %v2610_v48 = vadd.f32 %v10239_v21, %v2609_v2  ;;  %v2631_v15 = vadd.f32 %v10365_v25, %v2630_v45  ;;  %v18955_v4 = vld [vmem:[#allocation40_spill] sm:$0xff]  ;;  %v10444_v22 = vpop.eup %7696  ;;  %v18957_v19 = vld [vmem:[#allocation99_spill] sm:$0xff] }
 0x3b8   : > { %v2197_v31 = vmul.f32 1.442695, %v18953_v12  ;;  %7714 = vpow2.f32 %v2181_v29  ;;  %v18956_v63 = vpack.c.bf16 %v18954_v58, %v18955_v4  ;;  %v18958_v55 = vsub.f32 %v18957_v19, %v9814_v3  ;;  %v10455_v45 = vpop.eup %7698 }
 0x3b9   : > { %7716 = vpow2.f32 %v2185_v60  ;;  %v18959_v2 = vpack.c.bf16 %v10001_v39, %v9992_v23  ;;  %v1611_v25 = vmax.f32 %v1610_v42, %v10291_v51  ;;  %v1648_v29 = vmax.f32 %v1647_v62, %v10299_v5  ;;  %v10460_v58 = vpop.eup %7700  ;;  %v10464_v42 = vpop.f32.mrb[116].mxu1 }
 0x3ba   : > { %7288 = vmatmul.mubr.msk.bf16.gmra.mrb[220].mxu1 %vm264_vm0, %v18956_v63  ;;  %v2201_v12 = vmul.f32 1.442695, %v18958_v55  ;;  %v2611_v63 = vadd.f32 %v10252_v37, %v2610_v48  ;;  %7718 = vpow2.f32 %v2189_v27  ;;  %v2632_v60 = vadd.f32 %v7681_v34, %v2631_v15  ;;  %v10466_v62 = vpop.eup %7702  ;;  %v10472_v27 = vpop.f32.mrb[117].mxu1 }
 0x3bb   : > { %3190 = vmatpush1.bf16.msra.mxu1 %v18959_v2  ;;  %1412 = vmatprep.mubr.bf16.mxu1 %v18683_v11  ;;  %7720 = vpow2.f32 %v2193_v30  ;;  %v1612_v23 = vmax.f32 %v1611_v25, %v10338_v40  ;;  %v1649_v39 = vmax.f32 %v1648_v29, %v10342_v24  ;;  %18960 = vst [vmem:[#allocation21_spill] sm:$0xff] %v10472_v27  ;;  %v10481_v55 = vpop.f32.mrb[118].mxu1 }
 0x3bc   : > { %3191 = vmatprep.subr.bf16.mxu1 %v3064_v52  ;;  %v2612_v4 = vadd.f32 %v10259_v36, %v2611_v63  ;;  %7722 = vpow2.f32 %v2197_v31  ;;  %v2633_v34 = vadd.f32 %v10383_v57, %v2632_v60  ;;  %v10474_v48 = vpop.eup %7704  ;;  %v18961_v30 = vpack.c.bf16 %v10025_v26, %v10011_v35  ;;  %v10489_v25 = vpop.f32.mrb[119].mxu1 }
 0x3bd   : > { %7724 = vpow2.f32 %v2201_v12  ;;  %v1613_v15 = vmax.f32 %v1612_v23, %v10353_v47  ;;  %v1650_v19 = vmax.f32 %v1649_v39, %v10357_v43  ;;  %v10483_v31 = vpop.eup %7706  ;;  %18962 = vst [vmem:[#allocation29_spill] sm:$0xff] %v10489_v25  ;;  %v18964_v39 = vld [vmem:[#allocation48_spill] sm:$0xff]  ;;  %v18970_v12 = vld [vmem:[#allocation35_spill] sm:$0xff] }
 0x3be   : > { %v2613_v57 = vadd.f32 %v10267_v1, %v2612_v4  ;;  %v2634_v2 = vadd.f32 %v10388_v0, %v2633_v34 }
 0x3bf   : > { %3192 = vmatpush1.bf16.msra.mxu1 %v18961_v30  ;;  %v10491_v35 = vpop.eup %7708  ;;  %v1614_v26 = vmax.f32 %v1613_v15, %v10396_v49  ;;  %v1651_v29 = vmax.f32 %v1650_v19, %v10404_v10  ;;  %v18966_v30 = vld [vmem:[#allocation26_spill] sm:$0xff] }
 0x3c0   : > { %3193 = vmatprep.subr.bf16.mxu1 %v3066_v14  ;;  %v10495_v63 = vpop.eup %7710  ;;  %v2614_v60 = vadd.f32 %v10276_v41, %v2613_v57  ;;  %v2635_v23 = vadd.f32 %v10398_v54, %v2634_v2  ;;  %v18963_v14 = vld [vmem:[#allocation52_spill] sm:$0xff]  ;;  %v18967_v15 = vpack.c.bf16 %v10045_v8, %v18966_v30  ;;  %v10526_v30 = vpop.f32.mrb[120].mxu1  ;;  %v18969_v8 = vld [vmem:[#allocation43_spill] sm:$0xff] }
 0x3c1   : > { %v18965_v4 = vpack.c.bf16 %v18963_v14, %v18964_v39  ;;  %v10505_v34 = vpop.eup %7712  ;;  %v1615_v19 = vmax.f32 %v1614_v26, %v10417_v38  ;;  %v1652_v57 = vmax.f32 %v1651_v29, %v10425_v50  ;;  %v18968_v39 = vpack.c.bf16 %v10406_v6, %v10398_v54 }
 0x3c2   : > { %v10513_v2 = vpop.eup %7714  ;;  %v2615_v0 = vadd.f32 %v10286_v33, %v2614_v60  ;;  %v2636_v14 = vadd.f32 %v10406_v6, %v2635_v23  ;;  %v10534_v6 = vpop.f32.mrb[121].mxu1 }
 0x3c3   : > { %7289 = vmatmul.mubr.msk.bf16.gmra.mrb[224].mxu1 %vm264_vm0, %v18965_v4  ;;  %v10522_v4 = vpop.eup %7716  ;;  %v1616_v26 = vmax.f32 %v1615_v19, %v10464_v42  ;;  %v1653_v29 = vmax.f32 %v1652_v57, %v10472_v27  ;;  %v18971_v19 = vpack.c.bf16 %v18969_v8, %v18970_v12  ;;  %v10543_v3 = vpop.f32.mrb[122].mxu1  ;;  %v18974_v27 = vpack.c.bf16 %v10427_v59, %v10419_v17 }
 0x3c4   : > { %3194 = vmatpush1.bf16.msra.mxu1 %v18967_v15  ;;  %1422 = vmatprep.mubr.bf16.mxu1 %v18683_v11  ;;  %v10528_v15 = vpop.eup %7718  ;;  %v2616_v60 = vadd.f32 %v10295_v53, %v2615_v0  ;;  %v2637_v23 = vadd.f32 %v10419_v17, %v2636_v14  ;;  %v18972_v14 = vld [vmem:[#allocation106_spill] sm:$0xff]  ;;  %v10556_v8 = vpop.f32.mrb[123].mxu1 }
 0x3c5   : > { %3195 = vmatprep.subr.bf16.mxu1 %v18968_v39  ;;  %v10536_v39 = vpop.eup %7720  ;;  %v1617_v57 = vmax.f32 %v1616_v26, %v10481_v55  ;;  %v1654_v52 = vmax.f32 %v1653_v29, %v10489_v25  ;;  %v18976_v25 = vld [vmem:[#allocation56_spill] sm:$0xff] }
 0x3c6   : > { %v10545_v0 = vpop.eup %7722  ;;  %v10548_v16 = vadd.f32 %v18972_v14, %v2616_v60  ;;  %v2638_v54 = vadd.f32 %v10427_v59, %v2637_v23  ;;  %v18978_v59 = vld [vmem:[#allocation107_spill] sm:$0xff]  ;;  %v10579_v23 = vpop.f32.mrb[124].mxu1 }
 0x3c7   : > { %v10558_v26 = vpop.eup %7724  ;;  %v1618_v29 = vmax.f32 %v1617_v57, %v10526_v30 }
 0x3c8   : > { %3196 = vmatpush1.bf16.msra.mxu1 %v18971_v19  ;;  %18973 = vst [vmem:[#allocation27_spill] sm:$0xff] %v10548_v16  ;;  %v1655_v19 = vmax.f32 %v1654_v52, %v10534_v6  ;;  %v2639_v60 = vadd.f32 %v10434_v61, %v2638_v54  ;;  %v18975_v16 = vld [vmem:[#allocation61_spill] sm:$0xff]  ;;  %v18981_v54 = vpack.c.bf16 %v10444_v22, %v10434_v61 }
 0x3c9   : > { %3197 = vmatprep.subr.bf16.mxu1 %v18974_v27  ;;  %v18977_v17 = vpack.c.bf16 %v18975_v16, %v18976_v25  ;;  %v18979_v27 = vld [vmem:[#allocation69_spill] sm:$0xff]  ;;  %v1619_v50 = vmax.f32 %v1618_v29, %v10543_v3  ;;  %v18984_v61 = vpack.c.bf16 %v10460_v58, %v10455_v45 }
 0x3ca   : > { %v18980_v12 = vpack.c.bf16 %v18978_v59, %v18979_v27  ;;  %v1656_v57 = vmax.f32 %v1655_v19, %v10556_v8  ;;  %v2640_v52 = vadd.f32 %v10444_v22, %v2639_v60 }
 0x3cb   : > { %7290 = vmatmul.mubr.msk.bf16.gmra.mrb[228].mxu1 %vm264_vm0, %v18977_v17  ;;  %v1620_v25 = vmax.f32 %v1619_v50, %v10579_v23  ;;  %v10583_v17 = vpop.f32.mrb[125].mxu1 }
 0x3cc   : > { %3198 = vmatpush1.bf16.msra.mxu1 %v18980_v12  ;;  %1432 = vmatprep.mubr.bf16.mxu1 %v18683_v11  ;;  %v2641_v16 = vadd.f32 %v10455_v45, %v2640_v52  ;;  %v18982_v12 = vld [vmem:[#allocation108_spill] sm:$0xff]  ;;  %v1657_v19 = vmax.f32 %v1656_v57, %v10583_v17  ;;  %v10589_v59 = vpop.f32.mrb[126].mxu1  ;;  %v18988_v57 = vpack.c.bf16 %v10161_v20, %v10146_v46  ;;  %v18989_v45 = vld [vmem:[#allocation13_spill] sm:$0xff] }
 0x3cd   : > { %3199 = vmatprep.subr.bf16.mxu1 %v18981_v54  ;;  %v18983_v29 = vpack.c.bf16 %v10128_v44, %v18982_v12  ;;  %v1621_v22 = vmax.f32 %v1620_v25, %v10589_v59  ;;  %v10596_v27 = vpop.f32.mrb[127].mxu1  ;;  %v18985_v44 = vld [vmem:[#allocation68_spill] sm:$0xff]  ;;  %v18986_v54 = vld [vmem:[#allocation65_spill] sm:$0xff]  ;;  %v18991_v25 = vld [vmem:[#allocation18_spill] sm:$0xff] }
 0x3ce   : > { %v2642_v60 = vadd.f32 %v10460_v58, %v2641_v16  ;;  %v1658_v50 = vmax.f32 %v1657_v19, %v10596_v27  ;;  %v18987_v12 = vpack.c.bf16 %v18985_v44, %v18986_v54  ;;  %v18990_v58 = vld [vmem:[#allocation12_spill] sm:$0xff]  ;;  %v18994_v54 = vpack.c.bf16 %v10193_v18, %v10178_v28 }
 0x3cf   : > { %v576_v16 = vmul.f32 %v18990_v58, %v18989_v45  ;;  %v18997_v18 = vpack.c.bf16 %v10225_v56, %v10210_v9 }
 0x3d0   : > { %3200 = vmatpush1.bf16.msra.mxu1 %v18983_v29  ;;  %v2643_v52 = vadd.f32 %v10466_v62, %v2642_v60  ;;  %v577_v29 = vmul.f32 %v18990_v58, %v18991_v25  ;;  %v18992_v60 = vpack.c.bf16 %v10474_v48, %v10466_v62  ;;  %v18995_v62 = vpack.c.bf16 %v10491_v35, %v10483_v31 }
 0x3d1   : > { %3201 = vmatprep.subr.bf16.mxu1 %v18984_v61  ;;  %v10616_v61 = vpop.f32.mrb[128].mxu1 }
 0x3d2   : > { %v2644_v19 = vadd.f32 %v10474_v48, %v2643_v52  ;;  %v1622_v46 = vmax.f32 %v1621_v22, %v10616_v61  ;;  %v10620_v20 = vpop.f32.mrb[129].mxu1  ;;  %v648_v22 = vpack.c.bf16 %v577_v29, %v576_v16  ;;  %v19000_v29 = vpack.c.bf16 %v10505_v34, %v10495_v63 }
 0x3d3   : > { %7291 = vmatmul.mubr.msk.bf16.gmra.mrb[232].mxu1 %vm264_vm0, %v18987_v12  ;;  %18993 = vst [vmem:[#allocation39_spill] sm:$0xff] %v10620_v20  ;;  %v1659_v12 = vmax.f32 %v1658_v50, %v10620_v20  ;;  %v18998_v50 = vld [vmem:[#allocation19_spill] sm:$0xff] }
 0x3d4   : > { %3202 = vmatpush1.bf16.msra.mxu1 %v18988_v57  ;;  %1442 = vmatprep.mubr.bf16.mxu1 %v18683_v11  ;;  %v2645_v44 = vadd.f32 %v10483_v31, %v2644_v19  ;;  %v10626_v57 = vpop.f32.mrb[130].mxu1  ;;  %v578_v31 = vmul.f32 %v18990_v58, %v18998_v50  ;;  %v19008_v50 = vpack.c.bf16 %v10536_v39, %v10528_v15 }
 0x3d5   : > { %3203 = vmatprep.subr.bf16.mxu1 %v18992_v60  ;;  %v1623_v48 = vmax.f32 %v1622_v46, %v10626_v57  ;;  %v10633_v45 = vpop.f32.mrb[131].mxu1  ;;  %v19002_v46 = vpack.c.bf16 %v10252_v37, %v10239_v21  ;;  %v19005_v37 = vpack.c.bf16 %v10267_v1, %v10259_v36 }
 0x3d6   : > { %v2646_v52 = vadd.f32 %v10491_v35, %v2645_v44  ;;  %18996 = vst [vmem:[#allocation51_spill] sm:$0xff] %v10633_v45  ;;  %v1660_v25 = vmax.f32 %v1659_v12, %v10633_v45  ;;  %v18999_v35 = vld [vmem:[#allocation24_spill] sm:$0xff]  ;;  %v10650_v60 = vpop.f32.mrb[132].mxu1  ;;  %v19090_v45 = vld [vmem:[#allocation83_spill] sm:$0xff] }
 0x3d7   : > { %v579_v19 = vmul.f32 %v18990_v58, %v18999_v35  ;;  %v1624_v9 = vmax.f32 %v1623_v48, %v10650_v60  ;;  %v10654_v56 = vpop.f32.mrb[133].mxu1 }
 0x3d8   : > { %3204 = vmatpush1.bf16.msra.mxu1 %v18994_v54  ;;  %v2647_v28 = vadd.f32 %v10495_v63, %v2646_v52  ;;  %19001 = vst [vmem:[#allocation47_spill] sm:$0xff] %v10654_v56  ;;  %v1661_v54 = vmax.f32 %v1660_v25, %v10654_v56  ;;  %v10660_v12 = vpop.f32.mrb[134].mxu1  ;;  %v19003_v63 = vpack.c.bf16 %v10522_v4, %v10513_v2  ;;  %v19006_v25 = vld [vmem:[#allocation25_spill] sm:$0xff] }
 0x3d9   : > { %3205 = vmatprep.subr.bf16.mxu1 %v18995_v62  ;;  %v10667_v62 = vpop.f32.mrb[135].mxu1  ;;  %v649_v48 = vpack.c.bf16 %v579_v19, %v578_v31  ;;  %v19010_v19 = vpack.c.bf16 %v10286_v33, %v10276_v41  ;;  %v19014_v33 = vpack.c.bf16 %v18972_v14, %v10295_v53  ;;  %v19035_v14 = vld [vmem:[#allocation31_spill] sm:$0xff] }
 0x3da   : > { %v2648_v16 = vadd.f32 %v10505_v34, %v2647_v28  ;;  %v1625_v34 = vmax.f32 %v1624_v9, %v10660_v12  ;;  %19004 = vst [vmem:[#allocation36_spill] sm:$0xff] %v10667_v62 }
 0x3db   : > { %7292 = vmatmul.mubr.msk.bf16.gmra.mrb[236].mxu1 %vm264_vm0, %v648_v22  ;;  %v1662_v22 = vmax.f32 %v1661_v54, %v10667_v62 }
 0x3dc   : > { %3206 = vmatpush1.bf16.msra.mxu1 %v18997_v18  ;;  %1452 = vmatprep.mubr.bf16.mxu1 %v18683_v11  ;;  %v2649_v44 = vadd.f32 %v10513_v2, %v2648_v16  ;;  %v580_v2 = vmul.f32 %v18990_v58, %v19006_v25 }
 0x3dd   : > { %3207 = vmatprep.subr.bf16.mxu1 %v19000_v29  ;;  %v10684_v31 = vpop.f32.mrb[136].mxu1 }
 0x3de   : > { %v2650_v52 = vadd.f32 %v10522_v4, %v2649_v44  ;;  %v19007_v4 = vld [vmem:[#allocation30_spill] sm:$0xff]  ;;  %v1626_v36 = vmax.f32 %v1625_v34, %v10684_v31  ;;  %v10688_v1 = vpop.f32.mrb[137].mxu1 }
 0x3df   : > { %v581_v28 = vmul.f32 %v18990_v58, %v19007_v4  ;;  %19009 = vst [vmem:[#allocation32_spill] sm:$0xff] %v10688_v1  ;;  %v1663_v16 = vmax.f32 %v1662_v22, %v10688_v1  ;;  %v10694_v29 = vpop.f32.mrb[138].mxu1 }
 0x3e0   : > { %3208 = vmatpush1.bf16.msra.mxu1 %v19002_v46  ;;  %v2651_v21 = vadd.f32 %v10528_v15, %v2650_v52  ;;  %v19012_v15 = vpack.c.bf16 %v10558_v26, %v10545_v0  ;;  %v10703_v9 = vpop.f32.mrb[139].mxu1 }
 0x3e1   : > { %3209 = vmatprep.subr.bf16.mxu1 %v19003_v63  ;;  %19013 = vst [vmem:[#allocation110_spill] sm:$0xff] %v10703_v9  ;;  %v650_v46 = vpack.c.bf16 %v581_v28, %v580_v2  ;;  %v1664_v54 = vmax.f32 %v1663_v16, %v10703_v9  ;;  %v19019_v28 = vld [vmem:[#allocation38_spill] sm:$0xff]  ;;  %v19023_v16 = vld [vmem:[#allocation100_spill] sm:$0xff] }
 0x3e2   : > { %v2652_v18 = vadd.f32 %v10536_v39, %v2651_v21  ;;  %v1627_v39 = vmax.f32 %v1626_v36, %v10694_v29 }
 0x3e3   : > { %7293 = vmatmul.mubr.msk.bf16.gmra.mrb[240].mxu1 %vm264_vm0, %v649_v48  ;;  %v1665_v52 = vrot.slane %v1664_v54, 4 }
 0x3e4   : > { %3210 = vmatpush1.bf16.msra.mxu1 %v19005_v37  ;;  %1462 = vmatprep.mubr.bf16.mxu1 %v18683_v11  ;;  %v2653_v35 = vadd.f32 %v10545_v0, %v2652_v18  ;;  %v1628_v41 = vrot.slane %v1627_v39, 4  ;;  %v19020_v18 = vld [vmem:[#allocation34_spill] sm:$0xff] }
 0x3e5   : > { %3211 = vmatprep.subr.bf16.mxu1 %v19008_v50  ;;  %v1666_v0 = vmax.f32 %v1664_v54, %v1665_v52  ;;  %v19021_v50 = vpack.c.bf16 %v19019_v28, %v19020_v18  ;;  %v19025_v54 = vld [vmem:[#allocation37_spill] sm:$0xff]  ;;  %v19030_v28 = vld [vmem:[#allocation63_spill] sm:$0xff] }
 0x3e6   : > { %v10697_v44 = vadd.f32 %v10558_v26, %v2653_v35  ;;  %v1629_v63 = vmax.f32 %v1627_v39, %v1628_v41  ;;  %v10711_v26 = vpop.f32.mrb[140].mxu1  ;;  %v19024_v39 = vld [vmem:[#allocation102_spill] sm:$0xff] }
 0x3e7   : > { %19015 = vst [vmem:[#allocation111_spill] sm:$0xff] %v10711_v26  ;;  %v10713_v48 = vpop.f32.mrb[141].mxu1  ;;  %v1667_v22 = vrot.slane %v1666_v0, 2 }
 0x3e8   : > { %3212 = vmatpush1.bf16.msra.mxu1 %v19010_v19  ;;  %19011 = vst [vmem:[#allocation60_spill] sm:$0xff] %v10697_v44  ;;  %v1630_v34 = vrot.slane %v1629_v63, 2  ;;  %19016 = vst [vmem:[#allocation55_spill] sm:$0xff] %v10713_v48  ;;  %v10715_v21 = vpop.f32.mrb[142].mxu1 }
 0x3e9   : > { %3213 = vmatprep.subr.bf16.mxu1 %v19012_v15  ;;  %19017 = vst [vmem:[#allocation112_spill] sm:$0xff] %v10715_v21  ;;  %v10719_v2 = vpop.f32.mrb[143].mxu1  ;;  %v1668_v53 = vmax.f32 %v1666_v0, %v1667_v22 }
 0x3ea   : > { %v1631_v37 = vmax.f32 %v1629_v63, %v1630_v34  ;;  %19018 = vst [vmem:[#allocation113_spill] sm:$0xff] %v10719_v2  ;;  %v19027_v63 = vld [vmem:[#allocation104_spill] sm:$0xff]  ;;  %v19028_v34 = vld [vmem:[#allocation45_spill] sm:$0xff] }
 0x3eb   : > { %7294 = vmatmul.mubr.msk.bf16.gmra.mrb[244].mxu1 %vm264_vm0, %v650_v46  ;;  %v1669_v35 = vrot.slane %v1668_v53, 1 }
 0x3ec   : > { %3214 = vmatpush1.bf16.msra.mxu1 %v19014_v33  ;;  %1472 = vmatprep.mubr.bf16.mxu1 %v18683_v11  ;;  %v1632_v4 = vrot.slane %v1631_v37, 1 }
 0x3ed   : > { %v10730_v19 = vpop.f32.mrb[144].mxu1  ;;  %v10738_v33 = vmax.f32 %v1668_v53, %v1669_v35  ;;  %v19033_v35 = vld [vmem:[#allocation14_spill] sm:$0xff] }
 0x3ee   : > { %v10728_v36 = vmax.f32 %v1631_v37, %v1632_v4  ;;  %19022 = vst [vmem:[#allocation97_spill] sm:$0xff] %v10730_v19  ;;  %v10740_v52 = vpop.f32.mrb[145].mxu1  ;;  %v19029_v37 = vld [vmem:[#allocation53_spill] sm:$0xff]  ;;  %v19045_v19 = vld [vmem:[#allocation50_spill] sm:$0xff] }
 0x3ef   : > { %19026 = vst [vmem:[#allocation98_spill] sm:$0xff] %v10740_v52 }
 0x3f0   : > { %v1883_v15 = vsub.f32 %v19023_v16, %v10728_v36  ;;  %v1885_v46 = vsub.f32 %v19024_v39, %v10728_v36  ;;  %v1887_v41 = vsub.f32 %v19025_v54, %v10728_v36  ;;  %v1889_v0 = vsub.f32 %v19027_v63, %v10728_v36  ;;  %v19032_v16 = vld [vmem:[#allocation57_spill] sm:$0xff]  ;;  %v19034_v54 = vld [vmem:[#allocation20_spill] sm:$0xff] }
 0x3f1   : > { %v1891_v22 = vsub.f32 %v19028_v34, %v10728_v36  ;;  %v1893_v4 = vsub.f32 %v19029_v37, %v10728_v36  ;;  %v1895_v18 = vsub.f32 %v19030_v28, %v10728_v36  ;;  %v1897_v53 = vsub.f32 %v19032_v16, %v10728_v36  ;;  %v19037_v37 = vld [vmem:[#allocation109_spill] sm:$0xff]  ;;  %v19038_v28 = vld [vmem:[#allocation15_spill] sm:$0xff] }
 0x3f2   : > { %v1899_v39 = vsub.f32 %v19033_v35, %v10728_v36  ;;  %v1901_v63 = vsub.f32 %v19034_v54, %v10728_v36  ;;  %v1903_v34 = vsub.f32 %v19035_v14, %v10728_v36  ;;  %v1905_v58 = vsub.f32 %v19037_v37, %v10728_v36 }
 0x3f3   : > { %7295 = vmatmul.mubr.msk.bf16.gmra.mrb[248].mxu1 %vm264_vm0, %v19021_v50  ;;  %v10750_v50 = vpop.f32.mrb[146].mxu1  ;;  %v1907_v44 = vsub.f32 %v19038_v28, %v10728_v36  ;;  %v1909_v16 = vsub.f32 %v10237_v7, %v10728_v36  ;;  %v1911_v35 = vsub.f32 %v10274_v32, %v10728_v36  ;;  %v1913_v54 = vsub.f32 %v10291_v51, %v10728_v36  ;;  %v19040_v28 = vld [vmem:[#allocation42_spill] sm:$0xff] }
 0x3f4   : > { %1482 = vmatprep.mubr.bf16.mxu1 %v18683_v11  ;;  %19031 = vst [vmem:[#allocation44_spill] sm:$0xff] %v10750_v50  ;;  %v10760_v25 = vpop.f32.mrb[147].mxu1  ;;  %v1915_v14 = vsub.f32 %v10338_v40, %v10728_v36  ;;  %v1919_v37 = vsub.f32 %v10396_v49, %v10728_v36  ;;  %v19039_v50 = vld [vmem:[#allocation46_spill] sm:$0xff]  ;;  %v1921_v7 = vsub.f32 %v10417_v38, %v10728_v36  ;;  %v2207_v38 = vmul.f32 1.442695, %v1885_v46 }
 0x3f5   : > { %19036 = vst [vmem:[#allocation40_spill] sm:$0xff] %v10760_v25  ;;  %v1917_v25 = vsub.f32 %v10353_v47, %v10728_v36  ;;  %v19041_v2 = vpack.c.bf16 %v19039_v50, %v19040_v28  ;;  %v1923_v51 = vsub.f32 %v10464_v42, %v10728_v36  ;;  %v1925_v32 = vsub.f32 %v10481_v55, %v10728_v36  ;;  %v10807_v50 = vpop.f32.mrb[148].mxu1  ;;  %v19043_v55 = vld [vmem:[#allocation101_spill] sm:$0xff] }
 0x3f6   : > { %v1927_v40 = vsub.f32 %v10526_v30, %v10728_v36  ;;  %v1929_v49 = vsub.f32 %v10543_v3, %v10728_v36  ;;  %v1931_v47 = vsub.f32 %v10579_v23, %v10728_v36  ;;  %19042 = vst [vmem:[#allocation99_spill] sm:$0xff] %v10807_v50  ;;  %v2203_v28 = vmul.f32 1.442695, %v1883_v15  ;;  %v19044_v3 = vld [vmem:[#allocation54_spill] sm:$0xff] }
 0x3f7   : > { %v2211_v42 = vmul.f32 1.442695, %v1887_v41  ;;  %v2215_v48 = vmul.f32 1.442695, %v1889_v0  ;;  %v2219_v30 = vmul.f32 1.442695, %v1891_v22  ;;  %v19046_v50 = vpack.c.bf16 %v19044_v3, %v19045_v19 }
 0x3f8   : > { %7726 = vpow2.f32 %v2203_v28  ;;  %v2223_v21 = vmul.f32 1.442695, %v1893_v4  ;;  %v2231_v26 = vmul.f32 1.442695, %v1897_v53  ;;  %v2235_v15 = vmul.f32 1.442695, %v1899_v39 }
 0x3f9   : > { %7728 = vpow2.f32 %v2207_v38  ;;  %v2239_v46 = vmul.f32 1.442695, %v1901_v63  ;;  %v2243_v41 = vmul.f32 1.442695, %v1903_v34  ;;  %v2247_v0 = vmul.f32 1.442695, %v1905_v58 }
 0x3fa   : > { %7730 = vpow2.f32 %v2211_v42  ;;  %v2251_v28 = vmul.f32 1.442695, %v1907_v44  ;;  %v2255_v22 = vmul.f32 1.442695, %v1909_v16  ;;  %v2259_v4 = vmul.f32 1.442695, %v1911_v35 }
 0x3fb   : > { %7296 = vmatmul.mubr.msk.bf16.gmra.mrb[252].mxu1 %vm264_vm0, %v19041_v2  ;;  %v2227_v2 = vmul.f32 1.442695, %v1895_v18  ;;  %7732 = vpow2.f32 %v2215_v48  ;;  %v2263_v38 = vmul.f32 1.442695, %v1913_v54  ;;  %v2267_v18 = vmul.f32 1.442695, %v1915_v14 }
 0x3fc   : > { %1492 = vmatprep.mubr.bf16.mxu1 %v18683_v11  ;;  %7734 = vpow2.f32 %v2219_v30  ;;  %v2271_v53 = vmul.f32 1.442695, %v1917_v25  ;;  %v10818_v42 = vmul.f32 1.442695, %v1919_v37  ;;  %v10820_v19 = vmul.f32 1.442695, %v1921_v7 }
 0x3fd   : > { %7736 = vpow2.f32 %v2223_v21  ;;  %v10822_v48 = vmul.f32 1.442695, %v1923_v51  ;;  %v10824_v39 = vmul.f32 1.442695, %v1925_v32  ;;  %v10826_v63 = vmul.f32 1.442695, %v1927_v40 }
 0x3fe   : > { %7738 = vpow2.f32 %v2227_v2  ;;  %v10828_v58 = vmul.f32 1.442695, %v1929_v49  ;;  %v10830_v44 = vmul.f32 1.442695, %v1931_v47  ;;  %v19047_v21 = vld [vmem:[#allocation103_spill] sm:$0xff]  ;;  %v10834_v25 = vpop.f32.mrb[149].mxu1 }
 0x3ff   : > { %7740 = vpow2.f32 %v2231_v26  ;;  %19048 = vst [vmem:[#allocation52_spill] sm:$0xff] %v10834_v25  ;;  %v19049_v16 = vld [vmem:[#allocation33_spill] sm:$0xff]  ;;  %v10842_v7 = vpop.f32.mrb[150].mxu1  ;;  %v19055_v49 = vld [vmem:[#allocation62_spill] sm:$0xff]  ;;  %v19056_v30 = vld [vmem:[#allocation16_spill] sm:$0xff] }
 0x400   : > { %7742 = vpow2.f32 %v2235_v15  ;;  %v19050_v35 = vld [vmem:[#allocation105_spill] sm:$0xff]  ;;  %19052 = vst [vmem:[#allocation48_spill] sm:$0xff] %v10842_v7  ;;  %v10852_v3 = vpop.f32.mrb[151].mxu1  ;;  %v19059_v15 = vld [vmem:[#allocation59_spill] sm:$0xff]  ;;  %v19063_v40 = vld [vmem:[#allocation28_spill] sm:$0xff] }
 0x401   : > { %7744 = vpow2.f32 %v2239_v46  ;;  %v19051_v14 = vld [vmem:[#allocation41_spill] sm:$0xff]  ;;  %19057 = vst [vmem:[#allocation43_spill] sm:$0xff] %v10852_v3  ;;  %v19064_v47 = vld [vmem:[#allocation66_spill] sm:$0xff]  ;;  %v10866_v2 = vpop.f32.mrb[152].mxu1 }
 0x402   : > { %v10844_v51 = vpop.eup %7726  ;;  %7746 = vpow2.f32 %v2243_v41  ;;  %v19054_v32 = vld [vmem:[#allocation49_spill] sm:$0xff]  ;;  %v19062_v41 = vld [vmem:[#allocation22_spill] sm:$0xff]  ;;  %19065 = vst [vmem:[#allocation106_spill] sm:$0xff] %v10866_v2  ;;  %v10877_v26 = vpop.f32.mrb[153].mxu1 }
 0x403   : > { %7297 = vmatmul.mubr.msk.bf16.gmra.mrb[0].mxu1 %vm264_vm0, %v19046_v50  ;;  %19053 = vst [vmem:[#allocation26_spill] sm:$0xff] %v10844_v51  ;;  %v19058_v50 = vld [vmem:[#allocation64_spill] sm:$0xff]  ;;  %v10858_v37 = vpop.eup %7728  ;;  %7748 = vpow2.f32 %v2247_v0  ;;  %v19067_v0 = vld [vmem:[#allocation17_spill] sm:$0xff]  ;;  %19069 = vst [vmem:[#allocation56_spill] sm:$0xff] %v10877_v26  ;;  %v10887_v3 = vpop.f32.mrb[154].mxu1 }
 0x404   : > { %1502 = vmatprep.mubr.bf16.mxu1 %v18683_v11  ;;  %v19060_v46 = vpack.c.bf16 %v19058_v50, %v19059_v15  ;;  %19061 = vst [vmem:[#allocation35_spill] sm:$0xff] %v10858_v37  ;;  %v10869_v52 = vpop.eup %7730  ;;  %7750 = vpow2.f32 %v2251_v28  ;;  %v2661_v50 = vadd.f32 %v10858_v37, %v10844_v51  ;;  %v19071_v34 = vld [vmem:[#allocation58_spill] sm:$0xff]  ;;  %19072 = vst [vmem:[#allocation69_spill] sm:$0xff] %v10887_v3  ;;  %v19076_v28 = vld [vmem:[#allocation23_spill] sm:$0xff] }
 0x405   : > { %19066 = vst [vmem:[#allocation61_spill] sm:$0xff] %v10869_v52  ;;  %v10879_v23 = vpop.eup %7732  ;;  %7752 = vpow2.f32 %v2255_v22  ;;  %v19085_v3 = vld [vmem:[#allocation70_spill] sm:$0xff] }
 0x406   : > { %19070 = vst [vmem:[#allocation107_spill] sm:$0xff] %v10879_v23  ;;  %v10889_v15 = vpop.eup %7734  ;;  %7754 = vpow2.f32 %v2259_v4  ;;  %v2662_v54 = vadd.f32 %v10869_v52, %v2661_v50  ;;  %v19077_v4 = vld [vmem:[#allocation21_spill] sm:$0xff]  ;;  %v19155_v56 = vld [vmem:[#allocation98_spill] sm:$0xff]  ;;  %v19172_v51 = vld [vmem:[#allocation52_spill] sm:$0xff] }
 0x407   : > { %19073 = vst [vmem:[#allocation108_spill] sm:$0xff] %v10889_v15  ;;  %v10898_v7 = vpop.eup %7736  ;;  %7756 = vpow2.f32 %v2263_v38 }
 0x408   : > { %19075 = vst [vmem:[#allocation65_spill] sm:$0xff] %v10898_v7  ;;  %v10908_v26 = vpop.eup %7738  ;;  %7758 = vpow2.f32 %v2267_v18  ;;  %v2663_v22 = vadd.f32 %v10879_v23, %v2662_v54 }
 0x409   : > { %19079 = vst [vmem:[#allocation18_spill] sm:$0xff] %v10908_v26  ;;  %v10917_v37 = vpop.eup %7740  ;;  %7760 = vpow2.f32 %v2271_v53  ;;  %v19089_v53 = vld [vmem:[#allocation85_spill] sm:$0xff] }
 0x40a   : > { %19082 = vst [vmem:[#allocation24_spill] sm:$0xff] %v10917_v37  ;;  %v10927_v52 = vpop.eup %7742  ;;  %7762 = vpow2.f32 %v10818_v42  ;;  %v2664_v38 = vadd.f32 %v10889_v15, %v2663_v22  ;;  %v19091_v20 = vpack.c.bf16 %v19089_v53, %v19090_v45  ;;  %v19099_v22 = vsub.f32 %v10660_v12, %v10728_v36 }
 0x40b   : > { %7298 = vmatmul.mubr.msk.bf16.gmra.mrb[4].mxu1 %vm264_vm0, %v19060_v46  ;;  %v19068_v46 = vld [vmem:[#allocation114_spill] sm:$0xff]  ;;  %19083 = vst [vmem:[#allocation25_spill] sm:$0xff] %v10927_v52  ;;  %v10941_v18 = vpop.eup %7744  ;;  %7764 = vpow2.f32 %v10820_v19  ;;  %v19103_v12 = vsub.f32 %v19043_v55, %v10738_v33 }
 0x40c   : > { %1512 = vmatprep.mubr.bf16.mxu1 %v18683_v11  ;;  %v10896_v11 = vpop.f32.mrb[155].mxu1  ;;  %19088 = vst [vmem:[#allocation38_spill] sm:$0xff] %v10941_v18  ;;  %7766 = vpow2.f32 %v10822_v48  ;;  %v19096_v48 = vsub.f32 %v10626_v57, %v10728_v36 }
 0x40d   : > { %19074 = vst [vmem:[#allocation68_spill] sm:$0xff] %v10896_v11  ;;  %v10906_v25 = vpop.f32.mrb[156].mxu1  ;;  %v19080_v11 = vld [vmem:[#allocation29_spill] sm:$0xff]  ;;  %7768 = vpow2.f32 %v10824_v39  ;;  %v2319_v39 = vmul.f32 1.442695, %v19099_v22 }
 0x40e   : > { %19078 = vst [vmem:[#allocation13_spill] sm:$0xff] %v10906_v25  ;;  %v10915_v2 = vpop.f32.mrb[157].mxu1  ;;  %v19086_v25 = vld [vmem:[#allocation67_spill] sm:$0xff]  ;;  %v2311_v53 = vmul.f32 1.442695, %v19096_v48  ;;  %7770 = vpow2.f32 %v10826_v63 }
 0x40f   : > { %19081 = vst [vmem:[#allocation19_spill] sm:$0xff] %v10915_v2  ;;  %v10925_v54 = vpop.f32.mrb[158].mxu1  ;;  %v19087_v23 = vpack.c.bf16 %v19085_v3, %v19086_v25  ;;  %v10953_v25 = vpop.eup %7746  ;;  %v2665_v3 = vadd.f32 %v10898_v7, %v2664_v38  ;;  %7772 = vpow2.f32 %v10828_v58  ;;  %v2205_v22 = vmul.f32 1.442695, %v19103_v12 }
 0x410   : > { %v10935_v2 = vpop.f32.mrb[159].mxu1  ;;  %19092 = vst [vmem:[#allocation34_spill] sm:$0xff] %v10953_v25  ;;  %v10962_v42 = vpop.eup %7748  ;;  %7774 = vpow2.f32 %v10830_v44  ;;  %v19106_v58 = vsub.f32 %v19049_v16, %v10738_v33  ;;  %v19111_v44 = vsub.f32 %v19054_v32, %v10738_v33  ;;  %v19112_v16 = vsub.f32 %v19055_v49, %v10738_v33  ;;  %v19116_v49 = vld [vmem:[#allocation84_spill] sm:$0xff] }
 0x411   : > { %19084 = vst [vmem:[#allocation30_spill] sm:$0xff] %v10935_v2  ;;  %19094 = vst [vmem:[#allocation100_spill] sm:$0xff] %v10962_v42  ;;  %v10974_v38 = vpop.eup %7750  ;;  %v2666_v50 = vadd.f32 %v10908_v26, %v2665_v3  ;;  %v10984_v57 = vpop.f32.mrb[160].mxu1  ;;  %v19115_v32 = vsub.f32 %v19062_v41, %v10738_v33  ;;  %v19176_v26 = vld [vmem:[#allocation48_spill] sm:$0xff] }
 0x412   : > { %19098 = vst [vmem:[#allocation102_spill] sm:$0xff] %v10974_v38  ;;  %v10986_v48 = vpop.eup %7752  ;;  %v2213_v9 = vmul.f32 1.442695, %v19106_v58  ;;  %v11008_v55 = vpop.f32.mrb[161].mxu1 }
 0x413   : > { %7299 = vmatmul.mubr.msk.bf16.gmra.mrb[8].mxu1 %vm264_vm0, %v19087_v23  ;;  %v19093_v23 = vsub.f32 %v10589_v59, %v10728_v36  ;;  %v19097_v59 = vsub.f32 %v10650_v60, %v10728_v36  ;;  %19101 = vst [vmem:[#allocation37_spill] sm:$0xff] %v10986_v48  ;;  %v19102_v60 = vsub.f32 %v10694_v29, %v10728_v36  ;;  %19108 = vst [vmem:[#allocation45_spill] sm:$0xff] %v11008_v55 }
 0x414   : > { %3215 = vmatprep.mubr.bf16.mxu1 %v19091_v20  ;;  %v19095_v20 = vsub.f32 %v10616_v61, %v10728_v36  ;;  %v19100_v61 = vsub.f32 %v10684_v31, %v10728_v36  ;;  %v19104_v31 = vsub.f32 %v19047_v21, %v10738_v33  ;;  %v2667_v3 = vadd.f32 %v10917_v37, %v2666_v50 }
 0x415   : > { %v2303_v19 = vmul.f32 1.442695, %v19093_v23  ;;  %v2315_v23 = vmul.f32 1.442695, %v19097_v59  ;;  %v2327_v63 = vmul.f32 1.442695, %v19102_v60  ;;  %v19107_v29 = vsub.f32 %v19050_v35, %v10738_v33 }
 0x416   : > { %v2307_v45 = vmul.f32 1.442695, %v19095_v20  ;;  %v2323_v20 = vmul.f32 1.442695, %v19100_v61  ;;  %v2209_v59 = vmul.f32 1.442695, %v19104_v31  ;;  %v10998_v61 = vpop.eup %7754  ;;  %v19110_v21 = vsub.f32 %v19051_v14, %v10738_v33 }
 0x417   : > { %19105 = vst [vmem:[#allocation104_spill] sm:$0xff] %v10998_v61  ;;  %v2217_v36 = vmul.f32 1.442695, %v19107_v29  ;;  %v11010_v60 = vpop.eup %7756  ;;  %7776 = vpow2.f32 %v2303_v19  ;;  %v11020_v50 = vmul.f32 1.442695, %v19111_v44  ;;  %v2668_v19 = vadd.f32 %v10927_v52, %v2667_v3  ;;  %v19117_v44 = vld [vmem:[#allocation82_spill] sm:$0xff] }
 0x418   : > { %19109 = vst [vmem:[#allocation53_spill] sm:$0xff] %v11010_v60  ;;  %v11015_v12 = vmul.f32 1.442695, %v19110_v21  ;;  %v11025_v35 = vmul.f32 1.442695, %v19112_v16  ;;  %v11027_v31 = vpop.eup %7758  ;;  %7778 = vpow2.f32 %v2307_v45  ;;  %v19114_v14 = vsub.f32 %v19056_v30, %v10738_v33  ;;  %v11040_v21 = vpop.f32.mrb[162].mxu1 }
 0x419   : > { %19113 = vst [vmem:[#allocation63_spill] sm:$0xff] %v11027_v31  ;;  %v11038_v29 = vmul.f32 1.442695, %v19115_v32  ;;  %v19118_v16 = vpack.c.bf16 %v19116_v49, %v19117_v44  ;;  %v11045_v1 = vpop.eup %7760  ;;  %7780 = vpow2.f32 %v2311_v53  ;;  %v19120_v45 = vsub.f32 %v19063_v40, %v10738_v33  ;;  %v19177_v52 = vld [vmem:[#allocation43_spill] sm:$0xff] }
 0x41a   : > { %v11033_v58 = vmul.f32 1.442695, %v19114_v14  ;;  %19119 = vst [vmem:[#allocation57_spill] sm:$0xff] %v11045_v1  ;;  %v19121_v3 = vsub.f32 %v19064_v47, %v10738_v33  ;;  %v19122_v14 = vsub.f32 %v19067_v0, %v10738_v33  ;;  %v19123_v49 = vmov 0.0   ;;  %v11063_v44 = vpop.eup %7762  ;;  %v11076_v0 = vpop.f32.mrb[163].mxu1 }
 0x41b   : > { %3216 = vmatmul.mubr.bf16.vlgmr.msra.gmra.mrb[12].mxu1 %v19118_v16  ;;  %v11050_v30 = vmul.f32 1.442695, %v19120_v45  ;;  %19124 = vst [vmem:[#allocation14_spill] sm:$0xff] %v11063_v44  ;;  %7782 = vpow2.f32 %v2315_v23  ;;  %v2669_v53 = vadd.f32 %v10941_v18, %v2668_v19  ;;  %v19125_v40 = vsub.f32 %v19068_v46, %v10738_v33  ;;  %19127 = vst [vmem:[#allocation20_spill] sm:$0xff] %v11076_v0 }
 0x41c   : > { %v11055_v41 = vmul.f32 1.442695, %v19121_v3  ;;  %v11060_v32 = vmul.f32 1.442695, %v19122_v14  ;;  %6428 = vmatprep.mubr.f32.mxu1 %v19123_v49  ;;  %v19126_v47 = vsub.f32 %v19071_v34, %v10738_v33  ;;  %v11078_v3 = vpop.eup %7764  ;;  %7784 = vpow2.f32 %v2319_v39  ;;  %v11108_v49 = vpop.f32.mrb[164].mxu1 }
 0x41d   : > { %v11069_v16 = vmul.f32 1.442695, %v19125_v40  ;;  %19128 = vst [vmem:[#allocation31_spill] sm:$0xff] %v11078_v3  ;;  %v19129_v23 = vsub.f32 %v10282_v13, %v10738_v33  ;;  %v19130_v46 = vsub.f32 %v10299_v5, %v10738_v33  ;;  %v19131_v34 = vsub.f32 %v10342_v24, %v10738_v33  ;;  %19135 = vst [vmem:[#allocation15_spill] sm:$0xff] %v11108_v49  ;;  %v19152_v49 = vld [vmem:[#allocation111_spill] sm:$0xff] }
 0x41e   : > { %v11074_v45 = vmul.f32 1.442695, %v19126_v47  ;;  %v11095_v47 = vpop.eup %7766  ;;  %7786 = vpow2.f32 %v2323_v20  ;;  %v2670_v39 = vadd.f32 %v10953_v25, %v2669_v53  ;;  %v19133_v13 = vsub.f32 %v10357_v43, %v10738_v33  ;;  %v19185_v25 = vld [vmem:[#allocation68_spill] sm:$0xff] }
 0x41f   : > { %v11083_v14 = vmul.f32 1.442695, %v19129_v23  ;;  %v11088_v19 = vmul.f32 1.442695, %v19130_v46  ;;  %v11093_v40 = vmul.f32 1.442695, %v19131_v34  ;;  %v19134_v5 = vsub.f32 %v10404_v10, %v10738_v33  ;;  %v11110_v24 = vpop.eup %7768 }
 0x420   : > { %19132 = vst [vmem:[#allocation109_spill] sm:$0xff] %v11095_v47  ;;  %v11101_v23 = vmul.f32 1.442695, %v19133_v13  ;;  %19136 = vst [vmem:[#allocation46_spill] sm:$0xff] %v11110_v24  ;;  %7788 = vpow2.f32 %v2327_v63  ;;  %v19137_v20 = vsub.f32 %v19076_v28, %v10738_v33  ;;  %v19138_v43 = vsub.f32 %v19077_v4, %v10738_v33 }
 0x421   : > { %v11106_v46 = vmul.f32 1.442695, %v19134_v5  ;;  %v19140_v10 = vsub.f32 %v19080_v11, %v10738_v33  ;;  %v11127_v5 = vpop.eup %7770  ;;  %v2671_v62 = vadd.f32 %v10962_v42, %v2670_v39  ;;  %7790 = vpow2.f32 %v2205_v22  ;;  %v19151_v22 = vld [vmem:[#allocation97_spill] sm:$0xff] }
 0x422   : > { %v11115_v34 = vmul.f32 1.442695, %v19137_v20  ;;  %v11120_v53 = vmul.f32 1.442695, %v19138_v43  ;;  %19142 = vst [vmem:[#allocation54_spill] sm:$0xff] %v11127_v5  ;;  %v19143_v28 = vsub.f32 %v10534_v6, %v10738_v33  ;;  %v19145_v4 = vsub.f32 %v10556_v8, %v10738_v33  ;;  %v11140_v43 = vpop.f32.mrb[165].mxu1  ;;  %v11142_v11 = vpop.eup %7772 }
 0x423   : > { %v11125_v13 = vmul.f32 1.442695, %v19140_v10  ;;  %19147 = vst [vmem:[#allocation33_spill] sm:$0xff] %v11140_v43  ;;  %19148 = vst [vmem:[#allocation105_spill] sm:$0xff] %v11142_v11  ;;  %7792 = vpow2.f32 %v2209_v59  ;;  %v19149_v10 = vsub.f32 %v10583_v17, %v10738_v33  ;;  %v19153_v6 = vld [vmem:[#allocation112_spill] sm:$0xff]  ;;  %v19157_v8 = vld [vmem:[#allocation113_spill] sm:$0xff]  ;;  %v11159_v43 = vpop.eup %7774  ;;  %v2672_v59 = vadd.f32 %v10974_v38, %v2671_v62 }
 0x424   : > { %19139 = vst [vmem:[#allocation42_spill] sm:$0xff] %v11120_v53  ;;  %v11133_v63 = vmul.f32 1.442695, %v19143_v28  ;;  %v11138_v20 = vmul.f32 1.442695, %v19145_v4  ;;  %v19154_v28 = vmax.f32 %v19152_v49, %v19153_v6  ;;  %v11157_v53 = vpop.f32.mrb[166].mxu1  ;;  %7794 = vpow2.f32 %v2213_v9  ;;  %v11171_v6 = vpop.eup %7776 }
 0x425   : > { %19141 = vst [vmem:[#allocation101_spill] sm:$0xff] %v11125_v13  ;;  %v11147_v39 = vmul.f32 1.442695, %v19149_v10  ;;  %v19156_v13 = vld [vmem:[#allocation55_spill] sm:$0xff]  ;;  %19159 = vst [vmem:[#allocation49_spill] sm:$0xff] %v11157_v53  ;;  %v19161_v17 = vsub.f32 %v10596_v27, %v10738_v33  ;;  %7796 = vpow2.f32 %v2217_v36  ;;  %v11177_v53 = vpop.eup %7778  ;;  %v2673_v27 = vadd.f32 %v10986_v48, %v2672_v59  ;;  %v19180_v38 = vld [vmem:[#allocation106_spill] sm:$0xff] }
 0x426   : > { %19144 = vst [vmem:[#allocation50_spill] sm:$0xff] %v11133_v63  ;;  %19146 = vst [vmem:[#allocation103_spill] sm:$0xff] %v11138_v20  ;;  %v1672_v63 = vmax.f32 %v19154_v28, %v19151_v22  ;;  %v19158_v4 = vmax.f32 %v19156_v13, %v19157_v8  ;;  %v19166_v8 = vld [vmem:[#allocation40_spill] sm:$0xff]  ;;  %7798 = vpow2.f32 %v11015_v12  ;;  %v11185_v36 = vpop.eup %7780 }
 0x427   : > { %19150 = vst [vmem:[#allocation41_spill] sm:$0xff] %v11147_v39  ;;  %19160 = vst [vmem:[#allocation62_spill] sm:$0xff] %v11159_v43  ;;  %v11165_v10 = vmul.f32 1.442695, %v19161_v17  ;;  %v11167_v39 = vpop.f32.mrb[167].mxu1  ;;  %7800 = vpow2.f32 %v11020_v50  ;;  %v11194_v12 = vpop.eup %7782  ;;  %v2674_v17 = vadd.f32 %v10998_v61, %v2673_v27  ;;  %v19181_v61 = vld [vmem:[#allocation56_spill] sm:$0xff] }
 0x428   : > { %v1709_v20 = vmax.f32 %v19158_v4, %v19155_v56  ;;  %19162 = vst [vmem:[#allocation16_spill] sm:$0xff] %v11167_v39  ;;  %19164 = vst [vmem:[#allocation64_spill] sm:$0xff] %v11171_v6  ;;  %v19165_v4 = vld [vmem:[#allocation44_spill] sm:$0xff]  ;;  %v11190_v49 = vpop.f32.mrb[168].mxu1  ;;  %7802 = vpow2.f32 %v11025_v35 }
 0x429   : > { %v1673_v56 = vmax.f32 %v1672_v63, %v19165_v4  ;;  %19169 = vst [vmem:[#allocation59_spill] sm:$0xff] %v11177_v53  ;;  %19170 = vst [vmem:[#allocation22_spill] sm:$0xff] %v11185_v36  ;;  %v19171_v63 = vld [vmem:[#allocation99_spill] sm:$0xff]  ;;  %v11198_v22 = vpop.f32.mrb[169].mxu1  ;;  %7804 = vpow2.f32 %v11033_v58  ;;  %v2675_v50 = vadd.f32 %v11010_v60, %v2674_v17 }
 0x42a   : > { %v1710_v13 = vmax.f32 %v1709_v20, %v19166_v8  ;;  %19173 = vst [vmem:[#allocation28_spill] sm:$0xff] %v11194_v12  ;;  %19174 = vst [vmem:[#allocation66_spill] sm:$0xff] %v11198_v22  ;;  %v11209_v37 = vpop.f32.mrb[170].mxu1  ;;  %7806 = vpow2.f32 %v11038_v29 }
 0x42b   : > { %v1674_v20 = vmax.f32 %v1673_v56, %v19171_v63  ;;  %v11217_v56 = vpop.f32.mrb[171].mxu1  ;;  %7808 = vpow2.f32 %v11050_v30  ;;  %v2676_v60 = vadd.f32 %v11027_v31, %v2675_v50  ;;  %v19189_v31 = vld [vmem:[#allocation19_spill] sm:$0xff] }
 0x42c   : > { %v1711_v9 = vmax.f32 %v1710_v13, %v19172_v51  ;;  %v11204_v13 = vpop.eup %7784  ;;  %7810 = vpow2.f32 %v11055_v41  ;;  %v11258_v15 = vpop.f32.mrb[172].mxu1 }
 0x42d   : > { %19175 = vst [vmem:[#allocation17_spill] sm:$0xff] %v11204_v13  ;;  %v1675_v59 = vmax.f32 %v1674_v20, %v19176_v26  ;;  %v11213_v27 = vpop.eup %7786  ;;  %7812 = vpow2.f32 %v11060_v32  ;;  %v2677_v41 = vadd.f32 %v11045_v1, %v2676_v60  ;;  %v11267_v7 = vpop.f32.mrb[173].mxu1 }
 0x42e   : > { %v1712_v18 = vmax.f32 %v1711_v9, %v19177_v52  ;;  %19178 = vst [vmem:[#allocation114_spill] sm:$0xff] %v11213_v27  ;;  %v11223_v9 = vpop.eup %7788  ;;  %7814 = vpow2.f32 %v11069_v16  ;;  %v11276_v62 = vpop.f32.mrb[174].mxu1 }
 0x42f   : > { %19179 = vst [vmem:[#allocation58_spill] sm:$0xff] %v11223_v9  ;;  %v1676_v35 = vmax.f32 %v1675_v59, %v19180_v38  ;;  %v11230_v29 = vpop.eup %7790  ;;  %7816 = vpow2.f32 %v11074_v45  ;;  %v2678_v1 = vadd.f32 %v11063_v44, %v2677_v41  ;;  %v11285_v44 = vpop.f32.mrb[175].mxu1 }
 0x430   : > { %v1713_v48 = vmax.f32 %v1712_v18, %v19181_v61  ;;  %19182 = vst [vmem:[#allocation23_spill] sm:$0xff] %v11230_v29  ;;  %v11238_v30 = vpop.eup %7792  ;;  %v19184_v18 = vld [vmem:[#allocation69_spill] sm:$0xff]  ;;  %7818 = vpow2.f32 %v11083_v14  ;;  %19193 = vst [vmem:[#allocation84_spill] sm:$0xff] %v11285_v44 }
 0x431   : > { %19183 = vst [vmem:[#allocation21_spill] sm:$0xff] %v11238_v30  ;;  %v1677_v59 = vmax.f32 %v1676_v35, %v19184_v18  ;;  %v11245_v50 = vpop.eup %7794  ;;  %v2698_v58 = vadd.f32 %v11238_v30, %v11230_v29  ;;  %7820 = vpow2.f32 %v11088_v19  ;;  %v19208_v30 = vld [vmem:[#allocation33_spill] sm:$0xff] }
 0x432   : > { %v1714_v17 = vmax.f32 %v1713_v48, %v19185_v25  ;;  %19186 = vst [vmem:[#allocation29_spill] sm:$0xff] %v11245_v50  ;;  %v11253_v32 = vpop.eup %7796  ;;  %v19188_v48 = vld [vmem:[#allocation13_spill] sm:$0xff]  ;;  %7822 = vpow2.f32 %v11093_v40 }
 0x433   : > { %19187 = vst [vmem:[#allocation70_spill] sm:$0xff] %v11253_v32  ;;  %v1678_v35 = vmax.f32 %v1677_v59, %v19188_v48  ;;  %v11262_v16 = vpop.eup %7798  ;;  %v2699_v20 = vadd.f32 %v11245_v50, %v2698_v58  ;;  %v2679_v58 = vadd.f32 %v11078_v3, %v2678_v1  ;;  %7824 = vpow2.f32 %v11101_v23 }
 0x434   : > { %v1715_v42 = vmax.f32 %v1714_v17, %v19189_v31  ;;  %19190 = vst [vmem:[#allocation67_spill] sm:$0xff] %v11262_v16  ;;  %v11271_v59 = vpop.eup %7800  ;;  %7826 = vpow2.f32 %v11106_v46 }
 0x435   : > { %19191 = vst [vmem:[#allocation85_spill] sm:$0xff] %v11271_v59  ;;  %v1679_v17 = vmax.f32 %v1678_v35, %v10925_v54  ;;  %v11280_v41 = vpop.eup %7802  ;;  %v2700_v45 = vadd.f32 %v11253_v32, %v2699_v20  ;;  %v2680_v20 = vadd.f32 %v11095_v47, %v2679_v58  ;;  %7828 = vpow2.f32 %v11115_v34 }
 0x436   : > { %v1716_v60 = vmax.f32 %v1715_v42, %v10935_v2  ;;  %19192 = vst [vmem:[#allocation83_spill] sm:$0xff] %v11280_v41  ;;  %v11289_v35 = vpop.eup %7804  ;;  %v19195_v42 = vld [vmem:[#allocation39_spill] sm:$0xff] }
 0x437   : > { %19194 = vst [vmem:[#allocation82_spill] sm:$0xff] %v11289_v35  ;;  %v19196_v14 = vsub.f32 %v19195_v42, %v10738_v33  ;;  %v1680_v28 = vmax.f32 %v1679_v17, %v10984_v57  ;;  %v11297_v40 = vpop.eup %7806  ;;  %v2701_v19 = vadd.f32 %v11262_v16, %v2700_v45  ;;  %v2681_v46 = vadd.f32 %v11110_v24, %v2680_v20  ;;  %v19202_v45 = vld [vmem:[#allocation42_spill] sm:$0xff]  ;;  %v19204_v16 = vld [vmem:[#allocation101_spill] sm:$0xff]  ;;  %v11327_v20 = vpop.f32.mrb[176].mxu1 }
 0x438   : > { %v1717_v1 = vmax.f32 %v1716_v60, %v11008_v55  ;;  %19197 = vst [vmem:[#allocation44_spill] sm:$0xff] %v11297_v40  ;;  %v11304_v23 = vpop.eup %7808  ;;  %7830 = vpow2.f32 %v19202_v45  ;;  %v19210_v24 = vld [vmem:[#allocation50_spill] sm:$0xff]  ;;  %v19216_v55 = vld [vmem:[#allocation49_spill] sm:$0xff] }
 0x439   : > { %v2309_v50 = vmul.f32 1.442695, %v19196_v14  ;;  %19198 = vst [vmem:[#allocation40_spill] sm:$0xff] %v11304_v23  ;;  %v19199_v14 = vld [vmem:[#allocation51_spill] sm:$0xff]  ;;  %v1681_v60 = vmax.f32 %v1680_v28, %v11040_v21  ;;  %v11312_v58 = vpop.eup %7810  ;;  %v2702_v3 = vadd.f32 %v11271_v59, %v2701_v19  ;;  %7832 = vpow2.f32 %v19204_v16  ;;  %v11334_v59 = vpop.f32.mrb[177].mxu1 }
 0x43a   : > { %v19200_v17 = vsub.f32 %v19199_v14, %v10738_v33  ;;  %v1718_v32 = vmax.f32 %v1717_v1, %v11076_v0  ;;  %19201 = vst [vmem:[#allocation99_spill] sm:$0xff] %v11312_v58  ;;  %v11319_v34 = vpop.eup %7812  ;;  %v19205_v14 = vld [vmem:[#allocation47_spill] sm:$0xff]  ;;  %v2682_v19 = vadd.f32 %v11127_v5, %v2681_v46  ;;  %7834 = vpow2.f32 %v19210_v24  ;;  %19211 = vst [vmem:[#allocation43_spill] sm:$0xff] %v11334_v59  ;;  %v11346_v24 = vpop.f32.mrb[178].mxu1 }
 0x43b   : > { %19203 = vst [vmem:[#allocation52_spill] sm:$0xff] %v11319_v34  ;;  %v19206_v28 = vsub.f32 %v19205_v14, %v10738_v33  ;;  %v19207_v1 = vld [vmem:[#allocation15_spill] sm:$0xff]  ;;  %v11329_v45 = vpop.eup %7814  ;;  %v2703_v47 = vadd.f32 %v11280_v41, %v2702_v3  ;;  %v19218_v41 = vld [vmem:[#allocation41_spill] sm:$0xff]  ;;  %v11353_v31 = vpop.f32.mrb[179].mxu1 }
 0x43c   : > { %v2313_v42 = vmul.f32 1.442695, %v19200_v17  ;;  %v1682_v29 = vmax.f32 %v1681_v60, %v19207_v1  ;;  %v1719_v0 = vmax.f32 %v1718_v32, %v19208_v30  ;;  %19209 = vst [vmem:[#allocation48_spill] sm:$0xff] %v11329_v45  ;;  %v11338_v14 = vpop.eup %7816  ;;  %v19213_v60 = vld [vmem:[#allocation103_spill] sm:$0xff]  ;;  %v19214_v32 = vld [vmem:[#allocation36_spill] sm:$0xff]  ;;  %v2683_v5 = vadd.f32 %v11142_v11, %v2682_v19  ;;  %19219 = vst [vmem:[#allocation69_spill] sm:$0xff] %v11353_v31 }
 0x43d   : > { %v2317_v17 = vmul.f32 1.442695, %v19206_v28  ;;  %19212 = vst [vmem:[#allocation106_spill] sm:$0xff] %v11338_v14  ;;  %7836 = vpow2.f32 %v19213_v60  ;;  %v19215_v28 = vsub.f32 %v19214_v32, %v10738_v33  ;;  %v11348_v3 = vpop.eup %7818  ;;  %v2704_v16 = vadd.f32 %v11289_v35, %v2703_v47 }
 0x43e   : > { %v1683_v2 = vmax.f32 %v1682_v29, %v19216_v55  ;;  %v1720_v46 = vmax.f32 %v1719_v0, %v11167_v39  ;;  %19217 = vst [vmem:[#allocation56_spill] sm:$0xff] %v11348_v3  ;;  %7838 = vpow2.f32 %v19218_v41  ;;  %v11357_v32 = vpop.eup %7820  ;;  %v19221_v0 = vld [vmem:[#allocation32_spill] sm:$0xff]  ;;  %v2684_v47 = vadd.f32 %v11159_v43, %v2683_v5 }
 0x43f   : > { %v2321_v30 = vmul.f32 1.442695, %v19215_v28  ;;  %19220 = vst [vmem:[#allocation68_spill] sm:$0xff] %v11357_v32  ;;  %7840 = vpow2.f32 %v11165_v10  ;;  %v19222_v29 = vsub.f32 %v19221_v0, %v10738_v33  ;;  %v11365_v41 = vpop.eup %7822  ;;  %v2705_v11 = vadd.f32 %v11297_v40, %v2704_v16  ;;  %v19225_v10 = vld [vmem:[#allocation110_spill] sm:$0xff] }
 0x440   : > { %v1684_v39 = vmax.f32 %v1683_v2, %v11190_v49  ;;  %v1721_v19 = vmax.f32 %v1720_v46, %v11198_v22  ;;  %19223 = vst [vmem:[#allocation13_spill] sm:$0xff] %v11365_v41  ;;  %7842 = vpow2.f32 %v2309_v50  ;;  %v11371_v35 = vpop.eup %7824  ;;  %v19226_v0 = vsub.f32 %v19225_v10, %v10738_v33 }
 0x441   : > { %v2325_v28 = vmul.f32 1.442695, %v19222_v29  ;;  %19224 = vst [vmem:[#allocation39_spill] sm:$0xff] %v11371_v35  ;;  %7844 = vpow2.f32 %v2313_v42  ;;  %v11378_v22 = vpop.eup %7826  ;;  %v2685_v5 = vadd.f32 %v11171_v6, %v2684_v47  ;;  %v2706_v50 = vadd.f32 %v11304_v23, %v2705_v11  ;;  %v19229_v42 = vld [vmem:[#allocation27_spill] sm:$0xff] }
 0x442   : > { %v2329_v29 = vmul.f32 1.442695, %v19226_v0  ;;  %v1685_v2 = vmax.f32 %v1684_v39, %v11209_v37  ;;  %v1722_v46 = vmax.f32 %v1721_v19, %v11217_v56  ;;  %19227 = vst [vmem:[#allocation51_spill] sm:$0xff] %v11378_v22  ;;  %7846 = vpow2.f32 %v2317_v17  ;;  %v11384_v60 = vpop.eup %7828  ;;  %v11389_v19 = vpop.f32.mrb[180].mxu1 }
 0x443   : > { %19228 = vst [vmem:[#allocation42_spill] sm:$0xff] %v11384_v60  ;;  %v2618_v43 = vrot.slane %v19229_v42, 4  ;;  %7848 = vpow2.f32 %v2321_v30  ;;  %v11391_v10 = vpop.eup %7830  ;;  %v2686_v17 = vadd.f32 %v11177_v53, %v2685_v5  ;;  %v2707_v11 = vadd.f32 %v11312_v58, %v2706_v50  ;;  %v11395_v47 = vpop.f32.mrb[181].mxu1 }
 0x444   : > { %v1686_v33 = vmax.f32 %v1685_v2, %v11258_v15  ;;  %v1723_v39 = vmax.f32 %v1722_v46, %v11267_v7  ;;  %19230 = vst [vmem:[#allocation101_spill] sm:$0xff] %v11391_v10  ;;  %7850 = vpow2.f32 %v2325_v28  ;;  %19231 = vst [vmem:[#allocation47_spill] sm:$0xff] %v11395_v47  ;;  %v11399_v16 = vpop.eup %7832  ;;  %v11403_v46 = vpop.f32.mrb[182].mxu1 }
 0x445   : > { %19232 = vst [vmem:[#allocation15_spill] sm:$0xff] %v11399_v16  ;;  %7852 = vpow2.f32 %v2329_v29  ;;  %v11405_v6 = vpop.eup %7834  ;;  %v2687_v28 = vadd.f32 %v11185_v36, %v2686_v17  ;;  %v2708_v5 = vadd.f32 %v11319_v34, %v2707_v11  ;;  %v11409_v50 = vpop.f32.mrb[183].mxu1  ;;  %v2619_v29 = vadd.f32 %v2618_v43, %v19229_v42 }
 0x446   : > { %v1687_v30 = vmax.f32 %v1686_v33, %v11276_v62  ;;  %v1724_v2 = vmax.f32 %v1723_v39, %v11285_v44  ;;  %19233 = vst [vmem:[#allocation50_spill] sm:$0xff] %v11405_v6  ;;  %19234 = vst [vmem:[#allocation103_spill] sm:$0xff] %v11409_v50 }
 0x447   : > { %v11413_v53 = vpop.eup %7836  ;;  %v2688_v40 = vadd.f32 %v11194_v12, %v2687_v28  ;;  %v2709_v17 = vadd.f32 %v11329_v45, %v2708_v5  ;;  %v2620_v5 = vrot.slane %v2619_v29, 2  ;;  %v11438_v45 = vpop.f32.mrb[184].mxu1 }
 0x448   : > { %19235 = vst [vmem:[#allocation36_spill] sm:$0xff] %v11413_v53  ;;  %v1688_v33 = vmax.f32 %v1687_v30, %v11327_v20  ;;  %v1725_v39 = vmax.f32 %v1724_v2, %v11334_v59  ;;  %v11418_v58 = vpop.eup %7838 }
 0x449   : > { %19236 = vst [vmem:[#allocation49_spill] sm:$0xff] %v11418_v58  ;;  %v11424_v36 = vpop.eup %7840  ;;  %v2689_v42 = vadd.f32 %v11204_v13, %v2688_v40  ;;  %v2710_v30 = vadd.f32 %v11338_v14, %v2709_v17  ;;  %v11444_v13 = vpop.f32.mrb[185].mxu1 }
 0x44a   : > { %19237 = vst [vmem:[#allocation41_spill] sm:$0xff] %v11424_v36  ;;  %v1689_v0 = vmax.f32 %v1688_v33, %v11346_v24  ;;  %v1726_v34 = vmax.f32 %v1725_v39, %v11353_v31  ;;  %v11428_v43 = vpop.eup %7842 }
 0x44b   : > { %19238 = vst [vmem:[#allocation32_spill] sm:$0xff] %v11428_v43  ;;  %v11434_v28 = vpop.eup %7844  ;;  %v2690_v39 = vadd.f32 %v11213_v27, %v2689_v42  ;;  %v2711_v40 = vadd.f32 %v11348_v3, %v2710_v30  ;;  %v2621_v3 = vadd.f32 %v2620_v5, %v2619_v29 }
 0x44c   : > { %19239 = vst [vmem:[#allocation110_spill] sm:$0xff] %v11434_v28  ;;  %v1690_v11 = vmax.f32 %v1689_v0, %v11389_v19  ;;  %v1727_v12 = vmax.f32 %v1726_v34, %v11395_v47  ;;  %v11440_v33 = vpop.eup %7846  ;;  %v11452_v34 = vpop.f32.mrb[186].mxu1 }
 0x44d   : > { %19240 = vst [vmem:[#allocation27_spill] sm:$0xff] %v11440_v33  ;;  %v11448_v2 = vpop.eup %7848  ;;  %v2691_v47 = vadd.f32 %v11223_v9, %v2690_v39  ;;  %v2712_v42 = vadd.f32 %v11357_v32, %v2711_v40  ;;  %v11458_v30 = vpop.f32.mrb[187].mxu1  ;;  %v2622_v59 = vrot.slane %v2621_v3, 1 }
 0x44e   : > { %19241 = vst [vmem:[#allocation115_spill] sm:$0xff] %v11448_v2  ;;  %v1691_v14 = vmax.f32 %v1690_v11, %v11403_v46  ;;  %v1728_v0 = vmax.f32 %v1727_v12, %v11409_v50  ;;  %v11454_v23 = vpop.eup %7850  ;;  %v11472_v44 = vpop.f32.mrb[188].mxu1 }
 0x44f   : > { %19242 = vst [vmem:[#allocation116_spill] sm:$0xff] %v11454_v23  ;;  %v11462_v17 = vpop.eup %7852  ;;  %v2692_v50 = vrot.slane %v2691_v47, 4  ;;  %v2713_v31 = vadd.f32 %v11365_v41, %v2712_v42 }
 0x450   : > { %19243 = vst [vmem:[#allocation117_spill] sm:$0xff] %v11462_v17  ;;  %v1692_v11 = vmax.f32 %v1691_v14, %v11438_v45  ;;  %v1729_v12 = vmax.f32 %v1728_v0, %v11444_v13  ;;  %v11476_v0 = vpop.f32.mrb[189].mxu1 }
 0x451   : > { %v2693_v32 = vadd.f32 %v2692_v50, %v2691_v47  ;;  %v2714_v27 = vadd.f32 %v11371_v35, %v2713_v31  ;;  %v11479_v39 = vpop.f32.mrb[190].mxu1  ;;  %v2623_v50 = vadd.f32 %v2622_v59, %v2621_v3 }
 0x452   : > { %v1693_v40 = vmax.f32 %v1692_v11, %v11452_v34  ;;  %v1730_v9 = vmax.f32 %v1729_v12, %v11458_v30  ;;  %v11483_v31 = vpop.f32.mrb[191].mxu1 }
 0x453   : > { %v2694_v29 = vrot.slane %v2693_v32, 2  ;;  %v2715_v14 = vadd.f32 %v11378_v22, %v2714_v27  ;;  %7854 = vrcp.f32 %v2623_v50  ;;  %v19246_v50 = vld [vmem:[#allocation60_spill] sm:$0xff] }
 0x454   : > { %v1694_v5 = vmax.f32 %v1693_v40, %v11472_v44  ;;  %v1731_v42 = vmax.f32 %v1730_v9, %v11476_v0  ;;  %v11488_v9 = vpop.f32.mrb[192].mxu1 }
 0x455   : > { %v2695_v11 = vadd.f32 %v2694_v29, %v2693_v32  ;;  %v2716_v12 = vadd.f32 %v11384_v60, %v2715_v14  ;;  %v11492_v14 = vpop.f32.mrb[193].mxu1 }
 0x456   : > { %v1695_v47 = vmax.f32 %v1694_v5, %v11479_v39  ;;  %v1732_v41 = vmax.f32 %v1731_v42, %v11483_v31  ;;  %19244 = vst [vmem:[#allocation118_spill] sm:$0xff] %v11492_v14  ;;  %v11495_v3 = vpop.f32.mrb[194].mxu1 }
 0x457   : > { %v2696_v35 = vrot.slane %v2695_v11, 1  ;;  %v2717_v27 = vadd.f32 %v11391_v10, %v2716_v12  ;;  %v11499_v42 = vpop.f32.mrb[195].mxu1 }
 0x458   : > { %v1696_v29 = vmax.f32 %v1695_v47, %v11488_v9  ;;  %v1733_v59 = vmax.f32 %v1732_v41, %v11492_v14  ;;  %19245 = vst [vmem:[#allocation119_spill] sm:$0xff] %v11499_v42  ;;  %v2655_v47 = vrot.slane %v19246_v50, 4 }
 0x459   : > { %v2697_v40 = vadd.f32 %v2696_v35, %v2695_v11  ;;  %v2718_v22 = vadd.f32 %v11399_v16, %v2717_v27  ;;  %v11505_v27 = vpop.f32.mrb[196].mxu1 }
 0x45a   : > { %v1697_v35 = vmax.f32 %v1696_v29, %v11495_v3  ;;  %v1734_v11 = vmax.f32 %v1733_v59, %v11499_v42 }
 0x45b   : > { %7856 = vrcp.f32 %v2697_v40  ;;  %v2719_v32 = vadd.f32 %v11405_v6, %v2718_v22  ;;  %v11509_v6 = vpop.f32.mrb[197].mxu1 }
 0x45c   : > { %v1698_v40 = vmax.f32 %v1697_v35, %v11505_v27  ;;  %19247 = vst [vmem:[#allocation60_spill] sm:$0xff] %v11509_v6  ;;  %v1735_v29 = vmax.f32 %v1734_v11, %v11509_v6 }
 0x45d   : > { %v2720_v5 = vadd.f32 %v11413_v53, %v2719_v32  ;;  %v7855_v32 = vpop.eup %7854  ;;  %v11512_v53 = vpop.f32.mrb[198].mxu1 }
 0x45f   : > { %v2721_v12 = vadd.f32 %v11418_v58, %v2720_v5  ;;  %v11516_v58 = vpop.f32.mrb[199].mxu1 }
 0x460   : > { %19248 = vst [vmem:[#allocation120_spill] sm:$0xff] %v11516_v58  ;;  %v11525_v16 = vpop.f32.mrb[200].mxu1 }
 0x461   : > { %v2722_v22 = vadd.f32 %v11424_v36, %v2721_v12  ;;  %v1699_v12 = vmax.f32 %v1698_v40, %v11512_v53  ;;  %v2656_v36 = vadd.f32 %v2655_v47, %v19246_v50 }
 0x463   : > { %v2723_v41 = vadd.f32 %v11428_v43, %v2722_v22  ;;  %v1736_v22 = vmax.f32 %v1735_v29, %v11516_v58  ;;  %v2657_v10 = vrot.slane %v2656_v36, 2  ;;  %v1700_v40 = vmax.f32 %v1699_v12, %v11525_v16 }
 0x465   : > { %v7857_v59 = vpop.eup %7856  ;;  %v2724_v5 = vadd.f32 %v11434_v28, %v2723_v41  ;;  %v11529_v28 = vpop.f32.mrb[201].mxu1 }
 0x466   : > { %v11521_v35 = vsel %vm2903_vm1, %v7857_v59, %v7855_v32  ;;  %19250 = vst [vmem:[#allocation122_spill] sm:$0xff] %v11529_v28  ;;  %v1737_v50 = vmax.f32 %v1736_v22, %v11529_v28  ;;  %v11532_v47 = vpop.f32.mrb[202].mxu1 }
 0x467   : > { %19249 = vst [vmem:[#allocation121_spill] sm:$0xff] %v11521_v35  ;;  %v2725_v43 = vadd.f32 %v11440_v33, %v2724_v5  ;;  %v1701_v29 = vmax.f32 %v1700_v40, %v11532_v47  ;;  %v11536_v59 = vpop.f32.mrb[203].mxu1 }
 0x468   : > { %19251 = vst [vmem:[#allocation123_spill] sm:$0xff] %v11536_v59  ;;  %v1738_v5 = vmax.f32 %v1737_v50, %v11536_v59  ;;  %v11539_v58 = vpop.f32.mrb[204].mxu1 }
 0x469   : > { %v2726_v11 = vadd.f32 %v11448_v2, %v2725_v43  ;;  %v2658_v43 = vadd.f32 %v2657_v10, %v2656_v36  ;;  %v1702_v2 = vrot.slane %v1701_v29, 4  ;;  %19252 = vst [vmem:[#allocation124_spill] sm:$0xff] %v11539_v58  ;;  %v11541_v6 = vpop.f32.mrb[205].mxu1 }
 0x46a   : > { %19253 = vst [vmem:[#allocation125_spill] sm:$0xff] %v11541_v6  ;;  %v11543_v40 = vpop.f32.mrb[206].mxu1 }
 0x46b   : > { %v2727_v41 = vadd.f32 %v11454_v23, %v2726_v11  ;;  %v1739_v11 = vrot.slane %v1738_v5, 4  ;;  %v1703_v12 = vmax.f32 %v1701_v29, %v1702_v2  ;;  %v2659_v60 = vrot.slane %v2658_v43, 1  ;;  %19254 = vst [vmem:[#allocation126_spill] sm:$0xff] %v11543_v40  ;;  %v11547_v50 = vpop.f32.mrb[207].mxu1 }
 0x46c   : > { %19255 = vst [vmem:[#allocation127_spill] sm:$0xff] %v11547_v50 }
 0x46d   : > { %v2728_v32 = vadd.f32 %v11462_v17, %v2727_v41  ;;  %v1740_v35 = vmax.f32 %v1738_v5, %v1739_v11  ;;  %v1704_v28 = vrot.slane %v1703_v12, 2 }
 0x46f   : > { %v2729_v33 = vrot.slane %v2728_v32, 4  ;;  %v1741_v41 = vrot.slane %v1740_v35, 2  ;;  %v1705_v36 = vmax.f32 %v1703_v12, %v1704_v28  ;;  %v19258_v12 = vld [vmem:[#allocation112_spill] sm:$0xff] }
 0x471   : > { %v2730_v23 = vadd.f32 %v2729_v33, %v2728_v32  ;;  %v2660_v33 = vadd.f32 %v2659_v60, %v2658_v43  ;;  %v1742_v2 = vmax.f32 %v1740_v35, %v1741_v41  ;;  %v1706_v5 = vrot.slane %v1705_v36, 1  ;;  %v19259_v60 = vld [vmem:[#allocation97_spill] sm:$0xff] }
 0x473   : > { %v2731_v22 = vrot.slane %v2730_v23, 2  ;;  %v1743_v11 = vrot.slane %v1742_v2, 1  ;;  %v11551_v59 = vmax.f32 %v1705_v36, %v1706_v5  ;;  %7858 = vrcp.f32 %v2660_v33 }
 0x474   : > { %v11553_v14 = vpop.f32.mrb[208].mxu1 }
 0x475   : > { %v2732_v17 = vadd.f32 %v2731_v22, %v2730_v23  ;;  %19256 = vst [vmem:[#allocation128_spill] sm:$0xff] %v11553_v14  ;;  %v19257_v23 = vld [vmem:[#allocation111_spill] sm:$0xff]  ;;  %v1949_v22 = vsub.f32 %v19258_v12, %v11551_v59  ;;  %v1951_v35 = vsub.f32 %v19259_v60, %v11551_v59  ;;  %v11561_v43 = vmax.f32 %v1742_v2, %v1743_v11  ;;  %v11563_v41 = vpop.f32.mrb[209].mxu1 }
 0x476   : > { %v1947_v28 = vsub.f32 %v19257_v23, %v11551_v59  ;;  %19260 = vst [vmem:[#allocation111_spill] sm:$0xff] %v11563_v41  ;;  %v1953_v36 = vsub.f32 %v19165_v4, %v11551_v59  ;;  %v1957_v33 = vsub.f32 %v19176_v26, %v11551_v59  ;;  %v11573_v5 = vpop.f32.mrb[210].mxu1  ;;  %v1961_v2 = vsub.f32 %v19184_v18, %v11551_v59 }
 0x477   : > { %v2733_v29 = vrot.slane %v2732_v17, 1  ;;  %19261 = vst [vmem:[#allocation112_spill] sm:$0xff] %v11573_v5  ;;  %v1963_v11 = vsub.f32 %v19188_v48, %v11551_v59  ;;  %v1965_v4 = vsub.f32 %v10925_v54, %v11551_v59  ;;  %v11583_v23 = vpop.f32.mrb[211].mxu1  ;;  %v1969_v26 = vsub.f32 %v11040_v21, %v11551_v59 }
 0x478   : > { %19262 = vst [vmem:[#allocation97_spill] sm:$0xff] %v11583_v23  ;;  %v1973_v18 = vsub.f32 %v19216_v55, %v11551_v59  ;;  %v1975_v48 = vsub.f32 %v11190_v49, %v11551_v59  ;;  %v1977_v54 = vsub.f32 %v11209_v37, %v11551_v59  ;;  %v1981_v12 = vsub.f32 %v11276_v62, %v11551_v59 }
 0x479   : > { %v2734_v42 = vadd.f32 %v2733_v29, %v2732_v17  ;;  %v1955_v17 = vsub.f32 %v19171_v63, %v11551_v59  ;;  %v1959_v29 = vsub.f32 %v19180_v38, %v11551_v59  ;;  %v1967_v63 = vsub.f32 %v10984_v57, %v11551_v59 }
 0x47a   : > { %v1971_v38 = vsub.f32 %v19207_v1, %v11551_v59  ;;  %v1979_v57 = vsub.f32 %v11258_v15, %v11551_v59  ;;  %v1983_v21 = vsub.f32 %v11327_v20, %v11551_v59  ;;  %v1985_v1 = vsub.f32 %v11346_v24, %v11551_v59 }
 0x47b   : > { %v1987_v55 = vsub.f32 %v11389_v19, %v11551_v59  ;;  %v1989_v49 = vsub.f32 %v11403_v46, %v11551_v59  ;;  %v1991_v37 = vsub.f32 %v11438_v45, %v11551_v59  ;;  %v1993_v15 = vsub.f32 %v11452_v34, %v11551_v59  ;;  %v19265_v46 = vld [vmem:[#allocation55_spill] sm:$0xff] }
 0x47c   : > { %v1995_v62 = vsub.f32 %v11472_v44, %v11551_v59  ;;  %v1997_v20 = vsub.f32 %v11479_v39, %v11551_v59  ;;  %v11625_v60 = vpop.f32.mrb[212].mxu1  ;;  %v2331_v39 = vmul.f32 1.442695, %v1947_v28  ;;  %v2335_v32 = vmul.f32 1.442695, %v1949_v22 }
 0x47d   : > { %19263 = vst [vmem:[#allocation129_spill] sm:$0xff] %v11625_v60  ;;  %v2339_v10 = vmul.f32 1.442695, %v1951_v35  ;;  %v11629_v24 = vpop.eup %7858  ;;  %7860 = vrcp.f32 %v2734_v42  ;;  %v2343_v19 = vmul.f32 1.442695, %v1953_v36 }
 0x47e   : > { %19264 = vst [vmem:[#allocation130_spill] sm:$0xff] %v11629_v24  ;;  %7862 = vpow2.f32 %v2331_v39  ;;  %v2347_v45 = vmul.f32 1.442695, %v1955_v17  ;;  %v2351_v5 = vmul.f32 1.442695, %v1957_v33 }
 0x47f   : > { %7864 = vpow2.f32 %v2335_v32  ;;  %v2355_v34 = vmul.f32 1.442695, %v1959_v29  ;;  %v2359_v60 = vmul.f32 1.442695, %v1961_v2  ;;  %v2363_v50 = vmul.f32 1.442695, %v1963_v11 }
 0x480   : > { %7866 = vpow2.f32 %v2339_v10  ;;  %v2367_v44 = vmul.f32 1.442695, %v1965_v4  ;;  %v2371_v28 = vmul.f32 1.442695, %v1967_v63  ;;  %v2375_v22 = vmul.f32 1.442695, %v1969_v26 }
 0x481   : > { %7868 = vpow2.f32 %v2343_v19  ;;  %v2379_v35 = vmul.f32 1.442695, %v1971_v38  ;;  %v2383_v24 = vmul.f32 1.442695, %v1973_v18  ;;  %v2387_v42 = vmul.f32 1.442695, %v1975_v48 }
 0x482   : > { %7870 = vpow2.f32 %v2347_v45  ;;  %v2391_v36 = vmul.f32 1.442695, %v1977_v54  ;;  %v2395_v6 = vmul.f32 1.442695, %v1979_v57  ;;  %v2399_v23 = vmul.f32 1.442695, %v1981_v12 }
 0x483   : > { %7872 = vpow2.f32 %v2351_v5  ;;  %v11633_v17 = vmul.f32 1.442695, %v1983_v21  ;;  %v11635_v32 = vmul.f32 1.442695, %v1985_v1  ;;  %v11637_v10 = vmul.f32 1.442695, %v1987_v55 }
 0x484   : > { %7874 = vpow2.f32 %v2355_v34  ;;  %v11639_v33 = vmul.f32 1.442695, %v1989_v49  ;;  %v11641_v29 = vmul.f32 1.442695, %v1991_v37  ;;  %v11643_v2 = vmul.f32 1.442695, %v1993_v15 }
 0x485   : > { %7876 = vpow2.f32 %v2359_v60  ;;  %v11645_v11 = vmul.f32 1.442695, %v1995_v62  ;;  %v11647_v5 = vmul.f32 1.442695, %v1997_v20  ;;  %v19266_v4 = vld [vmem:[#allocation113_spill] sm:$0xff]  ;;  %v11651_v26 = vpop.f32.mrb[213].mxu1 }
 0x486   : > { %7878 = vpow2.f32 %v2363_v50  ;;  %19267 = vst [vmem:[#allocation55_spill] sm:$0xff] %v11651_v26  ;;  %v19268_v18 = vld [vmem:[#allocation98_spill] sm:$0xff]  ;;  %v11661_v57 = vpop.f32.mrb[214].mxu1  ;;  %v19273_v15 = vld [vmem:[#allocation19_spill] sm:$0xff]  ;;  %v19275_v45 = vld [vmem:[#allocation45_spill] sm:$0xff] }
 0x487   : > { %v11653_v38 = vpop.eup %7860  ;;  %7880 = vpow2.f32 %v2367_v44  ;;  %19269 = vst [vmem:[#allocation113_spill] sm:$0xff] %v11661_v57  ;;  %v11671_v49 = vpop.f32.mrb[215].mxu1  ;;  %v19274_v20 = vld [vmem:[#allocation30_spill] sm:$0xff]  ;;  %v19279_v55 = vld [vmem:[#allocation33_spill] sm:$0xff]  ;;  %v19282_v34 = vld [vmem:[#allocation16_spill] sm:$0xff] }
 0x488   : > { %v11663_v12 = vpop.eup %7862  ;;  %7882 = vpow2.f32 %v2371_v28  ;;  %19271 = vst [vmem:[#allocation131_spill] sm:$0xff] %v11671_v49  ;;  %v11681_v60 = vpop.f32.mrb[216].mxu1  ;;  %v19278_v28 = vld [vmem:[#allocation20_spill] sm:$0xff]  ;;  %v19283_v50 = vld [vmem:[#allocation66_spill] sm:$0xff]  ;;  %v19289_v54 = vld [vmem:[#allocation43_spill] sm:$0xff] }
 0x489   : > { %19270 = vst [vmem:[#allocation98_spill] sm:$0xff] %v11663_v12  ;;  %v11673_v37 = vpop.eup %7864  ;;  %7884 = vpow2.f32 %v2375_v22  ;;  %19276 = vst [vmem:[#allocation19_spill] sm:$0xff] %v11681_v60  ;;  %v11691_v1 = vpop.f32.mrb[217].mxu1 }
 0x48a   : > { %19272 = vst [vmem:[#allocation132_spill] sm:$0xff] %v11673_v37  ;;  %v11683_v44 = vpop.eup %7866  ;;  %7886 = vpow2.f32 %v2379_v35  ;;  %v2735_v39 = vadd.f32 %v11673_v37, %v11663_v12  ;;  %19280 = vst [vmem:[#allocation45_spill] sm:$0xff] %v11691_v1  ;;  %v11701_v48 = vpop.f32.mrb[218].mxu1 }
 0x48b   : > { %19277 = vst [vmem:[#allocation30_spill] sm:$0xff] %v11683_v44  ;;  %v11693_v19 = vpop.eup %7868  ;;  %7888 = vpow2.f32 %v2383_v24  ;;  %19284 = vst [vmem:[#allocation33_spill] sm:$0xff] %v11701_v48  ;;  %v19286_v24 = vld [vmem:[#allocation84_spill] sm:$0xff]  ;;  %v11710_v21 = vpop.f32.mrb[219].mxu1  ;;  %v19290_v48 = vld [vmem:[#allocation69_spill] sm:$0xff] }
 0x48c   : > { %19281 = vst [vmem:[#allocation20_spill] sm:$0xff] %v11693_v19  ;;  %v11703_v22 = vpop.eup %7870  ;;  %7890 = vpow2.f32 %v2387_v42  ;;  %v2736_v62 = vadd.f32 %v11683_v44, %v2735_v39  ;;  %19287 = vst [vmem:[#allocation66_spill] sm:$0xff] %v11710_v21  ;;  %v19291_v42 = vld [vmem:[#allocation47_spill] sm:$0xff]  ;;  %v19307_v39 = vsub.f32 %v11488_v9, %v11551_v59  ;;  %v19312_v9 = vsub.f32 %v11512_v53, %v11551_v59 }
 0x48d   : > { %19285 = vst [vmem:[#allocation16_spill] sm:$0xff] %v11703_v22  ;;  %v11712_v60 = vpop.eup %7872  ;;  %7892 = vpow2.f32 %v2391_v36  ;;  %v11720_v57 = vpop.f32.mrb[220].mxu1  ;;  %v19294_v21 = vld [vmem:[#allocation103_spill] sm:$0xff]  ;;  %v19317_v53 = vsub.f32 %v19265_v46, %v11561_v43  ;;  %v19322_v46 = vsub.f32 %v19172_v51, %v11561_v43  ;;  %v19327_v51 = vsub.f32 %v19185_v25, %v11561_v43 }
 0x48e   : > { %19288 = vst [vmem:[#allocation84_spill] sm:$0xff] %v11712_v60  ;;  %19292 = vst [vmem:[#allocation43_spill] sm:$0xff] %v11720_v57  ;;  %v11722_v63 = vpop.eup %7874  ;;  %7894 = vpow2.f32 %v2395_v6  ;;  %v2737_v1 = vadd.f32 %v11693_v19, %v2736_v62  ;;  %v11729_v35 = vpop.f32.mrb[221].mxu1 }
 0x48f   : > { %19293 = vst [vmem:[#allocation69_spill] sm:$0xff] %v11722_v63  ;;  %19295 = vst [vmem:[#allocation47_spill] sm:$0xff] %v11729_v35  ;;  %v11731_v44 = vpop.eup %7876  ;;  %7896 = vpow2.f32 %v2399_v23  ;;  %v11739_v62 = vpop.f32.mrb[222].mxu1  ;;  %v19299_v35 = vld [vmem:[#allocation118_spill] sm:$0xff]  ;;  %v2435_v23 = vmul.f32 1.442695, %v19307_v39 }
 0x490   : > { %19296 = vst [vmem:[#allocation103_spill] sm:$0xff] %v11731_v44  ;;  %19297 = vst [vmem:[#allocation133_spill] sm:$0xff] %v11739_v62  ;;  %v11741_v26 = vpop.eup %7878  ;;  %7898 = vpow2.f32 %v11633_v17  ;;  %v2738_v36 = vadd.f32 %v11703_v22, %v2737_v1  ;;  %v11749_v19 = vpop.f32.mrb[223].mxu1  ;;  %v19310_v22 = vsub.f32 %v11495_v3, %v11551_v59  ;;  %v2447_v39 = vmul.f32 1.442695, %v19312_v9 }
 0x491   : > { %19298 = vst [vmem:[#allocation134_spill] sm:$0xff] %v11741_v26  ;;  %19301 = vst [vmem:[#allocation118_spill] sm:$0xff] %v11749_v19  ;;  %v11751_v49 = vpop.eup %7880  ;;  %7900 = vpow2.f32 %v11635_v32  ;;  %v19314_v19 = vsub.f32 %v11525_v16, %v11551_v59  ;;  %v19315_v3 = vsub.f32 %v11532_v47, %v11551_v59  ;;  %v19318_v16 = vsub.f32 %v19266_v4, %v11561_v43 }
 0x492   : > { %19302 = vst [vmem:[#allocation135_spill] sm:$0xff] %v11751_v49  ;;  %v11760_v12 = vpop.eup %7882  ;;  %7902 = vpow2.f32 %v11637_v10  ;;  %v2739_v57 = vadd.f32 %v11712_v60, %v2738_v36  ;;  %v2439_v17 = vmul.f32 1.442695, %v19310_v22  ;;  %v19311_v10 = vsub.f32 %v11505_v27, %v11551_v59 }
 0x493   : > { %19306 = vst [vmem:[#allocation136_spill] sm:$0xff] %v11760_v12  ;;  %v11769_v62 = vpop.eup %7884  ;;  %7904 = vpow2.f32 %v11639_v33  ;;  %v2451_v33 = vmul.f32 1.442695, %v19314_v19  ;;  %v2455_v22 = vmul.f32 1.442695, %v19315_v3  ;;  %v19319_v47 = vsub.f32 %v19268_v18, %v11561_v43 }
 0x494   : > { %19309 = vst [vmem:[#allocation137_spill] sm:$0xff] %v11769_v62  ;;  %v2443_v1 = vmul.f32 1.442695, %v19311_v10  ;;  %v11781_v36 = vpop.eup %7886  ;;  %7906 = vpow2.f32 %v11641_v29  ;;  %v2740_v32 = vadd.f32 %v11722_v63, %v2739_v57  ;;  %v2333_v29 = vmul.f32 1.442695, %v19317_v53  ;;  %v19387_v63 = vld [vmem:[#allocation131_spill] sm:$0xff] }
 0x495   : > { %19313 = vst [vmem:[#allocation138_spill] sm:$0xff] %v11781_v36  ;;  %v11793_v10 = vpop.eup %7888  ;;  %7908 = vpow2.f32 %v11643_v2  ;;  %v2337_v19 = vmul.f32 1.442695, %v19318_v16  ;;  %v2341_v59 = vmul.f32 1.442695, %v19319_v47  ;;  %v19321_v2 = vsub.f32 %v19166_v8, %v11561_v43 }
 0x496   : > { %v11791_v27 = vpop.f32.mrb[224].mxu1  ;;  %19316 = vst [vmem:[#allocation139_spill] sm:$0xff] %v11793_v10  ;;  %v11805_v9 = vpop.eup %7890  ;;  %7910 = vpow2.f32 %v11645_v11  ;;  %v2741_v57 = vadd.f32 %v11731_v44, %v2740_v32  ;;  %v11815_v53 = vmul.f32 1.442695, %v19322_v46  ;;  %v19325_v11 = vsub.f32 %v19177_v52, %v11561_v43 }
 0x497   : > { %19320 = vst [vmem:[#allocation140_spill] sm:$0xff] %v11805_v9  ;;  %v2345_v3 = vmul.f32 1.442695, %v19321_v2  ;;  %v11817_v4 = vpop.f32.mrb[225].mxu1  ;;  %v11819_v16 = vpop.eup %7892  ;;  %7912 = vpow2.f32 %v11647_v5  ;;  %v19326_v8 = vsub.f32 %v19181_v61, %v11561_v43  ;;  %v11835_v47 = vmul.f32 1.442695, %v19327_v51 }
 0x498   : > { %19323 = vst [vmem:[#allocation141_spill] sm:$0xff] %v11817_v4  ;;  %19324 = vst [vmem:[#allocation142_spill] sm:$0xff] %v11819_v16  ;;  %v11825_v18 = vmul.f32 1.442695, %v19325_v11  ;;  %v11837_v2 = vpop.eup %7894  ;;  %7914 = vpow2.f32 %v2435_v23  ;;  %v2742_v5 = vadd.f32 %v11741_v26, %v2741_v57  ;;  %v19329_v52 = vsub.f32 %v19273_v15, %v11561_v43 }
 0x499   : > { %v11830_v32 = vmul.f32 1.442695, %v19326_v8  ;;  %19328 = vst [vmem:[#allocation143_spill] sm:$0xff] %v11837_v2  ;;  %v19330_v61 = vsub.f32 %v19274_v20, %v11561_v43  ;;  %v11850_v8 = vpop.f32.mrb[226].mxu1  ;;  %v11852_v25 = vpop.eup %7896  ;;  %7916 = vpow2.f32 %v2439_v17  ;;  %v19332_v23 = vsub.f32 %v19275_v45, %v11561_v43 }
 0x49a   : > { %v11843_v46 = vmul.f32 1.442695, %v19329_v52  ;;  %19331 = vst [vmem:[#allocation144_spill] sm:$0xff] %v11852_v25  ;;  %v19333_v15 = vsub.f32 %v19278_v28, %v11561_v43  ;;  %v19334_v20 = vsub.f32 %v19279_v55, %v11561_v43  ;;  %7918 = vpow2.f32 %v2443_v1  ;;  %v11882_v37 = vpop.f32.mrb[227].mxu1 }
 0x49b   : > { %v11848_v11 = vmul.f32 1.442695, %v19330_v61  ;;  %v11857_v51 = vmul.f32 1.442695, %v19332_v23  ;;  %v11869_v61 = vpop.eup %7898  ;;  %v2743_v17 = vadd.f32 %v11751_v49, %v2742_v5  ;;  %v19336_v45 = vsub.f32 %v19282_v34, %v11561_v43  ;;  %19338 = vst [vmem:[#allocation146_spill] sm:$0xff] %v11882_v37 }
 0x49c   : > { %v11862_v57 = vmul.f32 1.442695, %v19333_v15  ;;  %v11867_v52 = vmul.f32 1.442695, %v19334_v20  ;;  %19335 = vst [vmem:[#allocation145_spill] sm:$0xff] %v11869_v61  ;;  %v19337_v28 = vsub.f32 %v19283_v50, %v11561_v43  ;;  %v11884_v55 = vpop.eup %7900  ;;  %7920 = vpow2.f32 %v2447_v39 }
 0x49d   : > { %v11875_v23 = vmul.f32 1.442695, %v19336_v45  ;;  %19339 = vst [vmem:[#allocation147_spill] sm:$0xff] %v11884_v55  ;;  %v19340_v1 = vsub.f32 %v11217_v56, %v11561_v43  ;;  %v19341_v34 = vsub.f32 %v11267_v7, %v11561_v43  ;;  %v19342_v50 = vsub.f32 %v19286_v24, %v11561_v43 }
 0x49e   : > { %v11880_v15 = vmul.f32 1.442695, %v19337_v28  ;;  %v11901_v28 = vpop.eup %7902  ;;  %7922 = vpow2.f32 %v2451_v33  ;;  %v2744_v39 = vadd.f32 %v11760_v12, %v2743_v17  ;;  %v19344_v56 = vsub.f32 %v19289_v54, %v11561_v43  ;;  %v11914_v6 = vpop.f32.mrb[228].mxu1  ;;  %v19390_v12 = vld [vmem:[#allocation19_spill] sm:$0xff] }
 0x49f   : > { %v11889_v20 = vmul.f32 1.442695, %v19340_v1  ;;  %v11894_v5 = vmul.f32 1.442695, %v19341_v34  ;;  %v11899_v45 = vmul.f32 1.442695, %v19342_v50  ;;  %v19345_v7 = vsub.f32 %v19290_v48, %v11561_v43  ;;  %v11916_v24 = vpop.eup %7904 }
 0x4a0   : > { %19343 = vst [vmem:[#allocation148_spill] sm:$0xff] %v11901_v28  ;;  %v11907_v1 = vmul.f32 1.442695, %v19344_v56  ;;  %19346 = vst [vmem:[#allocation149_spill] sm:$0xff] %v11914_v6  ;;  %7924 = vpow2.f32 %v2455_v22  ;;  %v19348_v33 = vsub.f32 %v19291_v42, %v11561_v43  ;;  %v19349_v54 = vsub.f32 %v19294_v21, %v11561_v43 }
 0x4a1   : > { %v11912_v34 = vmul.f32 1.442695, %v19345_v7  ;;  %19347 = vst [vmem:[#allocation150_spill] sm:$0xff] %v11916_v24  ;;  %v19350_v48 = vsub.f32 %v11444_v13, %v11561_v43  ;;  %v11933_v7 = vpop.eup %7906  ;;  %v2745_v6 = vadd.f32 %v11769_v62, %v2744_v39  ;;  %7926 = vpow2.f32 %v2333_v29 }
 0x4a2   : > { %v11921_v50 = vmul.f32 1.442695, %v19348_v33  ;;  %v11926_v17 = vmul.f32 1.442695, %v19349_v54  ;;  %19352 = vst [vmem:[#allocation152_spill] sm:$0xff] %v11933_v7  ;;  %v19353_v42 = vsub.f32 %v11458_v30, %v11561_v43  ;;  %v19355_v21 = vsub.f32 %v11476_v0, %v11561_v43  ;;  %v11946_v54 = vpop.f32.mrb[229].mxu1  ;;  %v11948_v13 = vpop.eup %7908 }
 0x4a3   : > { %v11931_v56 = vmul.f32 1.442695, %v19350_v48  ;;  %19357 = vst [vmem:[#allocation155_spill] sm:$0xff] %v11946_v54  ;;  %19358 = vst [vmem:[#allocation156_spill] sm:$0xff] %v11948_v13  ;;  %7928 = vpow2.f32 %v2337_v19  ;;  %v19359_v48 = vsub.f32 %v11483_v31, %v11561_v43  ;;  %v19361_v30 = vmax.f32 %v11539_v58, %v11543_v40  ;;  %v19363_v0 = vld [vmem:[#allocation127_spill] sm:$0xff] }
 0x4a4   : > { %v11939_v22 = vmul.f32 1.442695, %v19353_v42  ;;  %v11944_v33 = vmul.f32 1.442695, %v19355_v21  ;;  %v19362_v42 = vld [vmem:[#allocation125_spill] sm:$0xff]  ;;  %v2746_v19 = vadd.f32 %v11781_v36, %v2745_v6  ;;  %7930 = vpow2.f32 %v2341_v59 }
 0x4a5   : > { %19351 = vst [vmem:[#allocation151_spill] sm:$0xff] %v11931_v56  ;;  %v11953_v39 = vmul.f32 1.442695, %v19359_v48  ;;  %v1746_v29 = vmax.f32 %v19361_v30, %v11553_v14  ;;  %v19364_v21 = vmax.f32 %v19362_v42, %v19363_v0  ;;  %v11965_v56 = vpop.eup %7910  ;;  %v19366_v31 = vsub.f32 %v19299_v35, %v11561_v43  ;;  %v19369_v30 = vld [vmem:[#allocation130_spill] sm:$0xff]  ;;  %v19373_v42 = vld [vmem:[#allocation97_spill] sm:$0xff] }
 0x4a6   : > { %19354 = vst [vmem:[#allocation153_spill] sm:$0xff] %v11939_v22  ;;  %19356 = vst [vmem:[#allocation154_spill] sm:$0xff] %v11944_v33  ;;  %v11963_v22 = vpop.f32.mrb[230].mxu1  ;;  %v11978_v14 = vsel %vm2903_vm1, %v11653_v38, %v19369_v30  ;;  %7932 = vpow2.f32 %v2345_v3  ;;  %v19386_v30 = vld [vmem:[#allocation113_spill] sm:$0xff] }
 0x4a7   : > { %19360 = vst [vmem:[#allocation157_spill] sm:$0xff] %v11953_v39  ;;  %v1783_v33 = vmax.f32 %v19364_v21, %v11563_v41  ;;  %19365 = vst [vmem:[#allocation158_spill] sm:$0xff] %v11965_v56  ;;  %v11971_v48 = vmul.f32 1.442695, %v19366_v31  ;;  %v11973_v39 = vpop.f32.mrb[231].mxu1  ;;  %v11980_v21 = vpop.eup %7912  ;;  %v19372_v41 = vld [vmem:[#allocation112_spill] sm:$0xff]  ;;  %v2747_v31 = vadd.f32 %v11793_v10, %v2746_v19  ;;  %7934 = vpow2.f32 %v11815_v53 }
 0x4a8   : > { %19368 = vst [vmem:[#allocation160_spill] sm:$0xff] %v11973_v39  ;;  %19370 = vst [vmem:[#allocation130_spill] sm:$0xff] %v11978_v14  ;;  %v1747_v0 = vmax.f32 %v1746_v29, %v19372_v41  ;;  %v11986_v35 = vpop.eup %7914  ;;  %7936 = vpow2.f32 %v11825_v18  ;;  %v11999_v59 = vpop.f32.mrb[232].mxu1  ;;  %v19391_v36 = vld [vmem:[#allocation45_spill] sm:$0xff] }
 0x4a9   : > { %19367 = vst [vmem:[#allocation159_spill] sm:$0xff] %v11971_v48  ;;  %19371 = vst [vmem:[#allocation161_spill] sm:$0xff] %v11980_v21  ;;  %v1784_v6 = vmax.f32 %v1783_v33, %v19373_v42  ;;  %v11994_v3 = vpop.eup %7916  ;;  %v19381_v33 = vld [vmem:[#allocation129_spill] sm:$0xff]  ;;  %v19382_v42 = vld [vmem:[#allocation55_spill] sm:$0xff]  ;;  %v2748_v38 = vadd.f32 %v11805_v9, %v2747_v31  ;;  %7938 = vpow2.f32 %v11830_v32  ;;  %v12007_v14 = vpop.f32.mrb[233].mxu1 }
 0x4aa   : > { %19376 = vst [vmem:[#allocation112_spill] sm:$0xff] %v11986_v35  ;;  %19380 = vst [vmem:[#allocation162_spill] sm:$0xff] %v11994_v3  ;;  %v1748_v29 = vmax.f32 %v1747_v0, %v19381_v33  ;;  %v12003_v53 = vpop.eup %7918  ;;  %7940 = vpow2.f32 %v11835_v47  ;;  %v12018_v60 = vpop.f32.mrb[234].mxu1  ;;  %v19395_v9 = vld [vmem:[#allocation66_spill] sm:$0xff] }
 0x4ab   : > { %v1785_v58 = vmax.f32 %v1784_v6, %v19382_v42  ;;  %19383 = vst [vmem:[#allocation129_spill] sm:$0xff] %v12003_v53  ;;  %19384 = vst [vmem:[#allocation55_spill] sm:$0xff] %v12007_v14  ;;  %v12013_v6 = vpop.eup %7920  ;;  %v2749_v18 = vadd.f32 %v11819_v16, %v2748_v38  ;;  %7942 = vpow2.f32 %v11843_v46  ;;  %v12026_v0 = vpop.f32.mrb[235].mxu1 }
 0x4ac   : > { %19385 = vst [vmem:[#allocation163_spill] sm:$0xff] %v12013_v6  ;;  %v1749_v19 = vmax.f32 %v1748_v29, %v19386_v30  ;;  %v12022_v31 = vpop.eup %7922  ;;  %7944 = vpow2.f32 %v11848_v11 }
 0x4ad   : > { %v1786_v44 = vmax.f32 %v1785_v58, %v19387_v63  ;;  %19388 = vst [vmem:[#allocation113_spill] sm:$0xff] %v12022_v31  ;;  %v12032_v58 = vpop.eup %7924  ;;  %v2750_v62 = vadd.f32 %v11837_v2, %v2749_v18  ;;  %7946 = vpow2.f32 %v11857_v51  ;;  %v19399_v2 = vld [vmem:[#allocation47_spill] sm:$0xff] }
 0x4ae   : > { %19389 = vst [vmem:[#allocation131_spill] sm:$0xff] %v12032_v58  ;;  %v1750_v32 = vmax.f32 %v1749_v19, %v19390_v12  ;;  %v12039_v46 = vpop.eup %7926  ;;  %7948 = vpow2.f32 %v11862_v57  ;;  %v12067_v26 = vpop.f32.mrb[236].mxu1 }
 0x4af   : > { %v1787_v10 = vmax.f32 %v1786_v44, %v19391_v36  ;;  %19392 = vst [vmem:[#allocation19_spill] sm:$0xff] %v12039_v46  ;;  %v12047_v11 = vpop.eup %7928  ;;  %v19394_v44 = vld [vmem:[#allocation33_spill] sm:$0xff]  ;;  %v2751_v51 = vadd.f32 %v11852_v25, %v2750_v62  ;;  %7950 = vpow2.f32 %v11867_v52  ;;  %v12076_v49 = vpop.f32.mrb[237].mxu1  ;;  %v19403_v62 = vld [vmem:[#allocation118_spill] sm:$0xff] }
 0x4b0   : > { %19393 = vst [vmem:[#allocation45_spill] sm:$0xff] %v12047_v11  ;;  %v1751_v19 = vmax.f32 %v1750_v32, %v19394_v44  ;;  %v12054_v18 = vpop.eup %7930  ;;  %v2772_v47 = vadd.f32 %v12047_v11, %v12039_v46  ;;  %7952 = vpow2.f32 %v11875_v23  ;;  %v12085_v40 = vpop.f32.mrb[238].mxu1 }
 0x4b1   : > { %v1788_v38 = vmax.f32 %v1787_v10, %v19395_v9  ;;  %19396 = vst [vmem:[#allocation33_spill] sm:$0xff] %v12054_v18  ;;  %v12062_v57 = vpop.eup %7932  ;;  %v19398_v10 = vld [vmem:[#allocation43_spill] sm:$0xff]  ;;  %v2752_v25 = vadd.f32 %v11869_v61, %v2751_v51  ;;  %7954 = vpow2.f32 %v11880_v15  ;;  %v12094_v61 = vpop.f32.mrb[239].mxu1 }
 0x4b2   : > { %19397 = vst [vmem:[#allocation66_spill] sm:$0xff] %v12062_v57  ;;  %v1752_v32 = vmax.f32 %v1751_v19, %v19398_v10  ;;  %v12071_v52 = vpop.eup %7934  ;;  %v2773_v29 = vadd.f32 %v12054_v18, %v2772_v47  ;;  %7956 = vpow2.f32 %v11889_v20 }
 0x4b3   : > { %v1789_v16 = vmax.f32 %v1788_v38, %v19399_v2  ;;  %19400 = vst [vmem:[#allocation43_spill] sm:$0xff] %v12071_v52  ;;  %v12080_v19 = vpop.eup %7936  ;;  %v19402_v38 = vld [vmem:[#allocation133_spill] sm:$0xff]  ;;  %v2753_v47 = vadd.f32 %v11884_v55, %v2752_v25  ;;  %7958 = vpow2.f32 %v11894_v5 }
 0x4b4   : > { %19401 = vst [vmem:[#allocation47_spill] sm:$0xff] %v12080_v19  ;;  %v1753_v48 = vmax.f32 %v1752_v32, %v19402_v38  ;;  %v12089_v51 = vpop.eup %7938  ;;  %v2774_v23 = vadd.f32 %v12062_v57, %v2773_v29  ;;  %7960 = vpow2.f32 %v11899_v45  ;;  %v19408_v45 = vld [vmem:[#allocation119_spill] sm:$0xff] }
 0x4b5   : > { %v1790_v39 = vmax.f32 %v1789_v16, %v19403_v62  ;;  %19404 = vst [vmem:[#allocation133_spill] sm:$0xff] %v12089_v51  ;;  %v12098_v32 = vpop.eup %7940  ;;  %v2754_v5 = vadd.f32 %v11901_v28, %v2753_v47  ;;  %7962 = vpow2.f32 %v11907_v1 }
 0x4b6   : > { %19405 = vst [vmem:[#allocation164_spill] sm:$0xff] %v12098_v32  ;;  %v1754_v16 = vmax.f32 %v1753_v48, %v11791_v27  ;;  %v12105_v55 = vpop.eup %7942  ;;  %v2775_v29 = vadd.f32 %v12071_v52, %v2774_v23  ;;  %7964 = vpow2.f32 %v11912_v34 }
 0x4b7   : > { %v1791_v15 = vmax.f32 %v1790_v39, %v11817_v4  ;;  %19406 = vst [vmem:[#allocation165_spill] sm:$0xff] %v12105_v55  ;;  %v12112_v18 = vpop.eup %7944  ;;  %v19409_v39 = vsub.f32 %v19408_v45, %v11561_v43  ;;  %v2755_v1 = vadd.f32 %v11916_v24, %v2754_v5  ;;  %7966 = vpow2.f32 %v11921_v50  ;;  %v19412_v45 = vld [vmem:[#allocation60_spill] sm:$0xff]  ;;  %v12135_v5 = vpop.f32.mrb[240].mxu1  ;;  %v19416_v24 = vld [vmem:[#allocation151_spill] sm:$0xff] }
 0x4b8   : > { %19407 = vst [vmem:[#allocation166_spill] sm:$0xff] %v12112_v18  ;;  %v1755_v25 = vmax.f32 %v1754_v16, %v11850_v8  ;;  %v12120_v47 = vpop.eup %7946  ;;  %v2776_v23 = vadd.f32 %v12080_v19, %v2775_v29  ;;  %7968 = vpow2.f32 %v11926_v17  ;;  %v19413_v16 = vsub.f32 %v19412_v45, %v11561_v43  ;;  %v12142_v19 = vpop.f32.mrb[241].mxu1 }
 0x4b9   : > { %v2441_v48 = vmul.f32 1.442695, %v19409_v39  ;;  %v1792_v57 = vmax.f32 %v1791_v15, %v11882_v37  ;;  %19410 = vst [vmem:[#allocation119_spill] sm:$0xff] %v12120_v47  ;;  %v12127_v34 = vpop.eup %7948  ;;  %v19414_v15 = vld [vmem:[#allocation149_spill] sm:$0xff]  ;;  %v2756_v29 = vadd.f32 %v11933_v7, %v2755_v1  ;;  %7970 = vpow2.f32 %v19416_v24  ;;  %v19421_v1 = vld [vmem:[#allocation160_spill] sm:$0xff]  ;;  %v12154_v24 = vpop.f32.mrb[242].mxu1 }
 0x4ba   : > { %19411 = vst [vmem:[#allocation167_spill] sm:$0xff] %v12127_v34  ;;  %v2445_v39 = vmul.f32 1.442695, %v19413_v16  ;;  %v1756_v28 = vmax.f32 %v1755_v25, %v19414_v15  ;;  %v12137_v50 = vpop.eup %7950  ;;  %v2777_v20 = vadd.f32 %v12089_v51, %v2776_v23  ;;  %v19418_v25 = vld [vmem:[#allocation153_spill] sm:$0xff]  ;;  %v12161_v37 = vpop.f32.mrb[243].mxu1 }
 0x4bb   : > { %v1793_v52 = vmax.f32 %v1792_v57, %v11946_v54  ;;  %19415 = vst [vmem:[#allocation60_spill] sm:$0xff] %v12137_v50  ;;  %v12146_v45 = vpop.eup %7952  ;;  %7972 = vpow2.f32 %v19418_v25  ;;  %v19419_v57 = vld [vmem:[#allocation120_spill] sm:$0xff]  ;;  %v2757_v51 = vadd.f32 %v11948_v13, %v2756_v29  ;;  %v19423_v54 = vld [vmem:[#allocation154_spill] sm:$0xff]  ;;  %v19429_v13 = vld [vmem:[#allocation159_spill] sm:$0xff] }
 0x4bc   : > { %19417 = vst [vmem:[#allocation149_spill] sm:$0xff] %v12146_v45  ;;  %v19420_v16 = vsub.f32 %v19419_v57, %v11561_v43  ;;  %v1757_v11 = vmax.f32 %v1756_v28, %v11963_v22  ;;  %v12156_v23 = vpop.eup %7954  ;;  %7974 = vpow2.f32 %v19423_v54  ;;  %v2778_v17 = vadd.f32 %v12098_v32, %v2777_v20  ;;  %v19425_v28 = vld [vmem:[#allocation157_spill] sm:$0xff] }
 0x4bd   : > { %v1794_v7 = vmax.f32 %v1793_v52, %v19421_v1  ;;  %19422 = vst [vmem:[#allocation151_spill] sm:$0xff] %v12156_v23  ;;  %v12165_v57 = vpop.eup %7956  ;;  %7976 = vpow2.f32 %v19425_v28  ;;  %v19426_v52 = vld [vmem:[#allocation122_spill] sm:$0xff]  ;;  %v2758_v20 = vadd.f32 %v11965_v56, %v2757_v51 }
 0x4be   : > { %v2449_v46 = vmul.f32 1.442695, %v19420_v16  ;;  %19424 = vst [vmem:[#allocation153_spill] sm:$0xff] %v12165_v57  ;;  %v19427_v16 = vsub.f32 %v19426_v52, %v11561_v43  ;;  %v1758_v4 = vmax.f32 %v1757_v11, %v11999_v59  ;;  %v12173_v54 = vpop.eup %7958  ;;  %7978 = vpow2.f32 %v19429_v13  ;;  %v19431_v52 = vld [vmem:[#allocation123_spill] sm:$0xff] }
 0x4bf   : > { %v1795_v29 = vmax.f32 %v1794_v7, %v12007_v14  ;;  %19428 = vst [vmem:[#allocation120_spill] sm:$0xff] %v12173_v54  ;;  %v2779_v25 = vadd.f32 %v12105_v55, %v2778_v17  ;;  %v12180_v28 = vpop.eup %7960  ;;  %7980 = vpow2.f32 %v2441_v48  ;;  %v2759_v13 = vadd.f32 %v11980_v21, %v2758_v20 }
 0x4c0   : > { %v2453_v1 = vmul.f32 1.442695, %v19427_v16  ;;  %19430 = vst [vmem:[#allocation154_spill] sm:$0xff] %v12180_v28  ;;  %v19432_v16 = vsub.f32 %v19431_v52, %v11561_v43  ;;  %v1759_v7 = vmax.f32 %v1758_v4, %v12018_v60  ;;  %v12187_v62 = vpop.eup %7962  ;;  %7982 = vpow2.f32 %v2445_v39  ;;  %v12197_v4 = vpop.f32.mrb[244].mxu1 }
 0x4c1   : > { %v1796_v14 = vmax.f32 %v1795_v29, %v12026_v0  ;;  %19433 = vst [vmem:[#allocation157_spill] sm:$0xff] %v12187_v62  ;;  %v2780_v51 = vadd.f32 %v12112_v18, %v2779_v25  ;;  %v12193_v32 = vpop.eup %7964  ;;  %7984 = vpow2.f32 %v2449_v46  ;;  %v2760_v52 = vadd.f32 %v11986_v35, %v2759_v13  ;;  %v12203_v25 = vpop.f32.mrb[245].mxu1 }
 0x4c2   : > { %v2457_v11 = vmul.f32 1.442695, %v19432_v16  ;;  %19434 = vst [vmem:[#allocation122_spill] sm:$0xff] %v12193_v32  ;;  %v1760_v43 = vmax.f32 %v1759_v7, %v12067_v26  ;;  %v12199_v29 = vpop.eup %7966  ;;  %7986 = vpow2.f32 %v2453_v1  ;;  %19436 = vst [vmem:[#allocation123_spill] sm:$0xff] %v12203_v25  ;;  %v12211_v7 = vpop.f32.mrb[246].mxu1 }
 0x4c3   : > { %v1797_v48 = vmax.f32 %v1796_v14, %v12076_v49  ;;  %19435 = vst [vmem:[#allocation159_spill] sm:$0xff] %v12199_v29  ;;  %v2781_v39 = vadd.f32 %v12120_v47, %v2780_v51  ;;  %v12207_v16 = vpop.eup %7968  ;;  %v2761_v1 = vadd.f32 %v11994_v3, %v2760_v52  ;;  %v12217_v51 = vpop.f32.mrb[247].mxu1 }
 0x4c4   : > { %19437 = vst [vmem:[#allocation168_spill] sm:$0xff] %v12207_v16  ;;  %7988 = vpow2.f32 %v2457_v11  ;;  %v1761_v46 = vmax.f32 %v1760_v43, %v12085_v40  ;;  %v12213_v17 = vpop.eup %7970  ;;  %19439 = vst [vmem:[#allocation170_spill] sm:$0xff] %v12217_v51 }
 0x4c5   : > { %v1798_v14 = vmax.f32 %v1797_v48, %v12094_v61  ;;  %19438 = vst [vmem:[#allocation169_spill] sm:$0xff] %v12213_v17  ;;  %v2782_v13 = vadd.f32 %v12127_v34, %v2781_v39  ;;  %v12221_v35 = vpop.eup %7972  ;;  %v2762_v56 = vadd.f32 %v12003_v53, %v2761_v1 }
 0x4c6   : > { %19440 = vst [vmem:[#allocation171_spill] sm:$0xff] %v12221_v35  ;;  %v1762_v11 = vmax.f32 %v1761_v46, %v12135_v5  ;;  %v12225_v48 = vpop.eup %7974 }
 0x4c7   : > { %v1799_v43 = vmax.f32 %v1798_v14, %v12142_v19  ;;  %19441 = vst [vmem:[#allocation172_spill] sm:$0xff] %v12225_v48  ;;  %v2783_v21 = vadd.f32 %v12137_v50, %v2782_v13  ;;  %v12231_v39 = vpop.eup %7976  ;;  %v2763_v46 = vadd.f32 %v12013_v6, %v2762_v56  ;;  %v12245_v50 = vpop.f32.mrb[248].mxu1 }
 0x4c8   : > { %19442 = vst [vmem:[#allocation173_spill] sm:$0xff] %v12231_v39  ;;  %v1763_v3 = vmax.f32 %v1762_v11, %v12154_v24  ;;  %v12235_v47 = vpop.eup %7978  ;;  %v12251_v56 = vpop.f32.mrb[249].mxu1 }
 0x4c9   : > { %v1800_v20 = vmax.f32 %v1799_v43, %v12161_v37  ;;  %19443 = vst [vmem:[#allocation174_spill] sm:$0xff] %v12235_v47  ;;  %v2784_v14 = vadd.f32 %v12146_v45, %v2783_v21  ;;  %v12241_v53 = vpop.eup %7980  ;;  %v2764_v43 = vadd.f32 %v12022_v31, %v2763_v46  ;;  %19446 = vst [vmem:[#allocation177_spill] sm:$0xff] %v12251_v56 }
 0x4ca   : > { %19444 = vst [vmem:[#allocation175_spill] sm:$0xff] %v12241_v53  ;;  %v1764_v13 = vmax.f32 %v1763_v3, %v12197_v4  ;;  %v12247_v11 = vpop.eup %7982 }
 0x4cb   : > { %v1801_v52 = vmax.f32 %v1800_v20, %v12203_v25  ;;  %19445 = vst [vmem:[#allocation176_spill] sm:$0xff] %v12247_v11  ;;  %v2785_v34 = vadd.f32 %v12156_v23, %v2784_v14  ;;  %v12255_v1 = vpop.eup %7984  ;;  %v12259_v20 = vpop.f32.mrb[250].mxu1  ;;  %v2765_v55 = vadd.f32 %v12032_v58, %v2764_v43 }
 0x4cc   : > { %19447 = vst [vmem:[#allocation178_spill] sm:$0xff] %v12255_v1  ;;  %v1765_v6 = vmax.f32 %v1764_v13, %v12211_v7  ;;  %v12261_v45 = vpop.eup %7986  ;;  %v12265_v14 = vpop.f32.mrb[251].mxu1 }
 0x4cd   : > { %v1802_v3 = vmax.f32 %v1801_v52, %v12217_v51  ;;  %19448 = vst [vmem:[#allocation179_spill] sm:$0xff] %v12261_v45  ;;  %v2786_v46 = vadd.f32 %v12165_v57, %v2785_v34  ;;  %v2766_v52 = vrot.slane %v2765_v55, 4 }
 0x4ce   : > { %v12269_v21 = vpop.eup %7988  ;;  %v1766_v23 = vmax.f32 %v1765_v6, %v12245_v50  ;;  %v12279_v31 = vpop.f32.mrb[252].mxu1 }
 0x4cf   : > { %19449 = vst [vmem:[#allocation180_spill] sm:$0xff] %v12269_v21  ;;  %v1803_v13 = vmax.f32 %v1802_v3, %v12251_v56  ;;  %v2787_v18 = vadd.f32 %v12173_v54, %v2786_v46  ;;  %v2767_v58 = vadd.f32 %v2766_v52, %v2765_v55  ;;  %v12283_v56 = vpop.f32.mrb[253].mxu1 }
 0x4d0   : > { %v1767_v43 = vmax.f32 %v1766_v23, %v12259_v20  ;;  %v12286_v54 = vpop.f32.mrb[254].mxu1 }
 0x4d1   : > { %v1804_v34 = vmax.f32 %v1803_v13, %v12265_v14  ;;  %v2788_v57 = vadd.f32 %v12180_v28, %v2787_v18  ;;  %v2768_v25 = vrot.slane %v2767_v58, 2  ;;  %v12290_v13 = vpop.f32.mrb[255].mxu1 }
 0x4d2   : > { %v1768_v3 = vmax.f32 %v1767_v43, %v12279_v31  ;;  %19450 = vst [vmem:[#allocation181_spill] sm:$0xff] %v12290_v13 }
 0x4d3   : > { %v2789_v6 = vadd.f32 %v12187_v62, %v2788_v57  ;;  %v1805_v46 = vmax.f32 %v1804_v34, %v12283_v56  ;;  %v2769_v51 = vadd.f32 %v2768_v25, %v2767_v58 }
 0x4d4   : > { %v1769_v55 = vmax.f32 %v1768_v3, %v12286_v54 }
 0x4d5   : > { %v2790_v23 = vadd.f32 %v12193_v32, %v2789_v6  ;;  %v1806_v18 = vmax.f32 %v1805_v46, %v12290_v13  ;;  %v2770_v52 = vrot.slane %v2769_v51, 1 }
 0x4d6   : > { %v12295_v28 = vpop.f32.mrb[0].mxu1 }
 0x4d7   : > { %v2791_v57 = vadd.f32 %v12199_v29, %v2790_v23  ;;  %v2771_v62 = vadd.f32 %v2770_v52, %v2769_v51  ;;  %v1770_v58 = vmax.f32 %v1769_v55, %v12295_v28  ;;  %v12299_v25 = vpop.f32.mrb[1].mxu1 }
 0x4d8   : > { %19451 = vst [vmem:[#allocation182_spill] sm:$0xff] %v12299_v25  ;;  %v1807_v6 = vmax.f32 %v1806_v18, %v12299_v25  ;;  %v12302_v3 = vpop.f32.mrb[2].mxu1 }
 0x4d9   : > { %v2792_v43 = vadd.f32 %v12207_v16, %v2791_v57  ;;  %7990 = vrcp.f32 %v2771_v62  ;;  %v1771_v23 = vmax.f32 %v1770_v58, %v12302_v3  ;;  %v12306_v51 = vpop.f32.mrb[3].mxu1 }
 0x4da   : > { %19452 = vst [vmem:[#allocation183_spill] sm:$0xff] %v12306_v51  ;;  %v1808_v52 = vmax.f32 %v1807_v6, %v12306_v51 }
 0x4db   : > { %v2793_v34 = vadd.f32 %v12213_v17, %v2792_v43 }
 0x4dd   : > { %v2794_v46 = vadd.f32 %v12221_v35, %v2793_v34 }
 0x4de   : > { %v12311_v43 = vpop.f32.mrb[4].mxu1 }
 0x4df   : > { %v2795_v62 = vadd.f32 %v12225_v48, %v2794_v46  ;;  %v1772_v18 = vmax.f32 %v1771_v23, %v12311_v43  ;;  %v12315_v17 = vpop.f32.mrb[5].mxu1 }
 0x4e0   : > { %19453 = vst [vmem:[#allocation184_spill] sm:$0xff] %v12315_v17  ;;  %v1809_v34 = vmax.f32 %v1808_v52, %v12315_v17  ;;  %v12318_v58 = vpop.f32.mrb[6].mxu1 }
 0x4e1   : > { %v2796_v57 = vadd.f32 %v12231_v39, %v2795_v62  ;;  %v1773_v46 = vmax.f32 %v1772_v18, %v12318_v58  ;;  %v12322_v48 = vpop.f32.mrb[7].mxu1  ;;  %v19455_v39 = vld [vmem:[#allocation121_spill] sm:$0xff] }
 0x4e2   : > { %19454 = vst [vmem:[#allocation185_spill] sm:$0xff] %v12322_v48  ;;  %v1810_v62 = vmax.f32 %v1809_v34, %v12322_v48 }
 0x4e3   : > { %v2797_v55 = vadd.f32 %v12235_v47, %v2796_v57  ;;  %v7991_v35 = vpop.eup %7990 }
 0x4e4   : > { %v12327_v57 = vsel %vm2905_vm2, %v7991_v35, %v19455_v39 }
 0x4e5   : > { %v2798_v6 = vadd.f32 %v12241_v53, %v2797_v55  ;;  %19456 = vst [vmem:[#allocation121_spill] sm:$0xff] %v12327_v57 }
 0x4e6   : > { %v12331_v52 = vpop.f32.mrb[8].mxu1 }
 0x4e7   : > { %v2799_v23 = vadd.f32 %v12247_v11, %v2798_v6  ;;  %v1774_v55 = vmax.f32 %v1773_v46, %v12331_v52  ;;  %v12335_v53 = vpop.f32.mrb[9].mxu1 }
 0x4e8   : > { %19457 = vst [vmem:[#allocation186_spill] sm:$0xff] %v12335_v53  ;;  %v1811_v18 = vmax.f32 %v1810_v62, %v12335_v53  ;;  %v12338_v16 = vpop.f32.mrb[10].mxu1 }
 0x4e9   : > { %v2800_v47 = vadd.f32 %v12255_v1, %v2799_v23  ;;  %v1775_v35 = vmax.f32 %v1774_v55, %v12338_v16  ;;  %v12342_v39 = vpop.f32.mrb[11].mxu1 }
 0x4ea   : > { %19458 = vst [vmem:[#allocation187_spill] sm:$0xff] %v12342_v39  ;;  %v1812_v6 = vmax.f32 %v1811_v18, %v12342_v39 }
 0x4eb   : > { %v2801_v29 = vadd.f32 %v12261_v45, %v2800_v47  ;;  %v1776_v11 = vrot.slane %v1775_v35, 4 }
 0x4ec   : > { %v1813_v1 = vrot.slane %v1812_v6, 4 }
 0x4ed   : > { %v2802_v34 = vadd.f32 %v12269_v21, %v2801_v29  ;;  %v1777_v45 = vmax.f32 %v1775_v35, %v1776_v11  ;;  %v19463_v11 = vld [vmem:[#allocation124_spill] sm:$0xff] }
 0x4ee   : > { %v1814_v46 = vmax.f32 %v1812_v6, %v1813_v1  ;;  %v12345_v32 = vpop.f32.mrb[12].mxu1  ;;  %v19464_v6 = vld [vmem:[#allocation126_spill] sm:$0xff] }
 0x4ef   : > { %v2803_v23 = vrot.slane %v2802_v34, 4  ;;  %19459 = vst [vmem:[#allocation188_spill] sm:$0xff] %v12345_v32  ;;  %v1778_v62 = vrot.slane %v1777_v45, 2  ;;  %v12347_v53 = vpop.f32.mrb[13].mxu1  ;;  %v19483_v32 = vld [vmem:[#allocation186_spill] sm:$0xff] }
 0x4f0   : > { %19460 = vst [vmem:[#allocation189_spill] sm:$0xff] %v12347_v53  ;;  %v1815_v48 = vrot.slane %v1814_v46, 2  ;;  %v12349_v29 = vpop.f32.mrb[14].mxu1  ;;  %v19465_v53 = vld [vmem:[#allocation128_spill] sm:$0xff] }
 0x4f1   : > { %v2804_v47 = vadd.f32 %v2803_v23, %v2802_v34  ;;  %19461 = vst [vmem:[#allocation190_spill] sm:$0xff] %v12349_v29  ;;  %v1779_v21 = vmax.f32 %v1777_v45, %v1778_v62  ;;  %v12351_v17 = vpop.f32.mrb[15].mxu1 }
 0x4f2   : > { %19462 = vst [vmem:[#allocation191_spill] sm:$0xff] %v12351_v17  ;;  %v1816_v18 = vmax.f32 %v1814_v46, %v1815_v48  ;;  %v19482_v17 = vld [vmem:[#allocation185_spill] sm:$0xff] }
 0x4f3   : > { %v2805_v57 = vrot.slane %v2804_v47, 2  ;;  %v1780_v51 = vrot.slane %v1779_v21, 1 }
 0x4f4   : > { %v1817_v25 = vrot.slane %v1816_v18, 1 }
 0x4f5   : > { %v2806_v55 = vadd.f32 %v2805_v57, %v2804_v47  ;;  %v12353_v34 = vmax.f32 %v1779_v21, %v1780_v51 }
 0x4f6   : > { %v12361_v57 = vmax.f32 %v1816_v18, %v1817_v25 }
 0x4f7   : > { %v2807_v39 = vrot.slane %v2806_v55, 1  ;;  %v2011_v35 = vsub.f32 %v19463_v11, %v12353_v34  ;;  %v2013_v23 = vsub.f32 %v19464_v6, %v12353_v34  ;;  %v2015_v29 = vsub.f32 %v19465_v53, %v12353_v34  ;;  %v19466_v11 = vld [vmem:[#allocation125_spill] sm:$0xff] }
 0x4f8   : > { %v2017_v45 = vsub.f32 %v19372_v41, %v12353_v34  ;;  %v2019_v48 = vsub.f32 %v19381_v33, %v12353_v34  ;;  %v2021_v21 = vsub.f32 %v19386_v30, %v12353_v34  ;;  %v2023_v51 = vsub.f32 %v19390_v12, %v12353_v34 }
 0x4f9   : > { %v2808_v1 = vadd.f32 %v2807_v39, %v2806_v55  ;;  %v2025_v39 = vsub.f32 %v19394_v44, %v12353_v34  ;;  %v2027_v53 = vsub.f32 %v19398_v10, %v12353_v34  ;;  %v2029_v25 = vsub.f32 %v19402_v38, %v12353_v34 }
 0x4fa   : > { %v2031_v41 = vsub.f32 %v11791_v27, %v12353_v34  ;;  %v2033_v33 = vsub.f32 %v11850_v8, %v12353_v34  ;;  %v2035_v30 = vsub.f32 %v19414_v15, %v12353_v34  ;;  %v2037_v12 = vsub.f32 %v11963_v22, %v12353_v34 }
 0x4fb   : > { %v2039_v44 = vsub.f32 %v11999_v59, %v12353_v34  ;;  %v2041_v10 = vsub.f32 %v12018_v60, %v12353_v34  ;;  %v2043_v38 = vsub.f32 %v12067_v26, %v12353_v34  ;;  %v2045_v27 = vsub.f32 %v12085_v40, %v12353_v34 }
 0x4fc   : > { %v2047_v8 = vsub.f32 %v12135_v5, %v12353_v34  ;;  %v2049_v15 = vsub.f32 %v12154_v24, %v12353_v34  ;;  %v2051_v22 = vsub.f32 %v12197_v4, %v12353_v34  ;;  %v2053_v59 = vsub.f32 %v12211_v7, %v12353_v34 }
 0x4fd   : > { %v2055_v60 = vsub.f32 %v12245_v50, %v12353_v34  ;;  %v2057_v26 = vsub.f32 %v12259_v20, %v12353_v34  ;;  %v2459_v46 = vmul.f32 1.442695, %v2011_v35  ;;  %v2463_v62 = vmul.f32 1.442695, %v2013_v23 }
 0x4fe   : > { %v2467_v55 = vmul.f32 1.442695, %v2015_v29  ;;  %7992 = vrcp.f32 %v2808_v1  ;;  %v2471_v18 = vmul.f32 1.442695, %v2017_v45  ;;  %v2475_v4 = vmul.f32 1.442695, %v2019_v48 }
 0x4ff   : > { %7994 = vpow2.f32 %v2459_v46  ;;  %v2479_v7 = vmul.f32 1.442695, %v2021_v21  ;;  %v2483_v50 = vmul.f32 1.442695, %v2023_v51  ;;  %v2487_v24 = vmul.f32 1.442695, %v2025_v39 }
 0x500   : > { %7996 = vpow2.f32 %v2463_v62  ;;  %v2491_v20 = vmul.f32 1.442695, %v2027_v53  ;;  %v2495_v5 = vmul.f32 1.442695, %v2029_v25  ;;  %v2499_v47 = vmul.f32 1.442695, %v2031_v41 }
 0x501   : > { %7998 = vpow2.f32 %v2467_v55  ;;  %v2503_v35 = vmul.f32 1.442695, %v2033_v33  ;;  %v2507_v23 = vmul.f32 1.442695, %v2035_v30  ;;  %v2511_v29 = vmul.f32 1.442695, %v2037_v12 }
 0x502   : > { %8000 = vpow2.f32 %v2471_v18  ;;  %v2515_v1 = vmul.f32 1.442695, %v2039_v44  ;;  %v2519_v45 = vmul.f32 1.442695, %v2041_v10  ;;  %v2523_v6 = vmul.f32 1.442695, %v2043_v38 }
 0x503   : > { %8002 = vpow2.f32 %v2475_v4  ;;  %v2527_v46 = vmul.f32 1.442695, %v2045_v27  ;;  %v2531_v48 = vmul.f32 1.442695, %v2047_v8  ;;  %v2535_v21 = vmul.f32 1.442695, %v2049_v15 }
 0x504   : > { %8004 = vpow2.f32 %v2479_v7  ;;  %v2539_v62 = vmul.f32 1.442695, %v2051_v22  ;;  %v12423_v51 = vmul.f32 1.442695, %v2053_v59  ;;  %v12425_v39 = vmul.f32 1.442695, %v2055_v60 }
 0x505   : > { %8006 = vpow2.f32 %v2483_v50  ;;  %v12427_v53 = vmul.f32 1.442695, %v2057_v26  ;;  %v19467_v25 = vld [vmem:[#allocation127_spill] sm:$0xff]  ;;  %v19469_v44 = vld [vmem:[#allocation97_spill] sm:$0xff]  ;;  %v19470_v26 = vld [vmem:[#allocation118_spill] sm:$0xff] }
 0x506   : > { %8008 = vpow2.f32 %v2487_v24  ;;  %v19468_v30 = vld [vmem:[#allocation111_spill] sm:$0xff]  ;;  %v19471_v24 = vld [vmem:[#allocation141_spill] sm:$0xff]  ;;  %v19477_v18 = vld [vmem:[#allocation170_spill] sm:$0xff] }
 0x507   : > { %8010 = vpow2.f32 %v2491_v20  ;;  %v19472_v20 = vld [vmem:[#allocation146_spill] sm:$0xff]  ;;  %v19473_v55 = vld [vmem:[#allocation155_spill] sm:$0xff]  ;;  %v19478_v10 = vld [vmem:[#allocation177_spill] sm:$0xff] }
 0x508   : > { %v12431_v33 = vpop.eup %7992  ;;  %8012 = vpow2.f32 %v2495_v5  ;;  %v19474_v5 = vld [vmem:[#allocation160_spill] sm:$0xff]  ;;  %v19475_v4 = vld [vmem:[#allocation55_spill] sm:$0xff] }
 0x509   : > { %v12439_v27 = vpop.eup %7994  ;;  %8014 = vpow2.f32 %v2499_v47  ;;  %v19476_v60 = vld [vmem:[#allocation123_spill] sm:$0xff] }
 0x50a   : > { %v12447_v59 = vpop.eup %7996  ;;  %8016 = vpow2.f32 %v2503_v35 }
 0x50b   : > { %v12455_v7 = vpop.eup %7998  ;;  %8018 = vpow2.f32 %v2507_v23  ;;  %v2809_v50 = vadd.f32 %v12447_v59, %v12439_v27  ;;  %v19481_v23 = vld [vmem:[#allocation184_spill] sm:$0xff] }
 0x50c   : > { %v12463_v35 = vpop.eup %8000  ;;  %8020 = vpow2.f32 %v2511_v29 }
 0x50d   : > { %v12471_v15 = vpop.eup %8002  ;;  %8022 = vpow2.f32 %v2515_v1  ;;  %v2810_v47 = vadd.f32 %v12455_v7, %v2809_v50 }
 0x50e   : > { %v12478_v8 = vpop.eup %8004  ;;  %8024 = vpow2.f32 %v2519_v45 }
 0x50f   : > { %v12486_v38 = vpop.eup %8006  ;;  %8026 = vpow2.f32 %v2523_v6  ;;  %v2811_v50 = vadd.f32 %v12463_v35, %v2810_v47  ;;  %v19486_v6 = vsub.f32 %v12286_v54, %v12353_v34 }
 0x510   : > { %v12493_v12 = vpop.eup %8008  ;;  %8028 = vpow2.f32 %v2527_v46 }
 0x511   : > { %v12501_v22 = vpop.eup %8010  ;;  %8030 = vpow2.f32 %v2531_v48  ;;  %v2812_v47 = vadd.f32 %v12471_v15, %v2811_v50  ;;  %v19484_v50 = vsub.f32 %v12279_v31, %v12353_v34  ;;  %v2559_v48 = vmul.f32 1.442695, %v19486_v6 }
 0x512   : > { %v12508_v40 = vpop.eup %8012  ;;  %8032 = vpow2.f32 %v2535_v21  ;;  %v19487_v31 = vsub.f32 %v12295_v28, %v12353_v34 }
 0x513   : > { %v12516_v13 = vpop.eup %8014  ;;  %8034 = vpow2.f32 %v2539_v62  ;;  %v2555_v45 = vmul.f32 1.442695, %v19484_v50  ;;  %v2813_v46 = vadd.f32 %v12478_v8, %v2812_v47 }
 0x514   : > { %v12524_v29 = vpop.eup %8016  ;;  %8036 = vpow2.f32 %v12423_v51  ;;  %v2563_v62 = vmul.f32 1.442695, %v19487_v31  ;;  %v19488_v51 = vsub.f32 %v12302_v3, %v12353_v34  ;;  %v19492_v3 = vsub.f32 %v12331_v52, %v12353_v34 }
 0x515   : > { %v12530_v1 = vpop.eup %8018  ;;  %8038 = vpow2.f32 %v12425_v39  ;;  %v2814_v47 = vadd.f32 %v12486_v38, %v2813_v46  ;;  %v19489_v39 = vsub.f32 %v12311_v43, %v12353_v34  ;;  %v19490_v46 = vsub.f32 %v12318_v58, %v12353_v34 }
 0x516   : > { %v12537_v50 = vpop.eup %8020  ;;  %8040 = vpow2.f32 %v12427_v53  ;;  %v2567_v41 = vmul.f32 1.442695, %v19488_v51 }
 0x517   : > { %v12543_v54 = vpop.eup %8022  ;;  %8042 = vpow2.f32 %v2555_v45  ;;  %v2571_v6 = vmul.f32 1.442695, %v19489_v39  ;;  %v2815_v28 = vadd.f32 %v12493_v12, %v2814_v47  ;;  %v2575_v53 = vmul.f32 1.442695, %v19490_v46 }
 0x518   : > { %v12549_v31 = vpop.eup %8024  ;;  %8044 = vpow2.f32 %v2559_v48  ;;  %v2579_v45 = vmul.f32 1.442695, %v19492_v3  ;;  %v19494_v47 = vsub.f32 %v12338_v16, %v12353_v34  ;;  %v19500_v34 = vsub.f32 %v19468_v30, %v12361_v57 }
 0x519   : > { %v12554_v21 = vpop.eup %8026  ;;  %8046 = vpow2.f32 %v2563_v62  ;;  %v2816_v51 = vadd.f32 %v12501_v22, %v2815_v28  ;;  %v19496_v62 = vsub.f32 %v19466_v11, %v12361_v57  ;;  %v19498_v28 = vsub.f32 %v19467_v25, %v12361_v57 }
 0x51a   : > { %19491 = vst [vmem:[#allocation124_spill] sm:$0xff] %v12554_v21  ;;  %v12560_v43 = vpop.eup %8028  ;;  %8048 = vpow2.f32 %v2567_v41  ;;  %v2583_v48 = vmul.f32 1.442695, %v19494_v47  ;;  %v19501_v11 = vsub.f32 %v19469_v44, %v12361_v57  ;;  %v19503_v25 = vsub.f32 %v19382_v42, %v12361_v57 }
 0x51b   : > { %19493 = vst [vmem:[#allocation126_spill] sm:$0xff] %v12560_v43  ;;  %v12565_v39 = vpop.eup %8030  ;;  %8050 = vpow2.f32 %v2571_v6  ;;  %v2817_v58 = vadd.f32 %v12508_v40, %v2816_v51  ;;  %v2461_v46 = vmul.f32 1.442695, %v19496_v62  ;;  %v2465_v41 = vmul.f32 1.442695, %v19498_v28 }
 0x51c   : > { %19495 = vst [vmem:[#allocation128_spill] sm:$0xff] %v12565_v39  ;;  %v12571_v52 = vpop.eup %8032  ;;  %8052 = vpow2.f32 %v2575_v53  ;;  %v2469_v6 = vmul.f32 1.442695, %v19500_v34  ;;  %v2473_v51 = vmul.f32 1.442695, %v19501_v11  ;;  %v19508_v42 = vsub.f32 %v19399_v2, %v12361_v57 }
 0x51d   : > { %19497 = vst [vmem:[#allocation125_spill] sm:$0xff] %v12571_v52  ;;  %v12576_v3 = vpop.eup %8034  ;;  %8054 = vpow2.f32 %v2579_v45  ;;  %v2818_v16 = vadd.f32 %v12516_v13, %v2817_v58  ;;  %v2477_v53 = vmul.f32 1.442695, %v19503_v25  ;;  %v19504_v45 = vsub.f32 %v19387_v63, %v12361_v57 }
 0x51e   : > { %19499 = vst [vmem:[#allocation127_spill] sm:$0xff] %v12576_v3  ;;  %v12585_v47 = vpop.eup %8036  ;;  %8056 = vpow2.f32 %v2583_v48  ;;  %v19505_v58 = vsub.f32 %v19391_v36, %v12361_v57  ;;  %v19507_v48 = vsub.f32 %v19395_v9, %v12361_v57  ;;  %v2493_v11 = vmul.f32 1.442695, %v19508_v42 }
 0x51f   : > { %19502 = vst [vmem:[#allocation111_spill] sm:$0xff] %v12585_v47  ;;  %v2481_v62 = vmul.f32 1.442695, %v19504_v45  ;;  %v12596_v28 = vpop.eup %8038  ;;  %v2819_v44 = vadd.f32 %v12524_v29, %v2818_v16  ;;  %8058 = vpow2.f32 %v2461_v46  ;;  %v19510_v63 = vsub.f32 %v19470_v26, %v12361_v57  ;;  %v19512_v46 = vld [vmem:[#allocation130_spill] sm:$0xff] }
 0x520   : > { %v2485_v30 = vmul.f32 1.442695, %v19505_v58  ;;  %19506 = vst [vmem:[#allocation97_spill] sm:$0xff] %v12596_v28  ;;  %v2489_v34 = vmul.f32 1.442695, %v19507_v48  ;;  %v12605_v25 = vpop.eup %8040  ;;  %8060 = vpow2.f32 %v2465_v41  ;;  %v19511_v45 = vsub.f32 %v19471_v24, %v12361_v57 }
 0x521   : > { %19509 = vst [vmem:[#allocation118_spill] sm:$0xff] %v12605_v25  ;;  %v2497_v36 = vmul.f32 1.442695, %v19510_v63  ;;  %v12616_v9 = vsel %vm2905_vm2, %v12431_v33, %v19512_v46  ;;  %v12618_v58 = vpop.eup %8042  ;;  %v2820_v2 = vadd.f32 %v12530_v1, %v2819_v44  ;;  %8062 = vpow2.f32 %v2469_v6 }
 0x522   : > { %v2501_v16 = vmul.f32 1.442695, %v19511_v45  ;;  %19513 = vst [vmem:[#allocation141_spill] sm:$0xff] %v12618_v58  ;;  %v19514_v41 = vsub.f32 %v19472_v20, %v12361_v57  ;;  %v19515_v26 = vsub.f32 %v19473_v55, %v12361_v57  ;;  %v12627_v24 = vpop.eup %8044  ;;  %8064 = vpow2.f32 %v2473_v51 }
 0x523   : > { %19516 = vst [vmem:[#allocation146_spill] sm:$0xff] %v12627_v24  ;;  %v12635_v44 = vpop.eup %8046  ;;  %v2821_v20 = vadd.f32 %v12537_v50, %v2820_v2  ;;  %8066 = vpow2.f32 %v2477_v53 }
 0x524   : > { %v2505_v48 = vmul.f32 1.442695, %v19514_v41  ;;  %v2509_v42 = vmul.f32 1.442695, %v19515_v26  ;;  %19517 = vst [vmem:[#allocation155_spill] sm:$0xff] %v12635_v44  ;;  %v12642_v45 = vpop.eup %8048  ;;  %8068 = vpow2.f32 %v2481_v62  ;;  %v19523_v26 = vsub.f32 %v19474_v5, %v12361_v57 }
 0x525   : > { %19518 = vst [vmem:[#allocation160_spill] sm:$0xff] %v12642_v45  ;;  %v12650_v2 = vpop.eup %8050  ;;  %v2822_v53 = vadd.f32 %v12543_v54, %v2821_v20  ;;  %8070 = vpow2.f32 %v2485_v30 }
 0x526   : > { %19519 = vst [vmem:[#allocation55_spill] sm:$0xff] %v12650_v2  ;;  %v12657_v55 = vpop.eup %8052  ;;  %8072 = vpow2.f32 %v2489_v34  ;;  %v2513_v41 = vmul.f32 1.442695, %v19523_v26  ;;  %v19526_v26 = vsub.f32 %v12076_v49, %v12361_v57  ;;  %v19528_v49 = vsub.f32 %v12142_v19, %v12361_v57 }
 0x527   : > { %19520 = vst [vmem:[#allocation123_spill] sm:$0xff] %v12657_v55  ;;  %v12665_v20 = vpop.eup %8054  ;;  %v2823_v30 = vadd.f32 %v12549_v31, %v2822_v53  ;;  %8074 = vpow2.f32 %v2493_v11  ;;  %v19524_v11 = vsub.f32 %v19475_v4, %v12361_v57  ;;  %v19530_v19 = vsub.f32 %v19476_v60, %v12361_v57 }
 0x528   : > { %19521 = vst [vmem:[#allocation170_spill] sm:$0xff] %v12665_v20  ;;  %v12672_v51 = vpop.eup %8056  ;;  %8076 = vpow2.f32 %v2497_v36  ;;  %v19525_v36 = vsub.f32 %v12026_v0, %v12361_v57  ;;  %v2525_v63 = vmul.f32 1.442695, %v19526_v26  ;;  %v19527_v0 = vsub.f32 %v12094_v61, %v12361_v57 }
 0x529   : > { %19522 = vst [vmem:[#allocation177_spill] sm:$0xff] %v12672_v51  ;;  %v12677_v6 = vpop.eup %8058  ;;  %v2824_v46 = vadd.f32 %v12554_v21, %v2823_v30  ;;  %8078 = vpow2.f32 %v2501_v16  ;;  %v2517_v53 = vmul.f32 1.442695, %v19524_v11  ;;  %v2533_v26 = vmul.f32 1.442695, %v19528_v49 }
 0x52a   : > { %v12685_v34 = vpop.eup %8060  ;;  %8080 = vpow2.f32 %v2505_v48  ;;  %v2521_v5 = vmul.f32 1.442695, %v19525_v36  ;;  %v2529_v36 = vmul.f32 1.442695, %v19527_v0  ;;  %v19529_v61 = vsub.f32 %v12161_v37, %v12361_v57 }
 0x52b   : > { %v12693_v30 = vpop.eup %8062  ;;  %v2825_v16 = vadd.f32 %v12560_v43, %v2824_v46  ;;  %8082 = vpow2.f32 %v2509_v42  ;;  %v2846_v4 = vadd.f32 %v12685_v34, %v12677_v6  ;;  %v2541_v0 = vmul.f32 1.442695, %v19530_v19 }
 0x52c   : > { %v12700_v48 = vpop.eup %8064  ;;  %8084 = vpow2.f32 %v2513_v41  ;;  %v2537_v41 = vmul.f32 1.442695, %v19529_v61  ;;  %v19531_v37 = vsub.f32 %v19477_v18, %v12361_v57  ;;  %v19532_v60 = vsub.f32 %v19478_v10, %v12361_v57 }
 0x52d   : > { %v12708_v62 = vpop.eup %8066  ;;  %v2826_v42 = vadd.f32 %v12565_v39, %v2825_v16  ;;  %8086 = vpow2.f32 %v2517_v53  ;;  %v2847_v46 = vadd.f32 %v12693_v30, %v2846_v4  ;;  %v19533_v18 = vsub.f32 %v12265_v14, %v12361_v57 }
 0x52e   : > { %v12714_v11 = vpop.eup %8068  ;;  %8088 = vpow2.f32 %v2521_v5  ;;  %v2545_v5 = vmul.f32 1.442695, %v19531_v37  ;;  %v2549_v61 = vmul.f32 1.442695, %v19532_v60  ;;  %v19534_v10 = vsub.f32 %v12283_v56, %v12361_v57 }
 0x52f   : > { %v12722_v49 = vpop.eup %8070  ;;  %v2827_v53 = vadd.f32 %v12571_v52, %v2826_v42  ;;  %8090 = vpow2.f32 %v2525_v63  ;;  %v2848_v16 = vadd.f32 %v12700_v48, %v2847_v46 }
 0x530   : > { %v12728_v33 = vpop.eup %8072  ;;  %8092 = vpow2.f32 %v2529_v36  ;;  %v2553_v36 = vmul.f32 1.442695, %v19533_v18  ;;  %v2557_v37 = vmul.f32 1.442695, %v19534_v10 }
 0x531   : > { %v12736_v19 = vpop.eup %8074  ;;  %v2828_v63 = vadd.f32 %v12576_v3, %v2827_v53  ;;  %8094 = vpow2.f32 %v2533_v26  ;;  %v2849_v42 = vadd.f32 %v12708_v62, %v2848_v16  ;;  %v19537_v3 = vld [vmem:[#allocation182_spill] sm:$0xff] }
 0x532   : > { %v12742_v4 = vpop.eup %8076  ;;  %8096 = vpow2.f32 %v2537_v41  ;;  %v19535_v41 = vld [vmem:[#allocation181_spill] sm:$0xff]  ;;  %v19538_v56 = vsub.f32 %v19537_v3, %v12361_v57  ;;  %v19541_v3 = vsub.f32 %v19481_v23, %v12361_v57  ;;  %v19543_v23 = vsub.f32 %v19483_v32, %v12361_v57 }
 0x533   : > { %v12750_v60 = vpop.eup %8078  ;;  %v2829_v26 = vadd.f32 %v12585_v47, %v2828_v63  ;;  %8098 = vpow2.f32 %v2541_v0  ;;  %v2850_v53 = vadd.f32 %v12714_v11, %v2849_v42  ;;  %v19536_v14 = vsub.f32 %v19535_v41, %v12361_v57 }
 0x534   : > { %v12756_v46 = vpop.eup %8080  ;;  %8100 = vpow2.f32 %v2545_v5  ;;  %v2565_v10 = vmul.f32 1.442695, %v19538_v56  ;;  %v19539_v5 = vld [vmem:[#allocation183_spill] sm:$0xff]  ;;  %v2573_v56 = vmul.f32 1.442695, %v19541_v3 }
 0x535   : > { %v2561_v18 = vmul.f32 1.442695, %v19536_v14  ;;  %v12764_v39 = vpop.eup %8082  ;;  %v2830_v0 = vadd.f32 %v12596_v28, %v2829_v26  ;;  %8102 = vpow2.f32 %v2549_v61  ;;  %v2851_v63 = vadd.f32 %v12722_v49, %v2850_v53 }
 0x536   : > { %v12770_v16 = vpop.eup %8084  ;;  %8104 = vpow2.f32 %v2553_v36  ;;  %v19540_v41 = vsub.f32 %v19539_v5, %v12361_v57  ;;  %v19542_v36 = vsub.f32 %v19482_v17, %v12361_v57 }
 0x537   : > { %v12778_v47 = vpop.eup %8086  ;;  %v2831_v61 = vadd.f32 %v12605_v25, %v2830_v0  ;;  %8106 = vpow2.f32 %v2557_v37  ;;  %v2852_v26 = vadd.f32 %v12728_v33, %v2851_v63 }
 0x538   : > { %v2569_v14 = vmul.f32 1.442695, %v19540_v41  ;;  %v12784_v42 = vpop.eup %8088  ;;  %8108 = vpow2.f32 %v2561_v18  ;;  %v2577_v5 = vmul.f32 1.442695, %v19542_v36  ;;  %v2581_v41 = vmul.f32 1.442695, %v19543_v23 }
 0x539   : > { %v12792_v3 = vpop.eup %8090  ;;  %v2832_v37 = vadd.f32 %v12618_v58, %v2831_v61  ;;  %8110 = vpow2.f32 %v2565_v10  ;;  %v2853_v0 = vadd.f32 %v12736_v19, %v2852_v26  ;;  %v19544_v18 = vld [vmem:[#allocation187_spill] sm:$0xff] }
 0x53a   : > { %v12798_v53 = vpop.eup %8092  ;;  %8112 = vpow2.f32 %v2569_v14  ;;  %v19545_v17 = vsub.f32 %v19544_v18, %v12361_v57 }
 0x53b   : > { %v12803_v28 = vpop.eup %8094  ;;  %v2833_v32 = vadd.f32 %v12627_v24, %v2832_v37  ;;  %8114 = vpow2.f32 %v2573_v56  ;;  %v2854_v61 = vadd.f32 %v12742_v4, %v2853_v0 }
 0x53c   : > { %v2585_v36 = vmul.f32 1.442695, %v19545_v17  ;;  %v12809_v26 = vpop.eup %8096  ;;  %8116 = vpow2.f32 %v2577_v5 }
 0x53d   : > { %v12811_v23 = vpop.eup %8098  ;;  %v2834_v14 = vadd.f32 %v12635_v44, %v2833_v32  ;;  %8118 = vpow2.f32 %v2581_v41  ;;  %v2855_v57 = vadd.f32 %v12750_v60, %v2854_v61 }
 0x53e   : > { %v12817_v37 = vpop.eup %8100  ;;  %8120 = vpow2.f32 %v2585_v36 }
 0x53f   : > { %v12819_v56 = vpop.eup %8102  ;;  %v2835_v0 = vadd.f32 %v12642_v45, %v2834_v14  ;;  %v2856_v17 = vadd.f32 %v12756_v46, %v2855_v57 }
 0x540   : > { %v12825_v10 = vpop.eup %8104 }
 0x541   : > { %v12827_v41 = vpop.eup %8106  ;;  %v2836_v32 = vadd.f32 %v12650_v2, %v2835_v0  ;;  %v2857_v61 = vadd.f32 %v12764_v39, %v2856_v17 }
 0x542   : > { %v12833_v18 = vpop.eup %8108 }
 0x543   : > { %v12835_v63 = vpop.eup %8110  ;;  %v2837_v14 = vadd.f32 %v12657_v55, %v2836_v32  ;;  %v2858_v57 = vadd.f32 %v12770_v16, %v2857_v61 }
 0x544   : > { %v12841_v44 = vpop.eup %8112 }
 0x545   : > { %v12843_v45 = vpop.eup %8114  ;;  %v2838_v0 = vadd.f32 %v12665_v20, %v2837_v14  ;;  %v2859_v17 = vadd.f32 %v12778_v47, %v2858_v57 }
 0x546   : > { %v12849_v2 = vpop.eup %8116 }
 0x547   : > { %v12851_v58 = vpop.eup %8118  ;;  %v2839_v32 = vadd.f32 %v12672_v51, %v2838_v0  ;;  %v2860_v61 = vadd.f32 %v12784_v42, %v2859_v17 }
 0x548   : > { %19546 = vst [vmem:[#allocation184_spill] sm:$0xff] %v12851_v58  ;;  %v12857_v55 = vpop.eup %8120 }
 0x549   : > { %v2840_v24 = vrot.slane %v2839_v32, 4  ;;  %v2861_v14 = vadd.f32 %v12792_v3, %v2860_v61 }
 0x54b   : > { %v2841_v36 = vadd.f32 %v2840_v24, %v2839_v32  ;;  %v2862_v20 = vadd.f32 %v12798_v53, %v2861_v14 }
 0x54d   : > { %v2842_v25 = vrot.slane %v2841_v36, 2  ;;  %v2863_v52 = vadd.f32 %v12803_v28, %v2862_v20 }
 0x54f   : > { %v2843_v0 = vadd.f32 %v2842_v25, %v2841_v36  ;;  %v2864_v17 = vadd.f32 %v12809_v26, %v2863_v52  ;;  %v19547_v36 = vld [vmem:[#allocation121_spill] sm:$0xff] }
 0x551   : > { %v2844_v51 = vrot.slane %v2843_v0, 1  ;;  %v2865_v5 = vadd.f32 %v12811_v23, %v2864_v17 }
 0x553   : > { %v2845_v21 = vadd.f32 %v2844_v51, %v2843_v0  ;;  %v2866_v43 = vadd.f32 %v12817_v37, %v2865_v5 }
 0x555   : > { %8122 = vrcp.f32 %v2845_v21  ;;  %v2867_v61 = vadd.f32 %v12819_v56, %v2866_v43 }
 0x557   : > { %v2868_v57 = vadd.f32 %v12825_v10, %v2867_v61 }
 0x559   : > { %v2869_v24 = vadd.f32 %v12827_v41, %v2868_v57 }
 0x55b   : > { %v2870_v32 = vadd.f32 %v12833_v18, %v2869_v24 }
 0x55d   : > { %v2871_v20 = vadd.f32 %v12835_v63, %v2870_v32 }
 0x55f   : > { %v8123_v25 = vpop.eup %8122  ;;  %v2872_v52 = vadd.f32 %v12841_v44, %v2871_v20 }
 0x560   : > { %v2908_v51 = vsel %vm2907_vm3, %v8123_v25, %v19547_v36  ;;  %v19549_v36 = vld [vmem:[#allocation21_spill] sm:$0xff] }
 0x561   : > { %v2873_v5 = vadd.f32 %v12843_v45, %v2872_v52  ;;  %v19548_v52 = vld [vmem:[#allocation74_spill] sm:$0xff] }
 0x563   : > { %v2874_v21 = vadd.f32 %v12849_v2, %v2873_v5  ;;  %v19550_v5 = vld [vmem:[#allocation23_spill] sm:$0xff] }
 0x565   : > { %v2875_v43 = vadd.f32 %v12851_v58, %v2874_v21  ;;  %v19551_v21 = vpack.c.bf16 %v19549_v36, %v19550_v5  ;;  %v19564_v36 = vld [vmem:[#allocation78_spill] sm:$0xff] }
 0x566   : > { %v19576_v58 = vld [vmem:[#allocation18_spill] sm:$0xff] }
 0x567   : > { %v2876_v14 = vadd.f32 %v12857_v55, %v2875_v43  ;;  %v19552_v43 = vld [vmem:[#allocation35_spill] sm:$0xff] }
 0x569   : > { %v2877_v57 = vrot.slane %v2876_v14, 4 }
 0x56b   : > { %v2878_v0 = vadd.f32 %v2877_v57, %v2876_v14  ;;  %v19553_v14 = vld [vmem:[#allocation26_spill] sm:$0xff] }
 0x56c   : > { %v19554_v57 = vpack.c.bf16 %v19552_v43, %v19553_v14  ;;  %v19567_v43 = vld [vmem:[#allocation67_spill] sm:$0xff] }
 0x56d   : > { %v2879_v17 = vrot.slane %v2878_v0, 2 }
 0x56f   : > { %v2880_v61 = vadd.f32 %v2879_v17, %v2878_v0  ;;  %v19555_v0 = vmov 0.0   ;;  %v19556_v17 = vld [vmem:[#allocation70_spill] sm:$0xff] }
 0x571   : > { %v2881_v24 = vrot.slane %v2880_v61, 1 }
 0x573   : > { %v2882_v32 = vadd.f32 %v2881_v24, %v2880_v61  ;;  %v19559_v24 = vld [vmem:[#allocation72_spill] sm:$0xff] }
 0x575   : > { %8124 = vrcp.f32 %v2882_v32  ;;  %v19561_v32 = vld [vmem:[#allocation61_spill] sm:$0xff] }
 0x57f   : > { %v8125_v20 = vpop.eup %8124 }
 0x580   : > { %v2911_v25 = vsel %vm2907_vm3, %v8125_v20, %v12616_v9  ;;  %v19557_v9 = vld [vmem:[#allocation29_spill] sm:$0xff] }
 0x581   : > { %7300 = vmatprep.subr.msk.mxu0 %vm2917_vm4, %v2911_v25  ;;  %v19558_v61 = vpack.c.bf16 %v19556_v17, %v19557_v9  ;;  %v19563_v25 = vld [vmem:[#allocation80_spill] sm:$0xff]  ;;  %v19572_v17 = vld [vmem:[#allocation82_spill] sm:$0xff]  ;;  %v19573_v9 = vld [vmem:[#allocation83_spill] sm:$0xff] }
 0x582   : > { %7301 = vmatpush1.msk.msra.mxu0 %vm2917_vm4, %v2908_v51  ;;  %v19560_v51 = vld [vmem:[#allocation107_spill] sm:$0xff]  ;;  %v19565_v5 = vpack.c.bf16 %v19563_v25, %v19564_v36  ;;  %v19581_v36 = vld [vmem:[#allocation38_spill] sm:$0xff] }
 0x583   : > { %7302 = vmatmul.mubr.msk.f32.vlgmr.msra.gmra.mrb[0].mxu0 %vm2912_vm5, %v19548_v52  ;;  %3226 = vmatprep.subr.bf16.mxu0 %v19551_v21  ;;  %v19562_v20 = vpack.c.bf16 %v19560_v51, %v19561_v32  ;;  %v19566_v21 = vld [vmem:[#allocation85_spill] sm:$0xff]  ;;  %v19570_v52 = vld [vmem:[#allocation108_spill] sm:$0xff] }
 0x584   : > { %3227 = vmatpush1.bf16.msra.mxu0 %v19554_v57  ;;  %2992 = vmatprep.mubr.f32.mxu0 %v19555_v0  ;;  %v19568_v14 = vpack.c.bf16 %v19566_v21, %v19567_v43  ;;  %v19569_v57 = vld [vmem:[#allocation65_spill] sm:$0xff]  ;;  %v19578_v32 = vld [vmem:[#allocation40_spill] sm:$0xff] }
 0x585   : > { %3228 = vmatprep.subr.bf16.mxu0 %v19558_v61  ;;  %v19571_v0 = vpack.c.bf16 %v19569_v57, %v19570_v52  ;;  %v19574_v61 = vpack.c.bf16 %v19572_v17, %v19573_v9  ;;  %v19584_v43 = vld [vmem:[#allocation52_spill] sm:$0xff]  ;;  %v19588_v57 = vld [vmem:[#allocation34_spill] sm:$0xff] }
 0x586   : > { %v19590_v9 = vld [vmem:[#allocation106_spill] sm:$0xff] }
 0x587   : > { %7303 = vmatmul.mubr.msk.f32.gmra.mrb[2].mxu0 %vm2912_vm5, %v19559_v24  ;;  %v19575_v24 = vld [vmem:[#allocation24_spill] sm:$0xff] }
 0x588   : > { %3229 = vmatpush1.bf16.msra.mxu0 %v19562_v20  ;;  %3258 = vmatprep.mubr.bf16.mxu0 %v19565_v5  ;;  %v19577_v51 = vpack.c.bf16 %v19575_v24, %v19576_v58  ;;  %v19579_v20 = vld [vmem:[#allocation44_spill] sm:$0xff]  ;;  %v19582_v5 = vld [vmem:[#allocation25_spill] sm:$0xff] }
 0x589   : > { %3230 = vmatprep.subr.bf16.mxu0 %v19568_v14  ;;  %v19580_v25 = vpack.c.bf16 %v19578_v32, %v19579_v20  ;;  %v19583_v21 = vpack.c.bf16 %v19581_v36, %v19582_v5  ;;  %v19585_v14 = vld [vmem:[#allocation99_spill] sm:$0xff]  ;;  %v19593_v24 = vld [vmem:[#allocation37_spill] sm:$0xff]  ;;  %v19596_v20 = vld [vmem:[#allocation68_spill] sm:$0xff] }
 0x58a   : > { %v19586_v52 = vpack.c.bf16 %v19584_v43, %v19585_v14  ;;  %v19599_v5 = vld [vmem:[#allocation53_spill] sm:$0xff]  ;;  %v19602_v14 = vld [vmem:[#allocation39_spill] sm:$0xff] }
 0x58c   : > { %3231 = vmatpush1.bf16.msra.mxu0 %v19571_v0  ;;  %v19587_v0 = vld [vmem:[#allocation100_spill] sm:$0xff] }
 0x58d   : > { %3232 = vmatprep.subr.bf16.mxu0 %v19574_v61  ;;  %v19589_v17 = vpack.c.bf16 %v19587_v0, %v19588_v57  ;;  %v19591_v61 = vld [vmem:[#allocation48_spill] sm:$0xff]  ;;  %v19605_v57 = vld [vmem:[#allocation57_spill] sm:$0xff] }
 0x58e   : > { %v19592_v58 = vpack.c.bf16 %v19590_v9, %v19591_v61  ;;  %v19608_v61 = vld [vmem:[#allocation42_spill] sm:$0xff] }
 0x590   : > { %3233 = vmatpush1.bf16.msra.mxu0 %v19577_v51  ;;  %v19594_v51 = vld [vmem:[#allocation102_spill] sm:$0xff] }
 0x591   : > { %3234 = vmatprep.subr.bf16.mxu0 %v19580_v25  ;;  %v19595_v32 = vpack.c.bf16 %v19593_v24, %v19594_v51  ;;  %v19597_v25 = vld [vmem:[#allocation56_spill] sm:$0xff]  ;;  %v19611_v51 = vld [vmem:[#allocation31_spill] sm:$0xff] }
 0x592   : > { %v19598_v36 = vpack.c.bf16 %v19596_v20, %v19597_v25  ;;  %v19614_v25 = vld [vmem:[#allocation15_spill] sm:$0xff] }
 0x594   : > { %3235 = vmatpush1.bf16.msra.mxu0 %v19583_v21  ;;  %v19600_v21 = vld [vmem:[#allocation104_spill] sm:$0xff] }
 0x595   : > { %3236 = vmatprep.subr.bf16.mxu0 %v19586_v52  ;;  %v19601_v43 = vpack.c.bf16 %v19599_v5, %v19600_v21  ;;  %v19603_v52 = vld [vmem:[#allocation13_spill] sm:$0xff]  ;;  %v19617_v21 = vld [vmem:[#allocation46_spill] sm:$0xff] }
 0x596   : > { %v19604_v0 = vpack.c.bf16 %v19602_v14, %v19603_v52  ;;  %v19620_v52 = vld [vmem:[#allocation36_spill] sm:$0xff] }
 0x598   : > { %3237 = vmatpush1.bf16.msra.mxu0 %v19589_v17  ;;  %v19606_v17 = vld [vmem:[#allocation63_spill] sm:$0xff] }
 0x599   : > { %3238 = vmatprep.subr.bf16.mxu0 %v19592_v58  ;;  %v19607_v9 = vpack.c.bf16 %v19605_v57, %v19606_v17  ;;  %v19609_v58 = vld [vmem:[#allocation51_spill] sm:$0xff]  ;;  %v19623_v17 = vld [vmem:[#allocation105_spill] sm:$0xff] }
 0x59a   : > { %v19610_v24 = vpack.c.bf16 %v19608_v61, %v19609_v58  ;;  %v19626_v58 = vld [vmem:[#allocation41_spill] sm:$0xff] }
 0x59c   : > { %3239 = vmatpush1.bf16.msra.mxu0 %v19595_v32  ;;  %v19612_v32 = vld [vmem:[#allocation14_spill] sm:$0xff] }
 0x59d   : > { %3240 = vmatprep.subr.bf16.mxu0 %v19598_v36  ;;  %v19613_v20 = vpack.c.bf16 %v19611_v51, %v19612_v32  ;;  %v19615_v36 = vld [vmem:[#allocation101_spill] sm:$0xff]  ;;  %v19629_v32 = vld [vmem:[#allocation64_spill] sm:$0xff] }
 0x59e   : > { %v19616_v5 = vpack.c.bf16 %v19614_v25, %v19615_v36  ;;  %v19632_v36 = vld [vmem:[#allocation110_spill] sm:$0xff] }
 0x5a0   : > { %3241 = vmatpush1.bf16.msra.mxu0 %v19601_v43  ;;  %v19618_v43 = vld [vmem:[#allocation109_spill] sm:$0xff] }
 0x5a1   : > { %3242 = vmatprep.subr.bf16.mxu0 %v19604_v0  ;;  %v19619_v14 = vpack.c.bf16 %v19617_v21, %v19618_v43  ;;  %v19621_v0 = vld [vmem:[#allocation50_spill] sm:$0xff] }
 0x5a2   : > { %v19622_v57 = vpack.c.bf16 %v19620_v52, %v19621_v0  ;;  %v19635_v43 = vld [vmem:[#allocation22_spill] sm:$0xff]  ;;  %v19638_v0 = vld [vmem:[#allocation115_spill] sm:$0xff] }
 0x5a4   : > { %3243 = vmatpush1.bf16.msra.mxu0 %v19607_v9  ;;  %v19624_v9 = vld [vmem:[#allocation54_spill] sm:$0xff] }
 0x5a5   : > { %3244 = vmatprep.subr.bf16.mxu0 %v19610_v24  ;;  %v19625_v61 = vpack.c.bf16 %v19623_v17, %v19624_v9  ;;  %v19627_v24 = vld [vmem:[#allocation49_spill] sm:$0xff] }
 0x5a6   : > { %v19628_v51 = vpack.c.bf16 %v19626_v58, %v19627_v24  ;;  %v19641_v9 = vld [vmem:[#allocation17_spill] sm:$0xff] }
 0x5a7   : > { %v19644_v24 = vld [vmem:[#allocation117_spill] sm:$0xff] }
 0x5a8   : > { %3245 = vmatpush1.bf16.msra.mxu0 %v19613_v20  ;;  %v19630_v20 = vld [vmem:[#allocation62_spill] sm:$0xff] }
 0x5a9   : > { %3246 = vmatprep.subr.bf16.mxu0 %v19616_v5  ;;  %v19631_v25 = vpack.c.bf16 %v19629_v32, %v19630_v20  ;;  %v19633_v5 = vld [vmem:[#allocation32_spill] sm:$0xff]  ;;  %v19647_v20 = vld [vmem:[#allocation58_spill] sm:$0xff] }
 0x5aa   : > { %v19634_v21 = vpack.c.bf16 %v19632_v36, %v19633_v5  ;;  %v19650_v5 = vld [vmem:[#allocation45_spill] sm:$0xff] }
 0x5ac   : > { %3247 = vmatpush1.bf16.msra.mxu0 %v19619_v14  ;;  %v19636_v14 = vld [vmem:[#allocation59_spill] sm:$0xff] }
 0x5ad   : > { %3248 = vmatprep.subr.bf16.mxu0 %v19622_v57  ;;  %v19637_v52 = vpack.c.bf16 %v19635_v43, %v19636_v14  ;;  %v19639_v57 = vld [vmem:[#allocation27_spill] sm:$0xff] }
 0x5ae   : > { %v19640_v17 = vpack.c.bf16 %v19638_v0, %v19639_v57  ;;  %v19653_v14 = vld [vmem:[#allocation79_spill] sm:$0xff]  ;;  %v19656_v57 = vld [vmem:[#allocation132_spill] sm:$0xff] }
 0x5b0   : > { %3249 = vmatpush1.bf16.msra.mxu0 %v19625_v61  ;;  %v19642_v61 = vld [vmem:[#allocation28_spill] sm:$0xff] }
 0x5b1   : > { %3250 = vmatprep.subr.bf16.mxu0 %v19628_v51  ;;  %v19643_v58 = vpack.c.bf16 %v19641_v9, %v19642_v61  ;;  %v19645_v51 = vld [vmem:[#allocation116_spill] sm:$0xff]  ;;  %v19659_v61 = vld [vmem:[#allocation90_spill] sm:$0xff] }
 0x5b2   : > { %v19646_v32 = vpack.c.bf16 %v19644_v24, %v19645_v51  ;;  %v19662_v51 = vld [vmem:[#allocation66_spill] sm:$0xff] }
 0x5b4   : > { %3251 = vmatpush1.bf16.msra.mxu0 %v19631_v25  ;;  %v19648_v25 = vld [vmem:[#allocation114_spill] sm:$0xff] }
 0x5b5   : > { %3252 = vmatprep.subr.bf16.mxu0 %v19634_v21  ;;  %v19649_v36 = vpack.c.bf16 %v19647_v20, %v19648_v25  ;;  %v19651_v21 = vld [vmem:[#allocation19_spill] sm:$0xff]  ;;  %v19665_v25 = vld [vmem:[#allocation20_spill] sm:$0xff] }
 0x5b6   : > { %v19652_v43 = vpack.c.bf16 %v19650_v5, %v19651_v21  ;;  %v19668_v21 = vld [vmem:[#allocation47_spill] sm:$0xff] }
 0x5b8   : > { %3253 = vmatpush1.bf16.msra.mxu0 %v19637_v52  ;;  %v19654_v52 = vld [vmem:[#allocation77_spill] sm:$0xff] }
 0x5b9   : > { %3254 = vmatprep.subr.bf16.mxu0 %v19640_v17  ;;  %v19655_v0 = vpack.c.bf16 %v19653_v14, %v19654_v52  ;;  %v19657_v17 = vld [vmem:[#allocation98_spill] sm:$0xff]  ;;  %v19671_v52 = vld [vmem:[#allocation84_spill] sm:$0xff] }
 0x5ba   : > { %v19658_v9 = vpack.c.bf16 %v19656_v57, %v19657_v17  ;;  %v19674_v17 = vld [vmem:[#allocation164_spill] sm:$0xff] }
 0x5bc   : > { %3255 = vmatpush1.bf16.msra.mxu0 %v19643_v58  ;;  %v19660_v58 = vld [vmem:[#allocation87_spill] sm:$0xff] }
 0x5bd   : > { %3256 = vmatprep.subr.bf16.mxu0 %v19646_v32  ;;  %v19661_v24 = vpack.c.bf16 %v19659_v61, %v19660_v58  ;;  %v19663_v32 = vld [vmem:[#allocation33_spill] sm:$0xff]  ;;  %v19677_v58 = vld [vmem:[#allocation103_spill] sm:$0xff] }
 0x5be   : > { %v19664_v20 = vpack.c.bf16 %v19662_v51, %v19663_v32  ;;  %v19680_v32 = vld [vmem:[#allocation166_spill] sm:$0xff] }
 0x5c0   : > { %3257 = vmatpush1.bf16.msra.mxu0 %v19649_v36  ;;  %v19666_v36 = vld [vmem:[#allocation30_spill] sm:$0xff] }
 0x5c1   : > { %3269 = vmatprep.subr.bf16.mxu0 %v19652_v43  ;;  %v19667_v5 = vpack.c.bf16 %v19665_v25, %v19666_v36  ;;  %v19669_v43 = vld [vmem:[#allocation43_spill] sm:$0xff] }
 0x5c2   : > { %v19670_v14 = vpack.c.bf16 %v19668_v21, %v19669_v43  ;;  %v19683_v36 = vld [vmem:[#allocation135_spill] sm:$0xff] }
 0x5c3   : > { %3259 = vmatmul.mubr.bf16.vlgmr.msra.gmra.mrb[4].mxu0 %v19655_v0  ;;  %v19672_v0 = vld [vmem:[#allocation16_spill] sm:$0xff]  ;;  %v19686_v43 = vld [vmem:[#allocation167_spill] sm:$0xff] }
 0x5c4   : > { %3270 = vmatpush1.bf16.msra.mxu0 %v19658_v9  ;;  %3301 = vmatprep.mubr.bf16.mxu0 %v19661_v24  ;;  %v19673_v57 = vpack.c.bf16 %v19671_v52, %v19672_v0  ;;  %v19675_v9 = vld [vmem:[#allocation133_spill] sm:$0xff] }
 0x5c5   : > { %3271 = vmatprep.subr.bf16.mxu0 %v19664_v20  ;;  %v19676_v61 = vpack.c.bf16 %v19674_v17, %v19675_v9  ;;  %v19678_v24 = vld [vmem:[#allocation69_spill] sm:$0xff] }
 0x5c6   : > { %v19679_v51 = vpack.c.bf16 %v19677_v58, %v19678_v24  ;;  %v19681_v20 = vld [vmem:[#allocation165_spill] sm:$0xff]  ;;  %v19695_v24 = vld [vmem:[#allocation139_spill] sm:$0xff] }
 0x5c7   : > { %v19682_v25 = vpack.c.bf16 %v19680_v32, %v19681_v20  ;;  %v19689_v0 = vld [vmem:[#allocation137_spill] sm:$0xff] }
 0x5c8   : > { %3272 = vmatpush1.bf16.msra.mxu0 %v19667_v5  ;;  %v19684_v5 = vld [vmem:[#allocation134_spill] sm:$0xff]  ;;  %v19692_v9 = vld [vmem:[#allocation149_spill] sm:$0xff] }
 0x5c9   : > { %3273 = vmatprep.subr.bf16.mxu0 %v19670_v14  ;;  %v19685_v21 = vpack.c.bf16 %v19683_v36, %v19684_v5  ;;  %v19687_v14 = vld [vmem:[#allocation119_spill] sm:$0xff]  ;;  %v19698_v20 = vld [vmem:[#allocation153_spill] sm:$0xff]  ;;  %v19701_v5 = vld [vmem:[#allocation142_spill] sm:$0xff] }
 0x5ca   : > { %v19688_v52 = vpack.c.bf16 %v19686_v43, %v19687_v14  ;;  %v19704_v14 = vld [vmem:[#allocation154_spill] sm:$0xff] }
 0x5cc   : > { %3274 = vmatpush1.bf16.msra.mxu0 %v19673_v57  ;;  %v19690_v57 = vld [vmem:[#allocation136_spill] sm:$0xff] }
 0x5cd   : > { %3275 = vmatprep.subr.bf16.mxu0 %v19676_v61  ;;  %v19691_v17 = vpack.c.bf16 %v19689_v0, %v19690_v57  ;;  %v19693_v61 = vld [vmem:[#allocation60_spill] sm:$0xff] }
 0x5ce   : > { %v19694_v58 = vpack.c.bf16 %v19692_v9, %v19693_v61  ;;  %v19707_v57 = vld [vmem:[#allocation144_spill] sm:$0xff]  ;;  %v19710_v61 = vld [vmem:[#allocation122_spill] sm:$0xff] }
 0x5d0   : > { %3276 = vmatpush1.bf16.msra.mxu0 %v19679_v51  ;;  %v19696_v51 = vld [vmem:[#allocation138_spill] sm:$0xff] }
 0x5d1   : > { %3277 = vmatprep.subr.bf16.mxu0 %v19682_v25  ;;  %v19697_v32 = vpack.c.bf16 %v19695_v24, %v19696_v51  ;;  %v19699_v25 = vld [vmem:[#allocation151_spill] sm:$0xff] }
 0x5d2   : > { %v19700_v36 = vpack.c.bf16 %v19698_v20, %v19699_v25  ;;  %v19713_v51 = vld [vmem:[#allocation147_spill] sm:$0xff]  ;;  %v19716_v25 = vld [vmem:[#allocation168_spill] sm:$0xff] }
 0x5d4   : > { %3278 = vmatpush1.bf16.msra.mxu0 %v19685_v21  ;;  %v19702_v21 = vld [vmem:[#allocation140_spill] sm:$0xff] }
 0x5d5   : > { %3279 = vmatprep.subr.bf16.mxu0 %v19688_v52  ;;  %v19703_v43 = vpack.c.bf16 %v19701_v5, %v19702_v21  ;;  %v19705_v52 = vld [vmem:[#allocation120_spill] sm:$0xff]  ;;  %v19719_v21 = vld [vmem:[#allocation150_spill] sm:$0xff] }
 0x5d6   : > { %v19706_v0 = vpack.c.bf16 %v19704_v14, %v19705_v52  ;;  %v19722_v52 = vld [vmem:[#allocation171_spill] sm:$0xff] }
 0x5d8   : > { %3280 = vmatpush1.bf16.msra.mxu0 %v19691_v17  ;;  %v19708_v17 = vld [vmem:[#allocation143_spill] sm:$0xff] }
 0x5d9   : > { %3281 = vmatprep.subr.bf16.mxu0 %v19694_v58  ;;  %v19709_v9 = vpack.c.bf16 %v19707_v57, %v19708_v17  ;;  %v19711_v58 = vld [vmem:[#allocation157_spill] sm:$0xff]  ;;  %v19725_v17 = vld [vmem:[#allocation156_spill] sm:$0xff] }
 0x5da   : > { %v19712_v24 = vpack.c.bf16 %v19710_v61, %v19711_v58  ;;  %v19728_v58 = vld [vmem:[#allocation173_spill] sm:$0xff] }
 0x5dc   : > { %3282 = vmatpush1.bf16.msra.mxu0 %v19697_v32  ;;  %v19714_v32 = vld [vmem:[#allocation145_spill] sm:$0xff] }
 0x5dd   : > { %3283 = vmatprep.subr.bf16.mxu0 %v19700_v36  ;;  %v19715_v20 = vpack.c.bf16 %v19713_v51, %v19714_v32  ;;  %v19717_v36 = vld [vmem:[#allocation159_spill] sm:$0xff]  ;;  %v19731_v32 = vld [vmem:[#allocation161_spill] sm:$0xff] }
 0x5de   : > { %v19718_v5 = vpack.c.bf16 %v19716_v25, %v19717_v36  ;;  %v19734_v36 = vld [vmem:[#allocation175_spill] sm:$0xff] }
 0x5e0   : > { %3284 = vmatpush1.bf16.msra.mxu0 %v19703_v43  ;;  %v19720_v43 = vld [vmem:[#allocation148_spill] sm:$0xff] }
 0x5e1   : > { %3285 = vmatprep.subr.bf16.mxu0 %v19706_v0  ;;  %v19721_v14 = vpack.c.bf16 %v19719_v21, %v19720_v43  ;;  %v19723_v0 = vld [vmem:[#allocation169_spill] sm:$0xff]  ;;  %v19737_v43 = vld [vmem:[#allocation162_spill] sm:$0xff] }
 0x5e2   : > { %v19724_v57 = vpack.c.bf16 %v19722_v52, %v19723_v0  ;;  %v19740_v0 = vld [vmem:[#allocation178_spill] sm:$0xff] }
 0x5e4   : > { %3286 = vmatpush1.bf16.msra.mxu0 %v19709_v9  ;;  %v19726_v9 = vld [vmem:[#allocation152_spill] sm:$0xff] }
 0x5e5   : > { %3287 = vmatprep.subr.bf16.mxu0 %v19712_v24  ;;  %v19727_v61 = vpack.c.bf16 %v19725_v17, %v19726_v9  ;;  %v19729_v24 = vld [vmem:[#allocation172_spill] sm:$0xff]  ;;  %v19743_v9 = vld [vmem:[#allocation163_spill] sm:$0xff] }
 0x5e6   : > { %v19730_v51 = vpack.c.bf16 %v19728_v58, %v19729_v24  ;;  %v19746_v24 = vld [vmem:[#allocation180_spill] sm:$0xff] }
 0x5e8   : > { %3288 = vmatpush1.bf16.msra.mxu0 %v19715_v20  ;;  %v19732_v20 = vld [vmem:[#allocation158_spill] sm:$0xff] }
 0x5e9   : > { %3289 = vmatprep.subr.bf16.mxu0 %v19718_v5  ;;  %v19733_v25 = vpack.c.bf16 %v19731_v32, %v19732_v20  ;;  %v19735_v5 = vld [vmem:[#allocation174_spill] sm:$0xff]  ;;  %v19749_v20 = vld [vmem:[#allocation131_spill] sm:$0xff] }
 0x5ea   : > { %v19736_v21 = vpack.c.bf16 %v19734_v36, %v19735_v5  ;;  %v19752_v5 = vpack.c.bf16 %v12685_v34, %v12677_v6  ;;  %v19761_v6 = vpack.c.bf16 %v12463_v35, %v12455_v7  ;;  %v19762_v34 = vpack.c.bf16 %v12714_v11, %v12708_v62  ;;  %v19780_v62 = vld [vmem:[#allocation128_spill] sm:$0xff]  ;;  %v19784_v11 = vld [vmem:[#allocation127_spill] sm:$0xff] }
 0x5eb   : > { %v19766_v7 = vpack.c.bf16 %v12742_v4, %v12736_v19  ;;  %v19767_v35 = vpack.c.bf16 %v12508_v40, %v12501_v22  ;;  %v19772_v40 = vpack.c.bf16 %v12784_v42, %v12778_v47  ;;  %v19773_v22 = vpack.c.bf16 %v12549_v31, %v12543_v54  ;;  %v19783_v31 = vld [vmem:[#allocation111_spill] sm:$0xff]  ;;  %v19787_v4 = vld [vmem:[#allocation118_spill] sm:$0xff]  ;;  %v19788_v19 = vld [vmem:[#allocation97_spill] sm:$0xff] }
 0x5ec   : > { %3290 = vmatpush1.bf16.msra.mxu0 %v19721_v14  ;;  %v19738_v14 = vld [vmem:[#allocation112_spill] sm:$0xff]  ;;  %v19782_v54 = vpack.c.bf16 %v12817_v37, %v12811_v23  ;;  %v19798_v23 = vpack.c.bf16 %v12849_v2, %v12843_v45  ;;  %v19799_v37 = vld [vmem:[#allocation123_spill] sm:$0xff] }
 0x5ed   : > { %3291 = vmatprep.subr.bf16.mxu0 %v19724_v57  ;;  %v19739_v52 = vpack.c.bf16 %v19737_v43, %v19738_v14  ;;  %v19741_v57 = vld [vmem:[#allocation176_spill] sm:$0xff]  ;;  %v19754_v43 = vld [vmem:[#allocation86_spill] sm:$0xff] }
 0x5ee   : > { %v19742_v17 = vpack.c.bf16 %v19740_v0, %v19741_v57  ;;  %v19757_v0 = vld [vmem:[#allocation94_spill] sm:$0xff]  ;;  %v19758_v57 = vld [vmem:[#allocation96_spill] sm:$0xff] }
 0x5f0   : > { %3292 = vmatpush1.bf16.msra.mxu0 %v19727_v61  ;;  %v19744_v61 = vld [vmem:[#allocation129_spill] sm:$0xff] }
 0x5f1   : > { %3293 = vmatprep.subr.bf16.mxu0 %v19730_v51  ;;  %v19745_v58 = vpack.c.bf16 %v19743_v9, %v19744_v61  ;;  %v19747_v51 = vld [vmem:[#allocation179_spill] sm:$0xff]  ;;  %v19760_v9 = vpack.c.bf16 %v12700_v48, %v12693_v30  ;;  %v19765_v30 = vpack.c.bf16 %v12493_v12, %v12486_v38  ;;  %v19770_v12 = vpack.c.bf16 %v12770_v16, %v12764_v39  ;;  %v19792_v16 = vld [vmem:[#allocation141_spill] sm:$0xff] }
 0x5f2   : > { %v19748_v32 = vpack.c.bf16 %v19746_v24, %v19747_v51  ;;  %v19771_v38 = vpack.c.bf16 %v12537_v50, %v12530_v1  ;;  %v19778_v1 = vpack.c.bf16 %v12809_v26, %v12803_v28  ;;  %v19779_v50 = vld [vmem:[#allocation125_spill] sm:$0xff]  ;;  %v19785_v48 = vpack.c.bf16 %v19783_v31, %v19784_v11  ;;  %v19796_v26 = vld [vmem:[#allocation155_spill] sm:$0xff]  ;;  %v19805_v24 = vld [vmem:[#allocation170_spill] sm:$0xff] }
 0x5f3   : > { %v19781_v47 = vpack.c.bf16 %v19779_v50, %v19780_v62  ;;  %v19789_v28 = vpack.c.bf16 %v19787_v4, %v19788_v19  ;;  %v19808_v51 = vld [vmem:[#allocation95_spill] sm:$0xff]  ;;  %v19815_v31 = vld [vmem:[#allocation74_spill] sm:$0xff] }
 0x5f4   : > { %3294 = vmatpush1.bf16.msra.mxu0 %v19733_v25  ;;  %v19750_v25 = vld [vmem:[#allocation113_spill] sm:$0xff] }
 0x5f5   : > { %3295 = vmatprep.subr.bf16.mxu0 %v19736_v21  ;;  %v19751_v36 = vpack.c.bf16 %v19749_v20, %v19750_v25  ;;  %v19753_v21 = vld [vmem:[#allocation89_spill] sm:$0xff] }
 0x5f6   : > { %v19755_v14 = vpack.c.bf16 %v19753_v21, %v19754_v43 }
 0x5f8   : > { %3296 = vmatpush1.bf16.msra.mxu0 %v19739_v52  ;;  %v19756_v52 = vpack.c.bf16 %v12447_v59, %v12439_v27  ;;  %v19763_v27 = vpack.c.bf16 %v12478_v8, %v12471_v15  ;;  %v19764_v59 = vpack.c.bf16 %v12728_v33, %v12722_v49  ;;  %v19768_v8 = vpack.c.bf16 %v12756_v46, %v12750_v60  ;;  %v19776_v33 = vld [vmem:[#allocation124_spill] sm:$0xff]  ;;  %v19791_v60 = vld [vmem:[#allocation146_spill] sm:$0xff] }
 0x5f9   : > { %3297 = vmatprep.subr.bf16.mxu0 %v19742_v17  ;;  %v19759_v17 = vpack.c.bf16 %v19757_v0, %v19758_v57  ;;  %v19769_v15 = vpack.c.bf16 %v12524_v29, %v12516_v13  ;;  %v19774_v13 = vpack.c.bf16 %v12798_v53, %v12792_v3  ;;  %v19775_v29 = vld [vmem:[#allocation126_spill] sm:$0xff]  ;;  %v19786_v49 = vpack.c.bf16 %v12825_v10, %v12819_v56  ;;  %v19795_v3 = vld [vmem:[#allocation160_spill] sm:$0xff]  ;;  %v19800_v56 = vld [vmem:[#allocation55_spill] sm:$0xff] }
 0x5fa   : > { %v19777_v39 = vpack.c.bf16 %v19775_v29, %v19776_v33  ;;  %v19790_v46 = vpack.c.bf16 %v12833_v18, %v12827_v41  ;;  %v19793_v42 = vpack.c.bf16 %v19791_v60, %v19792_v16  ;;  %v19794_v53 = vpack.c.bf16 %v12841_v44, %v12835_v63  ;;  %v19802_v41 = vld [vmem:[#allocation184_spill] sm:$0xff]  ;;  %v19807_v63 = vld [vmem:[#allocation93_spill] sm:$0xff]  ;;  %v19812_v57 = vld [vmem:[#allocation190_spill] sm:$0xff] }
 0x5fb   : > { %v19797_v10 = vpack.c.bf16 %v19795_v3, %v19796_v26  ;;  %v19801_v18 = vpack.c.bf16 %v19799_v37, %v19800_v56  ;;  %v19803_v61 = vpack.c.bf16 %v12857_v55, %v19802_v41  ;;  %v19814_v29 = vmov 0.0   ;;  %v19816_v60 = vld [vmem:[#allocation72_spill] sm:$0xff]  ;;  %v8660_v37 = vld [vmem:[%s17708_s1 + $0x8] sm:$0xff] }
 0x5fc   : > { %3298 = vmatpush1.bf16.msra.mxu0 %v19745_v58  ;;  %v19804_v58 = vld [vmem:[#allocation177_spill] sm:$0xff]  ;;  %v8739_v56 = vmov 3  }
 0x5fd   : > { %3299 = vmatprep.subr.bf16.mxu0 %v19748_v32  ;;  %v19806_v44 = vpack.c.bf16 %v19804_v58, %v19805_v24  ;;  %v19809_v32 = vpack.c.bf16 %v19807_v63, %v19808_v51 }
 0x600   : > { %3300 = vmatpush1.bf16.msra.mxu0 %v19751_v36 }
 0x601   : > { %3312 = vmatprep.subr.bf16.mxu0 %v19752_v5  ;;  %v19810_v5 = vld [vmem:[#allocation188_spill] sm:$0xff] }
 0x603   : > { %3302 = vmatmul.mubr.bf16.vlgmr.msra.gmra.mrb[4].mxu0 %v19755_v14  ;;  %v19811_v14 = vld [vmem:[#allocation189_spill] sm:$0xff] }
 0x604   : > { %3313 = vmatpush1.bf16.msra.mxu0 %v19756_v52  ;;  %3344 = vmatprep.mubr.bf16.mxu0 %v19759_v17 }
 0x605   : > { %3314 = vmatprep.subr.bf16.mxu0 %v19760_v9 }
 0x608   : > { %3315 = vmatpush1.bf16.msra.mxu0 %v19761_v6 }
 0x609   : > { %3316 = vmatprep.subr.bf16.mxu0 %v19762_v34  ;;  %v19813_v34 = vld [vmem:[#allocation191_spill] sm:$0xff] }
 0x60c   : > { %3317 = vmatpush1.bf16.msra.mxu0 %v19763_v27 }
 0x60d   : > { %3318 = vmatprep.subr.bf16.mxu0 %v19764_v59 }
 0x610   : > { %3319 = vmatpush1.bf16.msra.mxu0 %v19765_v30 }
 0x611   : > { %3320 = vmatprep.subr.bf16.mxu0 %v19766_v7 }
 0x614   : > { %3321 = vmatpush1.bf16.msra.mxu0 %v19767_v35 }
 0x615   : > { %3322 = vmatprep.subr.bf16.mxu0 %v19768_v8 }
 0x618   : > { %3323 = vmatpush1.bf16.msra.mxu0 %v19769_v15 }
 0x619   : > { %3324 = vmatprep.subr.bf16.mxu0 %v19770_v12 }
 0x61c   : > { %3325 = vmatpush1.bf16.msra.mxu0 %v19771_v38 }
 0x61d   : > { %3326 = vmatprep.subr.bf16.mxu0 %v19772_v40 }
 0x620   : > { %3327 = vmatpush1.bf16.msra.mxu0 %v19773_v22 }
 0x621   : > { %3328 = vmatprep.subr.bf16.mxu0 %v19774_v13  ;;  %v18180_v13 = vmov 0.0|0.0  }
 0x624   : > { %3329 = vmatpush1.bf16.msra.mxu0 %v19777_v39 }
 0x625   : > { %3330 = vmatprep.subr.bf16.mxu0 %v19778_v1 }
 0x628   : > { %3331 = vmatpush1.bf16.msra.mxu0 %v19781_v47 }
 0x629   : > { %3332 = vmatprep.subr.bf16.mxu0 %v19782_v54  ;;  %v8658_v54 = vld [vmem:[%s17709_s2 + $0x60] sm:$0xf] }
 0x62c   : > { %3333 = vmatpush1.bf16.msra.mxu0 %v19785_v48 }
 0x62d   : > { %3334 = vmatprep.subr.bf16.mxu0 %v19786_v49 }
 0x630   : > { %3335 = vmatpush1.bf16.msra.mxu0 %v19789_v28 }
 0x631   : > { %3336 = vmatprep.subr.bf16.mxu0 %v19790_v46 }
 0x634   : > { %3337 = vmatpush1.bf16.msra.mxu0 %v19793_v42 }
 0x635   : > { %3338 = vmatprep.subr.bf16.mxu0 %v19794_v53 }
 0x638   : > { %3339 = vmatpush1.bf16.msra.mxu0 %v19797_v10  ;;  %v8738_v10 = vmov 2  }
 0x639   : > { %3340 = vmatprep.subr.bf16.mxu0 %v19798_v23  ;;  %v8659_v23 = vld [vmem:[%s17708_s1] sm:$0xff] }
 0x63c   : > { %3341 = vmatpush1.bf16.msra.mxu0 %v19801_v18  ;;  %v19817_v18 = vmov 0  }
 0x63d   : > { %3342 = vmatprep.subr.bf16.mxu0 %v19803_v61 }
 0x640   : > { %3343 = vmatpush1.bf16.msra.mxu0 %v19806_v44 }
 0x641   : > { %7477 = vmatprep.subr.bf16.mxu0 %v18180_v13 }
 0x643   : > { %3345 = vmatmul.mubr.bf16.vlgmr.msra.gmra.mrb[4].mxu0 %v19809_v32 }
 0x644   : > { %7429 = vmatprep.mubr.msk.f32.mxu0 %vm8737_vm6, %v19814_v29 }
 0x656   : > { %v2988_v20 = vpop.f32.mrb[0].mxu0 }
 0x657   : > { %v2990_v25 = vpop.f32.mrb[1].mxu0 }
 0x65a   : > { %v2994_v45 = vpop.f32.mrb[2].mxu0 }
 0x65b   : > { %v2996_v2 = vpop.f32.mrb[3].mxu0 }
 0x716   : > { %v3346_v36 = vpop.f32.mrb[4].mxu0 }
 0x717   : > { %v7493_v21 = vadd.f32 %v3346_v36, %v19810_v5  ;;  %v3348_v43 = vpop.f32.mrb[5].mxu0 }
 0x718   : > { %v7494_v52 = vadd.f32 %v3348_v43, %v19811_v14  ;;  %v3350_v55 = vpop.f32.mrb[6].mxu0 }
 0x719   : > { %v13196_v0 = vmul.f32 %v7493_v21, %v2988_v20  ;;  %v7495_v17 = vadd.f32 %v3350_v55, %v19812_v57  ;;  %v3352_v9 = vpop.f32.mrb[7].mxu0 }
 0x71a   : > { %v13199_v6 = vmul.f32 %v7494_v52, %v2990_v25  ;;  %v7496_v27 = vadd.f32 %v3352_v9, %v19813_v34 }
 0x71b   : > { %v13202_v59 = vmul.f32 %v7495_v17, %v2994_v45  ;;  %v3365_v12 = vmul.f32 %v13196_v0, %v13196_v0 }
 0x71c   : > { %v13204_v30 = vmul.f32 %v7496_v27, %v2996_v2  ;;  %v3359_v7 = vadd.f32 %v13199_v6, %v13196_v0  ;;  %v3366_v38 = vmul.f32 %v13199_v6, %v13199_v6 }
 0x71d   : > { %v3367_v35 = vmul.f32 %v13202_v59, %v13202_v59 }
 0x71e   : > { %3360 = vadd.xlane.f32.xlu1 %v3359_v7  ;;  %v3362_v8 = vadd.f32 %v13204_v30, %v13202_v59  ;;  %v3368_v15 = vmul.f32 %v13204_v30, %v13204_v30  ;;  %v3369_v22 = vadd.f32 %v3366_v38, %v3365_v12  ;;  %v19824_v12 = vld [vmem:[#allocation6_spill] sm:$0xff] }
 0x720   : > { %3363 = vadd.xlane.f32.xlu0 %v3362_v8  ;;  %v3372_v40 = vadd.f32 %v3368_v15, %v3367_v35  ;;  %v19818_v35 = vld [vmem:[#allocation7_spill] sm:$0xff] }
 0x722   : > { %3373 = vadd.xlane.f32.xlu1 %v3372_v40 }
 0x724   : > { %3370 = vadd.xlane.f32.xlu0 %v3369_v22 }
 0x7ab   : > { %v3361_v33 = vpop.xlane.xlu1 %3360 }
 0x7ad   : > { %v3364_v39 = vpop.xlane.xlu0 %3363 }
 0x7ae   : > { %v7478_v1 = vpack.c.bf16 %v3364_v39, %v3361_v33  ;;  %v182_v33 = vld [vmem:[%s17709_s2 + $0x30] sm:$0xff]  ;;  %v183_v39 = vld [vmem:[%s17709_s2 + $0x38] sm:$0xff] }
 0x7af   : > { %v3374_v50 = vpop.xlane.xlu1 %3373 }
 0x7b0   : > { %7479 = vmatpush3.bf16.msra.mxu0 %v7478_v1  ;;  %v184_v1 = vld [vmem:[%s17709_s2 + $0x40] sm:$0xff] }
 0x7b1   : > { %v3371_v62 = vpop.xlane.xlu0 %3370  ;;  %7480 = vmatprep.subr.bf16.mxu0 %v18180_v13 }
 0x7b2   : > { %v7481_v47 = vpack.c.bf16 %v3374_v50, %v3371_v62  ;;  %v185_v50 = vld [vmem:[%s17709_s2 + $0x48] sm:$0xff]  ;;  %v186_v62 = vld [vmem:[%s17709_s2 + $0x50] sm:$0xff] }
 0x7b3   : > { %7430 = vmatmul.mubr.msk.f32.vlgmr.msra.gmra.mrb[8].mxu0 %vm264_vm0, %v8658_v54 }
 0x7b4   : > { %7482 = vmatpush3.bf16.msra.mxu0 %v7481_v47  ;;  %7436 = vmatprep.mubr.msk.f32.mxu0 %vm8737_vm6, %v19814_v29  ;;  %v187_v47 = vld [vmem:[%s17709_s2 + $0x58] sm:$0xff] }
 0x7b7   : > { %7437 = vmatmul.mubr.msk.f32.vlgmr.msra.gmra.mrb[10].mxu0 %vm264_vm0, %v8658_v54 }
 0x7b8   : > { %7441 = vmatprep.mubr.msk.f32.mxu0 %vm2912_vm5, %v19815_v31 }
 0x886   : > { %v3444_v11 = vpop.f32.mrb[8].mxu0 }
 0x887   : > { %v3448_v48 = vmul.f32 0.0009765625, %v3444_v11  ;;  %v7431_v49 = vpop.f32.mrb[9].mxu0 }
 0x889   : > { %7439 = vmatprep.subr.msk.mxu0 %vm2917_vm4, %v3448_v48  ;;  %v3520_v28 = vmul.f32 %v3448_v48, %v3448_v48 }
 0x88a   : > { %v3515_v4 = vpop.f32.mrb[10].mxu0  ;;  %7440 = vmatpush3.msk.msra.mxu0 %vm2917_vm4, %v3448_v48  ;;  %v19826_v48 = vld [vmem:[#allocation75_spill] sm:$0xff] }
 0x88b   : > { %v3519_v19 = vmul.f32 0.0009765625, %v3515_v4  ;;  %v7438_v46 = vpop.f32.mrb[11].mxu0  ;;  %7442 = vmatmul.mubr.msk.f32.vlgmr.msra.gmra.mrb[12].mxu0 %vm2912_vm5, %v19816_v60  ;;  %v19828_v4 = vld [vmem:[#allocation71_spill] sm:$0xff] }
 0x88c   : > { %7446 = vmatprep.mubr.msk.f32.mxu0 %vm2912_vm5, %v19815_v31 }
 0x88d   : > { %v3521_v16 = vsub.f32 %v3519_v19, %v3520_v28  ;;  %v19830_v28 = vld [vmem:[#allocation73_spill] sm:$0xff] }
 0x88f   : > { %v3522_v42 = vadd.f32 1e-05, %v3521_v16  ;;  %v19832_v16 = vld [vmem:[#allocation92_spill] sm:$0xff] }
 0x891   : > { %8126 = vrsqrt.f32 %v3522_v42 }
 0x89b   : > { %v8127_v53 = vpop.eup %8126 }
 0x89c   : > { %7444 = vmatprep.subr.msk.mxu0 %vm2917_vm4, %v8127_v53 }
 0x89d   : > { %7445 = vmatpush3.msk.msra.mxu0 %vm2917_vm4, %v8127_v53 }
 0x89e   : > { %7447 = vmatmul.mubr.msk.f32.vlgmr.msra.gmra.mrb[14].mxu0 %vm2912_vm5, %v19816_v60 }
 0x89f   : > { %3818 = vmatprep.mubr.f32.mxu0 %v19814_v29 }
 0x95e   : > { %v7443_v3 = vpop.f32.mrb[12].mxu0 }
 0x95f   : > { %3687 = vperm.xlu1 %7582, %v7443_v3   ;;  %v3593_v26 = vpop.f32.mrb[13].mxu0 }
 0x960   : > { %3682 = vperm.xlu0 %7581, %v3593_v26  }
 0x963   : > { %7583 = vset.pattern.permute.xlu1 %v8738_v10 }
 0x964   : > { %3709 = vperm.xlu1 %7583, %v8659_v23  }
 0x968   : > { %3713 = vperm.xlu1 %7583, %v8660_v37  }
 0x96c   : > { %7584 = vset.pattern.permute.xlu1 %v8739_v56 }
 0x96d   : > { %3721 = vperm.xlu1 %7584, %v8659_v23  }
 0x971   : > { %7585 = vset.pattern.permute.xlu1 %v19817_v18  ;;  %v7448_v41 = vpop.f32.mrb[14].mxu0 }
 0x972   : > { %3701 = vperm.xlu1 %7585, %v7448_v41   ;;  %v3671_v61 = vpop.f32.mrb[15].mxu0  ;;  %v19840_v41 = vld [vmem:[#allocation76_spill] sm:$0xff] }
 0x976   : > { %3696 = vperm.xlu1 %7585, %v3671_v61  }
 0x97a   : > { %7586 = vset.pattern.permute.xlu1 %v8739_v56 }
 0x97b   : > { %3725 = vperm.xlu1 %7586, %v8660_v37   ;;  %v19838_v37 = vld [vmem:[#allocation81_spill] sm:$0xff] }
 0x9de   : > { %v3688_v58 = vpop.permute.xlu1 %3687 }
 0x9df   : > { %v3683_v51 = vpop.permute.xlu0 %3682  ;;  %v3692_v20 = vsub.f32 %v13202_v59, %v3688_v58  ;;  %v3693_v25 = vsub.f32 %v13204_v30, %v3688_v58  ;;  %v19842_v58 = vld [vmem:[#allocation88_spill] sm:$0xff] }
 0x9e0   : > { %v3690_v45 = vsub.f32 %v13196_v0, %v3683_v51  ;;  %v3691_v2 = vsub.f32 %v13199_v6, %v3683_v51  ;;  %v19820_v0 = vld [vmem:[#allocation5_spill] sm:$0xff]  ;;  %v19822_v6 = vld [vmem:[#allocation8_spill] sm:$0xff] }
 0x9e3   : > { %v3710_v24 = vpop.permute.xlu1 %3709 }
 0x9e7   : > { %v3714_v44 = vpop.permute.xlu1 %3713 }
 0x9ec   : > { %v3722_v63 = vpop.permute.xlu1 %3721 }
 0x9f1   : > { %v3702_v32 = vpop.permute.xlu1 %3701 }
 0x9f2   : > { %v3706_v36 = vmul.f32 %v3702_v32, %v3692_v20  ;;  %v3707_v5 = vmul.f32 %v3702_v32, %v3693_v25 }
 0x9f4   : > { %v3718_v57 = vmul.f32 %v3714_v44, %v3706_v36  ;;  %v3719_v17 = vmul.f32 %v3714_v44, %v3707_v5  ;;  %v19844_v44 = vld [vmem:[#allocation91_spill] sm:$0xff] }
 0x9f5   : > { %v3697_v21 = vpop.permute.xlu1 %3696 }
 0x9f6   : > { %v3704_v43 = vmul.f32 %v3697_v21, %v3690_v45  ;;  %v3705_v14 = vmul.f32 %v3697_v21, %v3691_v2 }
 0x9f8   : > { %v3716_v52 = vmul.f32 %v3710_v24, %v3704_v43  ;;  %v3717_v55 = vmul.f32 %v3710_v24, %v3705_v14 }
 0x9fa   : > { %v3728_v9 = vadd.f32 %v3722_v63, %v3716_v52  ;;  %v3729_v34 = vadd.f32 %v3722_v63, %v3717_v55  ;;  %v3726_v27 = vpop.permute.xlu1 %3725 }
 0x9fb   : > { %v3730_v7 = vadd.f32 %v3726_v27, %v3718_v57  ;;  %v3731_v59 = vadd.f32 %v3726_v27, %v3719_v17 }
 0x9fc   : > { %v13254_v30 = vadd.f32 %v3728_v9, %v19818_v35  ;;  %v13257_v8 = vadd.f32 %v3729_v34, %v19820_v0 }
 0x9fd   : > { %v13260_v15 = vadd.f32 %v3730_v7, %v19822_v6  ;;  %v13263_v38 = vadd.f32 %v3731_v59, %v19824_v12 }
 0x9fe   : > { %19819 = vst [vmem:[#allocation185_spill] sm:$0xff] %v13254_v30  ;;  %19821 = vst [vmem:[#allocation186_spill] sm:$0xff] %v13257_v8 }
 0x9ff   : > { %19823 = vst [vmem:[#allocation130_spill] sm:$0xff] %v13260_v15  ;;  %19825 = vst [vmem:[#allocation181_spill] sm:$0xff] %v13263_v38  ;;  %v7485_v40 = vpack.c.bf16 %v13260_v15, %v13254_v30  ;;  %v7483_v22 = vpack.c.bf16 %v13263_v38, %v13257_v8 }
 0xa01   : > { %7484 = vmatprep.subr.bf16.mxu0 %v7483_v22  ;;  %v19850_v22 = vld [vmem:[#allocation9_spill] sm:$0xff] }
 0xa02   : > { %7486 = vmatpush1.bf16.msra.mxu0 %v7485_v40 }
 0xa05   : > { %7312 = vmatmul.mubr.msk.f32.vlgmr.msra.gmra.mrb[16].mxu0 %vm264_vm0, %v182_v33 }
 0xa06   : > { %3824 = vmatprep.mubr.f32.mxu0 %v19814_v29 }
 0xa09   : > { %7313 = vmatmul.mubr.msk.f32.gmra.mrb[18].mxu0 %vm264_vm0, %v183_v39  ;;  %v19851_v39 = vld [vmem:[#allocation10_spill] sm:$0xff] }
 0xa0a   : > { %3830 = vmatprep.mubr.f32.mxu0 %v19814_v29 }
 0xa0d   : > { %7314 = vmatmul.mubr.msk.f32.gmra.mrb[20].mxu0 %vm264_vm0, %v184_v1 }
 0xa0e   : > { %3836 = vmatprep.mubr.f32.mxu0 %v19814_v29 }
 0xa11   : > { %7315 = vmatmul.mubr.msk.f32.gmra.mrb[22].mxu0 %vm264_vm0, %v185_v50  ;;  %v19852_v50 = vld [vmem:[#allocation11_spill] sm:$0xff] }
 0xa12   : > { %3842 = vmatprep.mubr.f32.mxu0 %v19814_v29 }
 0xa15   : > { %7316 = vmatmul.mubr.msk.f32.gmra.mrb[24].mxu0 %vm264_vm0, %v186_v62 }
 0xa16   : > { %3848 = vmatprep.mubr.f32.mxu0 %v19814_v29 }
 0xa19   : > { %7317 = vmatmul.mubr.msk.f32.gmra.mrb[26].mxu0 %vm264_vm0, %v187_v47  ;;  %v19854_v47 = vld [vmem:[#allocation12_spill] sm:$0xff] }
 0xa1a   : > { %4337 = vmatprep.mubr.bf16.mxu0 %v19817_v18 }
 0xad8   : > { %v3820_v54 = vpop.f32.mrb[16].mxu0 }
 0xad9   : > { %v3822_v11 = vpop.f32.mrb[17].mxu0  ;;  %v13300_v49 = vmul.f32 %v3820_v54, %v19826_v48  ;;  %v13303_v19 = vmul.f32 %v3820_v54, %v19828_v4  ;;  %v13306_v46 = vmul.f32 %v3820_v54, %v19830_v28  ;;  %v13309_v42 = vmul.f32 %v3820_v54, %v19832_v16 }
 0xada   : > { %v13312_v3 = vmul.f32 %v3822_v11, %v19826_v48  ;;  %v13315_v26 = vmul.f32 %v3822_v11, %v19828_v4  ;;  %v13318_v10 = vmul.f32 %v3822_v11, %v19830_v28  ;;  %v13321_v23 = vmul.f32 %v3822_v11, %v19832_v16 }
 0xadb   : > { %19827 = vst [vmem:[#allocation182_spill] sm:$0xff] %v13300_v49  ;;  %19829 = vst [vmem:[#allocation183_spill] sm:$0xff] %v13303_v19 }
 0xadc   : > { %19831 = vst [vmem:[#allocation187_spill] sm:$0xff] %v13306_v46  ;;  %19833 = vst [vmem:[#allocation121_spill] sm:$0xff] %v13309_v42  ;;  %v3826_v53 = vpop.f32.mrb[18].mxu0 }
 0xadd   : > { %19834 = vst [vmem:[#allocation21_spill] sm:$0xff] %v13312_v3  ;;  %19835 = vst [vmem:[#allocation23_spill] sm:$0xff] %v13315_v26  ;;  %v13324_v56 = vmul.f32 %v3826_v53, %v19838_v37  ;;  %v13327_v61 = vmul.f32 %v3826_v53, %v19840_v41  ;;  %v13330_v24 = vmul.f32 %v3826_v53, %v19842_v58  ;;  %v3828_v51 = vpop.f32.mrb[19].mxu0 }
 0xade   : > { %19836 = vst [vmem:[#allocation35_spill] sm:$0xff] %v13318_v10  ;;  %19837 = vst [vmem:[#allocation26_spill] sm:$0xff] %v13321_v23  ;;  %v13333_v63 = vmul.f32 %v3826_v53, %v19844_v44  ;;  %v13336_v32 = vmul.f32 %v3828_v51, %v19838_v37  ;;  %v13339_v20 = vmul.f32 %v3828_v51, %v19840_v41 }
 0xadf   : > { %19839 = vst [vmem:[#allocation70_spill] sm:$0xff] %v13324_v56  ;;  %19841 = vst [vmem:[#allocation29_spill] sm:$0xff] %v13327_v61  ;;  %v13342_v25 = vmul.f32 %v3828_v51, %v19842_v58  ;;  %v13345_v45 = vmul.f32 %v3828_v51, %v19844_v44 }
 0xae0   : > { %19843 = vst [vmem:[#allocation107_spill] sm:$0xff] %v13330_v24  ;;  %19845 = vst [vmem:[#allocation61_spill] sm:$0xff] %v13333_v63  ;;  %v3832_v43 = vpop.f32.mrb[20].mxu0 }
 0xae1   : > { %19846 = vst [vmem:[#allocation80_spill] sm:$0xff] %v13336_v32  ;;  %19847 = vst [vmem:[#allocation78_spill] sm:$0xff] %v13339_v20  ;;  %v3834_v17 = vpop.f32.mrb[21].mxu0 }
 0xae2   : > { %19848 = vst [vmem:[#allocation85_spill] sm:$0xff] %v13342_v25  ;;  %19849 = vst [vmem:[#allocation67_spill] sm:$0xff] %v13345_v45 }
 0xae4   : > { %v3838_v9 = vpop.f32.mrb[22].mxu0 }
 0xae5   : > { %v4111_v34 = vpack.c.bf16 %v3838_v9, %v3832_v43  ;;  %v3840_v27 = vpop.f32.mrb[23].mxu0 }
 0xae6   : > { %v4112_v7 = vpack.c.bf16 %v3840_v27, %v3834_v17 }
 0xae8   : > { %v3844_v59 = vpop.f32.mrb[24].mxu0  ;;  %4305 = vmatprep.subr.bf16.mxu0 %v4112_v7 }
 0xae9   : > { %4306 = vmatpush1.bf16.msra.mxu0 %v4111_v34  ;;  %3855 = vxpose.xlu1.b32.start [1/2] (short) %v3844_v59, 128  ;;  %v3846_v35 = vpop.f32.mrb[25].mxu0 }
 0xaea   : > { %3887 = vxpose.xlu0.b32.start [1/2] (short) %v3846_v35, 128 }
 0xaec   : > { %v3850_v0 = vpop.f32.mrb[26].mxu0 }
 0xaed   : > { %3856 = vxpose.xlu1.b32.end [2/2] (short) %v3850_v0, 128  ;;  %v3852_v6 = vpop.f32.mrb[27].mxu0 }
 0xaee   : > { %3888 = vxpose.xlu0.b32.end [2/2] (short) %v3852_v6, 128 }
 0xb69   : > { %v3871_v12 = vpop.trf.xlu1 }
 0xb6a   : > { %v13363_v40 = vpop.trf.xlu0  ;;  %v3919_v33 = vmul.f32 %v3871_v12, %v19850_v22  ;;  %v13367_v1 = vmul.f32 %v3871_v12, %v19851_v39  ;;  %v13370_v62 = vmul.f32 %v3871_v12, %v19852_v50  ;;  %v13373_v54 = vmul.f32 %v3871_v12, %v19854_v47 }
 0xb6b   : > { %v13377_v48 = vmul.f32 %v13363_v40, %v19851_v39  ;;  %v13381_v4 = vmul.f32 %v13363_v40, %v19852_v50  ;;  %v13385_v28 = vmul.f32 %v13363_v40, %v19854_v47 }
 0xb6c   : > { %19853 = vst [vmem:[#allocation65_spill] sm:$0xff] %v13370_v62  ;;  %19855 = vst [vmem:[#allocation108_spill] sm:$0xff] %v13373_v54  ;;  %v3935_v62 = vmul.f32 %v13363_v40, %v19850_v22 }
 0xb6d   : > { %v3872_v11 = vpop.trf.xlu1  ;;  %19856 = vst [vmem:[#allocation82_spill] sm:$0xff] %v13381_v4  ;;  %19857 = vst [vmem:[#allocation83_spill] sm:$0xff] %v13385_v28 }
 0xb6e   : > { %v3920_v16 = vmul.f32 %v3872_v11, %v19850_v22  ;;  %v13389_v53 = vmul.f32 %v3872_v11, %v19851_v39  ;;  %v13392_v37 = vmul.f32 %v3872_v11, %v19852_v50  ;;  %v13395_v41 = vmul.f32 %v3872_v11, %v19854_v47  ;;  %v13397_v58 = vpop.trf.xlu0 }
 0xb6f   : > { %v13401_v44 = vmul.f32 %v13397_v58, %v19851_v39  ;;  %v13405_v51 = vmul.f32 %v13397_v58, %v19852_v50  ;;  %v13409_v43 = vmul.f32 %v13397_v58, %v19854_v47 }
 0xb70   : > { %19858 = vst [vmem:[#allocation24_spill] sm:$0xff] %v13395_v41  ;;  %v4047_v17 = vpack.c.bf16 %v3920_v16, %v3919_v33 }
 0xb71   : > { %19859 = vst [vmem:[#allocation18_spill] sm:$0xff] %v13405_v51  ;;  %19860 = vst [vmem:[#allocation40_spill] sm:$0xff] %v13409_v43  ;;  %v3873_v7 = vpop.trf.xlu1 }
 0xb72   : > { %7318 = vmatmul.mubr.msk.bf16.vlgmr.msra.gmra.mrb[28].mxu0 %vm264_vm0, %v4047_v17  ;;  %v13424_v6 = vpop.trf.xlu0  ;;  %v3921_v12 = vmul.f32 %v3873_v7, %v19850_v22  ;;  %v13429_v33 = vmul.f32 %v3873_v7, %v19851_v39  ;;  %v13432_v11 = vmul.f32 %v3873_v7, %v19852_v50  ;;  %v13435_v16 = vmul.f32 %v3873_v7, %v19854_v47 }
 0xb73   : > { %4347 = vmatprep.mubr.bf16.mxu0 %v19817_v18  ;;  %v13439_v13 = vmul.f32 %v13424_v6, %v19851_v39  ;;  %v13443_v17 = vmul.f32 %v13424_v6, %v19852_v50  ;;  %v13447_v57 = vmul.f32 %v13424_v6, %v19854_v47 }
 0xb74   : > { %19861 = vst [vmem:[#allocation44_spill] sm:$0xff] %v13432_v11  ;;  %19862 = vst [vmem:[#allocation38_spill] sm:$0xff] %v13435_v16 }
 0xb75   : > { %v3874_v21 = vpop.trf.xlu1  ;;  %19863 = vst [vmem:[#allocation25_spill] sm:$0xff] %v13443_v17  ;;  %19864 = vst [vmem:[#allocation52_spill] sm:$0xff] %v13447_v57 }
 0xb76   : > { %v3922_v5 = vmul.f32 %v3874_v21, %v19850_v22  ;;  %v13451_v55 = vmul.f32 %v3874_v21, %v19851_v39  ;;  %v13454_v7 = vmul.f32 %v3874_v21, %v19852_v50  ;;  %v13457_v36 = vmul.f32 %v3874_v21, %v19854_v47  ;;  %v13459_v52 = vpop.trf.xlu0 }
 0xb77   : > { %v13463_v2 = vmul.f32 %v13459_v52, %v19851_v39  ;;  %v13467_v14 = vmul.f32 %v13459_v52, %v19852_v50  ;;  %v13471_v0 = vmul.f32 %v13459_v52, %v19854_v47 }
 0xb78   : > { %19865 = vst [vmem:[#allocation99_spill] sm:$0xff] %v13454_v7  ;;  %19866 = vst [vmem:[#allocation100_spill] sm:$0xff] %v13457_v36  ;;  %v4048_v27 = vpack.c.bf16 %v3922_v5, %v3921_v12 }
 0xb79   : > { %19867 = vst [vmem:[#allocation34_spill] sm:$0xff] %v13467_v14  ;;  %19868 = vst [vmem:[#allocation106_spill] sm:$0xff] %v13471_v0  ;;  %v3875_v59 = vpop.trf.xlu1 }
 0xb7a   : > { %7319 = vmatmul.mubr.msk.bf16.gmra.mrb[32].mxu0 %vm264_vm0, %v4048_v27  ;;  %v13486_v5 = vpop.trf.xlu0  ;;  %v3923_v12 = vmul.f32 %v3875_v59, %v19850_v22  ;;  %v13491_v34 = vmul.f32 %v3875_v59, %v19851_v39  ;;  %v13494_v21 = vmul.f32 %v3875_v59, %v19852_v50  ;;  %v13497_v9 = vmul.f32 %v3875_v59, %v19854_v47 }
 0xb7b   : > { %4357 = vmatprep.mubr.bf16.mxu0 %v19817_v18  ;;  %v13501_v15 = vmul.f32 %v13486_v5, %v19851_v39  ;;  %v13505_v27 = vmul.f32 %v13486_v5, %v19852_v50  ;;  %v13509_v35 = vmul.f32 %v13486_v5, %v19854_v47  ;;  %v3939_v40 = vmul.f32 %v13486_v5, %v19850_v22 }
 0xb7c   : > { %19869 = vst [vmem:[#allocation48_spill] sm:$0xff] %v13494_v21  ;;  %19870 = vst [vmem:[#allocation37_spill] sm:$0xff] %v13497_v9 }
 0xb7d   : > { %v3876_v38 = vpop.trf.xlu1  ;;  %19871 = vst [vmem:[#allocation102_spill] sm:$0xff] %v13505_v27  ;;  %19872 = vst [vmem:[#allocation68_spill] sm:$0xff] %v13509_v35 }
 0xb7e   : > { %v3924_v8 = vmul.f32 %v3876_v38, %v19850_v22  ;;  %v13513_v30 = vmul.f32 %v3876_v38, %v19851_v39  ;;  %v13516_v59 = vmul.f32 %v3876_v38, %v19852_v50  ;;  %v13519_v42 = vmul.f32 %v3876_v38, %v19854_v47  ;;  %v13521_v63 = vpop.trf.xlu0 }
 0xb7f   : > { %v13525_v23 = vmul.f32 %v13521_v63, %v19851_v39  ;;  %v13529_v45 = vmul.f32 %v13521_v63, %v19852_v50  ;;  %v13533_v46 = vmul.f32 %v13521_v63, %v19854_v47 }
 0xb80   : > { %19873 = vst [vmem:[#allocation56_spill] sm:$0xff] %v13516_v59  ;;  %19874 = vst [vmem:[#allocation53_spill] sm:$0xff] %v13519_v42  ;;  %v4049_v24 = vpack.c.bf16 %v3924_v8, %v3923_v12 }
 0xb81   : > { %19875 = vst [vmem:[#allocation104_spill] sm:$0xff] %v13529_v45  ;;  %19876 = vst [vmem:[#allocation39_spill] sm:$0xff] %v13533_v46  ;;  %v3877_v19 = vpop.trf.xlu1 }
 0xb82   : > { %7320 = vmatmul.mubr.msk.bf16.gmra.mrb[36].mxu0 %vm264_vm0, %v4049_v24  ;;  %v13548_v8 = vpop.trf.xlu0  ;;  %v3925_v12 = vmul.f32 %v3877_v19, %v19850_v22  ;;  %v13553_v25 = vmul.f32 %v3877_v19, %v19851_v39  ;;  %v13556_v38 = vmul.f32 %v3877_v19, %v19852_v50  ;;  %v13559_v61 = vmul.f32 %v3877_v19, %v19854_v47 }
 0xb83   : > { %4367 = vmatprep.mubr.bf16.mxu0 %v19817_v18  ;;  %v13563_v20 = vmul.f32 %v13548_v8, %v19851_v39  ;;  %v13567_v24 = vmul.f32 %v13548_v8, %v19852_v50  ;;  %v13571_v10 = vmul.f32 %v13548_v8, %v19854_v47 }
 0xb84   : > { %19877 = vst [vmem:[#allocation13_spill] sm:$0xff] %v13556_v38  ;;  %19878 = vst [vmem:[#allocation57_spill] sm:$0xff] %v13559_v61 }
 0xb85   : > { %v3878_v26 = vpop.trf.xlu1  ;;  %19879 = vst [vmem:[#allocation63_spill] sm:$0xff] %v13567_v24  ;;  %19880 = vst [vmem:[#allocation42_spill] sm:$0xff] %v13571_v10 }
 0xb86   : > { %v3926_v60 = vmul.f32 %v3878_v26, %v19850_v22  ;;  %v13575_v29 = vmul.f32 %v3878_v26, %v19851_v39  ;;  %v13578_v19 = vmul.f32 %v3878_v26, %v19852_v50  ;;  %v13581_v31 = vmul.f32 %v3878_v26, %v19854_v47  ;;  %v13583_v49 = vpop.trf.xlu0 }
 0xb87   : > { %v13587_v56 = vmul.f32 %v13583_v49, %v19851_v39  ;;  %v13591_v3 = vmul.f32 %v13583_v49, %v19852_v50  ;;  %v13595_v32 = vmul.f32 %v13583_v49, %v19854_v47 }
 0xb88   : > { %19881 = vst [vmem:[#allocation51_spill] sm:$0xff] %v13578_v19  ;;  %19882 = vst [vmem:[#allocation31_spill] sm:$0xff] %v13581_v31  ;;  %v4050_v35 = vpack.c.bf16 %v3926_v60, %v3925_v12 }
 0xb89   : > { %19883 = vst [vmem:[#allocation14_spill] sm:$0xff] %v13591_v3  ;;  %19884 = vst [vmem:[#allocation15_spill] sm:$0xff] %v13595_v32  ;;  %v3879_v0 = vpop.trf.xlu1 }
 0xb8a   : > { %7321 = vmatmul.mubr.msk.bf16.gmra.mrb[40].mxu0 %vm264_vm0, %v4050_v35  ;;  %v13610_v60 = vpop.trf.xlu0  ;;  %v3927_v12 = vmul.f32 %v3879_v0, %v19850_v22  ;;  %v13615_v57 = vmul.f32 %v3879_v0, %v19851_v39  ;;  %v13618_v26 = vmul.f32 %v3879_v0, %v19852_v50  ;;  %v13621_v28 = vmul.f32 %v3879_v0, %v19854_v47 }
 0xb8b   : > { %4377 = vmatprep.mubr.bf16.mxu0 %v19817_v18  ;;  %v13625_v9 = vmul.f32 %v13610_v60, %v19851_v39  ;;  %v13629_v35 = vmul.f32 %v13610_v60, %v19852_v50  ;;  %v13633_v46 = vmul.f32 %v13610_v60, %v19854_v47  ;;  %v3943_v5 = vmul.f32 %v13610_v60, %v19850_v22 }
 0xb8c   : > { %19885 = vst [vmem:[#allocation101_spill] sm:$0xff] %v13618_v26  ;;  %19886 = vst [vmem:[#allocation46_spill] sm:$0xff] %v13621_v28 }
 0xb8d   : > { %v3880_v43 = vpop.trf.xlu1  ;;  %19887 = vst [vmem:[#allocation109_spill] sm:$0xff] %v13629_v35  ;;  %19888 = vst [vmem:[#allocation36_spill] sm:$0xff] %v13633_v46 }
 0xb8e   : > { %v3928_v10 = vmul.f32 %v3880_v43, %v19850_v22  ;;  %v13637_v32 = vmul.f32 %v3880_v43, %v19851_v39  ;;  %v13640_v0 = vmul.f32 %v3880_v43, %v19852_v50  ;;  %v13643_v61 = vmul.f32 %v3880_v43, %v19854_v47  ;;  %v13645_v31 = vpop.trf.xlu0 }
 0xb8f   : > { %v13649_v42 = vmul.f32 %v13645_v31, %v19851_v39  ;;  %v13653_v16 = vmul.f32 %v13645_v31, %v19852_v50  ;;  %v13657_v36 = vmul.f32 %v13645_v31, %v19854_v47 }
 0xb90   : > { %19889 = vst [vmem:[#allocation50_spill] sm:$0xff] %v13640_v0  ;;  %19890 = vst [vmem:[#allocation105_spill] sm:$0xff] %v13643_v61  ;;  %v4051_v54 = vpack.c.bf16 %v3928_v10, %v3927_v12 }
 0xb91   : > { %19891 = vst [vmem:[#allocation54_spill] sm:$0xff] %v13653_v16  ;;  %19892 = vst [vmem:[#allocation41_spill] sm:$0xff] %v13657_v36  ;;  %v3881_v3 = vpop.trf.xlu1 }
 0xb92   : > { %7322 = vmatmul.mubr.msk.bf16.gmra.mrb[44].mxu0 %vm264_vm0, %v4051_v54  ;;  %v13672_v10 = vpop.trf.xlu0  ;;  %v3929_v12 = vmul.f32 %v3881_v3, %v19850_v22  ;;  %v13677_v24 = vmul.f32 %v3881_v3, %v19851_v39  ;;  %v13680_v43 = vmul.f32 %v3881_v3, %v19852_v50  ;;  %v13683_v27 = vmul.f32 %v3881_v3, %v19854_v47 }
 0xb93   : > { %4387 = vmatprep.mubr.bf16.mxu0 %v19817_v18  ;;  %v13687_v17 = vmul.f32 %v13672_v10, %v19851_v39  ;;  %v13691_v54 = vmul.f32 %v13672_v10, %v19852_v50  ;;  %v13695_v41 = vmul.f32 %v13672_v10, %v19854_v47 }
 0xb94   : > { %19893 = vst [vmem:[#allocation49_spill] sm:$0xff] %v13680_v43  ;;  %19894 = vst [vmem:[#allocation64_spill] sm:$0xff] %v13683_v27 }
 0xb95   : > { %v3882_v45 = vpop.trf.xlu1  ;;  %19895 = vst [vmem:[#allocation62_spill] sm:$0xff] %v13691_v54  ;;  %19896 = vst [vmem:[#allocation110_spill] sm:$0xff] %v13695_v41 }
 0xb96   : > { %v3930_v46 = vmul.f32 %v3882_v45, %v19850_v22  ;;  %v13699_v36 = vmul.f32 %v3882_v45, %v19851_v39  ;;  %v13702_v3 = vmul.f32 %v3882_v45, %v19852_v50  ;;  %v13705_v28 = vmul.f32 %v3882_v45, %v19854_v47  ;;  %v13707_v61 = vpop.trf.xlu0 }
 0xb97   : > { %v13711_v35 = vmul.f32 %v13707_v61, %v19851_v39  ;;  %v13715_v16 = vmul.f32 %v13707_v61, %v19852_v50  ;;  %v13719_v14 = vmul.f32 %v13707_v61, %v19854_v47 }
 0xb98   : > { %19897 = vst [vmem:[#allocation32_spill] sm:$0xff] %v13702_v3  ;;  %19898 = vst [vmem:[#allocation22_spill] sm:$0xff] %v13705_v28  ;;  %v4052_v4 = vpack.c.bf16 %v3930_v46, %v3929_v12 }
 0xb99   : > { %19899 = vst [vmem:[#allocation59_spill] sm:$0xff] %v13715_v16  ;;  %19900 = vst [vmem:[#allocation115_spill] sm:$0xff] %v13719_v14  ;;  %v3883_v0 = vpop.trf.xlu1 }
 0xb9a   : > { %7323 = vmatmul.mubr.msk.bf16.gmra.mrb[48].mxu0 %vm264_vm0, %v4052_v4  ;;  %v13734_v46 = vpop.trf.xlu0  ;;  %v3931_v12 = vmul.f32 %v3883_v0, %v19850_v22  ;;  %v13739_v26 = vmul.f32 %v3883_v0, %v19851_v39  ;;  %v13742_v45 = vmul.f32 %v3883_v0, %v19852_v50  ;;  %v13745_v38 = vmul.f32 %v3883_v0, %v19854_v47 }
 0xb9b   : > { %4397 = vmatprep.mubr.bf16.mxu0 %v19817_v18  ;;  %v13749_v21 = vmul.f32 %v13734_v46, %v19851_v39  ;;  %v13753_v4 = vmul.f32 %v13734_v46, %v19852_v50  ;;  %v13757_v51 = vmul.f32 %v13734_v46, %v19854_v47 }
 0xb9c   : > { %19901 = vst [vmem:[#allocation27_spill] sm:$0xff] %v13745_v38 }
 0xb9d   : > { %v3884_v19 = vpop.trf.xlu1  ;;  %19902 = vst [vmem:[#allocation17_spill] sm:$0xff] %v13753_v4  ;;  %19903 = vst [vmem:[#allocation28_spill] sm:$0xff] %v13757_v51 }
 0xb9e   : > { %v3932_v41 = vmul.f32 %v3884_v19, %v19850_v22  ;;  %v13761_v14 = vmul.f32 %v3884_v19, %v19851_v39  ;;  %v13764_v0 = vmul.f32 %v3884_v19, %v19852_v50  ;;  %v13767_v27 = vmul.f32 %v3884_v19, %v19854_v47  ;;  %v3916_v28 = vpop.trf.xlu0 }
 0xb9f   : > { %v13770_v54 = vmul.f32 %v3916_v28, %v19851_v39  ;;  %v13773_v16 = vmul.f32 %v3916_v28, %v19852_v50  ;;  %v13776_v43 = vmul.f32 %v3916_v28, %v19854_v47  ;;  %v3937_v50 = vmul.f32 %v13424_v6, %v19850_v22 }
 0xba0   : > { %19904 = vst [vmem:[#allocation117_spill] sm:$0xff] %v13767_v27  ;;  %v4053_v3 = vpack.c.bf16 %v3932_v41, %v3931_v12  ;;  %v3941_v6 = vmul.f32 %v13548_v8, %v19850_v22  ;;  %v3945_v8 = vmul.f32 %v13672_v10, %v19850_v22  ;;  %v3948_v60 = vmul.f32 %v3916_v28, %v19850_v22 }
 0xba1   : > { %19905 = vst [vmem:[#allocation116_spill] sm:$0xff] %v13776_v43  ;;  %v13784_v7 = vpop.trf.xlu1  ;;  %v19910_v28 = vpack.c.bf16 %v13389_v53, %v13367_v1  ;;  %v19913_v1 = vpack.c.bf16 %v13575_v29, %v13553_v25  ;;  %v19916_v29 = vpack.c.bf16 %v13761_v14, %v13739_v26  ;;  %v19918_v14 = vpack.c.bf16 %v13463_v2, %v13439_v13 }
 0xba2   : > { %19906 = vst [vmem:[#allocation58_spill] sm:$0xff] %v13784_v7  ;;  %7324 = vmatmul.mubr.msk.bf16.gmra.mrb[52].mxu0 %vm264_vm0, %v4053_v3  ;;  %v3933_v19 = vmul.f32 %v13784_v7, %v19850_v22  ;;  %v3936_v3 = vmul.f32 %v13397_v58, %v19850_v22  ;;  %v3965_v25 = vmul.f32 %v13784_v7, %v19851_v39 }
 0xba3   : > { %4407 = vmatprep.mubr.bf16.mxu0 %v19817_v18  ;;  %v19919_v53 = vpack.c.bf16 %v13525_v23, %v13501_v15  ;;  %v19920_v15 = vpack.c.bf16 %v13587_v56, %v13563_v20  ;;  %v19921_v20 = vpack.c.bf16 %v13649_v42, %v13625_v9  ;;  %v19922_v9 = vpack.c.bf16 %v13711_v35, %v13687_v17 }
 0xba4   : > { %v4055_v41 = vpack.c.bf16 %v3936_v3, %v3935_v62  ;;  %v3940_v62 = vmul.f32 %v13521_v63, %v19850_v22  ;;  %v3944_v63 = vmul.f32 %v13645_v31, %v19850_v22  ;;  %v13837_v3 = vpop.trf.xlu0  ;;  %v3947_v31 = vmul.f32 %v13734_v46, %v19850_v22 }
 0xba5   : > { %v13794_v12 = vpop.trf.xlu1  ;;  %19908 = vst [vmem:[#allocation45_spill] sm:$0xff] %v13837_v3  ;;  %v19911_v46 = vpack.c.bf16 %v13451_v55, %v13429_v33  ;;  %v19914_v55 = vpack.c.bf16 %v13637_v32, %v13615_v57  ;;  %v19923_v35 = vpack.c.bf16 %v13770_v54, %v13749_v21 }
 0xba6   : > { %19907 = vst [vmem:[#allocation114_spill] sm:$0xff] %v13794_v12  ;;  %v3934_v11 = vmul.f32 %v13794_v12, %v19850_v22  ;;  %v4057_v58 = vpack.c.bf16 %v3940_v62, %v3939_v40  ;;  %v3966_v32 = vmul.f32 %v13794_v12, %v19851_v39 }
 0xba8   : > { %v4054_v59 = vpack.c.bf16 %v3934_v11, %v3933_v19  ;;  %v3938_v11 = vmul.f32 %v13459_v52, %v19850_v22  ;;  %v3942_v52 = vmul.f32 %v13583_v49, %v19850_v22  ;;  %v4059_v19 = vpack.c.bf16 %v3944_v63, %v3943_v5 }
 0xba9   : > { %v3946_v49 = vmul.f32 %v13707_v61, %v19850_v22  ;;  %v3949_v61 = vmul.f32 %v13837_v3, %v19850_v22  ;;  %v4070_v57 = vpack.c.bf16 %v3966_v32, %v3965_v25 }
 0xbaa   : > { %7325 = vmatmul.mubr.msk.bf16.gmra.mrb[56].mxu0 %vm264_vm0, %v4054_v59  ;;  %v4056_v59 = vpack.c.bf16 %v3938_v11, %v3937_v50  ;;  %v4058_v50 = vpack.c.bf16 %v3942_v52, %v3941_v6  ;;  %v4061_v11 = vpack.c.bf16 %v3948_v60, %v3947_v31 }
 0xbab   : > { %4417 = vmatprep.mubr.bf16.mxu0 %v19817_v18 }
 0xbb2   : > { %7326 = vmatmul.mubr.msk.bf16.gmra.mrb[60].mxu0 %vm264_vm0, %v4055_v41  ;;  %v4060_v41 = vpack.c.bf16 %v3946_v49, %v3945_v8 }
 0xbb3   : > { %4427 = vmatprep.mubr.bf16.mxu0 %v19817_v18 }
 0xbba   : > { %7327 = vmatmul.mubr.msk.bf16.gmra.mrb[64].mxu0 %vm264_vm0, %v4056_v59  ;;  %v13843_v59 = vpop.trf.xlu0 }
 0xbbb   : > { %4437 = vmatprep.mubr.bf16.mxu0 %v19817_v18  ;;  %19909 = vst [vmem:[#allocation19_spill] sm:$0xff] %v13843_v59  ;;  %v3950_v10 = vmul.f32 %v13843_v59, %v19850_v22  ;;  %v19912_v22 = vpack.c.bf16 %v13513_v30, %v13491_v34  ;;  %v19915_v30 = vpack.c.bf16 %v13699_v36, %v13677_v24 }
 0xbbc   : > { %v19917_v36 = vpack.c.bf16 %v13401_v44, %v13377_v48 }
 0xbbd   : > { %v4062_v40 = vpack.c.bf16 %v3950_v10, %v3949_v61 }
 0xbc2   : > { %7328 = vmatmul.mubr.msk.bf16.gmra.mrb[68].mxu0 %vm264_vm0, %v4057_v58 }
 0xbc3   : > { %4447 = vmatprep.mubr.bf16.mxu0 %v19817_v18 }
 0xbca   : > { %7329 = vmatmul.mubr.msk.bf16.gmra.mrb[72].mxu0 %vm264_vm0, %v4058_v50 }
 0xbcb   : > { %4457 = vmatprep.mubr.bf16.mxu0 %v19817_v18 }
 0xbd2   : > { %7330 = vmatmul.mubr.msk.bf16.gmra.mrb[76].mxu0 %vm264_vm0, %v4059_v19 }
 0xbd3   : > { %4467 = vmatprep.mubr.bf16.mxu0 %v19817_v18 }
 0xbda   : > { %7331 = vmatmul.mubr.msk.bf16.gmra.mrb[80].mxu0 %vm264_vm0, %v4060_v41 }
 0xbdb   : > { %4477 = vmatprep.mubr.bf16.mxu0 %v19817_v18 }
 0xbe2   : > { %7332 = vmatmul.mubr.msk.bf16.gmra.mrb[84].mxu0 %vm264_vm0, %v4061_v11 }
 0xbe3   : > { %4487 = vmatprep.mubr.bf16.mxu0 %v19817_v18 }
 0xbea   : > { %7333 = vmatmul.mubr.msk.bf16.gmra.mrb[88].mxu0 %vm264_vm0, %v4062_v40 }
 0xbeb   : > { %4497 = vmatprep.mubr.bf16.mxu0 %v19817_v18 }
 0xbf2   : > { %7334 = vmatmul.mubr.msk.bf16.gmra.mrb[92].mxu0 %vm264_vm0, %v19910_v28 }
 0xbf3   : > { %4507 = vmatprep.mubr.bf16.mxu0 %v19817_v18 }
 0xbfa   : > { %7335 = vmatmul.mubr.msk.bf16.gmra.mrb[96].mxu0 %vm264_vm0, %v19911_v46  ;;  %v3981_v46 = vmul.f32 %v13837_v3, %v19851_v39 }
 0xbfb   : > { %4517 = vmatprep.mubr.bf16.mxu0 %v19817_v18 }
 0xc02   : > { %7336 = vmatmul.mubr.msk.bf16.gmra.mrb[100].mxu0 %vm264_vm0, %v19912_v22  ;;  %v3982_v22 = vmul.f32 %v13843_v59, %v19851_v39 }
 0xc03   : > { %4527 = vmatprep.mubr.bf16.mxu0 %v19817_v18 }
 0xc04   : > { %v4078_v25 = vpack.c.bf16 %v3982_v22, %v3981_v46 }
 0xc0a   : > { %7337 = vmatmul.mubr.msk.bf16.gmra.mrb[104].mxu0 %vm264_vm0, %v19913_v1 }
 0xc0b   : > { %4537 = vmatprep.mubr.bf16.mxu0 %v19817_v18 }
 0xc12   : > { %7338 = vmatmul.mubr.msk.bf16.gmra.mrb[108].mxu0 %vm264_vm0, %v19914_v55 }
 0xc13   : > { %4547 = vmatprep.mubr.bf16.mxu0 %v19817_v18 }
 0xc1a   : > { %7339 = vmatmul.mubr.msk.bf16.gmra.mrb[112].mxu0 %vm264_vm0, %v19915_v30 }
 0xc1b   : > { %4557 = vmatprep.mubr.bf16.mxu0 %v19817_v18 }
 0xc22   : > { %7340 = vmatmul.mubr.msk.bf16.gmra.mrb[116].mxu0 %vm264_vm0, %v19916_v29 }
 0xc23   : > { %4567 = vmatprep.mubr.bf16.mxu0 %v19817_v18 }
 0xc2a   : > { %7341 = vmatmul.mubr.msk.bf16.gmra.mrb[120].mxu0 %vm264_vm0, %v4070_v57 }
 0xc2b   : > { %4577 = vmatprep.mubr.bf16.mxu0 %v19817_v18 }
 0xc32   : > { %7342 = vmatmul.mubr.msk.bf16.gmra.mrb[124].mxu0 %vm264_vm0, %v19917_v36 }
 0xc33   : > { %4587 = vmatprep.mubr.bf16.mxu0 %v19817_v18 }
 0xc3a   : > { %7343 = vmatmul.mubr.msk.bf16.gmra.mrb[128].mxu0 %vm264_vm0, %v19918_v14 }
 0xc3b   : > { %4597 = vmatprep.mubr.bf16.mxu0 %v19817_v18 }
 0xc42   : > { %7344 = vmatmul.mubr.msk.bf16.gmra.mrb[132].mxu0 %vm264_vm0, %v19919_v53 }
 0xc43   : > { %4607 = vmatprep.mubr.bf16.mxu0 %v19817_v18 }
 0xc45   : > { %v13909_v34 = vpop.f32.mrb[28].mxu0 }
 0xc46   : > { %v13911_v48 = vpop.f32.mrb[29].mxu0 }
 0xc47   : > { %v13913_v44 = vpop.f32.mrb[30].mxu0 }
 0xc48   : > { %v13915_v33 = vpop.f32.mrb[31].mxu0  ;;  %v4978_v13 = vmax.f32 %v13909_v34, %v13913_v44 }
 0xc49   : > { %v5015_v2 = vmax.f32 %v13911_v48, %v13915_v33 }
 0xc4a   : > { %7345 = vmatmul.mubr.msk.bf16.gmra.mrb[136].mxu0 %vm264_vm0, %v19920_v15 }
 0xc4b   : > { %4617 = vmatprep.mubr.bf16.mxu0 %v19817_v18 }
 0xc4d   : > { %v13926_v23 = vpop.f32.mrb[32].mxu0 }
 0xc4e   : > { %v4979_v24 = vmax.f32 %v4978_v13, %v13926_v23  ;;  %v13929_v26 = vpop.f32.mrb[33].mxu0 }
 0xc4f   : > { %v5016_v62 = vmax.f32 %v5015_v2, %v13929_v26  ;;  %v13932_v58 = vpop.f32.mrb[34].mxu0 }
 0xc50   : > { %v4980_v6 = vmax.f32 %v4979_v24, %v13932_v58  ;;  %v13935_v52 = vpop.f32.mrb[35].mxu0 }
 0xc51   : > { %v5017_v56 = vmax.f32 %v5016_v62, %v13935_v52  ;;  %v19927_v62 = vld [vmem:[#allocation65_spill] sm:$0xff] }
 0xc52   : > { %7346 = vmatmul.mubr.msk.bf16.gmra.mrb[140].mxu0 %vm264_vm0, %v19921_v20 }
 0xc53   : > { %4627 = vmatprep.mubr.bf16.mxu0 %v19817_v18 }
 0xc55   : > { %v13943_v50 = vpop.f32.mrb[36].mxu0 }
 0xc56   : > { %v4981_v5 = vmax.f32 %v4980_v6, %v13943_v50  ;;  %v13946_v63 = vpop.f32.mrb[37].mxu0  ;;  %v19928_v6 = vpack.c.bf16 %v13392_v37, %v19927_v62 }
 0xc57   : > { %v5018_v19 = vmax.f32 %v5017_v56, %v13946_v63  ;;  %v13949_v8 = vpop.f32.mrb[38].mxu0 }
 0xc58   : > { %v4982_v49 = vmax.f32 %v4981_v5, %v13949_v8  ;;  %v13952_v41 = vpop.f32.mrb[39].mxu0 }
 0xc59   : > { %v5019_v42 = vmax.f32 %v5018_v19, %v13952_v41 }
 0xc5a   : > { %7347 = vmatmul.mubr.msk.bf16.gmra.mrb[144].mxu0 %vm264_vm0, %v19922_v9 }
 0xc5b   : > { %4637 = vmatprep.mubr.bf16.mxu0 %v19817_v18 }
 0xc5d   : > { %v13960_v31 = vpop.f32.mrb[40].mxu0 }
 0xc5e   : > { %v4983_v60 = vmax.f32 %v4982_v49, %v13960_v31  ;;  %v13963_v11 = vpop.f32.mrb[41].mxu0 }
 0xc5f   : > { %v5020_v61 = vmax.f32 %v5019_v42, %v13963_v11  ;;  %v13966_v10 = vpop.f32.mrb[42].mxu0 }
 0xc60   : > { %v4984_v40 = vmax.f32 %v4983_v60, %v13966_v10  ;;  %v13969_v28 = vpop.f32.mrb[43].mxu0  ;;  %v19931_v60 = vld [vmem:[#allocation99_spill] sm:$0xff] }
 0xc61   : > { %v5021_v17 = vmax.f32 %v5020_v61, %v13969_v28  ;;  %v19932_v61 = vld [vmem:[#allocation44_spill] sm:$0xff] }
 0xc62   : > { %7348 = vmatmul.mubr.msk.bf16.gmra.mrb[148].mxu0 %vm264_vm0, %v19923_v35 }
 0xc63   : > { %4647 = vmatprep.mubr.bf16.mxu0 %v19817_v18 }
 0xc65   : > { %v13981_v1 = vpop.f32.mrb[44].mxu0 }
 0xc66   : > { %v4985_v55 = vmax.f32 %v4984_v40, %v13981_v1  ;;  %v13984_v30 = vpop.f32.mrb[45].mxu0  ;;  %v19933_v40 = vpack.c.bf16 %v19931_v60, %v19932_v61  ;;  %v19941_v60 = vld [vmem:[#allocation51_spill] sm:$0xff]  ;;  %v19942_v61 = vld [vmem:[#allocation13_spill] sm:$0xff] }
 0xc67   : > { %v5022_v29 = vmax.f32 %v5021_v17, %v13984_v30  ;;  %v13987_v32 = vpop.f32.mrb[46].mxu0 }
 0xc68   : > { %v4986_v21 = vmax.f32 %v4985_v55, %v13987_v32  ;;  %v13990_v54 = vpop.f32.mrb[47].mxu0 }
 0xc69   : > { %19924 = vst [vmem:[#allocation79_spill] sm:$0xff] %v13990_v54  ;;  %v5023_v57 = vmax.f32 %v5022_v29, %v13990_v54 }
 0xc6a   : > { %7349 = vmatmul.mubr.msk.bf16.gmra.mrb[152].mxu0 %vm264_vm0, %v4078_v25 }
 0xc6b   : > { %4657 = vmatprep.mubr.bf16.mxu0 %v19817_v18 }
 0xc6d   : > { %v13995_v39 = vpop.f32.mrb[48].mxu0 }
 0xc6e   : > { %v4987_v36 = vmax.f32 %v4986_v21, %v13995_v39  ;;  %v13998_v14 = vpop.f32.mrb[49].mxu0 }
 0xc6f   : > { %19925 = vst [vmem:[#allocation77_spill] sm:$0xff] %v13998_v14  ;;  %v5024_v53 = vmax.f32 %v5023_v57, %v13998_v14  ;;  %v14001_v13 = vpop.f32.mrb[50].mxu0  ;;  %v19936_v57 = vld [vmem:[#allocation56_spill] sm:$0xff] }
 0xc70   : > { %v4988_v2 = vmax.f32 %v4987_v36, %v14001_v13  ;;  %v14004_v15 = vpop.f32.mrb[51].mxu0  ;;  %v19937_v36 = vld [vmem:[#allocation48_spill] sm:$0xff] }
 0xc71   : > { %19926 = vst [vmem:[#allocation132_spill] sm:$0xff] %v14004_v15  ;;  %v5025_v24 = vmax.f32 %v5024_v53, %v14004_v15  ;;  %v19938_v53 = vpack.c.bf16 %v19936_v57, %v19937_v36 }
 0xc72   : > { %7350 = vmatmul.mubr.msk.bf16.gmra.mrb[156].mxu0 %vm264_vm0, %v19928_v6 }
 0xc73   : > { %4667 = vmatprep.mubr.bf16.mxu0 %v19817_v18 }
 0xc75   : > { %v14012_v56 = vpop.f32.mrb[52].mxu0 }
 0xc76   : > { %v4989_v20 = vmax.f32 %v4988_v2, %v14012_v56  ;;  %v14015_v5 = vpop.f32.mrb[53].mxu0 }
 0xc77   : > { %19929 = vst [vmem:[#allocation98_spill] sm:$0xff] %v14015_v5  ;;  %v5026_v19 = vmax.f32 %v5025_v24, %v14015_v5  ;;  %v14018_v49 = vpop.f32.mrb[54].mxu0 }
 0xc78   : > { %v4990_v42 = vmax.f32 %v4989_v20, %v14018_v49  ;;  %v14021_v9 = vpop.f32.mrb[55].mxu0 }
 0xc79   : > { %19930 = vst [vmem:[#allocation90_spill] sm:$0xff] %v14021_v9  ;;  %v5027_v37 = vmax.f32 %v5026_v19, %v14021_v9 }
 0xc7a   : > { %7351 = vmatmul.mubr.msk.bf16.gmra.mrb[160].mxu0 %vm264_vm0, %v19933_v40  ;;  %v19943_v40 = vpack.c.bf16 %v19941_v60, %v19942_v61  ;;  %v19947_v60 = vld [vmem:[#allocation101_spill] sm:$0xff] }
 0xc7b   : > { %4677 = vmatprep.mubr.bf16.mxu0 %v19817_v18 }
 0xc7d   : > { %v14029_v17 = vpop.f32.mrb[56].mxu0 }
 0xc7e   : > { %v4991_v35 = vmax.f32 %v4990_v42, %v14029_v17  ;;  %v14032_v46 = vpop.f32.mrb[57].mxu0 }
 0xc7f   : > { %19934 = vst [vmem:[#allocation87_spill] sm:$0xff] %v14032_v46  ;;  %v5028_v22 = vmax.f32 %v5027_v37, %v14032_v46  ;;  %v14035_v55 = vpop.f32.mrb[58].mxu0 }
 0xc80   : > { %v4992_v29 = vmax.f32 %v4991_v35, %v14035_v55  ;;  %v14038_v21 = vpop.f32.mrb[59].mxu0 }
 0xc81   : > { %19935 = vst [vmem:[#allocation66_spill] sm:$0xff] %v14038_v21  ;;  %v5029_v25 = vmax.f32 %v5028_v22, %v14038_v21 }
 0xc82   : > { %7352 = vmatmul.mubr.msk.bf16.gmra.mrb[164].mxu0 %vm264_vm0, %v19938_v53 }
 0xc83   : > { %4687 = vmatprep.mubr.bf16.mxu0 %v19817_v18 }
 0xc85   : > { %v14046_v2 = vpop.f32.mrb[60].mxu0 }
 0xc86   : > { %v4993_v24 = vmax.f32 %v4992_v29, %v14046_v2  ;;  %v14049_v62 = vpop.f32.mrb[61].mxu0 }
 0xc87   : > { %19939 = vst [vmem:[#allocation33_spill] sm:$0xff] %v14049_v62  ;;  %v5030_v6 = vmax.f32 %v5029_v25, %v14049_v62  ;;  %v14052_v20 = vpop.f32.mrb[62].mxu0 }
 0xc88   : > { %v4994_v19 = vmax.f32 %v4993_v24, %v14052_v20  ;;  %v14055_v42 = vpop.f32.mrb[63].mxu0 }
 0xc89   : > { %19940 = vst [vmem:[#allocation20_spill] sm:$0xff] %v14055_v42  ;;  %v5031_v37 = vmax.f32 %v5030_v6, %v14055_v42  ;;  %v19946_v6 = vld [vmem:[#allocation50_spill] sm:$0xff] }
 0xc8a   : > { %7353 = vmatmul.mubr.msk.bf16.gmra.mrb[168].mxu0 %vm264_vm0, %v19943_v40  ;;  %v19948_v61 = vpack.c.bf16 %v19946_v6, %v19947_v60  ;;  %v19951_v60 = vld [vmem:[#allocation32_spill] sm:$0xff] }
 0xc8b   : > { %4697 = vmatprep.mubr.bf16.mxu0 %v19817_v18 }
 0xc8d   : > { %v14063_v35 = vpop.f32.mrb[64].mxu0 }
 0xc8e   : > { %v4995_v22 = vmax.f32 %v4994_v19, %v14063_v35  ;;  %v14066_v29 = vpop.f32.mrb[65].mxu0 }
 0xc8f   : > { %19944 = vst [vmem:[#allocation30_spill] sm:$0xff] %v14066_v29  ;;  %v5032_v25 = vmax.f32 %v5031_v37, %v14066_v29  ;;  %v14069_v57 = vpop.f32.mrb[66].mxu0 }
 0xc90   : > { %v4996_v36 = vmax.f32 %v4995_v22, %v14069_v57  ;;  %v14072_v53 = vpop.f32.mrb[67].mxu0 }
 0xc91   : > { %19945 = vst [vmem:[#allocation47_spill] sm:$0xff] %v14072_v53  ;;  %v5033_v24 = vmax.f32 %v5032_v25, %v14072_v53 }
 0xc92   : > { %7354 = vmatmul.mubr.msk.bf16.gmra.mrb[172].mxu0 %vm264_vm0, %v19948_v61  ;;  %v19952_v61 = vld [vmem:[#allocation49_spill] sm:$0xff] }
 0xc93   : > { %4707 = vmatprep.mubr.bf16.mxu0 %v19817_v18  ;;  %v19953_v47 = vpack.c.bf16 %v19951_v60, %v19952_v61 }
 0xc95   : > { %v14080_v19 = vpop.f32.mrb[68].mxu0 }
 0xc96   : > { %v4997_v40 = vmax.f32 %v4996_v36, %v14080_v19  ;;  %v14083_v37 = vpop.f32.mrb[69].mxu0 }
 0xc97   : > { %19949 = vst [vmem:[#allocation43_spill] sm:$0xff] %v14083_v37  ;;  %v5034_v51 = vmax.f32 %v5033_v24, %v14083_v37  ;;  %v14086_v22 = vpop.f32.mrb[70].mxu0 }
 0xc98   : > { %v4998_v43 = vmax.f32 %v4997_v40, %v14086_v22  ;;  %v14089_v25 = vpop.f32.mrb[71].mxu0 }
 0xc99   : > { %19950 = vst [vmem:[#allocation84_spill] sm:$0xff] %v14089_v25  ;;  %v5035_v6 = vmax.f32 %v5034_v51, %v14089_v25 }
 0xc9a   : > { %7355 = vmatmul.mubr.msk.bf16.gmra.mrb[176].mxu0 %vm264_vm0, %v19953_v47  ;;  %v19956_v47 = vpack.c.bf16 %v13764_v0, %v13742_v45 }
 0xc9b   : > { %4717 = vmatprep.mubr.bf16.mxu0 %v19817_v18 }
 0xc9d   : > { %v14097_v36 = vpop.f32.mrb[72].mxu0 }
 0xc9e   : > { %v4999_v38 = vmax.f32 %v4998_v43, %v14097_v36  ;;  %v14100_v24 = vpop.f32.mrb[73].mxu0  ;;  %v19957_v43 = vld [vmem:[#allocation11_spill] sm:$0xff] }
 0xc9f   : > { %19954 = vst [vmem:[#allocation16_spill] sm:$0xff] %v14100_v24  ;;  %v5036_v27 = vmax.f32 %v5035_v6, %v14100_v24  ;;  %v14103_v40 = vpop.f32.mrb[74].mxu0  ;;  %v3998_v61 = vmul.f32 %v13794_v12, %v19957_v43  ;;  %v3997_v6 = vmul.f32 %v13784_v7, %v19957_v43 }
 0xca0   : > { %v5000_v37 = vmax.f32 %v4999_v38, %v14103_v40  ;;  %v14106_v51 = vpop.f32.mrb[75].mxu0 }
 0xca1   : > { %19955 = vst [vmem:[#allocation164_spill] sm:$0xff] %v14106_v51  ;;  %v5037_v60 = vmax.f32 %v5036_v27, %v14106_v51 }
 0xca2   : > { %7356 = vmatmul.mubr.msk.bf16.gmra.mrb[180].mxu0 %vm264_vm0, %v19956_v47  ;;  %v4086_v47 = vpack.c.bf16 %v3998_v61, %v3997_v6  ;;  %v19962_v6 = vld [vmem:[#allocation18_spill] sm:$0xff] }
 0xca3   : > { %4727 = vmatprep.mubr.bf16.mxu0 %v19817_v18 }
 0xca5   : > { %v14116_v25 = vpop.f32.mrb[76].mxu0 }
 0xca6   : > { %v5001_v38 = vmax.f32 %v5000_v37, %v14116_v25  ;;  %v14121_v24 = vpop.f32.mrb[77].mxu0 }
 0xca7   : > { %19958 = vst [vmem:[#allocation133_spill] sm:$0xff] %v14121_v24  ;;  %v5038_v27 = vmax.f32 %v5037_v60, %v14121_v24  ;;  %v14124_v51 = vpop.f32.mrb[78].mxu0 }
 0xca8   : > { %v5002_v45 = vmax.f32 %v5001_v38, %v14124_v51  ;;  %v14127_v0 = vpop.f32.mrb[79].mxu0 }
 0xca9   : > { %19959 = vst [vmem:[#allocation103_spill] sm:$0xff] %v14127_v0  ;;  %v5039_v12 = vmax.f32 %v5038_v27, %v14127_v0  ;;  %v19963_v27 = vld [vmem:[#allocation82_spill] sm:$0xff] }
 0xcaa   : > { %7357 = vmatmul.mubr.msk.bf16.gmra.mrb[184].mxu0 %vm264_vm0, %v4086_v47  ;;  %v19964_v47 = vpack.c.bf16 %v19962_v6, %v19963_v27  ;;  %v19967_v27 = vld [vmem:[#allocation34_spill] sm:$0xff] }
 0xcab   : > { %4737 = vmatprep.mubr.bf16.mxu0 %v19817_v18 }
 0xcad   : > { %v14132_v7 = vpop.f32.mrb[80].mxu0 }
 0xcae   : > { %v5003_v37 = vmax.f32 %v5002_v45, %v14132_v7  ;;  %v14135_v53 = vpop.f32.mrb[81].mxu0 }
 0xcaf   : > { %19960 = vst [vmem:[#allocation69_spill] sm:$0xff] %v14135_v53  ;;  %v5040_v60 = vmax.f32 %v5039_v12, %v14135_v53  ;;  %v14138_v24 = vpop.f32.mrb[82].mxu0 }
 0xcb0   : > { %v5004_v38 = vmax.f32 %v5003_v37, %v14138_v24  ;;  %v14141_v29 = vpop.f32.mrb[83].mxu0 }
 0xcb1   : > { %19961 = vst [vmem:[#allocation166_spill] sm:$0xff] %v14141_v29  ;;  %v5041_v61 = vmax.f32 %v5040_v60, %v14141_v29 }
 0xcb2   : > { %7358 = vmatmul.mubr.msk.bf16.gmra.mrb[188].mxu0 %vm264_vm0, %v19964_v47  ;;  %v19968_v47 = vld [vmem:[#allocation25_spill] sm:$0xff] }
 0xcb3   : > { %4747 = vmatprep.mubr.bf16.mxu0 %v19817_v18  ;;  %v19969_v29 = vpack.c.bf16 %v19967_v27, %v19968_v47 }
 0xcb5   : > { %v14149_v45 = vpop.f32.mrb[84].mxu0 }
 0xcb6   : > { %v5005_v0 = vmax.f32 %v5004_v38, %v14149_v45  ;;  %v14152_v12 = vpop.f32.mrb[85].mxu0 }
 0xcb7   : > { %19965 = vst [vmem:[#allocation165_spill] sm:$0xff] %v14152_v12  ;;  %v5042_v53 = vmax.f32 %v5041_v61, %v14152_v12  ;;  %v14155_v37 = vpop.f32.mrb[86].mxu0 }
 0xcb8   : > { %v5006_v42 = vmax.f32 %v5005_v0, %v14155_v37  ;;  %v14158_v60 = vpop.f32.mrb[87].mxu0 }
 0xcb9   : > { %19966 = vst [vmem:[#allocation135_spill] sm:$0xff] %v14158_v60  ;;  %v5043_v6 = vmax.f32 %v5042_v53, %v14158_v60  ;;  %v19973_v60 = vld [vmem:[#allocation102_spill] sm:$0xff] }
 0xcba   : > { %7359 = vmatmul.mubr.msk.bf16.gmra.mrb[192].mxu0 %vm264_vm0, %v19969_v29  ;;  %v19972_v29 = vld [vmem:[#allocation104_spill] sm:$0xff] }
 0xcbb   : > { %4757 = vmatprep.mubr.bf16.mxu0 %v19817_v18  ;;  %v19974_v46 = vpack.c.bf16 %v19972_v29, %v19973_v60 }
 0xcbd   : > { %v14166_v38 = vpop.f32.mrb[88].mxu0 }
 0xcbe   : > { %v5007_v62 = vmax.f32 %v5006_v42, %v14166_v38  ;;  %v14169_v61 = vpop.f32.mrb[89].mxu0 }
 0xcbf   : > { %19970 = vst [vmem:[#allocation134_spill] sm:$0xff] %v14169_v61  ;;  %v5044_v12 = vmax.f32 %v5043_v6, %v14169_v61  ;;  %v14172_v0 = vpop.f32.mrb[90].mxu0 }
 0xcc0   : > { %v5008_v21 = vmax.f32 %v5007_v62, %v14172_v0  ;;  %v14175_v53 = vpop.f32.mrb[91].mxu0 }
 0xcc1   : > { %19971 = vst [vmem:[#allocation167_spill] sm:$0xff] %v14175_v53  ;;  %v5045_v27 = vmax.f32 %v5044_v12, %v14175_v53 }
 0xcc2   : > { %v5009_v47 = vrot.slane %v5008_v21, 4  ;;  %7360 = vmatmul.mubr.msk.bf16.gmra.mrb[196].mxu0 %vm264_vm0, %v19974_v46 }
 0xcc3   : > { %v5046_v9 = vrot.slane %v5045_v27, 4  ;;  %4767 = vmatprep.mubr.bf16.mxu0 %v19817_v18 }
 0xcc4   : > { %v5010_v42 = vmax.f32 %v5008_v21, %v5009_v47 }
 0xcc5   : > { %v5047_v5 = vmax.f32 %v5045_v27, %v5046_v9  ;;  %v14183_v6 = vpop.f32.mrb[92].mxu0  ;;  %v19979_v9 = vld [vmem:[#allocation14_spill] sm:$0xff]  ;;  %v19980_v27 = vld [vmem:[#allocation63_spill] sm:$0xff] }
 0xcc6   : > { %19975 = vst [vmem:[#allocation119_spill] sm:$0xff] %v14183_v6  ;;  %v5011_v61 = vrot.slane %v5010_v42, 2  ;;  %v14185_v15 = vpop.f32.mrb[93].mxu0  ;;  %v19981_v47 = vpack.c.bf16 %v19979_v9, %v19980_v27 }
 0xcc7   : > { %19976 = vst [vmem:[#allocation137_spill] sm:$0xff] %v14185_v15  ;;  %v5048_v62 = vrot.slane %v5047_v5, 2  ;;  %v14187_v14 = vpop.f32.mrb[94].mxu0 }
 0xcc8   : > { %19977 = vst [vmem:[#allocation136_spill] sm:$0xff] %v14187_v14  ;;  %v5012_v12 = vmax.f32 %v5010_v42, %v5011_v61  ;;  %v14191_v60 = vpop.f32.mrb[95].mxu0  ;;  %v14204_v61 = vmul.f32 %v13837_v3, %v19957_v43 }
 0xcc9   : > { %19978 = vst [vmem:[#allocation149_spill] sm:$0xff] %v14191_v60  ;;  %v5049_v46 = vmax.f32 %v5047_v5, %v5048_v62  ;;  %v14208_v5 = vmul.f32 %v13843_v59, %v19957_v43  ;;  %v19986_v59 = vld [vmem:[#allocation54_spill] sm:$0xff]  ;;  %v19990_v60 = vld [vmem:[#allocation59_spill] sm:$0xff] }
 0xcca   : > { %v5013_v21 = vrot.slane %v5012_v12, 1  ;;  %7361 = vmatmul.mubr.msk.bf16.gmra.mrb[200].mxu0 %vm264_vm0, %v19981_v47 }
 0xccb   : > { %v5050_v54 = vrot.slane %v5049_v46, 1  ;;  %4777 = vmatprep.mubr.bf16.mxu0 %v19817_v18 }
 0xccc   : > { %v14200_v4 = vmax.f32 %v5012_v12, %v5013_v21 }
 0xccd   : > { %v14210_v42 = vmax.f32 %v5049_v46, %v5050_v54  ;;  %v14212_v62 = vpop.f32.mrb[96].mxu0 }
 0xcce   : > { %19982 = vst [vmem:[#allocation60_spill] sm:$0xff] %v14212_v62  ;;  %v5274_v9 = vsub.f32 %v13909_v34, %v14200_v4  ;;  %v5276_v27 = vsub.f32 %v13913_v44, %v14200_v4  ;;  %v5278_v12 = vsub.f32 %v13926_v23, %v14200_v4  ;;  %v5280_v21 = vsub.f32 %v13932_v58, %v14200_v4  ;;  %v14222_v47 = vpop.f32.mrb[97].mxu0 }
 0xccf   : > { %19983 = vst [vmem:[#allocation139_spill] sm:$0xff] %v14222_v47  ;;  %v5282_v54 = vsub.f32 %v13943_v50, %v14200_v4  ;;  %v5284_v43 = vsub.f32 %v13949_v8, %v14200_v4  ;;  %v5286_v34 = vsub.f32 %v13960_v31, %v14200_v4  ;;  %v5288_v44 = vsub.f32 %v13966_v10, %v14200_v4  ;;  %v14232_v46 = vpop.f32.mrb[98].mxu0 }
 0xcd0   : > { %19984 = vst [vmem:[#allocation138_spill] sm:$0xff] %v14232_v46  ;;  %v5290_v23 = vsub.f32 %v13981_v1, %v14200_v4  ;;  %v5292_v58 = vsub.f32 %v13987_v32, %v14200_v4  ;;  %v5294_v50 = vsub.f32 %v13995_v39, %v14200_v4  ;;  %v5296_v8 = vsub.f32 %v14001_v13, %v14200_v4  ;;  %v14242_v29 = vpop.f32.mrb[99].mxu0 }
 0xcd1   : > { %19985 = vst [vmem:[#allocation153_spill] sm:$0xff] %v14242_v29  ;;  %v5298_v31 = vsub.f32 %v14012_v56, %v14200_v4  ;;  %v5300_v10 = vsub.f32 %v14018_v49, %v14200_v4  ;;  %v5302_v1 = vsub.f32 %v14029_v17, %v14200_v4  ;;  %v5304_v32 = vsub.f32 %v14035_v55, %v14200_v4  ;;  %v19987_v49 = vld [vmem:[#allocation109_spill] sm:$0xff] }
 0xcd2   : > { %v5306_v39 = vsub.f32 %v14046_v2, %v14200_v4  ;;  %v5308_v13 = vsub.f32 %v14052_v20, %v14200_v4  ;;  %v5310_v53 = vsub.f32 %v14063_v35, %v14200_v4  ;;  %v5312_v56 = vsub.f32 %v14069_v57, %v14200_v4  ;;  %v20013_v57 = vld [vmem:[#allocation20_spill] sm:$0xff] }
 0xcd3   : > { %v19988_v3 = vpack.c.bf16 %v19986_v59, %v19987_v49  ;;  %v5314_v17 = vsub.f32 %v14080_v19, %v14200_v4  ;;  %v5316_v55 = vsub.f32 %v14086_v22, %v14200_v4  ;;  %v5318_v2 = vsub.f32 %v14097_v36, %v14200_v4 }
 0xcd4   : > { %v5320_v20 = vsub.f32 %v14103_v40, %v14200_v4  ;;  %v5534_v35 = vmul.f32 1.442695, %v5276_v27  ;;  %v5538_v59 = vmul.f32 1.442695, %v5278_v12  ;;  %v5542_v29 = vmul.f32 1.442695, %v5280_v21 }
 0xcd5   : > { %7362 = vmatmul.mubr.msk.bf16.gmra.mrb[204].mxu0 %vm264_vm0, %v19988_v3  ;;  %v14289_v49 = vpop.f32.mrb[100].mxu0  ;;  %v5530_v3 = vmul.f32 1.442695, %v5274_v9  ;;  %v5546_v22 = vmul.f32 1.442695, %v5282_v54  ;;  %v19991_v40 = vld [vmem:[#allocation62_spill] sm:$0xff] }
 0xcd6   : > { %4787 = vmatprep.mubr.bf16.mxu0 %v19817_v18  ;;  %19989 = vst [vmem:[#allocation151_spill] sm:$0xff] %v14289_v49  ;;  %v5550_v46 = vmul.f32 1.442695, %v5284_v43  ;;  %v5554_v36 = vmul.f32 1.442695, %v5286_v34  ;;  %v19992_v15 = vpack.c.bf16 %v19990_v60, %v19991_v40 }
 0xcd7   : > { %8128 = vpow2.f32 %v5530_v3  ;;  %v5558_v27 = vmul.f32 1.442695, %v5288_v44  ;;  %v5562_v12 = vmul.f32 1.442695, %v5290_v23  ;;  %v5566_v21 = vmul.f32 1.442695, %v5292_v58 }
 0xcd8   : > { %8130 = vpow2.f32 %v5534_v35  ;;  %v5570_v54 = vmul.f32 1.442695, %v5294_v50  ;;  %v5574_v35 = vmul.f32 1.442695, %v5296_v8  ;;  %v5578_v43 = vmul.f32 1.442695, %v5298_v31 }
 0xcd9   : > { %8132 = vpow2.f32 %v5538_v59  ;;  %v5582_v34 = vmul.f32 1.442695, %v5300_v10  ;;  %v5586_v3 = vmul.f32 1.442695, %v5302_v1  ;;  %v5590_v59 = vmul.f32 1.442695, %v5304_v32 }
 0xcda   : > { %8134 = vpow2.f32 %v5542_v29  ;;  %v5594_v60 = vmul.f32 1.442695, %v5306_v39  ;;  %v14302_v40 = vmul.f32 1.442695, %v5310_v53  ;;  %v14304_v29 = vmul.f32 1.442695, %v5312_v56 }
 0xcdb   : > { %8136 = vpow2.f32 %v5546_v22  ;;  %v14306_v44 = vmul.f32 1.442695, %v5314_v17  ;;  %v14308_v23 = vmul.f32 1.442695, %v5316_v55  ;;  %v14310_v58 = vmul.f32 1.442695, %v5318_v2 }
 0xcdc   : > { %8138 = vpow2.f32 %v5550_v46  ;;  %v14312_v50 = vmul.f32 1.442695, %v5320_v20  ;;  %v14316_v8 = vpop.f32.mrb[101].mxu0  ;;  %v19997_v55 = vld [vmem:[#allocation17_spill] sm:$0xff]  ;;  %v20000_v22 = vld [vmem:[#allocation79_spill] sm:$0xff]  ;;  %v20010_v31 = vld [vmem:[#allocation66_spill] sm:$0xff] }
 0xcdd   : > { %7363 = vmatmul.mubr.msk.bf16.gmra.mrb[208].mxu0 %vm264_vm0, %v19992_v15  ;;  %8140 = vpow2.f32 %v5554_v36  ;;  %v5598_v15 = vmul.f32 1.442695, %v5308_v13  ;;  %19993 = vst [vmem:[#allocation142_spill] sm:$0xff] %v14316_v8  ;;  %v14324_v1 = vpop.f32.mrb[102].mxu0  ;;  %v19998_v2 = vpack.c.bf16 %v13773_v16, %v19997_v55  ;;  %v20011_v53 = vld [vmem:[#allocation33_spill] sm:$0xff]  ;;  %v20016_v46 = vld [vmem:[#allocation47_spill] sm:$0xff] }
 0xcde   : > { %4797 = vmatprep.mubr.bf16.mxu0 %v19817_v18  ;;  %8142 = vpow2.f32 %v5558_v27  ;;  %19994 = vst [vmem:[#allocation140_spill] sm:$0xff] %v14324_v1  ;;  %v14334_v17 = vpop.f32.mrb[103].mxu0  ;;  %v20001_v27 = vld [vmem:[#allocation77_spill] sm:$0xff] }
 0xcdf   : > { %8144 = vpow2.f32 %v5562_v12  ;;  %19996 = vst [vmem:[#allocation120_spill] sm:$0xff] %v14334_v17  ;;  %v14348_v56 = vpop.f32.mrb[104].mxu0  ;;  %v20037_v17 = vsub.f32 %v14132_v7, %v14200_v4  ;;  %v20042_v7 = vsub.f32 %v14166_v38, %v14200_v4  ;;  %v20047_v38 = vsub.f32 %v13915_v33, %v14210_v42 }
 0xce0   : > { %8146 = vpow2.f32 %v5566_v21  ;;  %v20002_v21 = vld [vmem:[#allocation132_spill] sm:$0xff]  ;;  %20003 = vst [vmem:[#allocation143_spill] sm:$0xff] %v14348_v56  ;;  %v14359_v12 = vpop.f32.mrb[105].mxu0  ;;  %v20053_v33 = vsub.f32 %v13946_v63, %v14210_v42  ;;  %v20057_v63 = vsub.f32 %v13969_v28, %v14210_v42  ;;  %v20063_v28 = vsub.f32 %v20000_v22, %v14210_v42 }
 0xce1   : > { %v14326_v32 = vpop.eup %8128  ;;  %8148 = vpow2.f32 %v5570_v54  ;;  %20007 = vst [vmem:[#allocation157_spill] sm:$0xff] %v14359_v12  ;;  %v20009_v54 = vld [vmem:[#allocation87_spill] sm:$0xff]  ;;  %v14369_v19 = vpop.f32.mrb[106].mxu0 }
 0xce2   : > { %19995 = vst [vmem:[#allocation154_spill] sm:$0xff] %v14326_v32  ;;  %v14340_v20 = vpop.eup %8130  ;;  %8150 = vpow2.f32 %v5574_v35  ;;  %v20005_v35 = vld [vmem:[#allocation98_spill] sm:$0xff]  ;;  %20012 = vst [vmem:[#allocation145_spill] sm:$0xff] %v14369_v19  ;;  %v14378_v10 = vpop.f32.mrb[107].mxu0  ;;  %v20017_v19 = vld [vmem:[#allocation43_spill] sm:$0xff] }
 0xce3   : > { %19999 = vst [vmem:[#allocation144_spill] sm:$0xff] %v14340_v20  ;;  %v14351_v13 = vpop.eup %8132  ;;  %8152 = vpow2.f32 %v5578_v43  ;;  %v6042_v16 = vadd.f32 %v14340_v20, %v14326_v32  ;;  %20015 = vst [vmem:[#allocation168_spill] sm:$0xff] %v14378_v10  ;;  %v20020_v10 = vld [vmem:[#allocation16_spill] sm:$0xff]  ;;  %v20030_v20 = vpack.c.bf16 %v14208_v5, %v14204_v61  ;;  %v20035_v61 = vsub.f32 %v14116_v25, %v14200_v4 }
 0xce4   : > { %20004 = vst [vmem:[#allocation122_spill] sm:$0xff] %v14351_v13  ;;  %v14361_v39 = vpop.eup %8134  ;;  %8154 = vpow2.f32 %v5582_v34  ;;  %v20014_v34 = vld [vmem:[#allocation30_spill] sm:$0xff]  ;;  %v20039_v25 = vsub.f32 %v14149_v45, %v14200_v4  ;;  %v20045_v45 = vsub.f32 %v14172_v0, %v14200_v4  ;;  %v20066_v22 = vsub.f32 %v20005_v35, %v14210_v42 }
 0xce5   : > { %7364 = vmatmul.mubr.msk.bf16.gmra.mrb[212].mxu0 %vm264_vm0, %v19998_v2  ;;  %v20006_v2 = vld [vmem:[#allocation90_spill] sm:$0xff]  ;;  %20008 = vst [vmem:[#allocation147_spill] sm:$0xff] %v14361_v39  ;;  %v14371_v55 = vpop.eup %8136  ;;  %8156 = vpow2.f32 %v5586_v3  ;;  %v6043_v36 = vadd.f32 %v14351_v13, %v6042_v16  ;;  %v20018_v3 = vld [vmem:[#allocation84_spill] sm:$0xff]  ;;  %v14388_v1 = vpop.f32.mrb[108].mxu0  ;;  %v5626_v5 = vmul.f32 1.442695, %v20035_v61  ;;  %v20070_v35 = vsub.f32 %v20010_v31, %v14210_v42 }
 0xce6   : > { %4807 = vmatprep.mubr.bf16.mxu0 %v19817_v18  ;;  %v14380_v56 = vpop.eup %8138  ;;  %8158 = vpow2.f32 %v5590_v59  ;;  %20019 = vst [vmem:[#allocation159_spill] sm:$0xff] %v14388_v1  ;;  %v20021_v59 = vld [vmem:[#allocation164_spill] sm:$0xff]  ;;  %v14397_v43 = vpop.f32.mrb[109].mxu0  ;;  %v20024_v1 = vld [vmem:[#allocation103_spill] sm:$0xff]  ;;  %v5642_v61 = vmul.f32 1.442695, %v20039_v25  ;;  %v20073_v31 = vsub.f32 %v20014_v34, %v14210_v42  ;;  %v20079_v34 = vsub.f32 %v20018_v3, %v14210_v42 }
 0xce7   : > { %v14390_v9 = vpop.eup %8140  ;;  %8160 = vpow2.f32 %v5594_v60  ;;  %v6044_v12 = vadd.f32 %v14361_v39, %v6043_v36  ;;  %20022 = vst [vmem:[#allocation150_spill] sm:$0xff] %v14397_v43  ;;  %v14407_v39 = vpop.f32.mrb[110].mxu0  ;;  %v5634_v43 = vmul.f32 1.442695, %v20037_v17  ;;  %v5650_v17 = vmul.f32 1.442695, %v20042_v7 }
 0xce8   : > { %v14399_v13 = vpop.eup %8142  ;;  %8162 = vpow2.f32 %v5598_v15  ;;  %20026 = vst [vmem:[#allocation148_spill] sm:$0xff] %v14407_v39  ;;  %v14417_v16 = vpop.f32.mrb[111].mxu0 }
 0xce9   : > { %v14409_v8 = vpop.eup %8144  ;;  %8164 = vpow2.f32 %v14302_v40  ;;  %v6045_v49 = vadd.f32 %v14371_v55, %v6044_v12  ;;  %20029 = vst [vmem:[#allocation171_spill] sm:$0xff] %v14417_v16 }
 0xcea   : > { %v14423_v36 = vpop.eup %8146  ;;  %8166 = vpow2.f32 %v14304_v29  ;;  %v20036_v29 = vsub.f32 %v14124_v51, %v14200_v4 }
 0xceb   : > { %v14433_v32 = vpop.eup %8148  ;;  %8168 = vpow2.f32 %v14306_v44  ;;  %v6046_v12 = vadd.f32 %v14380_v56, %v6045_v49  ;;  %v20038_v44 = vsub.f32 %v14138_v24, %v14200_v4  ;;  %v20041_v49 = vsub.f32 %v14155_v37, %v14200_v4 }
 0xcec   : > { %20034 = vst [vmem:[#allocation169_spill] sm:$0xff] %v14433_v32  ;;  %v14443_v15 = vpop.eup %8150  ;;  %8170 = vpow2.f32 %v14308_v23  ;;  %v20046_v37 = vsub.f32 %v13911_v48, %v14210_v42  ;;  %v20050_v4 = vsub.f32 %v13935_v52, %v14210_v42 }
 0xced   : > { %7365 = vmatmul.mubr.msk.bf16.gmra.mrb[216].mxu0 %vm264_vm0, %v20030_v20  ;;  %v5630_v20 = vmul.f32 1.442695, %v20036_v29  ;;  %v5638_v60 = vmul.f32 1.442695, %v20038_v44  ;;  %v14455_v51 = vpop.eup %8152  ;;  %8172 = vpow2.f32 %v14310_v58  ;;  %v5646_v23 = vmul.f32 1.442695, %v20041_v49 }
 0xcee   : > { %4817 = vmatprep.mubr.bf16.mxu0 %v19817_v18  ;;  %20040 = vst [vmem:[#allocation156_spill] sm:$0xff] %v14455_v51  ;;  %v6047_v29 = vadd.f32 %v14390_v9, %v6046_v12  ;;  %v14465_v24 = vpop.f32.mrb[112].mxu0  ;;  %v14467_v44 = vpop.eup %8154  ;;  %8174 = vpow2.f32 %v14312_v50  ;;  %v5654_v58 = vmul.f32 1.442695, %v20045_v45  ;;  %v5532_v25 = vmul.f32 1.442695, %v20046_v37 }
 0xcef   : > { %20043 = vst [vmem:[#allocation152_spill] sm:$0xff] %v14465_v24  ;;  %20044 = vst [vmem:[#allocation173_spill] sm:$0xff] %v14467_v44  ;;  %v5536_v49 = vmul.f32 1.442695, %v20047_v38  ;;  %v14479_v7 = vpop.eup %8156  ;;  %8176 = vpow2.f32 %v5626_v5  ;;  %v20049_v50 = vsub.f32 %v13929_v26, %v14210_v42  ;;  %v5544_v0 = vmul.f32 1.442695, %v20050_v4 }
 0xcf0   : > { %20048 = vst [vmem:[#allocation172_spill] sm:$0xff] %v14479_v7  ;;  %v6048_v12 = vadd.f32 %v14399_v13, %v6047_v29  ;;  %v14488_v45 = vpop.f32.mrb[113].mxu0  ;;  %v14490_v48 = vpop.eup %8158  ;;  %8178 = vpow2.f32 %v5630_v20  ;;  %v14495_v37 = vmul.f32 1.442695, %v20053_v33  ;;  %v20054_v5 = vsub.f32 %v13952_v41, %v14210_v42 }
 0xcf1   : > { %v5540_v40 = vmul.f32 1.442695, %v20049_v50  ;;  %20051 = vst [vmem:[#allocation161_spill] sm:$0xff] %v14488_v45  ;;  %20052 = vst [vmem:[#allocation158_spill] sm:$0xff] %v14490_v48  ;;  %v20055_v26 = vsub.f32 %v13963_v11, %v14210_v42  ;;  %v14507_v38 = vpop.eup %8160  ;;  %8180 = vpow2.f32 %v5634_v43  ;;  %v14513_v50 = vmul.f32 1.442695, %v20057_v63 }
 0xcf2   : > { %v14500_v29 = vmul.f32 1.442695, %v20054_v5  ;;  %20056 = vst [vmem:[#allocation175_spill] sm:$0xff] %v14507_v38  ;;  %v6049_v20 = vadd.f32 %v14409_v8, %v6048_v12  ;;  %v20058_v41 = vsub.f32 %v13984_v30, %v14210_v42  ;;  %v14520_v33 = vpop.f32.mrb[114].mxu0  ;;  %v20060_v11 = vld [vmem:[#allocation24_spill] sm:$0xff]  ;;  %v14526_v43 = vpop.eup %8162  ;;  %8182 = vpow2.f32 %v5638_v60 }
 0xcf3   : > { %v14505_v52 = vmul.f32 1.442695, %v20055_v26  ;;  %20059 = vst [vmem:[#allocation174_spill] sm:$0xff] %v14520_v33  ;;  %v20061_v5 = vld [vmem:[#allocation108_spill] sm:$0xff]  ;;  %v14531_v12 = vmul.f32 1.442695, %v20063_v28  ;;  %v20064_v30 = vsub.f32 %v20001_v27, %v14210_v42  ;;  %8184 = vpow2.f32 %v5642_v61 }
 0xcf4   : > { %v14518_v4 = vmul.f32 1.442695, %v20058_v41  ;;  %v20062_v26 = vpack.c.bf16 %v20060_v11, %v20061_v5  ;;  %v20065_v41 = vsub.f32 %v20002_v21, %v14210_v42  ;;  %v14544_v11 = vpop.eup %8164  ;;  %v6050_v60 = vadd.f32 %v14423_v36, %v6049_v20  ;;  %v14557_v21 = vpop.f32.mrb[115].mxu0 }
 0xcf5   : > { %v14536_v63 = vmul.f32 1.442695, %v20064_v30  ;;  %v14550_v5 = vmul.f32 1.442695, %v20066_v22  ;;  %v20067_v27 = vsub.f32 %v20006_v2, %v14210_v42  ;;  %20068 = vst [vmem:[#allocation162_spill] sm:$0xff] %v14557_v21  ;;  %v14559_v28 = vpop.eup %8166  ;;  %8186 = vpow2.f32 %v5646_v23  ;;  %v20093_v21 = vld [vmem:[#allocation147_spill] sm:$0xff] }
 0xcf6   : > { %7366 = vmatmul.mubr.msk.bf16.gmra.mrb[220].mxu0 %vm264_vm0, %v20062_v26  ;;  %v14541_v33 = vmul.f32 1.442695, %v20065_v41  ;;  %v20069_v61 = vsub.f32 %v20009_v54, %v14210_v42  ;;  %v14569_v20 = vmul.f32 1.442695, %v20070_v35  ;;  %v20071_v2 = vsub.f32 %v20011_v53, %v14210_v42  ;;  %v14576_v22 = vpop.eup %8168  ;;  %v14589_v35 = vpop.f32.mrb[116].mxu0 }
 0xcf7   : > { %4827 = vmatprep.mubr.bf16.mxu0 %v19817_v18  ;;  %v14555_v26 = vmul.f32 1.442695, %v20067_v27  ;;  %8188 = vpow2.f32 %v5650_v17  ;;  %v6051_v23 = vadd.f32 %v14433_v32, %v6050_v60  ;;  %v20072_v54 = vsub.f32 %v20013_v57, %v14210_v42  ;;  %20074 = vst [vmem:[#allocation112_spill] sm:$0xff] %v14589_v35  ;;  %v14591_v53 = vpop.eup %8170 }
 0xcf8   : > { %v14564_v30 = vmul.f32 1.442695, %v20069_v61  ;;  %v14574_v41 = vmul.f32 1.442695, %v20071_v2  ;;  %v14587_v61 = vmul.f32 1.442695, %v20073_v31  ;;  %8190 = vpow2.f32 %v5654_v58  ;;  %v14608_v31 = vpop.eup %8172 }
 0xcf9   : > { %v14582_v27 = vmul.f32 1.442695, %v20072_v54  ;;  %v20075_v17 = vsub.f32 %v20016_v46, %v14210_v42  ;;  %v20077_v57 = vsub.f32 %v20017_v19, %v14210_v42  ;;  %v14606_v54 = vmul.f32 1.442695, %v20079_v34  ;;  %v14623_v3 = vpop.eup %8174  ;;  %v20087_v34 = vld [vmem:[#allocation137_spill] sm:$0xff] }
 0xcfa   : > { %v6052_v35 = vadd.f32 %v14443_v15, %v6051_v23  ;;  %8192 = vpow2.f32 %v5532_v25  ;;  %v20081_v46 = vsub.f32 %v20020_v10, %v14210_v42  ;;  %v20083_v19 = vsub.f32 %v20021_v59, %v14210_v42  ;;  %v20088_v10 = vld [vmem:[#allocation149_spill] sm:$0xff] }
 0xcfb   : > { %v14596_v2 = vmul.f32 1.442695, %v20075_v17  ;;  %v14601_v60 = vmul.f32 1.442695, %v20077_v57  ;;  %20080 = vst [vmem:[#allocation163_spill] sm:$0xff] %v14606_v54  ;;  %v14621_v57 = vpop.f32.mrb[117].mxu0  ;;  %8194 = vpow2.f32 %v5536_v49  ;;  %v20086_v23 = vmax.f32 %v14183_v6, %v14187_v14 }
 0xcfc   : > { %v14614_v58 = vmul.f32 1.442695, %v20081_v46  ;;  %v14619_v17 = vmul.f32 1.442695, %v20083_v19  ;;  %20085 = vst [vmem:[#allocation179_spill] sm:$0xff] %v14621_v57  ;;  %v20089_v46 = vmax.f32 %v20087_v34, %v20088_v10  ;;  %v20090_v54 = vld [vmem:[#allocation154_spill] sm:$0xff]  ;;  %v6053_v57 = vadd.f32 %v14455_v51, %v6052_v35 }
 0xcfd   : > { %20076 = vst [vmem:[#allocation178_spill] sm:$0xff] %v14596_v2  ;;  %20078 = vst [vmem:[#allocation176_spill] sm:$0xff] %v14601_v60  ;;  %v5053_v25 = vmax.f32 %v20086_v23, %v14212_v62  ;;  %v20091_v60 = vld [vmem:[#allocation144_spill] sm:$0xff]  ;;  %v14635_v19 = vpop.f32.mrb[118].mxu0  ;;  %8196 = vpow2.f32 %v5540_v40  ;;  %v20092_v49 = vld [vmem:[#allocation122_spill] sm:$0xff] }
 0xcfe   : > { %20082 = vst [vmem:[#allocation129_spill] sm:$0xff] %v14614_v58  ;;  %20084 = vst [vmem:[#allocation180_spill] sm:$0xff] %v14619_v17  ;;  %v5090_v58 = vmax.f32 %v20089_v46, %v14222_v47  ;;  %v14637_v17 = vpop.eup %8176  ;;  %v14644_v62 = vpop.f32.mrb[119].mxu0  ;;  %v20095_v10 = vld [vmem:[#allocation100_spill] sm:$0xff]  ;;  %v20096_v46 = vld [vmem:[#allocation38_spill] sm:$0xff]  ;;  %8198 = vpow2.f32 %v5544_v0  ;;  %v6054_v6 = vadd.f32 %v14467_v44, %v6053_v57 }
 0xcff   : > { %20094 = vst [vmem:[#allocation131_spill] sm:$0xff] %v14644_v62  ;;  %v20097_v47 = vpack.c.bf16 %v20095_v10, %v20096_v46  ;;  %v14650_v59 = vpop.eup %8178  ;;  %v20098_v34 = vld [vmem:[#allocation138_spill] sm:$0xff]  ;;  %v20099_v35 = vld [vmem:[#allocation153_spill] sm:$0xff]  ;;  %8200 = vpow2.f32 %v14495_v37  ;;  %v14672_v57 = vpop.f32.mrb[120].mxu0 }
 0xd00   : > { %v5054_v14 = vmax.f32 %v5053_v25, %v20098_v34  ;;  %v5091_v40 = vmax.f32 %v5090_v58, %v20099_v35  ;;  %v14657_v23 = vpop.eup %8180  ;;  %8202 = vpow2.f32 %v14500_v29  ;;  %v20100_v58 = vld [vmem:[#allocation151_spill] sm:$0xff]  ;;  %v20101_v46 = vld [vmem:[#allocation142_spill] sm:$0xff]  ;;  %v14680_v34 = vpop.f32.mrb[121].mxu0  ;;  %v20108_v44 = vld [vmem:[#allocation37_spill] sm:$0xff] }
 0xd01   : > { %7367 = vmatmul.mubr.msk.bf16.gmra.mrb[224].mxu0 %vm264_vm0, %v20097_v47  ;;  %v14665_v25 = vpop.eup %8182  ;;  %v6055_v47 = vadd.f32 %v14479_v7, %v6054_v6  ;;  %8204 = vpow2.f32 %v14505_v52  ;;  %v14689_v51 = vpop.f32.mrb[122].mxu0 }
 0xd02   : > { %4837 = vmatprep.mubr.bf16.mxu0 %v19817_v18  ;;  %v5055_v10 = vmax.f32 %v5054_v14, %v20100_v58  ;;  %v5092_v2 = vmax.f32 %v5091_v40, %v20101_v46  ;;  %v14674_v37 = vpop.eup %8184  ;;  %8206 = vpow2.f32 %v14513_v50  ;;  %v20102_v40 = vld [vmem:[#allocation140_spill] sm:$0xff]  ;;  %v14697_v14 = vpop.f32.mrb[123].mxu0  ;;  %v20107_v50 = vld [vmem:[#allocation53_spill] sm:$0xff] }
 0xd03   : > { %v14684_v29 = vpop.eup %8186  ;;  %v20103_v46 = vld [vmem:[#allocation120_spill] sm:$0xff]  ;;  %v6056_v0 = vadd.f32 %v14490_v48, %v6055_v47  ;;  %8208 = vpow2.f32 %v14518_v4  ;;  %v20109_v32 = vpack.c.bf16 %v20107_v50, %v20108_v44  ;;  %v20110_v47 = vld [vmem:[#allocation145_spill] sm:$0xff] }
 0xd04   : > { %v5056_v35 = vmax.f32 %v5055_v10, %v20102_v40  ;;  %v5093_v58 = vmax.f32 %v5092_v2, %v20103_v46  ;;  %v14693_v52 = vpop.eup %8188  ;;  %8210 = vpow2.f32 %v14531_v12  ;;  %v20105_v46 = vld [vmem:[#allocation143_spill] sm:$0xff]  ;;  %v20106_v40 = vld [vmem:[#allocation157_spill] sm:$0xff] }
 0xd05   : > { %v14703_v2 = vpop.eup %8190  ;;  %v6057_v48 = vadd.f32 %v14507_v38, %v6056_v0  ;;  %8212 = vpow2.f32 %v14536_v63  ;;  %v14736_v44 = vpop.f32.mrb[124].mxu0 }
 0xd06   : > { %20104 = vst [vmem:[#allocation113_spill] sm:$0xff] %v14703_v2  ;;  %v5057_v6 = vmax.f32 %v5056_v35, %v20105_v46  ;;  %v5094_v7 = vmax.f32 %v5093_v58, %v20106_v40  ;;  %v8193_v4 = vpop.eup %8192  ;;  %8214 = vpow2.f32 %v14541_v33  ;;  %v20111_v40 = vld [vmem:[#allocation168_spill] sm:$0xff]  ;;  %v20112_v33 = vld [vmem:[#allocation133_spill] sm:$0xff]  ;;  %v20115_v46 = vld [vmem:[#allocation150_spill] sm:$0xff] }
 0xd07   : > { %v8195_v58 = vpop.eup %8194  ;;  %8216 = vpow2.f32 %v14550_v5 }
 0xd08   : > { %v5058_v10 = vmax.f32 %v5057_v6, %v20110_v47  ;;  %v5095_v0 = vmax.f32 %v5094_v7, %v20111_v40  ;;  %v8197_v63 = vpop.eup %8196  ;;  %v6079_v50 = vadd.f32 %v8195_v58, %v8193_v4  ;;  %v6466_v12 = vpack.c.bf16 %v8195_v58, %v8193_v4  ;;  %v20114_v7 = vld [vmem:[#allocation159_spill] sm:$0xff] }
 0xd09   : > { %7368 = vmatmul.mubr.msk.bf16.gmra.mrb[228].mxu0 %vm264_vm0, %v20109_v32  ;;  %v6058_v32 = vadd.f32 %v14526_v43, %v6057_v48  ;;  %v8199_v35 = vpop.eup %8198  ;;  %8218 = vpow2.f32 %v14555_v26  ;;  %v20113_v6 = vsub.f32 %v20112_v33, %v14210_v42  ;;  %v14740_v26 = vpop.f32.mrb[125].mxu0 }
 0xd0a   : > { %4847 = vmatprep.mubr.bf16.mxu0 %v19817_v18  ;;  %v5059_v40 = vmax.f32 %v5058_v10, %v20114_v7  ;;  %v5096_v38 = vmax.f32 %v5095_v0, %v20115_v46  ;;  %v8201_v2 = vpop.eup %8200  ;;  %8220 = vpow2.f32 %v14564_v30  ;;  %v6080_v5 = vadd.f32 %v8197_v63, %v6079_v50  ;;  %6593 = vmatprep.subr.bf16.mxu0 %v6466_v12  ;;  %v14751_v50 = vpop.f32.mrb[126].mxu0 }
 0xd0b   : > { %v14732_v47 = vmul.f32 1.442695, %v20113_v6  ;;  %v6059_v48 = vadd.f32 %v14544_v11, %v6058_v32  ;;  %v6468_v4 = vpack.c.bf16 %v8199_v35, %v8197_v63  ;;  %v8203_v58 = vpop.eup %8202  ;;  %8222 = vpow2.f32 %v14569_v20 }
 0xd0c   : > { %v20116_v10 = vsub.f32 %v20024_v1, %v14210_v42  ;;  %v20117_v0 = vpack.c.bf16 %v20091_v60, %v20090_v54  ;;  %v5060_v32 = vmax.f32 %v5059_v40, %v14407_v39  ;;  %v5097_v30 = vmax.f32 %v5096_v38, %v14417_v16  ;;  %v8205_v12 = vpop.eup %8204  ;;  %v14755_v1 = vpop.f32.mrb[127].mxu0  ;;  %v20118_v60 = vld [vmem:[#allocation69_spill] sm:$0xff] }
 0xd0d   : > { %v6060_v63 = vadd.f32 %v14559_v28, %v6059_v48  ;;  %8224 = vpow2.f32 %v14574_v41  ;;  %v6081_v20 = vadd.f32 %v8199_v35, %v6080_v5  ;;  %v6470_v6 = vpack.c.bf16 %v8203_v58, %v8201_v2  ;;  %v20120_v5 = vld [vmem:[#allocation31_spill] sm:$0xff]  ;;  %v14794_v39 = vpop.f32.mrb[128].mxu0 }
 0xd0e   : > { %v5632_v33 = vmul.f32 1.442695, %v20116_v10  ;;  %6594 = vmatpush1.bf16.msra.mxu0 %v20117_v0  ;;  %v8207_v10 = vpop.eup %8206  ;;  %8226 = vpow2.f32 %v14582_v27  ;;  %v20119_v54 = vsub.f32 %v20118_v60, %v14210_v42  ;;  %v5061_v38 = vmax.f32 %v5060_v32, %v14465_v24  ;;  %v20123_v60 = vld [vmem:[#allocation178_spill] sm:$0xff] }
 0xd0f   : > { %6595 = vmatprep.subr.bf16.mxu0 %v6468_v4  ;;  %v5098_v0 = vmax.f32 %v5097_v30, %v14488_v45  ;;  %v14763_v16 = vpop.eup %8208  ;;  %v6061_v41 = vadd.f32 %v14576_v22, %v6060_v63  ;;  %8228 = vpow2.f32 %v14587_v61  ;;  %v6082_v35 = vadd.f32 %v8201_v2, %v6081_v20  ;;  %v20121_v4 = vld [vmem:[#allocation57_spill] sm:$0xff]  ;;  %v20127_v63 = vld [vmem:[#allocation174_spill] sm:$0xff] }
 0xd10   : > { %v5636_v40 = vmul.f32 1.442695, %v20119_v54  ;;  %v6472_v48 = vpack.c.bf16 %v8207_v10, %v8205_v12  ;;  %v20122_v46 = vpack.c.bf16 %v20120_v5, %v20121_v4  ;;  %v8211_v27 = vpop.eup %8210  ;;  %8230 = vpow2.f32 %v20123_v60  ;;  %v20124_v54 = vld [vmem:[#allocation166_spill] sm:$0xff]  ;;  %v20129_v4 = vld [vmem:[#allocation176_spill] sm:$0xff] }
 0xd11   : > { %v20125_v32 = vsub.f32 %v20124_v54, %v14210_v42  ;;  %v20126_v45 = vpack.c.bf16 %v20093_v21, %v20092_v49  ;;  %v5062_v61 = vmax.f32 %v5061_v38, %v20127_v63  ;;  %v20128_v2 = vld [vmem:[#allocation162_spill] sm:$0xff]  ;;  %v14781_v5 = vpop.eup %8212  ;;  %8232 = vpow2.f32 %v20129_v4  ;;  %v20130_v21 = vld [vmem:[#allocation163_spill] sm:$0xff] }
 0xd12   : > { %7369 = vmatmul.mubr.msk.bf16.gmra.mrb[232].mxu0 %vm264_vm0, %v20122_v46  ;;  %v5099_v20 = vmax.f32 %v5098_v0, %v20128_v2  ;;  %v6062_v46 = vadd.f32 %v14591_v53, %v6061_v41  ;;  %v6083_v60 = vadd.f32 %v8203_v58, %v6082_v35  ;;  %v6474_v54 = vpack.c.bf16 %v8211_v27, %v14763_v16  ;;  %v20133_v0 = vld [vmem:[#allocation112_spill] sm:$0xff]  ;;  %v20134_v63 = vld [vmem:[#allocation179_spill] sm:$0xff] }
 0xd13   : > { %v5640_v30 = vmul.f32 1.442695, %v20125_v32  ;;  %6596 = vmatpush1.bf16.msra.mxu0 %v20126_v45  ;;  %4857 = vmatprep.mubr.bf16.mxu0 %v19817_v18  ;;  %v14786_v32 = vpop.eup %8214  ;;  %8234 = vpow2.f32 %v20130_v21  ;;  %v20131_v45 = vld [vmem:[#allocation165_spill] sm:$0xff]  ;;  %v5063_v2 = vmax.f32 %v5062_v61, %v20133_v0  ;;  %v14802_v21 = vpop.f32.mrb[129].mxu0  ;;  %v20137_v61 = vld [vmem:[#allocation135_spill] sm:$0xff]  ;;  %v20139_v0 = vpack.c.bf16 %v14380_v56, %v14371_v55  ;;  %v20141_v55 = vld [vmem:[#allocation134_spill] sm:$0xff] }
 0xd14   : > { %6597 = vmatprep.subr.bf16.mxu0 %v6470_v6  ;;  %v20132_v49 = vsub.f32 %v20131_v45, %v14210_v42  ;;  %v5100_v24 = vmax.f32 %v5099_v20, %v20134_v63  ;;  %v14796_v41 = vpop.eup %8216  ;;  %v6063_v58 = vadd.f32 %v14608_v31, %v6062_v46  ;;  %v20135_v6 = vld [vmem:[#allocation129_spill] sm:$0xff]  ;;  %v6084_v35 = vadd.f32 %v8205_v12, %v6083_v60  ;;  %v14815_v60 = vpop.f32.mrb[130].mxu0 }
 0xd15   : > { %8236 = vpow2.f32 %v20135_v6  ;;  %v6476_v4 = vpack.c.bf16 %v14786_v32, %v14781_v5  ;;  %v14804_v45 = vpop.eup %8218  ;;  %v20138_v20 = vsub.f32 %v20137_v61, %v14210_v42  ;;  %v5064_v46 = vmax.f32 %v5063_v2, %v14635_v19 }
 0xd16   : > { %v5644_v38 = vmul.f32 1.442695, %v20132_v49  ;;  %v20136_v49 = vld [vmem:[#allocation180_spill] sm:$0xff]  ;;  %v5101_v12 = vmax.f32 %v5100_v24, %v14644_v62  ;;  %v14817_v6 = vpop.eup %8220  ;;  %v6064_v7 = vadd.f32 %v14623_v3, %v6063_v58  ;;  %v20142_v24 = vsub.f32 %v20141_v55, %v14210_v42 }
 0xd17   : > { %8238 = vpow2.f32 %v20136_v49  ;;  %v5648_v63 = vmul.f32 1.442695, %v20138_v20  ;;  %6598 = vmatpush1.bf16.msra.mxu0 %v20139_v0  ;;  %v6085_v49 = vadd.f32 %v8207_v10, %v6084_v35  ;;  %v14823_v20 = vpop.f32.mrb[131].mxu0  ;;  %v14825_v56 = vpop.eup %8222  ;;  %v5065_v0 = vmax.f32 %v5064_v46, %v14672_v57  ;;  %v20143_v35 = vld [vmem:[#allocation105_spill] sm:$0xff]  ;;  %v20146_v46 = vld [vmem:[#allocation167_spill] sm:$0xff] }
 0xd18   : > { %8240 = vpow2.f32 %v14732_v47  ;;  %6599 = vmatprep.subr.bf16.mxu0 %v6472_v48  ;;  %20140 = vst [vmem:[#allocation89_spill] sm:$0xff] %v14823_v20  ;;  %v5652_v2 = vmul.f32 1.442695, %v20142_v24  ;;  %v5102_v58 = vmax.f32 %v5101_v12, %v14680_v34  ;;  %v14832_v62 = vpop.eup %8224  ;;  %v6065_v47 = vadd.f32 %v14637_v17, %v6064_v7 }
 0xd19   : > { %8242 = vpow2.f32 %v5632_v33  ;;  %v6086_v10 = vadd.f32 %v14763_v16, %v6085_v49  ;;  %v20144_v33 = vld [vmem:[#allocation46_spill] sm:$0xff]  ;;  %v14842_v55 = vpop.eup %8226  ;;  %v20147_v12 = vsub.f32 %v20146_v46, %v14210_v42  ;;  %v20148_v7 = vpack.c.bf16 %v14399_v13, %v14390_v9 }
 0xd1a   : > { %8244 = vpow2.f32 %v5636_v40  ;;  %v20145_v61 = vpack.c.bf16 %v20143_v35, %v20144_v33  ;;  %v5066_v16 = vmax.f32 %v5065_v0, %v14689_v51  ;;  %v5103_v40 = vmax.f32 %v5102_v58, %v14697_v14  ;;  %v14853_v49 = vpop.eup %8228  ;;  %v14862_v0 = vpop.f32.mrb[132].mxu0 }
 0xd1b   : > { %8246 = vpow2.f32 %v5640_v30  ;;  %v5656_v24 = vmul.f32 1.442695, %v20147_v12  ;;  %6600 = vmatpush1.bf16.msra.mxu0 %v20148_v7  ;;  %v6087_v30 = vadd.f32 %v8211_v27, %v6086_v10  ;;  %v14858_v35 = vpop.eup %8230 }
 0xd1c   : > { %7370 = vmatmul.mubr.msk.bf16.gmra.mrb[236].mxu0 %vm264_vm0, %v20145_v61  ;;  %v6066_v61 = vadd.f32 %v14650_v59, %v6065_v47  ;;  %8248 = vpow2.f32 %v5644_v38  ;;  %6601 = vmatprep.subr.bf16.mxu0 %v6474_v54  ;;  %v5067_v9 = vmax.f32 %v5066_v16, %v14736_v44  ;;  %v5104_v13 = vmax.f32 %v5103_v40, %v14740_v26  ;;  %v14864_v58 = vpop.eup %8232  ;;  %v14870_v38 = vpop.f32.mrb[133].mxu0 }
 0xd1d   : > { %4867 = vmatprep.mubr.bf16.mxu0 %v19817_v18  ;;  %8250 = vpow2.f32 %v5648_v63  ;;  %v6088_v27 = vadd.f32 %v14781_v5, %v6087_v30  ;;  %20149 = vst [vmem:[#allocation86_spill] sm:$0xff] %v14870_v38  ;;  %v14872_v47 = vpop.eup %8234  ;;  %v20150_v63 = vpack.c.bf16 %v14423_v36, %v14409_v8  ;;  %v14879_v12 = vpop.f32.mrb[134].mxu0 }
 0xd1e   : > { %v6067_v33 = vadd.f32 %v14657_v23, %v6066_v61  ;;  %8252 = vpow2.f32 %v5652_v2  ;;  %v5068_v10 = vmax.f32 %v5067_v9, %v14751_v50  ;;  %v5105_v46 = vmax.f32 %v5104_v13, %v14755_v1  ;;  %v14887_v16 = vpop.f32.mrb[135].mxu0  ;;  %v20153_v13 = vld [vmem:[#allocation64_spill] sm:$0xff] }
 0xd1f   : > { %8254 = vpow2.f32 %v5656_v24  ;;  %6602 = vmatpush1.bf16.msra.mxu0 %v20150_v63  ;;  %v14881_v2 = vpop.eup %8236  ;;  %v6089_v7 = vadd.f32 %v14786_v32, %v6088_v27  ;;  %20151 = vst [vmem:[#allocation94_spill] sm:$0xff] %v14887_v16  ;;  %v20155_v63 = vld [vmem:[#allocation169_spill] sm:$0xff]  ;;  %v20160_v24 = vld [vmem:[#allocation156_spill] sm:$0xff] }
 0xd20   : > { %v6068_v5 = vadd.f32 %v14665_v25, %v6067_v33  ;;  %6603 = vmatprep.subr.bf16.mxu0 %v6476_v4  ;;  %v5069_v36 = vmax.f32 %v5068_v10, %v14794_v39  ;;  %v5106_v40 = vmax.f32 %v5105_v46, %v14802_v21  ;;  %v20152_v4 = vld [vmem:[#allocation22_spill] sm:$0xff]  ;;  %v20156_v10 = vpack.c.bf16 %v14443_v15, %v20155_v63  ;;  %v14924_v63 = vpop.f32.mrb[136].mxu0  ;;  %v20159_v15 = vld [vmem:[#allocation173_spill] sm:$0xff] }
 0xd21   : > { %v14889_v8 = vpop.eup %8238  ;;  %v6090_v9 = vadd.f32 %v14796_v41, %v6089_v7  ;;  %v20154_v33 = vpack.c.bf16 %v20152_v4, %v20153_v13  ;;  %v20157_v13 = vpack.c.bf16 %v14804_v45, %v14796_v41 }
 0xd22   : > { %v14893_v61 = vpop.eup %8240  ;;  %v6069_v30 = vadd.f32 %v14674_v37, %v6068_v5  ;;  %v5070_v46 = vmax.f32 %v5069_v36, %v14815_v60  ;;  %v5107_v5 = vmax.f32 %v5106_v40, %v14823_v20 }
 0xd23   : > { %v14903_v27 = vpop.eup %8242  ;;  %6604 = vmatpush1.bf16.msra.mxu0 %v20156_v10  ;;  %v6091_v4 = vadd.f32 %v14804_v45, %v6090_v9  ;;  %v14932_v45 = vpop.f32.mrb[137].mxu0 }
 0xd24   : > { %7371 = vmatmul.mubr.msk.bf16.gmra.mrb[240].mxu0 %vm264_vm0, %v20154_v33  ;;  %v14911_v7 = vpop.eup %8244  ;;  %v6070_v32 = vadd.f32 %v14684_v29, %v6069_v30  ;;  %6605 = vmatprep.subr.bf16.mxu0 %v20157_v13  ;;  %v5071_v36 = vmax.f32 %v5070_v46, %v14862_v0  ;;  %v5108_v40 = vmax.f32 %v5107_v5, %v14870_v38  ;;  %v14941_v42 = vpop.f32.mrb[138].mxu0 }
 0xd25   : > { %4877 = vmatprep.mubr.bf16.mxu0 %v19817_v18  ;;  %v14920_v33 = vpop.eup %8246  ;;  %v6092_v9 = vadd.f32 %v14817_v6, %v6091_v4  ;;  %20158 = vst [vmem:[#allocation96_spill] sm:$0xff] %v14932_v45  ;;  %v20161_v46 = vpack.c.bf16 %v20159_v15, %v20160_v24  ;;  %v20162_v4 = vld [vmem:[#allocation113_spill] sm:$0xff]  ;;  %v20164_v38 = vpack.c.bf16 %v14825_v56, %v14817_v6  ;;  %v14954_v15 = vpop.f32.mrb[139].mxu0 }
 0xd26   : > { %v14926_v10 = vpop.eup %8248  ;;  %v6071_v30 = vadd.f32 %v14693_v52, %v6070_v32  ;;  %v5072_v5 = vmax.f32 %v5071_v36, %v14879_v12  ;;  %v5109_v54 = vmax.f32 %v5108_v40, %v14887_v16  ;;  %20165 = vst [vmem:[#allocation124_spill] sm:$0xff] %v14954_v15  ;;  %v20167_v16 = vld [vmem:[#allocation27_spill] sm:$0xff] }
 0xd27   : > { %v14934_v13 = vpop.eup %8250  ;;  %6606 = vmatpush1.bf16.msra.mxu0 %v20161_v46  ;;  %v6093_v41 = vadd.f32 %v14825_v56, %v6092_v9  ;;  %v20169_v56 = vld [vmem:[#allocation158_spill] sm:$0xff] }
 0xd28   : > { %v14943_v32 = vpop.eup %8252  ;;  %v14946_v48 = vadd.f32 %v20162_v4, %v6071_v30  ;;  %6607 = vmatprep.subr.bf16.mxu0 %v20164_v38  ;;  %v5073_v40 = vmax.f32 %v5072_v5, %v14924_v63  ;;  %v5110_v46 = vmax.f32 %v5109_v54, %v14932_v45  ;;  %v20170_v38 = vld [vmem:[#allocation172_spill] sm:$0xff] }
 0xd29   : > { %v14956_v36 = vpop.eup %8254  ;;  %v6094_v30 = vadd.f32 %v14832_v62, %v6093_v41  ;;  %v20171_v24 = vpack.c.bf16 %v20169_v56, %v20170_v38  ;;  %v20172_v54 = vld [vmem:[#allocation12_spill] sm:$0xff]  ;;  %v20173_v41 = vld [vmem:[#allocation114_spill] sm:$0xff]  ;;  %v20176_v38 = vld [vmem:[#allocation175_spill] sm:$0xff] }
 0xd2a   : > { %20163 = vst [vmem:[#allocation126_spill] sm:$0xff] %v14946_v48  ;;  %v20166_v48 = vld [vmem:[#allocation117_spill] sm:$0xff]  ;;  %v5074_v20 = vmax.f32 %v5073_v40, %v14941_v42  ;;  %v5111_v5 = vmax.f32 %v5110_v46, %v14954_v15  ;;  %v4030_v45 = vmul.f32 %v20173_v41, %v20172_v54  ;;  %v20177_v41 = vpack.c.bf16 %v14526_v43, %v20176_v38 }
 0xd2b   : > { %v20168_v6 = vpack.c.bf16 %v20166_v48, %v20167_v16  ;;  %6608 = vmatpush1.bf16.msra.mxu0 %v20171_v24  ;;  %v6095_v9 = vadd.f32 %v14842_v55, %v6094_v30  ;;  %v20174_v48 = vpack.c.bf16 %v14842_v55, %v14832_v62  ;;  %v14979_v16 = vpop.f32.mrb[140].mxu0  ;;  %v20178_v55 = vpack.c.bf16 %v14858_v35, %v14853_v49 }
 0xd2c   : > { %v5075_v46 = vmax.f32 %v5074_v20, %v14979_v16  ;;  %v14985_v56 = vpop.f32.mrb[141].mxu0 }
 0xd2d   : > { %7372 = vmatmul.mubr.msk.bf16.gmra.mrb[244].mxu0 %vm264_vm0, %v20168_v6  ;;  %6609 = vmatprep.subr.bf16.mxu0 %v20174_v48  ;;  %v20175_v6 = vld [vmem:[#allocation58_spill] sm:$0xff]  ;;  %v6096_v40 = vadd.f32 %v14853_v49, %v6095_v9  ;;  %v5112_v30 = vmax.f32 %v5111_v5, %v14985_v56  ;;  %v14991_v15 = vpop.f32.mrb[142].mxu0  ;;  %v20179_v5 = vpack.c.bf16 %v14559_v28, %v14544_v11 }
 0xd2e   : > { %4887 = vmatprep.mubr.bf16.mxu0 %v19817_v18  ;;  %v4029_v24 = vmul.f32 %v20175_v6, %v20172_v54  ;;  %v5076_v9 = vmax.f32 %v5075_v46, %v14991_v15  ;;  %v14998_v48 = vpop.f32.mrb[143].mxu0  ;;  %v20182_v11 = vpack.c.bf16 %v14591_v53, %v14576_v22  ;;  %v20185_v22 = vld [vmem:[#allocation40_spill] sm:$0xff]  ;;  %v20186_v53 = vld [vmem:[#allocation83_spill] sm:$0xff] }
 0xd2f   : > { %6610 = vmatpush1.bf16.msra.mxu0 %v20177_v41  ;;  %v6097_v62 = vadd.f32 %v14858_v35, %v6096_v40  ;;  %v5113_v6 = vmax.f32 %v5112_v30, %v14998_v48  ;;  %v20180_v35 = vpack.c.bf16 %v14872_v47, %v14864_v58  ;;  %v15011_v40 = vpop.f32.mrb[144].mxu0 }
 0xd30   : > { %6611 = vmatprep.subr.bf16.mxu0 %v20178_v55  ;;  %v4102_v20 = vpack.c.bf16 %v4030_v45, %v4029_v24  ;;  %v5077_v24 = vmax.f32 %v5076_v9, %v15011_v40  ;;  %v15015_v46 = vpop.f32.mrb[145].mxu0  ;;  %v20187_v9 = vpack.c.bf16 %v20185_v22, %v20186_v53 }
 0xd31   : > { %v6098_v43 = vadd.f32 %v14864_v58, %v6097_v62  ;;  %20181 = vst [vmem:[#allocation125_spill] sm:$0xff] %v15015_v46  ;;  %v5114_v28 = vmax.f32 %v5113_v6, %v15015_v46  ;;  %v15021_v38 = vpop.f32.mrb[146].mxu0  ;;  %v20183_v58 = vpack.c.bf16 %v14889_v8, %v14881_v2 }
 0xd32   : > { %v15028_v30 = vpop.f32.mrb[147].mxu0 }
 0xd33   : > { %6612 = vmatpush1.bf16.msra.mxu0 %v20179_v5  ;;  %v6099_v49 = vadd.f32 %v14872_v47, %v6098_v43  ;;  %v5078_v47 = vmax.f32 %v5077_v24, %v15021_v38  ;;  %20184 = vst [vmem:[#allocation128_spill] sm:$0xff] %v15028_v30  ;;  %v5115_v62 = vmax.f32 %v5114_v28, %v15028_v30  ;;  %v20285_v30 = vld [vmem:[#allocation21_spill] sm:$0xff] }
 0xd34   : > { %6613 = vmatprep.subr.bf16.mxu0 %v20180_v35 }
 0xd35   : > { %7373 = vmatmul.mubr.msk.bf16.gmra.mrb[248].mxu0 %vm264_vm0, %v4102_v20  ;;  %v6100_v45 = vadd.f32 %v14881_v2, %v6099_v49  ;;  %v20188_v20 = vpack.c.bf16 %v14623_v3, %v14608_v31  ;;  %v15044_v6 = vpop.f32.mrb[148].mxu0  ;;  %v20191_v31 = vpack.c.bf16 %v14650_v59, %v14637_v17  ;;  %v20194_v17 = vld [vmem:[#allocation106_spill] sm:$0xff]  ;;  %v20195_v59 = vld [vmem:[#allocation52_spill] sm:$0xff] }
 0xd36   : > { %4897 = vmatprep.mubr.bf16.mxu0 %v19817_v18  ;;  %v5079_v5 = vmax.f32 %v5078_v47, %v15044_v6  ;;  %v15048_v49 = vpop.f32.mrb[149].mxu0 }
 0xd37   : > { %6614 = vmatpush1.bf16.msra.mxu0 %v20182_v11  ;;  %v6101_v41 = vadd.f32 %v14889_v8, %v6100_v45  ;;  %v20189_v8 = vpack.c.bf16 %v14903_v27, %v14893_v61  ;;  %20190 = vst [vmem:[#allocation111_spill] sm:$0xff] %v15048_v49  ;;  %v5116_v3 = vmax.f32 %v5115_v62, %v15048_v49  ;;  %v15054_v35 = vpop.f32.mrb[150].mxu0 }
 0xd38   : > { %6615 = vmatprep.subr.bf16.mxu0 %v20183_v58  ;;  %v15061_v24 = vpop.f32.mrb[151].mxu0  ;;  %v20197_v58 = vpack.c.bf16 %v14665_v25, %v14657_v23  ;;  %v20200_v23 = vpack.c.bf16 %v14684_v29, %v14674_v37  ;;  %v20204_v37 = vld [vmem:[#allocation39_spill] sm:$0xff]  ;;  %v20205_v29 = vld [vmem:[#allocation68_spill] sm:$0xff] }
 0xd39   : > { %v6102_v55 = vadd.f32 %v14893_v61, %v6101_v41  ;;  %v20192_v61 = vpack.c.bf16 %v14920_v33, %v14911_v7  ;;  %20193 = vst [vmem:[#allocation127_spill] sm:$0xff] %v15061_v24  ;;  %v5117_v11 = vmax.f32 %v5116_v3, %v15061_v24  ;;  %v20196_v41 = vpack.c.bf16 %v20194_v17, %v20195_v59 }
 0xd3b   : > { %6616 = vmatpush1.bf16.msra.mxu0 %v20188_v20  ;;  %v6103_v2 = vadd.f32 %v14903_v27, %v6102_v55  ;;  %v5080_v27 = vmax.f32 %v5079_v5, %v15054_v35  ;;  %v20207_v5 = vpack.c.bf16 %v20162_v4, %v14693_v52 }
 0xd3c   : > { %6617 = vmatprep.subr.bf16.mxu0 %v20189_v8 }
 0xd3d   : > { %7374 = vmatmul.mubr.msk.bf16.gmra.mrb[252].mxu0 %vm264_vm0, %v20187_v9  ;;  %v6104_v43 = vadd.f32 %v14911_v7, %v6103_v2  ;;  %v15077_v47 = vpop.f32.mrb[152].mxu0 }
 0xd3e   : > { %4907 = vmatprep.mubr.bf16.mxu0 %v19817_v18  ;;  %v5081_v55 = vmax.f32 %v5080_v27, %v15077_v47  ;;  %v15081_v22 = vpop.f32.mrb[153].mxu0 }
 0xd3f   : > { %6618 = vmatpush1.bf16.msra.mxu0 %v20191_v31  ;;  %v6105_v45 = vadd.f32 %v14920_v33, %v6104_v43  ;;  %v20198_v33 = vpack.c.bf16 %v14934_v13, %v14926_v10  ;;  %20199 = vst [vmem:[#allocation118_spill] sm:$0xff] %v15081_v22  ;;  %v5118_v25 = vmax.f32 %v5117_v11, %v15081_v22  ;;  %v15087_v53 = vpop.f32.mrb[154].mxu0 }
 0xd40   : > { %6619 = vmatprep.subr.bf16.mxu0 %v20192_v61  ;;  %v15096_v20 = vpop.f32.mrb[155].mxu0  ;;  %v20206_v43 = vpack.c.bf16 %v20204_v37, %v20205_v29  ;;  %v20219_v29 = vld [vmem:[#allocation136_spill] sm:$0xff] }
 0xd41   : > { %v6106_v28 = vadd.f32 %v14926_v10, %v6105_v45  ;;  %v20202_v10 = vpack.c.bf16 %v14956_v36, %v14943_v32  ;;  %20203 = vst [vmem:[#allocation146_spill] sm:$0xff] %v15096_v20  ;;  %v5119_v2 = vmax.f32 %v5118_v25, %v15096_v20 }
 0xd43   : > { %6620 = vmatpush1.bf16.msra.mxu0 %v20197_v58  ;;  %v6107_v7 = vadd.f32 %v14934_v13, %v6106_v28  ;;  %v5082_v13 = vmax.f32 %v5081_v55, %v15087_v53  ;;  %v5120_v31 = vrot.slane %v5119_v2, 4  ;;  %v20212_v58 = vld [vmem:[#allocation15_spill] sm:$0xff] }
 0xd44   : > { %6621 = vmatprep.subr.bf16.mxu0 %v20198_v33 }
 0xd45   : > { %7375 = vmatmul.mubr.msk.bf16.gmra.mrb[0].mxu0 %vm264_vm0, %v20196_v41  ;;  %v6108_v62 = vadd.f32 %v14943_v32, %v6107_v7  ;;  %v5083_v8 = vrot.slane %v5082_v13, 4  ;;  %v15107_v3 = vpop.f32.mrb[156].mxu0  ;;  %v20213_v7 = vld [vmem:[#allocation42_spill] sm:$0xff] }
 0xd46   : > { %4917 = vmatprep.mubr.bf16.mxu0 %v19817_v18  ;;  %20208 = vst [vmem:[#allocation141_spill] sm:$0xff] %v15107_v3  ;;  %v15109_v61 = vpop.f32.mrb[157].mxu0  ;;  %v20214_v33 = vpack.c.bf16 %v20212_v58, %v20213_v7  ;;  %v20225_v7 = vld [vmem:[#allocation143_spill] sm:$0xff] }
 0xd47   : > { %6622 = vmatpush1.bf16.msra.mxu0 %v20200_v23  ;;  %v15090_v9 = vadd.f32 %v14956_v36, %v6108_v62  ;;  %v5084_v32 = vmax.f32 %v5082_v13, %v5083_v8  ;;  %v5121_v36 = vmax.f32 %v5119_v2, %v5120_v31  ;;  %20209 = vst [vmem:[#allocation160_spill] sm:$0xff] %v15109_v61  ;;  %v15111_v11 = vpop.f32.mrb[158].mxu0  ;;  %v20215_v23 = vld [vmem:[#allocation45_spill] sm:$0xff]  ;;  %v20218_v8 = vld [vmem:[#allocation119_spill] sm:$0xff] }
 0xd48   : > { %6623 = vmatprep.subr.bf16.mxu0 %v20202_v10  ;;  %20210 = vst [vmem:[#allocation155_spill] sm:$0xff] %v15111_v11  ;;  %v15115_v59 = vpop.f32.mrb[159].mxu0  ;;  %v15128_v25 = vmul.f32 %v20215_v23, %v20172_v54  ;;  %v20216_v10 = vld [vmem:[#allocation19_spill] sm:$0xff] }
 0xd49   : > { %20201 = vst [vmem:[#allocation97_spill] sm:$0xff] %v15090_v9  ;;  %v5085_v45 = vrot.slane %v5084_v32, 2  ;;  %v5122_v27 = vrot.slane %v5121_v36, 2  ;;  %20211 = vst [vmem:[#allocation123_spill] sm:$0xff] %v15115_v59  ;;  %v15132_v13 = vmul.f32 %v20216_v10, %v20172_v54  ;;  %v20223_v54 = vld [vmem:[#allocation151_spill] sm:$0xff]  ;;  %v20227_v10 = vld [vmem:[#allocation145_spill] sm:$0xff] }
 0xd4a   : > { %v20239_v3 = vld [vmem:[#allocation115_spill] sm:$0xff] }
 0xd4b   : > { %6624 = vmatpush1.bf16.msra.mxu0 %v20207_v5  ;;  %v5086_v28 = vmax.f32 %v5084_v32, %v5085_v45  ;;  %v5123_v52 = vmax.f32 %v5121_v36, %v5122_v27  ;;  %v20220_v5 = vld [vmem:[#allocation60_spill] sm:$0xff]  ;;  %v20222_v45 = vld [vmem:[#allocation138_spill] sm:$0xff] }
 0xd4d   : > { %7376 = vmatmul.mubr.msk.bf16.gmra.mrb[4].mxu0 %vm264_vm0, %v20206_v43  ;;  %v5087_v41 = vrot.slane %v5086_v28, 1  ;;  %v5124_v62 = vrot.slane %v5123_v52, 1  ;;  %v15134_v2 = vpop.f32.mrb[160].mxu0 }
 0xd4e   : > { %4927 = vmatprep.mubr.bf16.mxu0 %v19817_v18  ;;  %20217 = vst [vmem:[#allocation55_spill] sm:$0xff] %v15134_v2  ;;  %v15144_v36 = vpop.f32.mrb[161].mxu0  ;;  %v20240_v2 = vld [vmem:[#allocation110_spill] sm:$0xff] }
 0xd4f   : > { %v15124_v55 = vmax.f32 %v5086_v28, %v5087_v41  ;;  %v15142_v32 = vmax.f32 %v5123_v52, %v5124_v62  ;;  %20221 = vst [vmem:[#allocation184_spill] sm:$0xff] %v15144_v36  ;;  %v20224_v41 = vld [vmem:[#allocation140_spill] sm:$0xff]  ;;  %v15154_v23 = vpop.f32.mrb[162].mxu0  ;;  %v20228_v62 = vld [vmem:[#allocation159_spill] sm:$0xff] }
 0xd50   : > { %20226 = vst [vmem:[#allocation177_spill] sm:$0xff] %v15154_v23  ;;  %v15164_v4 = vpop.f32.mrb[163].mxu0  ;;  %v20234_v23 = vld [vmem:[#allocation41_spill] sm:$0xff] }
 0xd51   : > { %v5338_v37 = vsub.f32 %v20218_v8, %v15124_v55  ;;  %v5340_v43 = vsub.f32 %v20219_v29, %v15124_v55  ;;  %v5342_v31 = vsub.f32 %v20220_v5, %v15124_v55  ;;  %v5344_v27 = vsub.f32 %v20222_v45, %v15124_v55  ;;  %v20229_v29 = vld [vmem:[#allocation148_spill] sm:$0xff]  ;;  %20231 = vst [vmem:[#allocation170_spill] sm:$0xff] %v15164_v4 }
 0xd52   : > { %v5346_v28 = vsub.f32 %v20223_v54, %v15124_v55  ;;  %v5348_v58 = vsub.f32 %v20224_v41, %v15124_v55  ;;  %v5352_v52 = vsub.f32 %v20227_v10, %v15124_v55  ;;  %v5354_v8 = vsub.f32 %v20228_v62, %v15124_v55  ;;  %v20230_v45 = vld [vmem:[#allocation152_spill] sm:$0xff]  ;;  %v20232_v41 = vld [vmem:[#allocation174_spill] sm:$0xff] }
 0xd53   : > { %v5356_v5 = vsub.f32 %v20229_v29, %v15124_v55  ;;  %v5358_v54 = vsub.f32 %v20230_v45, %v15124_v55  ;;  %v5360_v17 = vsub.f32 %v20232_v41, %v15124_v55  ;;  %v5364_v10 = vsub.f32 %v14635_v19, %v15124_v55 }
 0xd54   : > { %v5366_v62 = vsub.f32 %v14672_v57, %v15124_v55  ;;  %v5368_v29 = vsub.f32 %v14689_v51, %v15124_v55  ;;  %v5370_v45 = vsub.f32 %v14736_v44, %v15124_v55  ;;  %v5372_v4 = vsub.f32 %v14751_v50, %v15124_v55 }
 0xd55   : > { %7377 = vmatmul.mubr.msk.bf16.gmra.mrb[8].mxu0 %vm264_vm0, %v20214_v33  ;;  %v5350_v33 = vsub.f32 %v20225_v7, %v15124_v55  ;;  %v20233_v7 = vld [vmem:[#allocation112_spill] sm:$0xff]  ;;  %v5374_v41 = vsub.f32 %v14794_v39, %v15124_v55  ;;  %v5376_v19 = vsub.f32 %v14815_v60, %v15124_v55  ;;  %v5378_v51 = vsub.f32 %v14862_v0, %v15124_v55 }
 0xd56   : > { %4937 = vmatprep.mubr.bf16.mxu0 %v19817_v18  ;;  %v5362_v9 = vsub.f32 %v20233_v7, %v15124_v55  ;;  %v20235_v7 = vld [vmem:[#allocation36_spill] sm:$0xff]  ;;  %v5380_v57 = vsub.f32 %v14879_v12, %v15124_v55  ;;  %v5382_v44 = vsub.f32 %v14924_v63, %v15124_v55  ;;  %v5384_v39 = vsub.f32 %v14941_v42, %v15124_v55  ;;  %v20238_v12 = vld [vmem:[#allocation137_spill] sm:$0xff] }
 0xd57   : > { %v20236_v59 = vpack.c.bf16 %v20234_v23, %v20235_v7  ;;  %v5386_v50 = vsub.f32 %v14979_v16, %v15124_v55  ;;  %v15211_v23 = vpop.f32.mrb[164].mxu0  ;;  %v5658_v7 = vmul.f32 1.442695, %v5338_v37  ;;  %v5662_v60 = vmul.f32 1.442695, %v5340_v43  ;;  %v20350_v49 = vld [vmem:[#allocation184_spill] sm:$0xff] }
 0xd58   : > { %20237 = vst [vmem:[#allocation93_spill] sm:$0xff] %v15211_v23  ;;  %v5666_v0 = vmul.f32 1.442695, %v5342_v31  ;;  %v5670_v61 = vmul.f32 1.442695, %v5344_v27  ;;  %v20241_v16 = vpack.c.bf16 %v20239_v3, %v20240_v2 }
 0xd59   : > { %8256 = vpow2.f32 %v5658_v7  ;;  %v5674_v63 = vmul.f32 1.442695, %v5346_v28  ;;  %v5678_v11 = vmul.f32 1.442695, %v5348_v58  ;;  %v5682_v42 = vmul.f32 1.442695, %v5350_v33 }
 0xd5a   : > { %8258 = vpow2.f32 %v5662_v60  ;;  %v5686_v23 = vmul.f32 1.442695, %v5352_v52  ;;  %v5690_v37 = vmul.f32 1.442695, %v5354_v8  ;;  %v5694_v43 = vmul.f32 1.442695, %v5356_v5 }
 0xd5b   : > { %8260 = vpow2.f32 %v5666_v0  ;;  %v5698_v31 = vmul.f32 1.442695, %v5358_v54  ;;  %v5702_v27 = vmul.f32 1.442695, %v5360_v17  ;;  %v5706_v28 = vmul.f32 1.442695, %v5362_v9 }
 0xd5c   : > { %8262 = vpow2.f32 %v5670_v61  ;;  %v5710_v58 = vmul.f32 1.442695, %v5364_v10  ;;  %v5714_v60 = vmul.f32 1.442695, %v5366_v62  ;;  %v5718_v0 = vmul.f32 1.442695, %v5368_v29 }
 0xd5d   : > { %7378 = vmatmul.mubr.msk.bf16.gmra.mrb[12].mxu0 %vm264_vm0, %v20236_v59  ;;  %8264 = vpow2.f32 %v5674_v63  ;;  %v5722_v33 = vmul.f32 1.442695, %v5370_v45  ;;  %v5726_v52 = vmul.f32 1.442695, %v5372_v4  ;;  %v15224_v7 = vmul.f32 1.442695, %v5374_v41 }
 0xd5e   : > { %4947 = vmatprep.mubr.bf16.mxu0 %v19817_v18  ;;  %8266 = vpow2.f32 %v5678_v11  ;;  %v15226_v3 = vmul.f32 1.442695, %v5376_v19  ;;  %v15228_v61 = vmul.f32 1.442695, %v5378_v51  ;;  %v15230_v2 = vmul.f32 1.442695, %v5380_v57 }
 0xd5f   : > { %8268 = vpow2.f32 %v5682_v42  ;;  %v15232_v8 = vmul.f32 1.442695, %v5382_v44  ;;  %v15234_v9 = vmul.f32 1.442695, %v5384_v39  ;;  %v15236_v11 = vmul.f32 1.442695, %v5386_v50 }
 0xd60   : > { %8270 = vpow2.f32 %v5686_v23  ;;  %v20242_v17 = vld [vmem:[#allocation149_spill] sm:$0xff]  ;;  %v15240_v4 = vpop.f32.mrb[165].mxu0  ;;  %v20244_v54 = vld [vmem:[#allocation139_spill] sm:$0xff]  ;;  %v20246_v45 = vld [vmem:[#allocation142_spill] sm:$0xff] }
 0xd61   : > { %8272 = vpow2.f32 %v5690_v37  ;;  %20243 = vst [vmem:[#allocation95_spill] sm:$0xff] %v15240_v4  ;;  %v20245_v62 = vld [vmem:[#allocation153_spill] sm:$0xff]  ;;  %v15248_v19 = vpop.f32.mrb[166].mxu0  ;;  %v20249_v57 = vld [vmem:[#allocation120_spill] sm:$0xff]  ;;  %v20258_v44 = vld [vmem:[#allocation171_spill] sm:$0xff] }
 0xd62   : > { %8274 = vpow2.f32 %v5694_v43  ;;  %20247 = vst [vmem:[#allocation188_spill] sm:$0xff] %v15248_v19  ;;  %v20250_v39 = vld [vmem:[#allocation157_spill] sm:$0xff]  ;;  %v20251_v63 = vld [vmem:[#allocation168_spill] sm:$0xff]  ;;  %v15258_v23 = vpop.f32.mrb[167].mxu0  ;;  %v20266_v5 = vld [vmem:[#allocation131_spill] sm:$0xff] }
 0xd63   : > { %v15250_v51 = vpop.eup %8256  ;;  %8276 = vpow2.f32 %v5698_v31  ;;  %20252 = vst [vmem:[#allocation190_spill] sm:$0xff] %v15258_v23  ;;  %v20254_v37 = vld [vmem:[#allocation28_spill] sm:$0xff]  ;;  %v20257_v31 = vld [vmem:[#allocation150_spill] sm:$0xff]  ;;  %v20259_v50 = vld [vmem:[#allocation161_spill] sm:$0xff]  ;;  %v15272_v42 = vpop.f32.mrb[168].mxu0 }
 0xd64   : > { %20248 = vst [vmem:[#allocation189_spill] sm:$0xff] %v15250_v51  ;;  %v15264_v41 = vpop.eup %8258  ;;  %8278 = vpow2.f32 %v5702_v27  ;;  %20260 = vst [vmem:[#allocation7_spill] sm:$0xff] %v15272_v42  ;;  %v20262_v27 = vld [vmem:[#allocation162_spill] sm:$0xff]  ;;  %v15283_v10 = vpop.f32.mrb[169].mxu0 }
 0xd65   : > { %7379 = vmatmul.mubr.msk.bf16.gmra.mrb[16].mxu0 %vm264_vm0, %v20241_v16  ;;  %v20253_v16 = vld [vmem:[#allocation116_spill] sm:$0xff]  ;;  %20256 = vst [vmem:[#allocation191_spill] sm:$0xff] %v15264_v41  ;;  %v15275_v36 = vpop.eup %8260  ;;  %8280 = vpow2.f32 %v5706_v28  ;;  %20264 = vst [vmem:[#allocation8_spill] sm:$0xff] %v15283_v10  ;;  %v15293_v23 = vpop.f32.mrb[170].mxu0  ;;  %v20271_v28 = vld [vmem:[#allocation89_spill] sm:$0xff] }
 0xd66   : > { %4957 = vmatprep.mubr.bf16.mxu0 %v19817_v18  ;;  %v20255_v43 = vpack.c.bf16 %v20253_v16, %v20254_v37  ;;  %20261 = vst [vmem:[#allocation5_spill] sm:$0xff] %v15275_v36  ;;  %v6116_v16 = vadd.f32 %v15264_v41, %v15250_v51  ;;  %v15285_v59 = vpop.eup %8262  ;;  %8282 = vpow2.f32 %v5710_v58  ;;  %20267 = vst [vmem:[#allocation75_spill] sm:$0xff] %v15293_v23 }
 0xd67   : > { %20265 = vst [vmem:[#allocation6_spill] sm:$0xff] %v15285_v59  ;;  %v15295_v37 = vpop.eup %8264  ;;  %8284 = vpow2.f32 %v5714_v60  ;;  %v20272_v60 = vld [vmem:[#allocation86_spill] sm:$0xff] }
 0xd68   : > { %20268 = vst [vmem:[#allocation71_spill] sm:$0xff] %v15295_v37  ;;  %v6117_v29 = vadd.f32 %v15275_v36, %v6116_v16  ;;  %v15304_v19 = vpop.eup %8266  ;;  %8286 = vpow2.f32 %v5718_v0  ;;  %v20276_v0 = vld [vmem:[#allocation96_spill] sm:$0xff] }
 0xd69   : > { %20270 = vst [vmem:[#allocation92_spill] sm:$0xff] %v15304_v19  ;;  %v15314_v10 = vpop.eup %8268  ;;  %8288 = vpow2.f32 %v5722_v33  ;;  %v20279_v16 = vld [vmem:[#allocation124_spill] sm:$0xff] }
 0xd6a   : > { %20274 = vst [vmem:[#allocation76_spill] sm:$0xff] %v15314_v10  ;;  %v6118_v58 = vadd.f32 %v15285_v59, %v6117_v29  ;;  %v15323_v51 = vpop.eup %8270  ;;  %8290 = vpow2.f32 %v5726_v52  ;;  %v20284_v52 = vld [vmem:[#allocation80_spill] sm:$0xff] }
 0xd6b   : > { %20278 = vst [vmem:[#allocation91_spill] sm:$0xff] %v15323_v51  ;;  %v15333_v36 = vpop.eup %8272  ;;  %8292 = vpow2.f32 %v15224_v7  ;;  %v20286_v46 = vpack.c.bf16 %v20284_v52, %v20285_v30 }
 0xd6c   : > { %20280 = vst [vmem:[#allocation9_spill] sm:$0xff] %v15333_v36  ;;  %v6119_v41 = vadd.f32 %v15295_v37, %v6118_v58  ;;  %v15347_v33 = vpop.eup %8274  ;;  %8294 = vpow2.f32 %v15226_v3  ;;  %v20294_v58 = vsub.f32 %v15054_v35, %v15124_v55  ;;  %v20298_v35 = vsub.f32 %v20238_v12, %v15142_v32 }
 0xd6d   : > { %7380 = vmatmul.mubr.msk.bf16.gmra.mrb[20].mxu0 %vm264_vm0, %v20255_v43  ;;  %v20263_v43 = vld [vmem:[#allocation179_spill] sm:$0xff]  ;;  %20283 = vst [vmem:[#allocation65_spill] sm:$0xff] %v15347_v33  ;;  %8296 = vpow2.f32 %v15228_v61  ;;  %v20291_v61 = vsub.f32 %v15021_v38, %v15124_v55 }
 0xd6e   : > { %4967 = vmatprep.mubr.bf16.mxu0 %v19817_v18  ;;  %v15302_v18 = vpop.f32.mrb[171].mxu0  ;;  %8298 = vpow2.f32 %v15230_v2  ;;  %v5774_v2 = vmul.f32 1.442695, %v20294_v58  ;;  %v5660_v58 = vmul.f32 1.442695, %v20298_v35 }
 0xd6f   : > { %20269 = vst [vmem:[#allocation73_spill] sm:$0xff] %v15302_v18  ;;  %v15312_v4 = vpop.f32.mrb[172].mxu0  ;;  %v20275_v18 = vld [vmem:[#allocation94_spill] sm:$0xff]  ;;  %v5766_v52 = vmul.f32 1.442695, %v20291_v61  ;;  %8300 = vpow2.f32 %v15232_v8 }
 0xd70   : > { %20273 = vst [vmem:[#allocation81_spill] sm:$0xff] %v15312_v4  ;;  %v15321_v42 = vpop.f32.mrb[173].mxu0  ;;  %v20282_v4 = vpack.c.bf16 %v15132_v13, %v15128_v25  ;;  %v15359_v25 = vpop.eup %8276  ;;  %v20288_v13 = vsub.f32 %v14991_v15, %v15124_v55  ;;  %v20292_v15 = vsub.f32 %v15044_v6, %v15124_v55  ;;  %8302 = vpow2.f32 %v15234_v9 }
 0xd71   : > { %20277 = vst [vmem:[#allocation88_spill] sm:$0xff] %v15321_v42  ;;  %v15331_v29 = vpop.f32.mrb[174].mxu0  ;;  %20287 = vst [vmem:[#allocation99_spill] sm:$0xff] %v15359_v25  ;;  %v15368_v7 = vpop.eup %8278  ;;  %v20297_v6 = vsub.f32 %v15087_v53, %v15124_v55  ;;  %8304 = vpow2.f32 %v15236_v11  ;;  %v20301_v9 = vsub.f32 %v20244_v54, %v15142_v32  ;;  %v20302_v53 = vsub.f32 %v20245_v62, %v15142_v32 }
 0xd72   : > { %v15341_v42 = vpop.f32.mrb[175].mxu0  ;;  %v5758_v3 = vmul.f32 1.442695, %v20288_v13  ;;  %20289 = vst [vmem:[#allocation44_spill] sm:$0xff] %v15368_v7  ;;  %v5770_v13 = vmul.f32 1.442695, %v20292_v15  ;;  %v20306_v11 = vsub.f32 %v20249_v57, %v15142_v32  ;;  %v20307_v54 = vsub.f32 %v20250_v39, %v15142_v32 }
 0xd73   : > { %20281 = vst [vmem:[#allocation10_spill] sm:$0xff] %v15341_v42  ;;  %v15390_v38 = vpop.f32.mrb[176].mxu0  ;;  %v5782_v8 = vmul.f32 1.442695, %v20297_v6  ;;  %v5668_v20 = vmul.f32 1.442695, %v20301_v9  ;;  %v20310_v57 = vsub.f32 %v20257_v31, %v15142_v32 }
 0xd74   : > { %v15414_v12 = vpop.f32.mrb[177].mxu0  ;;  %8306 = vpow2.f32 %v5758_v3  ;;  %v20309_v3 = vsub.f32 %v20251_v63, %v15142_v32  ;;  %v20312_v39 = vld [vmem:[#allocation70_spill] sm:$0xff] }
 0xd75   : > { %7381 = vmatmul.mubr.msk.bf16.gmra.mrb[24].mxu0 %vm264_vm0, %v20282_v4  ;;  %v6120_v4 = vadd.f32 %v15304_v19, %v6119_v41  ;;  %v15380_v41 = vpop.eup %8280  ;;  %20303 = vst [vmem:[#allocation13_spill] sm:$0xff] %v15414_v12 }
 0xd76   : > { %6625 = vmatprep.mubr.bf16.mxu0 %v20286_v46  ;;  %v20290_v46 = vsub.f32 %v15011_v40, %v15124_v55  ;;  %20293 = vst [vmem:[#allocation56_spill] sm:$0xff] %v15380_v41  ;;  %v20295_v40 = vsub.f32 %v15077_v47, %v15124_v55  ;;  %v15392_v61 = vpop.eup %8282  ;;  %v20299_v47 = vsub.f32 %v20242_v17, %v15142_v32  ;;  %v5672_v55 = vmul.f32 1.442695, %v20302_v53 }
 0xd77   : > { %v6121_v23 = vadd.f32 %v15314_v10, %v6120_v4  ;;  %20296 = vst [vmem:[#allocation48_spill] sm:$0xff] %v15392_v61  ;;  %v20305_v17 = vsub.f32 %v20246_v45, %v15142_v32  ;;  %v15437_v45 = vmul.f32 1.442695, %v20309_v3  ;;  %v15442_v53 = vmul.f32 1.442695, %v20310_v57  ;;  %v20378_v10 = vld [vmem:[#allocation73_spill] sm:$0xff] }
 0xd78   : > { %v5762_v30 = vmul.f32 1.442695, %v20290_v46  ;;  %v5778_v46 = vmul.f32 1.442695, %v20295_v40  ;;  %v5664_v15 = vmul.f32 1.442695, %v20299_v47  ;;  %v15404_v40 = vpop.eup %8284  ;;  %v20318_v3 = vsub.f32 %v20262_v27, %v15142_v32 }
 0xd79   : > { %20300 = vst [vmem:[#allocation51_spill] sm:$0xff] %v15404_v40  ;;  %v6122_v4 = vadd.f32 %v15323_v51, %v6121_v23  ;;  %v15416_v6 = vpop.eup %8286  ;;  %v5676_v35 = vmul.f32 1.442695, %v20305_v17  ;;  %v15424_v23 = vmul.f32 1.442695, %v20306_v11  ;;  %v15444_v17 = vpop.f32.mrb[178].mxu0 }
 0xd7a   : > { %20304 = vst [vmem:[#allocation50_spill] sm:$0xff] %v15416_v6  ;;  %v15429_v47 = vmul.f32 1.442695, %v20307_v54  ;;  %v15431_v62 = vpop.eup %8288  ;;  %8308 = vpow2.f32 %v5762_v30  ;;  %20311 = vst [vmem:[#allocation32_spill] sm:$0xff] %v15444_v17  ;;  %v20313_v11 = vld [vmem:[#allocation182_spill] sm:$0xff]  ;;  %v20316_v30 = vsub.f32 %v20258_v44, %v15142_v32  ;;  %v20320_v44 = vsub.f32 %v20263_v43, %v15142_v32 }
 0xd7b   : > { %20308 = vst [vmem:[#allocation101_spill] sm:$0xff] %v15431_v62  ;;  %v6123_v9 = vadd.f32 %v15333_v36, %v6122_v4  ;;  %v20314_v54 = vpack.c.bf16 %v20312_v39, %v20313_v11  ;;  %v15449_v22 = vpop.eup %8290  ;;  %8310 = vpow2.f32 %v5766_v52  ;;  %v20317_v4 = vsub.f32 %v20259_v50, %v15142_v32  ;;  %v20369_v36 = vld [vmem:[#allocation188_spill] sm:$0xff] }
 0xd7c   : > { %20315 = vst [vmem:[#allocation49_spill] sm:$0xff] %v15449_v22  ;;  %v15454_v63 = vmul.f32 1.442695, %v20316_v30  ;;  %v15464_v57 = vmul.f32 1.442695, %v20318_v3  ;;  %v15466_v39 = vpop.eup %8292  ;;  %8312 = vpow2.f32 %v5770_v13  ;;  %v20321_v50 = vsub.f32 %v20266_v5, %v15142_v32  ;;  %v15479_v30 = vpop.f32.mrb[179].mxu0 }
 0xd7d   : > { %6626 = vmatmul.mubr.bf16.vlgmr.msra.gmra.mrb[28].mxu0 %v20314_v54  ;;  %v15459_v31 = vmul.f32 1.442695, %v20317_v4  ;;  %20319 = vst [vmem:[#allocation11_spill] sm:$0xff] %v15466_v39  ;;  %v6124_v52 = vadd.f32 %v15347_v33, %v6123_v9  ;;  %v15472_v11 = vmul.f32 1.442695, %v20320_v44  ;;  %20322 = vst [vmem:[#allocation18_spill] sm:$0xff] %v15479_v30  ;;  %v15481_v27 = vpop.eup %8294  ;;  %8314 = vpow2.f32 %v5774_v2 }
 0xd7e   : > { %v15477_v54 = vmul.f32 1.442695, %v20321_v50  ;;  %20323 = vst [vmem:[#allocation82_spill] sm:$0xff] %v15481_v27  ;;  %v20324_v13 = vsub.f32 %v14680_v34, %v15142_v32  ;;  %v20325_v43 = vsub.f32 %v14697_v14, %v15142_v32  ;;  %v20326_v5 = vsub.f32 %v14740_v26, %v15142_v32  ;;  %v15498_v44 = vpop.eup %8296 }
 0xd7f   : > { %20327 = vst [vmem:[#allocation34_spill] sm:$0xff] %v15498_v44  ;;  %8316 = vpow2.f32 %v5778_v46  ;;  %v6125_v2 = vadd.f32 %v15359_v25, %v6124_v52  ;;  %v20328_v34 = vsub.f32 %v14755_v1, %v15142_v32  ;;  %v20329_v14 = vsub.f32 %v14802_v21, %v15142_v32  ;;  %v15513_v26 = vpop.eup %8298  ;;  %v20370_v25 = vld [vmem:[#allocation190_spill] sm:$0xff] }
 0xd80   : > { %v15486_v4 = vmul.f32 1.442695, %v20324_v13  ;;  %v15491_v9 = vmul.f32 1.442695, %v20325_v43  ;;  %v15496_v3 = vmul.f32 1.442695, %v20326_v5  ;;  %8318 = vpow2.f32 %v5782_v8 }
 0xd81   : > { %v15504_v50 = vmul.f32 1.442695, %v20328_v34  ;;  %v15509_v13 = vmul.f32 1.442695, %v20329_v14  ;;  %v15511_v43 = vpop.f32.mrb[180].mxu0  ;;  %20331 = vst [vmem:[#allocation104_spill] sm:$0xff] %v15513_v26  ;;  %v20332_v46 = vsub.f32 %v20271_v28, %v15142_v32  ;;  %v20333_v1 = vsub.f32 %v20272_v60, %v15142_v32  ;;  %v15530_v14 = vpop.eup %8300 }
 0xd82   : > { %20330 = vst [vmem:[#allocation25_spill] sm:$0xff] %v15511_v43  ;;  %v20335_v21 = vsub.f32 %v20275_v18, %v15142_v32  ;;  %20337 = vst [vmem:[#allocation63_spill] sm:$0xff] %v15530_v14  ;;  %v6126_v24 = vadd.f32 %v15368_v7, %v6125_v2  ;;  %8320 = vpow2.f32 %v5660_v58  ;;  %v20338_v28 = vsub.f32 %v20276_v0, %v15142_v32  ;;  %v15545_v18 = vpop.eup %8302  ;;  %v20346_v58 = vld [vmem:[#allocation55_spill] sm:$0xff]  ;;  %v20347_v43 = vld [vmem:[#allocation141_spill] sm:$0xff] }
 0xd83   : > { %v15518_v5 = vmul.f32 1.442695, %v20332_v46  ;;  %v15523_v52 = vmul.f32 1.442695, %v20333_v1  ;;  %v20340_v60 = vsub.f32 %v20279_v16, %v15142_v32  ;;  %v15543_v1 = vpop.f32.mrb[181].mxu0  ;;  %20343 = vst [vmem:[#allocation62_spill] sm:$0xff] %v15545_v18  ;;  %8322 = vpow2.f32 %v5664_v15 }
 0xd84   : > { %v15528_v34 = vmul.f32 1.442695, %v20335_v21  ;;  %v15536_v8 = vmul.f32 1.442695, %v20338_v28  ;;  %20342 = vst [vmem:[#allocation59_spill] sm:$0xff] %v15543_v1  ;;  %v20344_v21 = vsub.f32 %v14985_v56, %v15142_v32  ;;  %v20348_v0 = vld [vmem:[#allocation155_spill] sm:$0xff]  ;;  %v15562_v1 = vpop.eup %8304  ;;  %v6127_v15 = vadd.f32 %v15380_v41, %v6126_v24 }
 0xd85   : > { %20334 = vst [vmem:[#allocation102_spill] sm:$0xff] %v15523_v52  ;;  %v15541_v46 = vmul.f32 1.442695, %v20340_v60  ;;  %v20349_v28 = vmax.f32 %v20347_v43, %v20348_v0  ;;  %v20352_v16 = vld [vmem:[#allocation123_spill] sm:$0xff]  ;;  %v15560_v52 = vpop.f32.mrb[182].mxu0  ;;  %20354 = vst [vmem:[#allocation79_spill] sm:$0xff] %v15562_v1  ;;  %8324 = vpow2.f32 %v5668_v20 }
 0xd86   : > { %20336 = vst [vmem:[#allocation14_spill] sm:$0xff] %v15528_v34  ;;  %20339 = vst [vmem:[#allocation54_spill] sm:$0xff] %v15536_v8  ;;  %v15550_v2 = vmul.f32 1.442695, %v20344_v21  ;;  %v20351_v34 = vld [vmem:[#allocation160_spill] sm:$0xff]  ;;  %v15565_v56 = vpop.f32.mrb[183].mxu0  ;;  %8326 = vpow2.f32 %v5672_v55  ;;  %v6128_v20 = vadd.f32 %v15392_v61, %v6127_v15 }
 0xd87   : > { %20341 = vst [vmem:[#allocation109_spill] sm:$0xff] %v15541_v46  ;;  %v5127_v8 = vmax.f32 %v20349_v28, %v20346_v58  ;;  %v20353_v60 = vmax.f32 %v20351_v34, %v20352_v16  ;;  %20355 = vst [vmem:[#allocation77_spill] sm:$0xff] %v15565_v56  ;;  %v15571_v58 = vpop.eup %8306  ;;  %v20360_v16 = vld [vmem:[#allocation177_spill] sm:$0xff]  ;;  %8328 = vpow2.f32 %v5676_v35  ;;  %v15589_v0 = vpop.f32.mrb[184].mxu0  ;;  %v20374_v41 = vld [vmem:[#allocation8_spill] sm:$0xff] }
 0xd88   : > { %20345 = vst [vmem:[#allocation17_spill] sm:$0xff] %v15550_v2  ;;  %20359 = vst [vmem:[#allocation132_spill] sm:$0xff] %v15571_v58  ;;  %v15577_v24 = vpop.eup %8308  ;;  %8330 = vpow2.f32 %v15424_v23  ;;  %v20364_v55 = vld [vmem:[#allocation93_spill] sm:$0xff]  ;;  %v6129_v30 = vadd.f32 %v15404_v40, %v6128_v20  ;;  %v15597_v28 = vpop.f32.mrb[185].mxu0  ;;  %v20373_v40 = vld [vmem:[#allocation7_spill] sm:$0xff] }
 0xd89   : > { %v5164_v46 = vmax.f32 %v20353_v60, %v20350_v49  ;;  %v5128_v60 = vmax.f32 %v5127_v8, %v20360_v16  ;;  %v20361_v49 = vld [vmem:[#allocation170_spill] sm:$0xff]  ;;  %20362 = vst [vmem:[#allocation98_spill] sm:$0xff] %v15577_v24  ;;  %v15584_v17 = vpop.eup %8310  ;;  %8332 = vpow2.f32 %v15429_v47  ;;  %20367 = vst [vmem:[#allocation66_spill] sm:$0xff] %v15597_v28  ;;  %v15608_v33 = vpop.f32.mrb[186].mxu0 }
 0xd8a   : > { %20363 = vst [vmem:[#allocation90_spill] sm:$0xff] %v15584_v17  ;;  %v15593_v35 = vpop.eup %8312  ;;  %8334 = vpow2.f32 %v15437_v45  ;;  %v6130_v23 = vadd.f32 %v15416_v6, %v6129_v30 }
 0xd8b   : > { %v5165_v34 = vmax.f32 %v5164_v46, %v20361_v49  ;;  %v5129_v8 = vmax.f32 %v5128_v60, %v20364_v55  ;;  %v20365_v46 = vld [vmem:[#allocation95_spill] sm:$0xff]  ;;  %20366 = vst [vmem:[#allocation87_spill] sm:$0xff] %v15593_v35  ;;  %8336 = vpow2.f32 %v15442_v53  ;;  %v15616_v60 = vpop.f32.mrb[187].mxu0 }
 0xd8c   : > { %8338 = vpow2.f32 %v15454_v63  ;;  %v6131_v6 = vadd.f32 %v15431_v62, %v6130_v23  ;;  %v20382_v62 = vld [vmem:[#allocation88_spill] sm:$0xff]  ;;  %v15657_v37 = vpop.f32.mrb[188].mxu0 }
 0xd8d   : > { %v5166_v59 = vmax.f32 %v5165_v34, %v20365_v46  ;;  %v15603_v34 = vpop.eup %8314  ;;  %v5130_v15 = vmax.f32 %v5129_v8, %v20369_v36  ;;  %8340 = vpow2.f32 %v15459_v31  ;;  %v15666_v19 = vpop.f32.mrb[189].mxu0 }
 0xd8e   : > { %20368 = vst [vmem:[#allocation33_spill] sm:$0xff] %v15603_v34  ;;  %v15612_v20 = vpop.eup %8316  ;;  %8342 = vpow2.f32 %v15464_v57  ;;  %v6132_v31 = vadd.f32 %v15449_v22, %v6131_v6 }
 0xd8f   : > { %v5167_v7 = vmax.f32 %v5166_v59, %v20370_v25  ;;  %20371 = vst [vmem:[#allocation20_spill] sm:$0xff] %v15612_v20  ;;  %v15622_v59 = vpop.eup %8318  ;;  %v5131_v47 = vmax.f32 %v5130_v15, %v20373_v40  ;;  %8344 = vpow2.f32 %v15472_v11 }
 0xd90   : > { %20372 = vst [vmem:[#allocation30_spill] sm:$0xff] %v15622_v59  ;;  %v15629_v53 = vpop.eup %8320  ;;  %8346 = vpow2.f32 %v15477_v54  ;;  %v6133_v22 = vadd.f32 %v15466_v39, %v6132_v31 }
 0xd91   : > { %v5168_v61 = vmax.f32 %v5167_v7, %v20374_v41  ;;  %20375 = vst [vmem:[#allocation47_spill] sm:$0xff] %v15629_v53  ;;  %v15637_v63 = vpop.eup %8322  ;;  %v20377_v7 = vld [vmem:[#allocation75_spill] sm:$0xff]  ;;  %8348 = vpow2.f32 %v15486_v4  ;;  %v15678_v4 = vpop.f32.mrb[190].mxu0 }
 0xd92   : > { %20376 = vst [vmem:[#allocation43_spill] sm:$0xff] %v15637_v63  ;;  %v5132_v15 = vmax.f32 %v5131_v47, %v20377_v7  ;;  %v15644_v23 = vpop.eup %8324  ;;  %v6153_v45 = vadd.f32 %v15637_v63, %v15629_v53  ;;  %8350 = vpow2.f32 %v15491_v9  ;;  %v6134_v39 = vadd.f32 %v15481_v27, %v6133_v22  ;;  %v20396_v53 = vld [vmem:[#allocation18_spill] sm:$0xff] }
 0xd93   : > { %v5169_v30 = vmax.f32 %v5168_v61, %v20378_v10  ;;  %20379 = vst [vmem:[#allocation84_spill] sm:$0xff] %v15644_v23  ;;  %v15652_v57 = vpop.eup %8326  ;;  %v20381_v61 = vld [vmem:[#allocation81_spill] sm:$0xff]  ;;  %8352 = vpow2.f32 %v15496_v3 }
 0xd94   : > { %20380 = vst [vmem:[#allocation16_spill] sm:$0xff] %v15652_v57  ;;  %v5133_v47 = vmax.f32 %v5132_v15, %v20381_v61  ;;  %v15661_v11 = vpop.eup %8328  ;;  %v6154_v8 = vadd.f32 %v15644_v23, %v6153_v45  ;;  %v15685_v23 = vpop.f32.mrb[191].mxu0  ;;  %8354 = vpow2.f32 %v15504_v50 }
 0xd95   : > { %v5170_v51 = vmax.f32 %v5169_v30, %v20382_v62  ;;  %20383 = vst [vmem:[#allocation164_spill] sm:$0xff] %v15661_v11  ;;  %v15670_v15 = vpop.eup %8330  ;;  %v20385_v30 = vsub.f32 %v14998_v48, %v15142_v32  ;;  %20387 = vst [vmem:[#allocation108_spill] sm:$0xff] %v15685_v23  ;;  %8356 = vpow2.f32 %v15509_v13 }
 0xd96   : > { %20384 = vst [vmem:[#allocation103_spill] sm:$0xff] %v15670_v15  ;;  %v5134_v21 = vmax.f32 %v5133_v47, %v15331_v29  ;;  %v15680_v45 = vpop.eup %8332  ;;  %v6155_v54 = vadd.f32 %v15652_v57, %v6154_v8  ;;  %v6135_v8 = vadd.f32 %v15498_v44, %v6134_v39  ;;  %8358 = vpow2.f32 %v15518_v5 }
 0xd97   : > { %v5760_v6 = vmul.f32 1.442695, %v20385_v30  ;;  %v5171_v31 = vmax.f32 %v5170_v51, %v15341_v42  ;;  %20386 = vst [vmem:[#allocation24_spill] sm:$0xff] %v15680_v45  ;;  %v15689_v9 = vpop.eup %8334  ;;  %v20389_v51 = vld [vmem:[#allocation125_spill] sm:$0xff] }
 0xd98   : > { %20388 = vst [vmem:[#allocation154_spill] sm:$0xff] %v15689_v9  ;;  %v20390_v47 = vsub.f32 %v20389_v51, %v15142_v32  ;;  %v5135_v2 = vmax.f32 %v5134_v21, %v15390_v38  ;;  %v15697_v3 = vpop.eup %8336  ;;  %v6156_v48 = vadd.f32 %v15661_v11, %v6155_v54  ;;  %v20393_v51 = vld [vmem:[#allocation128_spill] sm:$0xff]  ;;  %v6136_v13 = vadd.f32 %v15513_v26, %v6135_v8  ;;  %v20398_v54 = vld [vmem:[#allocation102_spill] sm:$0xff]  ;;  %v15727_v8 = vpop.f32.mrb[192].mxu0 }
 0xd99   : > { %v5172_v22 = vmax.f32 %v5171_v31, %v15414_v12  ;;  %20391 = vst [vmem:[#allocation144_spill] sm:$0xff] %v15697_v3  ;;  %v15704_v50 = vpop.eup %8338  ;;  %v20394_v21 = vsub.f32 %v20393_v51, %v15142_v32  ;;  %v20395_v31 = vld [vmem:[#allocation32_spill] sm:$0xff]  ;;  %8360 = vpow2.f32 %v20398_v54  ;;  %v20400_v11 = vld [vmem:[#allocation14_spill] sm:$0xff]  ;;  %v20401_v51 = vld [vmem:[#allocation111_spill] sm:$0xff] }
 0xd9a   : > { %v5764_v30 = vmul.f32 1.442695, %v20390_v47  ;;  %20392 = vst [vmem:[#allocation122_spill] sm:$0xff] %v15704_v50  ;;  %v5136_v57 = vmax.f32 %v5135_v2, %v20395_v31  ;;  %v15712_v39 = vpop.eup %8340  ;;  %v6157_v27 = vadd.f32 %v15670_v15, %v6156_v48  ;;  %8362 = vpow2.f32 %v20400_v11  ;;  %v20404_v12 = vld [vmem:[#allocation59_spill] sm:$0xff]  ;;  %v20406_v26 = vld [vmem:[#allocation54_spill] sm:$0xff]  ;;  %v15734_v15 = vpop.f32.mrb[193].mxu0 }
 0xd9b   : > { %v5768_v47 = vmul.f32 1.442695, %v20394_v21  ;;  %v5173_v63 = vmax.f32 %v5172_v22, %v20396_v53  ;;  %20397 = vst [vmem:[#allocation147_spill] sm:$0xff] %v15712_v39  ;;  %v15719_v5 = vpop.eup %8342  ;;  %v20402_v2 = vsub.f32 %v20401_v51, %v15142_v32  ;;  %v20403_v22 = vld [vmem:[#allocation25_spill] sm:$0xff]  ;;  %v6137_v48 = vadd.f32 %v15530_v14, %v6136_v13  ;;  %20407 = vst [vmem:[#allocation53_spill] sm:$0xff] %v15734_v15 }
 0xd9c   : > { %20399 = vst [vmem:[#allocation100_spill] sm:$0xff] %v15719_v5  ;;  %v5137_v53 = vmax.f32 %v5136_v57, %v20403_v22  ;;  %v15729_v54 = vpop.eup %8344  ;;  %8364 = vpow2.f32 %v20406_v26  ;;  %v6158_v44 = vadd.f32 %v15680_v45, %v6157_v27  ;;  %v20409_v57 = vld [vmem:[#allocation109_spill] sm:$0xff]  ;;  %v15746_v26 = vpop.f32.mrb[194].mxu0 }
 0xd9d   : > { %v5772_v21 = vmul.f32 1.442695, %v20402_v2  ;;  %v5174_v42 = vmax.f32 %v5173_v63, %v20404_v12  ;;  %20405 = vst [vmem:[#allocation38_spill] sm:$0xff] %v15729_v54  ;;  %v15738_v51 = vpop.eup %8346  ;;  %8366 = vpow2.f32 %v20409_v57  ;;  %v20410_v63 = vld [vmem:[#allocation127_spill] sm:$0xff]  ;;  %v6138_v14 = vadd.f32 %v15545_v18, %v6137_v48  ;;  %v20413_v45 = vld [vmem:[#allocation17_spill] sm:$0xff]  ;;  %v15753_v10 = vpop.f32.mrb[195].mxu0 }
 0xd9e   : > { %20408 = vst [vmem:[#allocation37_spill] sm:$0xff] %v15738_v51  ;;  %v20411_v2 = vsub.f32 %v20410_v63, %v15142_v32  ;;  %v5138_v62 = vmax.f32 %v5137_v53, %v15560_v52  ;;  %v15748_v27 = vpop.eup %8348  ;;  %8368 = vpow2.f32 %v20413_v45  ;;  %v6159_v11 = vadd.f32 %v15689_v9, %v6158_v44  ;;  %20414 = vst [vmem:[#allocation69_spill] sm:$0xff] %v15753_v10  ;;  %v20416_v53 = vld [vmem:[#allocation118_spill] sm:$0xff] }
 0xd9f   : > { %v5175_v13 = vmax.f32 %v5174_v42, %v15565_v56  ;;  %20412 = vst [vmem:[#allocation133_spill] sm:$0xff] %v15748_v27  ;;  %v15757_v63 = vpop.eup %8350  ;;  %8370 = vpow2.f32 %v5760_v6  ;;  %v20417_v42 = vsub.f32 %v20416_v53, %v15142_v32  ;;  %v6139_v44 = vadd.f32 %v15562_v1, %v6138_v14  ;;  %v20420_v6 = vld [vmem:[#allocation146_spill] sm:$0xff] }
 0xda0   : > { %v5776_v12 = vmul.f32 1.442695, %v20411_v2  ;;  %20415 = vst [vmem:[#allocation31_spill] sm:$0xff] %v15757_v63  ;;  %v5139_v56 = vmax.f32 %v5138_v62, %v15589_v0  ;;  %v15764_v18 = vpop.eup %8352  ;;  %8372 = vpow2.f32 %v5764_v30  ;;  %v6160_v45 = vadd.f32 %v15697_v3, %v6159_v11 }
 0xda1   : > { %v5780_v2 = vmul.f32 1.442695, %v20417_v42  ;;  %v5176_v48 = vmax.f32 %v5175_v13, %v15597_v28  ;;  %20418 = vst [vmem:[#allocation57_spill] sm:$0xff] %v15764_v18  ;;  %v15770_v9 = vpop.eup %8354  ;;  %8374 = vpow2.f32 %v5768_v47  ;;  %v20421_v53 = vsub.f32 %v20420_v6, %v15142_v32  ;;  %v20424_v47 = vld [vmem:[#allocation126_spill] sm:$0xff] }
 0xda2   : > { %20419 = vst [vmem:[#allocation178_spill] sm:$0xff] %v15770_v9  ;;  %v5140_v62 = vmax.f32 %v5139_v56, %v15608_v33  ;;  %v15777_v28 = vpop.eup %8356  ;;  %v6140_v14 = vadd.f32 %v15571_v58, %v6139_v44  ;;  %8376 = vpow2.f32 %v5772_v21  ;;  %v6161_v30 = vadd.f32 %v15704_v50, %v6160_v45 }
 0xda3   : > { %v5784_v42 = vmul.f32 1.442695, %v20421_v53  ;;  %v5177_v13 = vmax.f32 %v5176_v48, %v15616_v60  ;;  %20422 = vst [vmem:[#allocation166_spill] sm:$0xff] %v15777_v28  ;;  %v15783_v57 = vpop.eup %8358  ;;  %v6073_v1 = vrot.slane %v20424_v47, 4  ;;  %8378 = vpow2.f32 %v5776_v12  ;;  %v15788_v48 = vpop.f32.mrb[196].mxu0 }
 0xda4   : > { %20423 = vst [vmem:[#allocation176_spill] sm:$0xff] %v15783_v57  ;;  %v5141_v32 = vmax.f32 %v5140_v62, %v15657_v37  ;;  %v15790_v6 = vpop.eup %8360  ;;  %v6141_v21 = vadd.f32 %v15577_v24, %v6140_v14  ;;  %8380 = vpow2.f32 %v5780_v2  ;;  %v6162_v44 = vadd.f32 %v15712_v39, %v6161_v30  ;;  %v15794_v45 = vpop.f32.mrb[197].mxu0 }
 0xda5   : > { %v5178_v56 = vmax.f32 %v5177_v13, %v15666_v19  ;;  %20425 = vst [vmem:[#allocation163_spill] sm:$0xff] %v15790_v6  ;;  %20426 = vst [vmem:[#allocation165_spill] sm:$0xff] %v15794_v45  ;;  %v15798_v11 = vpop.eup %8362  ;;  %8382 = vpow2.f32 %v5784_v42  ;;  %v15802_v13 = vpop.f32.mrb[198].mxu0  ;;  %v6074_v42 = vadd.f32 %v6073_v1, %v20424_v47 }
 0xda6   : > { %20427 = vst [vmem:[#allocation129_spill] sm:$0xff] %v15798_v11  ;;  %v5142_v12 = vmax.f32 %v5141_v32, %v15678_v4  ;;  %v15804_v58 = vpop.eup %8364  ;;  %v6142_v2 = vadd.f32 %v15584_v17, %v6141_v21  ;;  %v6163_v14 = vadd.f32 %v15719_v5, %v6162_v44  ;;  %v15808_v30 = vpop.f32.mrb[199].mxu0 }
 0xda7   : > { %v5179_v62 = vmax.f32 %v5178_v56, %v15685_v23  ;;  %20428 = vst [vmem:[#allocation180_spill] sm:$0xff] %v15804_v58  ;;  %20429 = vst [vmem:[#allocation135_spill] sm:$0xff] %v15808_v30  ;;  %v15812_v24 = vpop.eup %8366 }
 0xda8   : > { %20430 = vst [vmem:[#allocation134_spill] sm:$0xff] %v15812_v24  ;;  %v5143_v32 = vmax.f32 %v5142_v12, %v15727_v8  ;;  %v15817_v39 = vpop.eup %8368  ;;  %v6143_v3 = vadd.f32 %v15593_v35, %v6142_v2  ;;  %v6164_v21 = vadd.f32 %v15729_v54, %v6163_v14  ;;  %v6075_v14 = vrot.slane %v6074_v42, 2  ;;  %v15837_v54 = vpop.f32.mrb[200].mxu0 }
 0xda9   : > { %v5180_v56 = vmax.f32 %v5179_v62, %v15734_v15  ;;  %20431 = vst [vmem:[#allocation105_spill] sm:$0xff] %v15817_v39  ;;  %v15823_v17 = vpop.eup %8370 }
 0xdaa   : > { %20432 = vst [vmem:[#allocation46_spill] sm:$0xff] %v15823_v17  ;;  %v5144_v53 = vmax.f32 %v5143_v32, %v15746_v26  ;;  %v15827_v1 = vpop.eup %8372  ;;  %v6144_v47 = vadd.f32 %v15603_v34, %v6143_v3  ;;  %v6165_v12 = vadd.f32 %v15738_v51, %v6164_v21  ;;  %v15843_v34 = vpop.f32.mrb[201].mxu0 }
 0xdab   : > { %v5181_v5 = vmax.f32 %v5180_v56, %v15753_v10  ;;  %20433 = vst [vmem:[#allocation167_spill] sm:$0xff] %v15827_v1  ;;  %v15833_v2 = vpop.eup %8374 }
 0xdac   : > { %20434 = vst [vmem:[#allocation22_spill] sm:$0xff] %v15833_v2  ;;  %v5145_v44 = vmax.f32 %v5144_v53, %v15788_v48  ;;  %v15839_v32 = vpop.eup %8376  ;;  %v6145_v56 = vadd.f32 %v15612_v20, %v6144_v47  ;;  %v6166_v3 = vadd.f32 %v15748_v27, %v6165_v12  ;;  %v6076_v27 = vadd.f32 %v6075_v14, %v6074_v42 }
 0xdad   : > { %v5182_v35 = vmax.f32 %v5181_v5, %v15794_v45  ;;  %20435 = vst [vmem:[#allocation64_spill] sm:$0xff] %v15839_v32  ;;  %v15847_v62 = vpop.eup %8378  ;;  %v15851_v5 = vpop.f32.mrb[202].mxu0 }
 0xdae   : > { %20436 = vst [vmem:[#allocation169_spill] sm:$0xff] %v15847_v62  ;;  %v5146_v51 = vmax.f32 %v5145_v44, %v15802_v13  ;;  %v15853_v50 = vpop.eup %8380  ;;  %v6146_v45 = vadd.f32 %v15622_v59, %v6145_v56  ;;  %v6167_v47 = vadd.f32 %v15757_v63, %v6166_v3  ;;  %v15857_v12 = vpop.f32.mrb[203].mxu0  ;;  %v6077_v15 = vrot.slane %v6076_v27, 1 }
 0xdaf   : > { %v5183_v53 = vmax.f32 %v5182_v35, %v15808_v30  ;;  %20437 = vst [vmem:[#allocation173_spill] sm:$0xff] %v15853_v50  ;;  %v15861_v21 = vpop.eup %8382  ;;  %v15871_v23 = vpop.f32.mrb[204].mxu0 }
 0xdb0   : > { %20438 = vst [vmem:[#allocation156_spill] sm:$0xff] %v15861_v21  ;;  %v5147_v44 = vmax.f32 %v5146_v51, %v15837_v54  ;;  %v6147_v30 = vrot.slane %v6146_v45, 4  ;;  %v6168_v10 = vadd.f32 %v15764_v18, %v6167_v47 }
 0xdb1   : > { %v5184_v35 = vmax.f32 %v5183_v53, %v15843_v34  ;;  %v15875_v53 = vpop.f32.mrb[205].mxu0 }
 0xdb2   : > { %v5148_v3 = vmax.f32 %v5147_v44, %v15851_v5  ;;  %v6148_v63 = vadd.f32 %v6147_v30, %v6146_v45  ;;  %v6169_v20 = vadd.f32 %v15770_v9, %v6168_v10  ;;  %v15878_v56 = vpop.f32.mrb[206].mxu0  ;;  %v6078_v30 = vadd.f32 %v6077_v15, %v6076_v27 }
 0xdb3   : > { %v5185_v59 = vmax.f32 %v5184_v35, %v15857_v12  ;;  %v15882_v10 = vpop.f32.mrb[207].mxu0 }
 0xdb4   : > { %v6149_v42 = vrot.slane %v6148_v63, 2  ;;  %v6170_v51 = vadd.f32 %v15777_v28, %v6169_v20  ;;  %v5149_v14 = vmax.f32 %v5148_v3, %v15871_v23  ;;  %8384 = vrcp.f32 %v6078_v30  ;;  %v20441_v30 = vld [vmem:[#allocation97_spill] sm:$0xff] }
 0xdb5   : > { %v5186_v47 = vmax.f32 %v5185_v59, %v15875_v53  ;;  %v15887_v59 = vpop.f32.mrb[208].mxu0 }
 0xdb6   : > { %v6150_v44 = vadd.f32 %v6149_v42, %v6148_v63  ;;  %v6171_v35 = vadd.f32 %v15783_v57, %v6170_v51  ;;  %v5150_v45 = vmax.f32 %v5149_v14, %v15878_v56  ;;  %v15891_v51 = vpop.f32.mrb[209].mxu0 }
 0xdb7   : > { %v5187_v18 = vmax.f32 %v5186_v47, %v15882_v10  ;;  %20439 = vst [vmem:[#allocation113_spill] sm:$0xff] %v15891_v51  ;;  %v15894_v27 = vpop.f32.mrb[210].mxu0 }
 0xdb8   : > { %v6151_v9 = vrot.slane %v6150_v44, 1  ;;  %v6172_v20 = vadd.f32 %v15790_v6, %v6171_v35  ;;  %v5151_v42 = vmax.f32 %v5150_v45, %v15887_v59  ;;  %v15898_v47 = vpop.f32.mrb[211].mxu0  ;;  %v6110_v45 = vrot.slane %v20441_v30, 4 }
 0xdb9   : > { %v5188_v15 = vmax.f32 %v5187_v18, %v15891_v51  ;;  %20440 = vst [vmem:[#allocation117_spill] sm:$0xff] %v15898_v47 }
 0xdba   : > { %v6152_v3 = vadd.f32 %v6151_v9, %v6150_v44  ;;  %v6173_v28 = vadd.f32 %v15798_v11, %v6172_v20  ;;  %v5152_v9 = vmax.f32 %v5151_v42, %v15894_v27  ;;  %v15904_v20 = vpop.f32.mrb[212].mxu0 }
 0xdbb   : > { %v5189_v44 = vmax.f32 %v5188_v15, %v15898_v47 }
 0xdbc   : > { %8386 = vrcp.f32 %v6152_v3  ;;  %v6174_v63 = vadd.f32 %v15804_v58, %v6173_v28  ;;  %v5153_v3 = vmax.f32 %v5152_v9, %v15904_v20  ;;  %v15908_v58 = vpop.f32.mrb[213].mxu0 }
 0xdbd   : > { %20442 = vst [vmem:[#allocation27_spill] sm:$0xff] %v15908_v58  ;;  %v5190_v42 = vmax.f32 %v5189_v44, %v15908_v58 }
 0xdbe   : > { %v6175_v14 = vadd.f32 %v15812_v24, %v6174_v63  ;;  %v8385_v63 = vpop.eup %8384  ;;  %v15911_v24 = vpop.f32.mrb[214].mxu0 }
 0xdc0   : > { %v6176_v35 = vadd.f32 %v15817_v39, %v6175_v14  ;;  %v15915_v39 = vpop.f32.mrb[215].mxu0 }
 0xdc1   : > { %20443 = vst [vmem:[#allocation158_spill] sm:$0xff] %v15915_v39  ;;  %v15924_v11 = vpop.f32.mrb[216].mxu0 }
 0xdc2   : > { %v6177_v28 = vadd.f32 %v15823_v17, %v6176_v35  ;;  %v5154_v35 = vmax.f32 %v5153_v3, %v15911_v24  ;;  %v6111_v17 = vadd.f32 %v6110_v45, %v20441_v30 }
 0xdc4   : > { %v6178_v18 = vadd.f32 %v15827_v1, %v6177_v28  ;;  %v5191_v28 = vmax.f32 %v5190_v42, %v15915_v39  ;;  %v6112_v6 = vrot.slane %v6111_v17, 2  ;;  %v5155_v3 = vmax.f32 %v5154_v35, %v15924_v11 }
 0xdc6   : > { %v8387_v15 = vpop.eup %8386  ;;  %v6179_v14 = vadd.f32 %v15833_v2, %v6178_v18  ;;  %v15928_v2 = vpop.f32.mrb[217].mxu0 }
 0xdc7   : > { %v15920_v9 = vsel %vm2903_vm1, %v8387_v15, %v8385_v63  ;;  %20445 = vst [vmem:[#allocation12_spill] sm:$0xff] %v15928_v2  ;;  %v5192_v30 = vmax.f32 %v5191_v28, %v15928_v2  ;;  %v15931_v45 = vpop.f32.mrb[218].mxu0 }
 0xdc8   : > { %20444 = vst [vmem:[#allocation172_spill] sm:$0xff] %v15920_v9  ;;  %v6180_v1 = vadd.f32 %v15839_v32, %v6179_v14  ;;  %v5156_v42 = vmax.f32 %v5155_v3, %v15931_v45  ;;  %v15935_v15 = vpop.f32.mrb[219].mxu0 }
 0xdc9   : > { %20446 = vst [vmem:[#allocation114_spill] sm:$0xff] %v15935_v15  ;;  %v5193_v14 = vmax.f32 %v5192_v30, %v15935_v15  ;;  %v15938_v39 = vpop.f32.mrb[220].mxu0 }
 0xdca   : > { %v6181_v44 = vadd.f32 %v15847_v62, %v6180_v1  ;;  %v6113_v1 = vadd.f32 %v6112_v6, %v6111_v17  ;;  %v5157_v62 = vrot.slane %v5156_v42, 4  ;;  %20447 = vst [vmem:[#allocation58_spill] sm:$0xff] %v15938_v39  ;;  %v15940_v58 = vpop.f32.mrb[221].mxu0 }
 0xdcb   : > { %20448 = vst [vmem:[#allocation175_spill] sm:$0xff] %v15940_v58  ;;  %v15942_v3 = vpop.f32.mrb[222].mxu0 }
 0xdcc   : > { %v6182_v18 = vadd.f32 %v15853_v50, %v6181_v44  ;;  %v5194_v44 = vrot.slane %v5193_v14, 4  ;;  %v5158_v35 = vmax.f32 %v5156_v42, %v5157_v62  ;;  %v6114_v57 = vrot.slane %v6113_v1, 1  ;;  %20449 = vst [vmem:[#allocation40_spill] sm:$0xff] %v15942_v3  ;;  %v15946_v30 = vpop.f32.mrb[223].mxu0 }
 0xdcd   : > { %20450 = vst [vmem:[#allocation83_spill] sm:$0xff] %v15946_v30 }
 0xdce   : > { %v6183_v63 = vadd.f32 %v15861_v21, %v6182_v18  ;;  %v5195_v9 = vmax.f32 %v5193_v14, %v5194_v44  ;;  %v5159_v2 = vrot.slane %v5158_v35, 2 }
 0xdd0   : > { %v6184_v32 = vrot.slane %v6183_v63, 4  ;;  %v5196_v18 = vrot.slane %v5195_v9, 2  ;;  %v5160_v17 = vmax.f32 %v5158_v35, %v5159_v2  ;;  %v20452_v2 = vld [vmem:[#allocation155_spill] sm:$0xff] }
 0xdd2   : > { %v6185_v50 = vadd.f32 %v6184_v32, %v6183_v63  ;;  %v6115_v32 = vadd.f32 %v6114_v57, %v6113_v1  ;;  %v5197_v62 = vmax.f32 %v5195_v9, %v5196_v18  ;;  %v5161_v14 = vrot.slane %v5160_v17, 1  ;;  %v20453_v57 = vld [vmem:[#allocation55_spill] sm:$0xff] }
 0xdd4   : > { %v6186_v28 = vrot.slane %v6185_v50, 2  ;;  %v5198_v44 = vrot.slane %v5197_v62, 1  ;;  %v15950_v15 = vmax.f32 %v5160_v17, %v5161_v14  ;;  %8388 = vrcp.f32 %v6115_v32  ;;  %v15952_v51 = vpop.f32.mrb[224].mxu0 }
 0xdd5   : > { %20451 = vst [vmem:[#allocation106_spill] sm:$0xff] %v15952_v51 }
 0xdd6   : > { %v6187_v21 = vadd.f32 %v6186_v28, %v6185_v50  ;;  %v5402_v50 = vsub.f32 %v20347_v43, %v15950_v15  ;;  %v5404_v35 = vsub.f32 %v20452_v2, %v15950_v15  ;;  %v5406_v9 = vsub.f32 %v20453_v57, %v15950_v15  ;;  %v15962_v28 = vpop.f32.mrb[225].mxu0 }
 0xdd7   : > { %v15960_v1 = vmax.f32 %v5197_v62, %v5198_v44  ;;  %20454 = vst [vmem:[#allocation52_spill] sm:$0xff] %v15962_v28  ;;  %v5408_v18 = vsub.f32 %v20360_v16, %v15950_v15  ;;  %v5412_v17 = vsub.f32 %v20369_v36, %v15950_v15  ;;  %v5414_v43 = vsub.f32 %v20373_v40, %v15950_v15  ;;  %v15972_v32 = vpop.f32.mrb[226].mxu0 }
 0xdd8   : > { %v6188_v42 = vrot.slane %v6187_v21, 1  ;;  %20455 = vst [vmem:[#allocation39_spill] sm:$0xff] %v15972_v32  ;;  %v5416_v62 = vsub.f32 %v20377_v7, %v15950_v15  ;;  %v5420_v16 = vsub.f32 %v15331_v29, %v15950_v15  ;;  %v15982_v14 = vpop.f32.mrb[227].mxu0  ;;  %v5424_v36 = vsub.f32 %v20395_v31, %v15950_v15 }
 0xdd9   : > { %20456 = vst [vmem:[#allocation68_spill] sm:$0xff] %v15982_v14  ;;  %v5426_v40 = vsub.f32 %v20403_v22, %v15950_v15  ;;  %v5428_v7 = vsub.f32 %v15560_v52, %v15950_v15  ;;  %v5432_v29 = vsub.f32 %v15608_v33, %v15950_v15  ;;  %v5436_v44 = vsub.f32 %v15678_v4, %v15950_v15 }
 0xdda   : > { %v6189_v47 = vadd.f32 %v6188_v42, %v6187_v21  ;;  %v5410_v21 = vsub.f32 %v20364_v55, %v15950_v15  ;;  %v5418_v42 = vsub.f32 %v20381_v61, %v15950_v15  ;;  %v5422_v55 = vsub.f32 %v15390_v38, %v15950_v15 }
 0xddb   : > { %v5430_v61 = vsub.f32 %v15589_v0, %v15950_v15  ;;  %v5434_v38 = vsub.f32 %v15657_v37, %v15950_v15  ;;  %v5438_v31 = vsub.f32 %v15727_v8, %v15950_v15  ;;  %v5440_v22 = vsub.f32 %v15746_v26, %v15950_v15 }
 0xddc   : > { %v5442_v52 = vsub.f32 %v15788_v48, %v15950_v15  ;;  %v5444_v0 = vsub.f32 %v15802_v13, %v15950_v15  ;;  %v5446_v33 = vsub.f32 %v15837_v54, %v15950_v15  ;;  %v5448_v37 = vsub.f32 %v15851_v5, %v15950_v15  ;;  %v16024_v2 = vpop.f32.mrb[228].mxu0  ;;  %v20459_v13 = vld [vmem:[#allocation160_spill] sm:$0xff] }
 0xddd   : > { %v5450_v4 = vsub.f32 %v15871_v23, %v15950_v15  ;;  %v5452_v8 = vsub.f32 %v15878_v56, %v15950_v15  ;;  %20457 = vst [vmem:[#allocation15_spill] sm:$0xff] %v16024_v2  ;;  %v5786_v56 = vmul.f32 1.442695, %v5402_v50  ;;  %v5790_v57 = vmul.f32 1.442695, %v5404_v35 }
 0xdde   : > { %v5794_v63 = vmul.f32 1.442695, %v5406_v9  ;;  %v16028_v6 = vpop.eup %8388  ;;  %8390 = vrcp.f32 %v6189_v47  ;;  %v5798_v48 = vmul.f32 1.442695, %v5408_v18  ;;  %v5802_v54 = vmul.f32 1.442695, %v5410_v21 }
 0xddf   : > { %20458 = vst [vmem:[#allocation42_spill] sm:$0xff] %v16028_v6  ;;  %8392 = vpow2.f32 %v5786_v56  ;;  %v5806_v14 = vmul.f32 1.442695, %v5412_v17  ;;  %v5810_v5 = vmul.f32 1.442695, %v5414_v43 }
 0xde0   : > { %8394 = vpow2.f32 %v5790_v57  ;;  %v5814_v2 = vmul.f32 1.442695, %v5416_v62  ;;  %v5818_v32 = vmul.f32 1.442695, %v5418_v42  ;;  %v5822_v23 = vmul.f32 1.442695, %v5420_v16 }
 0xde1   : > { %8396 = vpow2.f32 %v5794_v63  ;;  %v5826_v50 = vmul.f32 1.442695, %v5422_v55  ;;  %v5830_v35 = vmul.f32 1.442695, %v5424_v36  ;;  %v5834_v9 = vmul.f32 1.442695, %v5426_v40 }
 0xde2   : > { %8398 = vpow2.f32 %v5798_v48  ;;  %v5838_v6 = vmul.f32 1.442695, %v5428_v7  ;;  %v5842_v47 = vmul.f32 1.442695, %v5430_v61  ;;  %v5846_v18 = vmul.f32 1.442695, %v5432_v29 }
 0xde3   : > { %8400 = vpow2.f32 %v5802_v54  ;;  %v5850_v30 = vmul.f32 1.442695, %v5434_v38  ;;  %v5854_v26 = vmul.f32 1.442695, %v5436_v44  ;;  %v16032_v21 = vmul.f32 1.442695, %v5438_v31 }
 0xde4   : > { %8402 = vpow2.f32 %v5806_v14  ;;  %v16034_v17 = vmul.f32 1.442695, %v5440_v22  ;;  %v16036_v63 = vmul.f32 1.442695, %v5442_v52  ;;  %v16038_v43 = vmul.f32 1.442695, %v5444_v0 }
 0xde5   : > { %8404 = vpow2.f32 %v5810_v5  ;;  %v16040_v62 = vmul.f32 1.442695, %v5446_v33  ;;  %v16042_v42 = vmul.f32 1.442695, %v5448_v37  ;;  %v16044_v16 = vmul.f32 1.442695, %v5450_v4 }
 0xde6   : > { %8406 = vpow2.f32 %v5814_v2  ;;  %v16046_v55 = vmul.f32 1.442695, %v5452_v8  ;;  %v20460_v14 = vld [vmem:[#allocation123_spill] sm:$0xff]  ;;  %v16050_v40 = vpop.f32.mrb[229].mxu0  ;;  %v20463_v61 = vld [vmem:[#allocation184_spill] sm:$0xff]  ;;  %v20466_v0 = vld [vmem:[#allocation73_spill] sm:$0xff] }
 0xde7   : > { %8408 = vpow2.f32 %v5818_v32  ;;  %20461 = vst [vmem:[#allocation45_spill] sm:$0xff] %v16050_v40  ;;  %v16060_v44 = vpop.f32.mrb[230].mxu0  ;;  %v20469_v8 = vld [vmem:[#allocation88_spill] sm:$0xff]  ;;  %v20470_v54 = vld [vmem:[#allocation10_spill] sm:$0xff]  ;;  %v20471_v2 = vld [vmem:[#allocation13_spill] sm:$0xff] }
 0xde8   : > { %v16052_v7 = vpop.eup %8390  ;;  %8410 = vpow2.f32 %v5822_v23  ;;  %20464 = vst [vmem:[#allocation119_spill] sm:$0xff] %v16060_v44  ;;  %v16070_v37 = vpop.f32.mrb[231].mxu0  ;;  %v20474_v33 = vld [vmem:[#allocation18_spill] sm:$0xff]  ;;  %v20475_v52 = vld [vmem:[#allocation59_spill] sm:$0xff]  ;;  %v20478_v23 = vld [vmem:[#allocation77_spill] sm:$0xff] }
 0xde9   : > { %20462 = vst [vmem:[#allocation19_spill] sm:$0xff] %v16052_v7  ;;  %v16062_v31 = vpop.eup %8392  ;;  %8412 = vpow2.f32 %v5826_v50  ;;  %20467 = vst [vmem:[#allocation60_spill] sm:$0xff] %v16070_v37  ;;  %v16080_v56 = vpop.f32.mrb[232].mxu0  ;;  %v20479_v38 = vld [vmem:[#allocation66_spill] sm:$0xff]  ;;  %v20485_v29 = vld [vmem:[#allocation53_spill] sm:$0xff] }
 0xdea   : > { %20465 = vst [vmem:[#allocation136_spill] sm:$0xff] %v16062_v31  ;;  %v16072_v4 = vpop.eup %8394  ;;  %8414 = vpow2.f32 %v5830_v35  ;;  %20472 = vst [vmem:[#allocation151_spill] sm:$0xff] %v16080_v56  ;;  %v16090_v22 = vpop.f32.mrb[233].mxu0 }
 0xdeb   : > { %20468 = vst [vmem:[#allocation138_spill] sm:$0xff] %v16072_v4  ;;  %v16082_v57 = vpop.eup %8396  ;;  %8416 = vpow2.f32 %v5834_v9  ;;  %v6190_v50 = vadd.f32 %v16072_v4, %v16062_v31  ;;  %20476 = vst [vmem:[#allocation143_spill] sm:$0xff] %v16090_v22  ;;  %v16100_v36 = vpop.f32.mrb[234].mxu0 }
 0xdec   : > { %20473 = vst [vmem:[#allocation140_spill] sm:$0xff] %v16082_v57  ;;  %v16092_v5 = vpop.eup %8398  ;;  %8418 = vpow2.f32 %v5838_v6  ;;  %20480 = vst [vmem:[#allocation159_spill] sm:$0xff] %v16100_v36  ;;  %v20482_v6 = vld [vmem:[#allocation108_spill] sm:$0xff]  ;;  %v16109_v32 = vpop.f32.mrb[235].mxu0  ;;  %v20486_v36 = vld [vmem:[#allocation69_spill] sm:$0xff] }
 0xded   : > { %20477 = vst [vmem:[#allocation145_spill] sm:$0xff] %v16092_v5  ;;  %v16102_v35 = vpop.eup %8400  ;;  %8420 = vpow2.f32 %v5842_v47  ;;  %v6191_v48 = vadd.f32 %v16082_v57, %v6190_v50  ;;  %20483 = vst [vmem:[#allocation152_spill] sm:$0xff] %v16109_v32  ;;  %v20487_v47 = vld [vmem:[#allocation165_spill] sm:$0xff]  ;;  %v20490_v32 = vld [vmem:[#allocation135_spill] sm:$0xff]  ;;  %v20503_v50 = vsub.f32 %v15887_v59, %v15950_v15  ;;  %v20508_v59 = vsub.f32 %v15911_v24, %v15950_v15 }
 0xdee   : > { %20481 = vst [vmem:[#allocation148_spill] sm:$0xff] %v16102_v35  ;;  %v16111_v37 = vpop.eup %8402  ;;  %8422 = vpow2.f32 %v5846_v18  ;;  %v20513_v24 = vsub.f32 %v20459_v13, %v15960_v1  ;;  %v20518_v13 = vsub.f32 %v20365_v46, %v15960_v1  ;;  %v20523_v46 = vsub.f32 %v20466_v0, %v15960_v1 }
 0xdef   : > { %20484 = vst [vmem:[#allocation174_spill] sm:$0xff] %v16111_v37  ;;  %v16119_v40 = vpop.f32.mrb[236].mxu0  ;;  %v16121_v22 = vpop.eup %8404  ;;  %8424 = vpow2.f32 %v5850_v30  ;;  %v6192_v56 = vadd.f32 %v16092_v5, %v6191_v48 }
 0xdf0   : > { %20488 = vst [vmem:[#allocation112_spill] sm:$0xff] %v16119_v40  ;;  %20489 = vst [vmem:[#allocation41_spill] sm:$0xff] %v16121_v22  ;;  %v16128_v9 = vpop.f32.mrb[237].mxu0  ;;  %v16130_v4 = vpop.eup %8406  ;;  %8426 = vpow2.f32 %v5854_v26  ;;  %v5890_v26 = vmul.f32 1.442695, %v20503_v50 }
 0xdf1   : > { %20491 = vst [vmem:[#allocation36_spill] sm:$0xff] %v16128_v9  ;;  %20492 = vst [vmem:[#allocation137_spill] sm:$0xff] %v16130_v4  ;;  %v16138_v48 = vpop.f32.mrb[238].mxu0  ;;  %v16140_v57 = vpop.eup %8408  ;;  %8428 = vpow2.f32 %v16032_v21  ;;  %v6193_v18 = vadd.f32 %v16102_v35, %v6192_v56  ;;  %v20506_v35 = vsub.f32 %v15894_v27, %v15950_v15  ;;  %v5902_v50 = vmul.f32 1.442695, %v20508_v59 }
 0xdf2   : > { %20493 = vst [vmem:[#allocation115_spill] sm:$0xff] %v16138_v48  ;;  %20494 = vst [vmem:[#allocation110_spill] sm:$0xff] %v16140_v57  ;;  %v16148_v5 = vpop.f32.mrb[239].mxu0  ;;  %v16150_v44 = vpop.eup %8410  ;;  %8430 = vpow2.f32 %v16034_v17  ;;  %v20510_v9 = vsub.f32 %v15924_v11, %v15950_v15  ;;  %v20511_v27 = vsub.f32 %v15931_v45, %v15950_v15  ;;  %v20514_v11 = vsub.f32 %v20460_v14, %v15960_v1 }
 0xdf3   : > { %20497 = vst [vmem:[#allocation149_spill] sm:$0xff] %v16148_v5  ;;  %20498 = vst [vmem:[#allocation139_spill] sm:$0xff] %v16150_v44  ;;  %v16159_v7 = vpop.eup %8412  ;;  %8432 = vpow2.f32 %v16036_v63  ;;  %v6194_v40 = vadd.f32 %v16111_v37, %v6193_v18  ;;  %v5894_v21 = vmul.f32 1.442695, %v20506_v35  ;;  %v20507_v63 = vsub.f32 %v15904_v20, %v15950_v15 }
 0xdf4   : > { %20502 = vst [vmem:[#allocation153_spill] sm:$0xff] %v16159_v7  ;;  %v16168_v48 = vpop.eup %8414  ;;  %8434 = vpow2.f32 %v16038_v43  ;;  %v5906_v43 = vmul.f32 1.442695, %v20510_v9  ;;  %v5910_v35 = vmul.f32 1.442695, %v20511_v27  ;;  %v20515_v45 = vsub.f32 %v20463_v61, %v15960_v1 }
 0xdf5   : > { %20505 = vst [vmem:[#allocation142_spill] sm:$0xff] %v16168_v48  ;;  %v5898_v56 = vmul.f32 1.442695, %v20507_v63  ;;  %v16180_v18 = vpop.eup %8416  ;;  %8436 = vpow2.f32 %v16040_v62  ;;  %v6195_v17 = vadd.f32 %v16121_v22, %v6194_v40  ;;  %v5788_v62 = vmul.f32 1.442695, %v20513_v24  ;;  %v20581_v22 = vld [vmem:[#allocation119_spill] sm:$0xff] }
 0xdf6   : > { %20509 = vst [vmem:[#allocation120_spill] sm:$0xff] %v16180_v18  ;;  %v16192_v63 = vpop.eup %8418  ;;  %8438 = vpow2.f32 %v16042_v42  ;;  %v5792_v9 = vmul.f32 1.442695, %v20514_v11  ;;  %v5796_v15 = vmul.f32 1.442695, %v20515_v45  ;;  %v20517_v42 = vsub.f32 %v20361_v49, %v15960_v1 }
 0xdf7   : > { %v16190_v20 = vpop.f32.mrb[240].mxu0  ;;  %20512 = vst [vmem:[#allocation157_spill] sm:$0xff] %v16192_v63  ;;  %v16204_v59 = vpop.eup %8420  ;;  %8440 = vpow2.f32 %v16044_v16  ;;  %v6196_v40 = vadd.f32 %v16130_v4, %v6195_v17  ;;  %v16214_v24 = vmul.f32 1.442695, %v20518_v13  ;;  %v20521_v16 = vsub.f32 %v20370_v25, %v15960_v1 }
 0xdf8   : > { %20516 = vst [vmem:[#allocation168_spill] sm:$0xff] %v16204_v59  ;;  %v5800_v27 = vmul.f32 1.442695, %v20517_v42  ;;  %v16216_v14 = vpop.f32.mrb[241].mxu0  ;;  %v16218_v11 = vpop.eup %8422  ;;  %8442 = vpow2.f32 %v16046_v55  ;;  %v20522_v49 = vsub.f32 %v20374_v41, %v15960_v1  ;;  %v16234_v45 = vmul.f32 1.442695, %v20523_v46 }
 0xdf9   : > { %20519 = vst [vmem:[#allocation116_spill] sm:$0xff] %v16216_v14  ;;  %20520 = vst [vmem:[#allocation28_spill] sm:$0xff] %v16218_v11  ;;  %v16224_v61 = vmul.f32 1.442695, %v20521_v16  ;;  %v16236_v42 = vpop.eup %8424  ;;  %8444 = vpow2.f32 %v5890_v26  ;;  %v6197_v55 = vadd.f32 %v16140_v57, %v6196_v40  ;;  %v20525_v25 = vsub.f32 %v20469_v8, %v15960_v1  ;;  %v20582_v57 = vld [vmem:[#allocation60_spill] sm:$0xff] }
 0xdfa   : > { %v16229_v17 = vmul.f32 1.442695, %v20522_v49  ;;  %20524 = vst [vmem:[#allocation150_spill] sm:$0xff] %v16236_v42  ;;  %v20526_v41 = vsub.f32 %v20470_v54, %v15960_v1  ;;  %v16249_v49 = vpop.f32.mrb[242].mxu0  ;;  %v16251_v0 = vpop.eup %8426  ;;  %8446 = vpow2.f32 %v5894_v21  ;;  %v20528_v26 = vsub.f32 %v20471_v2, %v15960_v1 }
 0xdfb   : > { %v16242_v13 = vmul.f32 1.442695, %v20525_v25  ;;  %20527 = vst [vmem:[#allocation171_spill] sm:$0xff] %v16251_v0  ;;  %v20529_v8 = vsub.f32 %v20474_v33, %v15960_v1  ;;  %v20530_v54 = vsub.f32 %v20475_v52, %v15960_v1  ;;  %8448 = vpow2.f32 %v5898_v56  ;;  %v16281_v31 = vpop.f32.mrb[243].mxu0 }
 0xdfc   : > { %v16247_v16 = vmul.f32 1.442695, %v20526_v41  ;;  %v16256_v46 = vmul.f32 1.442695, %v20528_v26  ;;  %v16268_v41 = vpop.eup %8428  ;;  %v6198_v21 = vadd.f32 %v16150_v44, %v6197_v55  ;;  %v20532_v2 = vsub.f32 %v20478_v23, %v15960_v1  ;;  %20534 = vst [vmem:[#allocation162_spill] sm:$0xff] %v16281_v31 }
 0xdfd   : > { %v16261_v40 = vmul.f32 1.442695, %v20529_v8  ;;  %v16266_v25 = vmul.f32 1.442695, %v20530_v54  ;;  %20531 = vst [vmem:[#allocation161_spill] sm:$0xff] %v16268_v41  ;;  %v20533_v33 = vsub.f32 %v20479_v38, %v15960_v1  ;;  %v16283_v52 = vpop.eup %8430  ;;  %8450 = vpow2.f32 %v5902_v50 }
 0xdfe   : > { %v16274_v26 = vmul.f32 1.442695, %v20532_v2  ;;  %20535 = vst [vmem:[#allocation179_spill] sm:$0xff] %v16283_v52  ;;  %v20536_v56 = vsub.f32 %v15616_v60, %v15960_v1  ;;  %v20537_v23 = vsub.f32 %v15666_v19, %v15960_v1  ;;  %v20538_v38 = vsub.f32 %v20482_v6, %v15960_v1 }
 0xdff   : > { %v16279_v8 = vmul.f32 1.442695, %v20533_v33  ;;  %v16300_v33 = vpop.eup %8432  ;;  %8452 = vpow2.f32 %v5906_v43  ;;  %v6199_v50 = vadd.f32 %v16159_v7, %v6198_v21  ;;  %v20540_v60 = vsub.f32 %v20485_v29, %v15960_v1  ;;  %v20590_v7 = vld [vmem:[#allocation152_spill] sm:$0xff] }
 0xe00   : > { %v16288_v54 = vmul.f32 1.442695, %v20536_v56  ;;  %v16293_v55 = vmul.f32 1.442695, %v20537_v23  ;;  %v16298_v2 = vmul.f32 1.442695, %v20538_v38  ;;  %v20541_v19 = vsub.f32 %v20486_v36, %v15960_v1  ;;  %v16315_v6 = vpop.eup %8434 }
 0xe01   : > { %20539 = vst [vmem:[#allocation131_spill] sm:$0xff] %v16300_v33  ;;  %v16306_v56 = vmul.f32 1.442695, %v20540_v60  ;;  %v16313_v30 = vpop.f32.mrb[244].mxu0  ;;  %20543 = vst [vmem:[#allocation86_spill] sm:$0xff] %v16315_v6  ;;  %8454 = vpow2.f32 %v5910_v35  ;;  %v20544_v43 = vsub.f32 %v20487_v47, %v15960_v1  ;;  %v20545_v29 = vsub.f32 %v20490_v32, %v15960_v1 }
 0xe02   : > { %v16311_v23 = vmul.f32 1.442695, %v20541_v19  ;;  %20542 = vst [vmem:[#allocation89_spill] sm:$0xff] %v16313_v30  ;;  %v20546_v36 = vsub.f32 %v15843_v34, %v15960_v1  ;;  %v16332_v19 = vpop.eup %8436  ;;  %v6200_v30 = vadd.f32 %v16168_v48, %v6199_v50  ;;  %8456 = vpow2.f32 %v5788_v62 }
 0xe03   : > { %v16320_v38 = vmul.f32 1.442695, %v20544_v43  ;;  %v16325_v21 = vmul.f32 1.442695, %v20545_v29  ;;  %20548 = vst [vmem:[#allocation96_spill] sm:$0xff] %v16332_v19  ;;  %v20549_v47 = vsub.f32 %v15857_v12, %v15960_v1  ;;  %v20551_v32 = vsub.f32 %v15875_v53, %v15960_v1  ;;  %v16345_v29 = vpop.f32.mrb[245].mxu0  ;;  %v16347_v34 = vpop.eup %8438 }
 0xe04   : > { %v16330_v60 = vmul.f32 1.442695, %v20546_v36  ;;  %20553 = vst [vmem:[#allocation21_spill] sm:$0xff] %v16345_v29  ;;  %20554 = vst [vmem:[#allocation70_spill] sm:$0xff] %v16347_v34  ;;  %8458 = vpow2.f32 %v5792_v9  ;;  %v20555_v36 = vsub.f32 %v15882_v10, %v15960_v1  ;;  %v20557_v12 = vmax.f32 %v15938_v39, %v15942_v3  ;;  %v20558_v53 = vld [vmem:[#allocation83_spill] sm:$0xff] }
 0xe05   : > { %v16338_v35 = vmul.f32 1.442695, %v20549_v47  ;;  %v16343_v43 = vmul.f32 1.442695, %v20551_v32  ;;  %v20559_v47 = vmax.f32 %v15940_v58, %v20558_v53  ;;  %v6201_v9 = vadd.f32 %v16180_v18, %v6200_v30  ;;  %v20570_v53 = vld [vmem:[#allocation68_spill] sm:$0xff]  ;;  %v20585_v18 = vld [vmem:[#allocation151_spill] sm:$0xff] }
 0xe06   : > { %20547 = vst [vmem:[#allocation94_spill] sm:$0xff] %v16330_v60  ;;  %v16352_v50 = vmul.f32 1.442695, %v20555_v36  ;;  %v5201_v62 = vmax.f32 %v20557_v12, %v15952_v51  ;;  %8460 = vpow2.f32 %v5796_v15  ;;  %v20563_v36 = vld [vmem:[#allocation42_spill] sm:$0xff]  ;;  %v20577_v12 = vld [vmem:[#allocation45_spill] sm:$0xff] }
 0xe07   : > { %20550 = vst [vmem:[#allocation124_spill] sm:$0xff] %v16338_v35  ;;  %20552 = vst [vmem:[#allocation80_spill] sm:$0xff] %v16343_v43  ;;  %v5238_v32 = vmax.f32 %v20559_v47, %v15962_v28  ;;  %v16362_v43 = vpop.f32.mrb[246].mxu0  ;;  %v16364_v35 = vpop.eup %8440  ;;  %8462 = vpow2.f32 %v5800_v27  ;;  %v20569_v47 = vld [vmem:[#allocation39_spill] sm:$0xff] }
 0xe08   : > { %20556 = vst [vmem:[#allocation182_spill] sm:$0xff] %v16352_v50  ;;  %20560 = vst [vmem:[#allocation141_spill] sm:$0xff] %v16362_v43  ;;  %v16367_v10 = vpop.f32.mrb[247].mxu0  ;;  %v20564_v50 = vld [vmem:[#allocation19_spill] sm:$0xff]  ;;  %v16376_v39 = vpop.eup %8442  ;;  %v5202_v28 = vmax.f32 %v5201_v62, %v20569_v47  ;;  %8464 = vpow2.f32 %v16214_v24 }
 0xe09   : > { %20561 = vst [vmem:[#allocation177_spill] sm:$0xff] %v16364_v35  ;;  %20562 = vst [vmem:[#allocation170_spill] sm:$0xff] %v16367_v10  ;;  %v16372_v60 = vsel %vm2903_vm1, %v20564_v50, %v20563_v36  ;;  %v5239_v58 = vmax.f32 %v5238_v32, %v20570_v53  ;;  %v16382_v29 = vpop.eup %8444  ;;  %v6202_v10 = vadd.f32 %v16192_v63, %v6201_v9  ;;  %8466 = vpow2.f32 %v16224_v61  ;;  %v20576_v62 = vld [vmem:[#allocation15_spill] sm:$0xff]  ;;  %v16395_v43 = vpop.f32.mrb[248].mxu0 }
 0xe0a   : > { %20565 = vst [vmem:[#allocation93_spill] sm:$0xff] %v16372_v60  ;;  %20568 = vst [vmem:[#allocation95_spill] sm:$0xff] %v16376_v39  ;;  %v16390_v27 = vpop.eup %8446  ;;  %v5203_v32 = vmax.f32 %v5202_v28, %v20576_v62  ;;  %8468 = vpow2.f32 %v16229_v17  ;;  %v16403_v3 = vpop.f32.mrb[249].mxu0 }
 0xe0b   : > { %20573 = vst [vmem:[#allocation188_spill] sm:$0xff] %v16382_v29  ;;  %20575 = vst [vmem:[#allocation190_spill] sm:$0xff] %v16390_v27  ;;  %v5240_v15 = vmax.f32 %v5239_v58, %v20577_v12  ;;  %v16399_v24 = vpop.eup %8448  ;;  %v6203_v36 = vadd.f32 %v16204_v59, %v6202_v10  ;;  %8470 = vpow2.f32 %v16234_v45  ;;  %v16414_v4 = vpop.f32.mrb[250].mxu0  ;;  %v20586_v59 = vld [vmem:[#allocation143_spill] sm:$0xff] }
 0xe0c   : > { %20578 = vst [vmem:[#allocation7_spill] sm:$0xff] %v16399_v24  ;;  %20579 = vst [vmem:[#allocation8_spill] sm:$0xff] %v16403_v3  ;;  %v16409_v58 = vpop.eup %8450  ;;  %v5204_v9 = vmax.f32 %v5203_v32, %v20581_v22  ;;  %8472 = vpow2.f32 %v16242_v13  ;;  %v16422_v28 = vpop.f32.mrb[251].mxu0 }
 0xe0d   : > { %20580 = vst [vmem:[#allocation75_spill] sm:$0xff] %v16409_v58  ;;  %v5241_v44 = vmax.f32 %v5240_v15, %v20582_v57  ;;  %v16418_v10 = vpop.eup %8452  ;;  %v6204_v61 = vadd.f32 %v16218_v11, %v6203_v36  ;;  %8474 = vpow2.f32 %v16247_v16 }
 0xe0e   : > { %20583 = vst [vmem:[#allocation81_spill] sm:$0xff] %v16418_v10  ;;  %v16428_v15 = vpop.eup %8454  ;;  %v5205_v17 = vmax.f32 %v5204_v9, %v20585_v18  ;;  %8476 = vpow2.f32 %v16256_v46 }
 0xe0f   : > { %20584 = vst [vmem:[#allocation125_spill] sm:$0xff] %v16428_v15  ;;  %v5242_v63 = vmax.f32 %v5241_v44, %v20586_v59  ;;  %v16435_v13 = vpop.eup %8456  ;;  %v6205_v11 = vadd.f32 %v16236_v42, %v6204_v61  ;;  %8478 = vpow2.f32 %v16261_v40  ;;  %v20589_v44 = vld [vmem:[#allocation159_spill] sm:$0xff]  ;;  %v20594_v42 = vld [vmem:[#allocation36_spill] sm:$0xff] }
 0xe10   : > { %20587 = vst [vmem:[#allocation128_spill] sm:$0xff] %v16435_v13  ;;  %v16443_v16 = vpop.eup %8458  ;;  %v5206_v9 = vmax.f32 %v5205_v17, %v20589_v44  ;;  %8480 = vpow2.f32 %v16266_v25  ;;  %v16463_v50 = vpop.f32.mrb[252].mxu0 }
 0xe11   : > { %20588 = vst [vmem:[#allocation32_spill] sm:$0xff] %v16443_v16  ;;  %v5243_v36 = vmax.f32 %v5242_v63, %v20590_v7  ;;  %v16450_v61 = vpop.eup %8460  ;;  %v6206_v46 = vadd.f32 %v16251_v0, %v6205_v11  ;;  %v6227_v45 = vadd.f32 %v16443_v16, %v16435_v13  ;;  %8482 = vpow2.f32 %v16274_v26  ;;  %v20593_v63 = vld [vmem:[#allocation112_spill] sm:$0xff]  ;;  %v16472_v37 = vpop.f32.mrb[253].mxu0 }
 0xe12   : > { %20591 = vst [vmem:[#allocation102_spill] sm:$0xff] %v16450_v61  ;;  %v16458_v40 = vpop.eup %8462  ;;  %v5207_v17 = vmax.f32 %v5206_v9, %v20593_v63  ;;  %8484 = vpow2.f32 %v16279_v8  ;;  %v16481_v51 = vpop.f32.mrb[254].mxu0 }
 0xe13   : > { %20592 = vst [vmem:[#allocation14_spill] sm:$0xff] %v16458_v40  ;;  %v5244_v48 = vmax.f32 %v5243_v36, %v20594_v42  ;;  %v16467_v25 = vpop.eup %8464  ;;  %v6207_v0 = vadd.f32 %v16268_v41, %v6206_v46  ;;  %v6228_v32 = vadd.f32 %v16450_v61, %v6227_v45  ;;  %8486 = vpow2.f32 %v16288_v54  ;;  %v20597_v36 = vld [vmem:[#allocation115_spill] sm:$0xff]  ;;  %v16490_v41 = vpop.f32.mrb[255].mxu0 }
 0xe14   : > { %20595 = vst [vmem:[#allocation111_spill] sm:$0xff] %v16467_v25  ;;  %v16476_v9 = vpop.eup %8466  ;;  %v5208_v30 = vmax.f32 %v5207_v17, %v20597_v36  ;;  %8488 = vpow2.f32 %v16293_v55 }
 0xe15   : > { %20596 = vst [vmem:[#allocation25_spill] sm:$0xff] %v16476_v9  ;;  %v5245_v11 = vmax.f32 %v5244_v48, %v16148_v5  ;;  %v16485_v46 = vpop.eup %8468  ;;  %v6208_v45 = vadd.f32 %v16283_v52, %v6207_v0  ;;  %v6229_v26 = vadd.f32 %v16458_v40, %v6228_v32  ;;  %8490 = vpow2.f32 %v16298_v2  ;;  %v20600_v48 = vld [vmem:[#allocation113_spill] sm:$0xff] }
 0xe16   : > { %20598 = vst [vmem:[#allocation54_spill] sm:$0xff] %v16485_v46  ;;  %v16494_v17 = vpop.eup %8470  ;;  %v20601_v8 = vsub.f32 %v20600_v48, %v15960_v1  ;;  %v5209_v13 = vmax.f32 %v5208_v30, %v16190_v20  ;;  %8492 = vpow2.f32 %v16306_v56 }
 0xe17   : > { %20599 = vst [vmem:[#allocation109_spill] sm:$0xff] %v16494_v17  ;;  %v5246_v0 = vmax.f32 %v5245_v11, %v16216_v14  ;;  %v16502_v55 = vpop.eup %8472  ;;  %v6209_v32 = vadd.f32 %v16300_v33, %v6208_v45  ;;  %v6230_v54 = vadd.f32 %v16467_v25, %v6229_v26  ;;  %8494 = vpow2.f32 %v16311_v23  ;;  %v20611_v25 = vld [vmem:[#allocation21_spill] sm:$0xff]  ;;  %v20621_v14 = vld [vmem:[#allocation80_spill] sm:$0xff] }
 0xe18   : > { %v5892_v61 = vmul.f32 1.442695, %v20601_v8  ;;  %20602 = vst [vmem:[#allocation127_spill] sm:$0xff] %v16502_v55  ;;  %v16509_v2 = vpop.eup %8474  ;;  %v20604_v8 = vld [vmem:[#allocation117_spill] sm:$0xff]  ;;  %v5210_v11 = vmax.f32 %v5209_v13, %v16249_v49  ;;  %8496 = vpow2.f32 %v16320_v38 }
 0xe19   : > { %20603 = vst [vmem:[#allocation17_spill] sm:$0xff] %v16509_v2  ;;  %v20605_v30 = vsub.f32 %v20604_v8, %v15960_v1  ;;  %v5247_v40 = vmax.f32 %v5246_v0, %v16281_v31  ;;  %v16517_v45 = vpop.eup %8476  ;;  %v6210_v56 = vadd.f32 %v16315_v6, %v6209_v32  ;;  %v6231_v26 = vadd.f32 %v16476_v9, %v6230_v54  ;;  %v20608_v8 = vld [vmem:[#allocation27_spill] sm:$0xff]  ;;  %v20610_v0 = vld [vmem:[#allocation89_spill] sm:$0xff]  ;;  %v16532_v32 = vpop.f32.mrb[0].mxu0  ;;  %v20613_v6 = vld [vmem:[#allocation94_spill] sm:$0xff] }
 0xe1a   : > { %20606 = vst [vmem:[#allocation118_spill] sm:$0xff] %v16517_v45  ;;  %v16524_v23 = vpop.eup %8478  ;;  %8498 = vpow2.f32 %v16325_v21  ;;  %v20609_v13 = vsub.f32 %v20608_v8, %v15960_v1  ;;  %v5211_v33 = vmax.f32 %v5210_v11, %v20610_v0  ;;  %v16539_v9 = vpop.f32.mrb[1].mxu0  ;;  %v20615_v11 = vld [vmem:[#allocation124_spill] sm:$0xff] }
 0xe1b   : > { %v5896_v48 = vmul.f32 1.442695, %v20605_v30  ;;  %20607 = vst [vmem:[#allocation146_spill] sm:$0xff] %v16524_v23  ;;  %v5248_v16 = vmax.f32 %v5247_v40, %v20611_v25  ;;  %v16534_v38 = vpop.eup %8480  ;;  %v6211_v54 = vadd.f32 %v16332_v19, %v6210_v56  ;;  %8500 = vpow2.f32 %v20613_v6  ;;  %v20616_v40 = vld [vmem:[#allocation158_spill] sm:$0xff]  ;;  %v20618_v25 = vld [vmem:[#allocation141_spill] sm:$0xff]  ;;  %v16551_v6 = vpop.f32.mrb[2].mxu0 }
 0xe1c   : > { %v5900_v30 = vmul.f32 1.442695, %v20609_v13  ;;  %20612 = vst [vmem:[#allocation126_spill] sm:$0xff] %v16534_v38  ;;  %v6232_v52 = vadd.f32 %v16485_v46, %v6231_v26  ;;  %v16543_v8 = vpop.eup %8482  ;;  %8502 = vpow2.f32 %v20615_v11  ;;  %v20617_v13 = vsub.f32 %v20616_v40, %v15960_v1  ;;  %v20619_v56 = vld [vmem:[#allocation170_spill] sm:$0xff]  ;;  %v16558_v5 = vpop.f32.mrb[3].mxu0 }
 0xe1d   : > { %20614 = vst [vmem:[#allocation97_spill] sm:$0xff] %v16543_v8  ;;  %v5212_v31 = vmax.f32 %v5211_v33, %v20618_v25  ;;  %v5249_v19 = vmax.f32 %v5248_v16, %v20619_v56  ;;  %v16553_v26 = vpop.eup %8484  ;;  %v6212_v46 = vadd.f32 %v16347_v34, %v6211_v54  ;;  %8504 = vpow2.f32 %v20621_v14  ;;  %v20623_v33 = vld [vmem:[#allocation182_spill] sm:$0xff]  ;;  %v20624_v16 = vld [vmem:[#allocation12_spill] sm:$0xff] }
 0xe1e   : > { %v5904_v60 = vmul.f32 1.442695, %v20617_v13  ;;  %20620 = vst [vmem:[#allocation155_spill] sm:$0xff] %v16553_v26  ;;  %v6233_v21 = vadd.f32 %v16494_v17, %v6232_v52  ;;  %v16562_v40 = vpop.eup %8486  ;;  %8506 = vpow2.f32 %v20623_v33  ;;  %v20625_v13 = vsub.f32 %v20624_v16, %v15960_v1  ;;  %v20628_v33 = vld [vmem:[#allocation114_spill] sm:$0xff] }
 0xe1f   : > { %20622 = vst [vmem:[#allocation55_spill] sm:$0xff] %v16562_v40  ;;  %v5213_v42 = vmax.f32 %v5212_v31, %v16395_v43  ;;  %v5250_v54 = vmax.f32 %v5249_v19, %v16403_v3  ;;  %v16570_v14 = vpop.eup %8488  ;;  %v6213_v52 = vadd.f32 %v16364_v35, %v6212_v46  ;;  %8508 = vpow2.f32 %v5892_v61 }
 0xe20   : > { %v5908_v56 = vmul.f32 1.442695, %v20625_v13  ;;  %20626 = vst [vmem:[#allocation160_spill] sm:$0xff] %v16570_v14  ;;  %v6234_v34 = vadd.f32 %v16502_v55, %v6233_v21  ;;  %v16576_v17 = vpop.eup %8490  ;;  %8510 = vpow2.f32 %v5896_v48  ;;  %v20629_v16 = vsub.f32 %v20628_v33, %v15960_v1 }
 0xe21   : > { %20627 = vst [vmem:[#allocation123_spill] sm:$0xff] %v16576_v17  ;;  %v5214_v31 = vmax.f32 %v5213_v42, %v16414_v4  ;;  %v5251_v19 = vmax.f32 %v5250_v54, %v16422_v28  ;;  %v16583_v3 = vpop.eup %8492  ;;  %v6214_v61 = vadd.f32 %v16376_v39, %v6213_v52  ;;  %8512 = vpow2.f32 %v5900_v30  ;;  %v16593_v42 = vpop.f32.mrb[4].mxu0 }
 0xe22   : > { %v5912_v13 = vmul.f32 1.442695, %v20629_v16  ;;  %20630 = vst [vmem:[#allocation184_spill] sm:$0xff] %v16583_v3  ;;  %v6235_v46 = vadd.f32 %v16509_v2, %v6234_v34  ;;  %v16589_v11 = vpop.eup %8494  ;;  %8514 = vpow2.f32 %v5904_v60  ;;  %v16599_v34 = vpop.f32.mrb[5].mxu0 }
 0xe23   : > { %20631 = vst [vmem:[#allocation73_spill] sm:$0xff] %v16589_v11  ;;  %v5215_v1 = vmax.f32 %v5214_v31, %v16463_v50  ;;  %v5252_v48 = vmax.f32 %v5251_v19, %v16472_v37  ;;  %v16595_v54 = vpop.eup %8496  ;;  %v6215_v33 = vadd.f32 %v16382_v29, %v6214_v61  ;;  %8516 = vpow2.f32 %v5908_v56  ;;  %20633 = vst [vmem:[#allocation10_spill] sm:$0xff] %v16599_v34  ;;  %v16607_v19 = vpop.f32.mrb[6].mxu0 }
 0xe24   : > { %20632 = vst [vmem:[#allocation88_spill] sm:$0xff] %v16595_v54  ;;  %v6236_v30 = vadd.f32 %v16517_v45, %v6235_v46  ;;  %v16603_v16 = vpop.eup %8498  ;;  %8518 = vpow2.f32 %v5912_v13  ;;  %v16613_v46 = vpop.f32.mrb[7].mxu0 }
 0xe25   : > { %20634 = vst [vmem:[#allocation13_spill] sm:$0xff] %v16603_v16  ;;  %v5216_v60 = vmax.f32 %v5215_v1, %v16481_v51  ;;  %v5253_v31 = vmax.f32 %v5252_v48, %v16490_v41  ;;  %v16609_v21 = vpop.eup %8500  ;;  %v6216_v56 = vadd.f32 %v16390_v27, %v6215_v33  ;;  %20636 = vst [vmem:[#allocation59_spill] sm:$0xff] %v16613_v46 }
 0xe26   : > { %20635 = vst [vmem:[#allocation18_spill] sm:$0xff] %v16609_v21  ;;  %v6237_v61 = vadd.f32 %v16524_v23, %v6236_v30  ;;  %v16617_v29 = vpop.eup %8502 }
 0xe27   : > { %20637 = vst [vmem:[#allocation77_spill] sm:$0xff] %v16617_v29  ;;  %v5217_v13 = vmax.f32 %v5216_v60, %v16532_v32  ;;  %v5254_v1 = vmax.f32 %v5253_v31, %v16539_v9  ;;  %v16621_v48 = vpop.eup %8504  ;;  %v6217_v35 = vadd.f32 %v16399_v24, %v6216_v56 }
 0xe28   : > { %20638 = vst [vmem:[#allocation66_spill] sm:$0xff] %v16621_v48  ;;  %v6238_v39 = vadd.f32 %v16534_v38, %v6237_v61  ;;  %v16627_v30 = vpop.eup %8506  ;;  %v16641_v38 = vpop.f32.mrb[8].mxu0 }
 0xe29   : > { %20639 = vst [vmem:[#allocation108_spill] sm:$0xff] %v16627_v30  ;;  %v5218_v27 = vmax.f32 %v5217_v13, %v16551_v6  ;;  %v5255_v52 = vmax.f32 %v5254_v1, %v16558_v5  ;;  %v16631_v45 = vpop.eup %8508  ;;  %v6218_v60 = vadd.f32 %v16409_v58, %v6217_v35  ;;  %v16647_v35 = vpop.f32.mrb[9].mxu0 }
 0xe2a   : > { %20640 = vst [vmem:[#allocation53_spill] sm:$0xff] %v16631_v45  ;;  %v6239_v31 = vadd.f32 %v16543_v8, %v6238_v39  ;;  %v16637_v24 = vpop.eup %8510  ;;  %20643 = vst [vmem:[#allocation135_spill] sm:$0xff] %v16647_v35 }
 0xe2b   : > { %20641 = vst [vmem:[#allocation69_spill] sm:$0xff] %v16637_v24  ;;  %v5219_v61 = vmax.f32 %v5218_v27, %v16593_v42  ;;  %v5256_v33 = vmax.f32 %v5255_v52, %v16599_v34  ;;  %v16643_v13 = vpop.eup %8512  ;;  %v6219_v1 = vadd.f32 %v16418_v10, %v6218_v60  ;;  %v16655_v52 = vpop.f32.mrb[10].mxu0 }
 0xe2c   : > { %20642 = vst [vmem:[#allocation165_spill] sm:$0xff] %v16643_v13  ;;  %v6240_v23 = vadd.f32 %v16553_v26, %v6239_v31  ;;  %v16651_v56 = vpop.eup %8514  ;;  %v16661_v31 = vpop.f32.mrb[11].mxu0 }
 0xe2d   : > { %20644 = vst [vmem:[#allocation42_spill] sm:$0xff] %v16651_v56  ;;  %v5220_v58 = vmax.f32 %v5219_v61, %v16607_v19  ;;  %v5257_v27 = vmax.f32 %v5256_v33, %v16613_v46  ;;  %v16657_v8 = vpop.eup %8516  ;;  %v6220_v55 = vadd.f32 %v16428_v15, %v6219_v1 }
 0xe2e   : > { %20645 = vst [vmem:[#allocation19_spill] sm:$0xff] %v16657_v8  ;;  %v6241_v60 = vadd.f32 %v16562_v40, %v6240_v23  ;;  %v16665_v39 = vpop.eup %8518 }
 0xe2f   : > { %20646 = vst [vmem:[#allocation39_spill] sm:$0xff] %v16665_v39  ;;  %v5221_v26 = vmax.f32 %v5220_v58, %v16641_v38  ;;  %v5258_v61 = vmax.f32 %v5257_v27, %v16647_v35  ;;  %v6221_v33 = vrot.slane %v6220_v55, 4 }
 0xe30   : > { %v6242_v2 = vadd.f32 %v16570_v14, %v6241_v60  ;;  %v16675_v10 = vpop.f32.mrb[12].mxu0 }
 0xe31   : > { %v5222_v1 = vmax.f32 %v5221_v26, %v16655_v52  ;;  %v5259_v23 = vmax.f32 %v5258_v61, %v16661_v31  ;;  %v6222_v15 = vadd.f32 %v6221_v33, %v6220_v55  ;;  %v16679_v35 = vpop.f32.mrb[13].mxu0 }
 0xe32   : > { %v6243_v40 = vadd.f32 %v16576_v17, %v6242_v2  ;;  %v16682_v14 = vpop.f32.mrb[14].mxu0 }
 0xe33   : > { %v6223_v34 = vrot.slane %v6222_v15, 2  ;;  %v5223_v27 = vmax.f32 %v5222_v1, %v16675_v10  ;;  %v5260_v60 = vmax.f32 %v5259_v23, %v16679_v35  ;;  %v16686_v61 = vpop.f32.mrb[15].mxu0 }
 0xe34   : > { %v6244_v58 = vadd.f32 %v16583_v3, %v6243_v40  ;;  %20647 = vst [vmem:[#allocation68_spill] sm:$0xff] %v16686_v61 }
 0xe35   : > { %v6224_v46 = vadd.f32 %v6223_v34, %v6222_v15  ;;  %v5224_v55 = vmax.f32 %v5223_v27, %v16682_v14  ;;  %v5261_v2 = vmax.f32 %v5260_v60, %v16686_v61 }
 0xe36   : > { %v6245_v26 = vadd.f32 %v16589_v11, %v6244_v58 }
 0xe37   : > { %v6225_v33 = vrot.slane %v6224_v46, 1 }
 0xe38   : > { %v6246_v40 = vadd.f32 %v16595_v54, %v6245_v26  ;;  %v16691_v17 = vpop.f32.mrb[16].mxu0 }
 0xe39   : > { %v6226_v3 = vadd.f32 %v6225_v33, %v6224_v46  ;;  %v5225_v15 = vmax.f32 %v5224_v55, %v16691_v17  ;;  %v16695_v34 = vpop.f32.mrb[17].mxu0 }
 0xe3a   : > { %v6247_v1 = vadd.f32 %v16603_v16, %v6246_v40  ;;  %20648 = vst [vmem:[#allocation15_spill] sm:$0xff] %v16695_v34  ;;  %v5262_v58 = vmax.f32 %v5261_v2, %v16695_v34  ;;  %v16698_v27 = vpop.f32.mrb[18].mxu0 }
 0xe3b   : > { %8520 = vrcp.f32 %v6226_v3  ;;  %v5226_v26 = vmax.f32 %v5225_v15, %v16698_v27  ;;  %v16702_v46 = vpop.f32.mrb[19].mxu0 }
 0xe3c   : > { %v6248_v23 = vadd.f32 %v16609_v21, %v6247_v1  ;;  %20649 = vst [vmem:[#allocation45_spill] sm:$0xff] %v16702_v46  ;;  %v5263_v33 = vmax.f32 %v5262_v58, %v16702_v46 }
 0xe3e   : > { %v6249_v60 = vadd.f32 %v16617_v29, %v6248_v23 }
 0xe40   : > { %v6250_v3 = vadd.f32 %v16621_v48, %v6249_v60  ;;  %v16707_v1 = vpop.f32.mrb[20].mxu0  ;;  %v20652_v48 = vld [vmem:[#allocation172_spill] sm:$0xff] }
 0xe41   : > { %v5227_v2 = vmax.f32 %v5226_v26, %v16707_v1  ;;  %v16711_v21 = vpop.f32.mrb[21].mxu0 }
 0xe42   : > { %v6251_v40 = vadd.f32 %v16627_v30, %v6250_v3  ;;  %20650 = vst [vmem:[#allocation119_spill] sm:$0xff] %v16711_v21  ;;  %v5264_v23 = vmax.f32 %v5263_v33, %v16711_v21  ;;  %v16714_v29 = vpop.f32.mrb[22].mxu0 }
 0xe43   : > { %v5228_v58 = vmax.f32 %v5227_v2, %v16714_v29  ;;  %v16718_v60 = vpop.f32.mrb[23].mxu0 }
 0xe44   : > { %v6252_v55 = vadd.f32 %v16631_v45, %v6251_v40  ;;  %20651 = vst [vmem:[#allocation60_spill] sm:$0xff] %v16718_v60  ;;  %v5265_v3 = vmax.f32 %v5264_v23, %v16718_v60 }
 0xe45   : > { %v8521_v15 = vpop.eup %8520 }
 0xe46   : > { %v6253_v54 = vadd.f32 %v16637_v24, %v6252_v55  ;;  %v16723_v40 = vsel %vm2905_vm2, %v8521_v15, %v20652_v48 }
 0xe47   : > { %20653 = vst [vmem:[#allocation151_spill] sm:$0xff] %v16723_v40 }
 0xe48   : > { %v6254_v26 = vadd.f32 %v16643_v13, %v6253_v54  ;;  %v16727_v33 = vpop.f32.mrb[24].mxu0 }
 0xe49   : > { %v5229_v55 = vmax.f32 %v5228_v58, %v16727_v33  ;;  %v16731_v24 = vpop.f32.mrb[25].mxu0 }
 0xe4a   : > { %v6255_v45 = vadd.f32 %v16651_v56, %v6254_v26  ;;  %20654 = vst [vmem:[#allocation143_spill] sm:$0xff] %v16731_v24  ;;  %v5266_v2 = vmax.f32 %v5265_v3, %v16731_v24  ;;  %v16734_v16 = vpop.f32.mrb[26].mxu0 }
 0xe4b   : > { %v5230_v48 = vmax.f32 %v5229_v55, %v16734_v16  ;;  %v16738_v15 = vpop.f32.mrb[27].mxu0 }
 0xe4c   : > { %v6256_v30 = vadd.f32 %v16657_v8, %v6255_v45  ;;  %20655 = vst [vmem:[#allocation159_spill] sm:$0xff] %v16738_v15  ;;  %v5267_v54 = vmax.f32 %v5266_v2, %v16738_v15 }
 0xe4d   : > { %v5231_v13 = vrot.slane %v5230_v48, 4 }
 0xe4e   : > { %v6257_v23 = vadd.f32 %v16665_v39, %v6256_v30  ;;  %v5268_v56 = vrot.slane %v5267_v54, 4 }
 0xe4f   : > { %v5232_v8 = vmax.f32 %v5230_v48, %v5231_v13  ;;  %v20660_v13 = vld [vmem:[#allocation58_spill] sm:$0xff] }
 0xe50   : > { %v6258_v26 = vrot.slane %v6257_v23, 4  ;;  %v5269_v58 = vmax.f32 %v5267_v54, %v5268_v56  ;;  %v16741_v11 = vpop.f32.mrb[28].mxu0  ;;  %v20661_v54 = vld [vmem:[#allocation40_spill] sm:$0xff] }
 0xe51   : > { %20656 = vst [vmem:[#allocation152_spill] sm:$0xff] %v16741_v11  ;;  %v5233_v3 = vrot.slane %v5232_v8, 2  ;;  %v16743_v24 = vpop.f32.mrb[29].mxu0  ;;  %v20680_v11 = vld [vmem:[#allocation143_spill] sm:$0xff] }
 0xe52   : > { %v6259_v45 = vadd.f32 %v6258_v26, %v6257_v23  ;;  %20657 = vst [vmem:[#allocation112_spill] sm:$0xff] %v16743_v24  ;;  %v5270_v60 = vrot.slane %v5269_v58, 2  ;;  %v16745_v30 = vpop.f32.mrb[30].mxu0  ;;  %v20662_v24 = vld [vmem:[#allocation106_spill] sm:$0xff] }
 0xe53   : > { %20658 = vst [vmem:[#allocation115_spill] sm:$0xff] %v16745_v30  ;;  %v5234_v39 = vmax.f32 %v5232_v8, %v5233_v3  ;;  %v16747_v21 = vpop.f32.mrb[31].mxu0 }
 0xe54   : > { %v6260_v40 = vrot.slane %v6259_v45, 2  ;;  %20659 = vst [vmem:[#allocation113_spill] sm:$0xff] %v16747_v21  ;;  %v5271_v2 = vmax.f32 %v5269_v58, %v5270_v60  ;;  %v20679_v21 = vld [vmem:[#allocation60_spill] sm:$0xff] }
 0xe55   : > { %v5235_v46 = vrot.slane %v5234_v39, 1 }
 0xe56   : > { %v6261_v55 = vadd.f32 %v6260_v40, %v6259_v45  ;;  %v5272_v34 = vrot.slane %v5271_v2, 1 }
 0xe57   : > { %v16749_v23 = vmax.f32 %v5234_v39, %v5235_v46 }
 0xe58   : > { %v6262_v15 = vrot.slane %v6261_v55, 1  ;;  %v16757_v40 = vmax.f32 %v5271_v2, %v5272_v34 }
 0xe59   : > { %v5466_v48 = vsub.f32 %v20660_v13, %v16749_v23  ;;  %v5468_v26 = vsub.f32 %v20661_v54, %v16749_v23  ;;  %v5470_v30 = vsub.f32 %v20662_v24, %v16749_v23  ;;  %v5472_v8 = vsub.f32 %v20569_v47, %v16749_v23  ;;  %v20663_v13 = vld [vmem:[#allocation175_spill] sm:$0xff] }
 0xe5a   : > { %v6263_v56 = vadd.f32 %v6262_v15, %v6261_v55  ;;  %v5474_v60 = vsub.f32 %v20576_v62, %v16749_v23  ;;  %v5476_v39 = vsub.f32 %v20581_v22, %v16749_v23  ;;  %v5478_v46 = vsub.f32 %v20585_v18, %v16749_v23 }
 0xe5b   : > { %v5480_v15 = vsub.f32 %v20589_v44, %v16749_v23  ;;  %v5482_v24 = vsub.f32 %v20593_v63, %v16749_v23  ;;  %v5484_v34 = vsub.f32 %v20597_v36, %v16749_v23  ;;  %v5486_v47 = vsub.f32 %v16190_v20, %v16749_v23 }
 0xe5c   : > { %v5488_v62 = vsub.f32 %v16249_v49, %v16749_v23  ;;  %v5490_v22 = vsub.f32 %v20610_v0, %v16749_v23  ;;  %v5492_v18 = vsub.f32 %v20618_v25, %v16749_v23  ;;  %v5494_v44 = vsub.f32 %v16395_v43, %v16749_v23 }
 0xe5d   : > { %v5496_v63 = vsub.f32 %v16414_v4, %v16749_v23  ;;  %v5498_v36 = vsub.f32 %v16463_v50, %v16749_v23  ;;  %v5500_v20 = vsub.f32 %v16481_v51, %v16749_v23  ;;  %v5502_v49 = vsub.f32 %v16532_v32, %v16749_v23 }
 0xe5e   : > { %v5504_v0 = vsub.f32 %v16551_v6, %v16749_v23  ;;  %v5506_v25 = vsub.f32 %v16593_v42, %v16749_v23  ;;  %v5508_v43 = vsub.f32 %v16607_v19, %v16749_v23  ;;  %v5510_v4 = vsub.f32 %v16641_v38, %v16749_v23 }
 0xe5f   : > { %v5512_v50 = vsub.f32 %v16655_v52, %v16749_v23  ;;  %v5914_v58 = vmul.f32 1.442695, %v5466_v48  ;;  %v5918_v3 = vmul.f32 1.442695, %v5468_v26  ;;  %v5922_v55 = vmul.f32 1.442695, %v5470_v30 }
 0xe60   : > { %8522 = vrcp.f32 %v6263_v56  ;;  %v5926_v2 = vmul.f32 1.442695, %v5472_v8  ;;  %v5930_v42 = vmul.f32 1.442695, %v5474_v60  ;;  %v5934_v19 = vmul.f32 1.442695, %v5476_v39 }
 0xe61   : > { %8524 = vpow2.f32 %v5914_v58  ;;  %v5938_v38 = vmul.f32 1.442695, %v5478_v46  ;;  %v5942_v6 = vmul.f32 1.442695, %v5480_v15  ;;  %v5946_v52 = vmul.f32 1.442695, %v5482_v24 }
 0xe62   : > { %8526 = vpow2.f32 %v5918_v3  ;;  %v5950_v32 = vmul.f32 1.442695, %v5484_v34  ;;  %v5954_v45 = vmul.f32 1.442695, %v5486_v47  ;;  %v5958_v48 = vmul.f32 1.442695, %v5488_v62 }
 0xe63   : > { %8528 = vpow2.f32 %v5922_v55  ;;  %v5962_v26 = vmul.f32 1.442695, %v5490_v22  ;;  %v5966_v30 = vmul.f32 1.442695, %v5492_v18  ;;  %v5970_v56 = vmul.f32 1.442695, %v5494_v44 }
 0xe64   : > { %8530 = vpow2.f32 %v5926_v2  ;;  %v5974_v8 = vmul.f32 1.442695, %v5496_v63  ;;  %v5978_v54 = vmul.f32 1.442695, %v5498_v36  ;;  %v5982_v58 = vmul.f32 1.442695, %v5500_v20 }
 0xe65   : > { %8532 = vpow2.f32 %v5930_v42  ;;  %v5986_v60 = vmul.f32 1.442695, %v5502_v49  ;;  %v5990_v39 = vmul.f32 1.442695, %v5504_v0  ;;  %v5994_v3 = vmul.f32 1.442695, %v5506_v25 }
 0xe66   : > { %8534 = vpow2.f32 %v5934_v19  ;;  %v16819_v46 = vmul.f32 1.442695, %v5508_v43  ;;  %v16821_v15 = vmul.f32 1.442695, %v5510_v4  ;;  %v16823_v24 = vmul.f32 1.442695, %v5512_v50 }
 0xe67   : > { %8536 = vpow2.f32 %v5938_v38  ;;  %v20664_v34 = vld [vmem:[#allocation83_spill] sm:$0xff]  ;;  %v20665_v22 = vld [vmem:[#allocation52_spill] sm:$0xff]  ;;  %v20667_v50 = vld [vmem:[#allocation149_spill] sm:$0xff] }
 0xe68   : > { %8538 = vpow2.f32 %v5942_v6  ;;  %v20666_v43 = vld [vmem:[#allocation36_spill] sm:$0xff]  ;;  %v20670_v55 = vld [vmem:[#allocation21_spill] sm:$0xff]  ;;  %v20673_v4 = vld [vmem:[#allocation10_spill] sm:$0xff] }
 0xe69   : > { %8540 = vpow2.f32 %v5946_v52  ;;  %v20668_v6 = vld [vmem:[#allocation116_spill] sm:$0xff]  ;;  %v20669_v52 = vld [vmem:[#allocation162_spill] sm:$0xff]  ;;  %v20674_v2 = vld [vmem:[#allocation59_spill] sm:$0xff] }
 0xe6a   : > { %v16827_v62 = vpop.eup %8522  ;;  %8542 = vpow2.f32 %v5950_v32  ;;  %v20671_v32 = vld [vmem:[#allocation170_spill] sm:$0xff]  ;;  %v20672_v42 = vld [vmem:[#allocation8_spill] sm:$0xff]  ;;  %v20675_v44 = vld [vmem:[#allocation135_spill] sm:$0xff] }
 0xe6b   : > { %v16835_v36 = vpop.eup %8524  ;;  %8544 = vpow2.f32 %v5954_v45 }
 0xe6c   : > { %v16843_v25 = vpop.eup %8526  ;;  %8546 = vpow2.f32 %v5958_v48 }
 0xe6d   : > { %v16851_v19 = vpop.eup %8528  ;;  %8548 = vpow2.f32 %v5962_v26  ;;  %v6264_v38 = vadd.f32 %v16843_v25, %v16835_v36  ;;  %v20678_v26 = vld [vmem:[#allocation119_spill] sm:$0xff] }
 0xe6e   : > { %v16859_v48 = vpop.eup %8530  ;;  %8550 = vpow2.f32 %v5966_v30 }
 0xe6f   : > { %v16867_v49 = vpop.eup %8532  ;;  %8552 = vpow2.f32 %v5970_v56  ;;  %v6265_v45 = vadd.f32 %v16851_v19, %v6264_v38 }
 0xe70   : > { %v16874_v20 = vpop.eup %8534  ;;  %8554 = vpow2.f32 %v5974_v8 }
 0xe71   : > { %v16882_v63 = vpop.eup %8536  ;;  %8556 = vpow2.f32 %v5978_v54  ;;  %v6266_v38 = vadd.f32 %v16859_v48, %v6265_v45  ;;  %v20683_v54 = vsub.f32 %v16682_v14, %v16749_v23 }
 0xe72   : > { %v16889_v18 = vpop.eup %8538  ;;  %8558 = vpow2.f32 %v5982_v58 }
 0xe73   : > { %v16897_v0 = vpop.eup %8540  ;;  %8560 = vpow2.f32 %v5986_v60  ;;  %v6267_v45 = vadd.f32 %v16867_v49, %v6266_v38  ;;  %v20681_v38 = vsub.f32 %v16675_v10, %v16749_v23  ;;  %v6014_v60 = vmul.f32 1.442695, %v20683_v54 }
 0xe74   : > { %v16904_v51 = vpop.eup %8542  ;;  %8562 = vpow2.f32 %v5990_v39  ;;  %v20684_v10 = vsub.f32 %v16691_v17, %v16749_v23 }
 0xe75   : > { %v16912_v61 = vpop.eup %8544  ;;  %8564 = vpow2.f32 %v5994_v3  ;;  %v6010_v8 = vmul.f32 1.442695, %v20681_v38  ;;  %v6268_v58 = vadd.f32 %v16874_v20, %v6267_v45 }
 0xe76   : > { %v16920_v30 = vpop.eup %8546  ;;  %8566 = vpow2.f32 %v16819_v46  ;;  %v6018_v3 = vmul.f32 1.442695, %v20684_v10  ;;  %v20685_v46 = vsub.f32 %v16698_v27, %v16749_v23  ;;  %v20689_v27 = vsub.f32 %v16727_v33, %v16749_v23 }
 0xe77   : > { %v16926_v56 = vpop.eup %8548  ;;  %8568 = vpow2.f32 %v16821_v15  ;;  %v6269_v45 = vadd.f32 %v16882_v63, %v6268_v58  ;;  %v20686_v15 = vsub.f32 %v16707_v1, %v16749_v23  ;;  %v20687_v58 = vsub.f32 %v16714_v29, %v16749_v23 }
 0xe78   : > { %v16933_v38 = vpop.eup %8550  ;;  %8570 = vpow2.f32 %v16823_v24  ;;  %v6022_v47 = vmul.f32 1.442695, %v20685_v46 }
 0xe79   : > { %v16939_v14 = vpop.eup %8552  ;;  %8572 = vpow2.f32 %v6010_v8  ;;  %v6026_v54 = vmul.f32 1.442695, %v20686_v15  ;;  %v6270_v17 = vadd.f32 %v16889_v18, %v6269_v45  ;;  %v6030_v24 = vmul.f32 1.442695, %v20687_v58 }
 0xe7a   : > { %v16945_v10 = vpop.eup %8554  ;;  %8574 = vpow2.f32 %v6014_v60  ;;  %v6034_v8 = vmul.f32 1.442695, %v20689_v27  ;;  %v20691_v45 = vsub.f32 %v16734_v16, %v16749_v23  ;;  %v20696_v16 = vsub.f32 %v20665_v22, %v16757_v40 }
 0xe7b   : > { %v16950_v39 = vpop.eup %8556  ;;  %8576 = vpow2.f32 %v6018_v3  ;;  %v6271_v46 = vadd.f32 %v16897_v0, %v6270_v17  ;;  %v20693_v3 = vsub.f32 %v20663_v13, %v16757_v40  ;;  %v20695_v17 = vsub.f32 %v20664_v34, %v16757_v40 }
 0xe7c   : > { %20688 = vst [vmem:[#allocation117_spill] sm:$0xff] %v16950_v39  ;;  %v16956_v1 = vpop.eup %8558  ;;  %8578 = vpow2.f32 %v6022_v47  ;;  %v6038_v60 = vmul.f32 1.442695, %v20691_v45  ;;  %v5924_v23 = vmul.f32 1.442695, %v20696_v16  ;;  %v20698_v13 = vsub.f32 %v20570_v53, %v16757_v40 }
 0xe7d   : > { %20690 = vst [vmem:[#allocation27_spill] sm:$0xff] %v16956_v1  ;;  %v16961_v15 = vpop.eup %8560  ;;  %8580 = vpow2.f32 %v6026_v54  ;;  %v6272_v29 = vadd.f32 %v16904_v51, %v6271_v46  ;;  %v5916_v58 = vmul.f32 1.442695, %v20693_v3  ;;  %v5920_v47 = vmul.f32 1.442695, %v20695_v17 }
 0xe7e   : > { %20692 = vst [vmem:[#allocation89_spill] sm:$0xff] %v16961_v15  ;;  %v16967_v33 = vpop.eup %8562  ;;  %8582 = vpow2.f32 %v6030_v24  ;;  %v5928_v46 = vmul.f32 1.442695, %v20698_v13  ;;  %v20699_v24 = vsub.f32 %v20577_v12, %v16757_v40  ;;  %v20701_v34 = vsub.f32 %v20582_v57, %v16757_v40 }
 0xe7f   : > { %20694 = vst [vmem:[#allocation94_spill] sm:$0xff] %v16967_v33  ;;  %v16975_v27 = vpop.eup %8564  ;;  %8584 = vpow2.f32 %v6034_v8  ;;  %v6273_v54 = vadd.f32 %v16912_v61, %v6272_v29  ;;  %v20702_v8 = vsub.f32 %v20586_v59, %v16757_v40  ;;  %v20703_v29 = vsub.f32 %v20590_v7, %v16757_v40 }
 0xe80   : > { %20697 = vst [vmem:[#allocation124_spill] sm:$0xff] %v16975_v27  ;;  %v5932_v45 = vmul.f32 1.442695, %v20699_v24  ;;  %v16984_v3 = vpop.eup %8566  ;;  %8586 = vpow2.f32 %v6038_v60  ;;  %v5936_v22 = vmul.f32 1.442695, %v20701_v34  ;;  %v20705_v60 = vsub.f32 %v20666_v43, %v16757_v40 }
 0xe81   : > { %20700 = vst [vmem:[#allocation158_spill] sm:$0xff] %v16984_v3  ;;  %v5940_v17 = vmul.f32 1.442695, %v20702_v8  ;;  %v5944_v53 = vmul.f32 1.442695, %v20703_v29  ;;  %v16995_v16 = vpop.eup %8568  ;;  %v6274_v12 = vadd.f32 %v16920_v30, %v6273_v54  ;;  %8588 = vpow2.f32 %v5916_v58  ;;  %v20709_v8 = vld [vmem:[#allocation93_spill] sm:$0xff] }
 0xe82   : > { %20704 = vst [vmem:[#allocation141_spill] sm:$0xff] %v16995_v16  ;;  %v5948_v13 = vmul.f32 1.442695, %v20705_v60  ;;  %v20706_v57 = vsub.f32 %v20667_v50, %v16757_v40  ;;  %v17004_v34 = vpop.eup %8570  ;;  %8590 = vpow2.f32 %v5920_v47  ;;  %v20708_v7 = vsub.f32 %v20668_v6, %v16757_v40 }
 0xe83   : > { %20707 = vst [vmem:[#allocation80_spill] sm:$0xff] %v17004_v34  ;;  %v17012_v54 = vsel %vm2905_vm2, %v16827_v62, %v20709_v8  ;;  %v17016_v58 = vpop.eup %8572  ;;  %v6275_v50 = vadd.f32 %v16926_v56, %v6274_v12  ;;  %8592 = vpow2.f32 %v5924_v23 }
 0xe84   : > { %v5952_v24 = vmul.f32 1.442695, %v20706_v57  ;;  %v5956_v59 = vmul.f32 1.442695, %v20708_v7  ;;  %20710 = vst [vmem:[#allocation182_spill] sm:$0xff] %v17016_v58  ;;  %v17023_v29 = vpop.eup %8574  ;;  %8594 = vpow2.f32 %v5928_v46  ;;  %v20716_v57 = vsub.f32 %v20669_v52, %v16757_v40 }
 0xe85   : > { %20711 = vst [vmem:[#allocation12_spill] sm:$0xff] %v17023_v29  ;;  %v17031_v12 = vpop.eup %8576  ;;  %v6276_v23 = vadd.f32 %v16933_v38, %v6275_v50  ;;  %8596 = vpow2.f32 %v5932_v45  ;;  %v20720_v52 = vsub.f32 %v20671_v32, %v16757_v40 }
 0xe86   : > { %20712 = vst [vmem:[#allocation114_spill] sm:$0xff] %v17031_v12  ;;  %v17038_v8 = vpop.eup %8578  ;;  %8598 = vpow2.f32 %v5936_v22  ;;  %v5960_v60 = vmul.f32 1.442695, %v20716_v57 }
 0xe87   : > { %20713 = vst [vmem:[#allocation172_spill] sm:$0xff] %v17038_v8  ;;  %v17046_v50 = vpop.eup %8580  ;;  %v6277_v45 = vadd.f32 %v16939_v14, %v6276_v23  ;;  %8600 = vpow2.f32 %v5940_v17  ;;  %v20718_v23 = vsub.f32 %v20670_v55, %v16757_v40  ;;  %v5968_v57 = vmul.f32 1.442695, %v20720_v52 }
 0xe88   : > { %20714 = vst [vmem:[#allocation58_spill] sm:$0xff] %v17046_v50  ;;  %v17053_v7 = vpop.eup %8582  ;;  %8602 = vpow2.f32 %v5944_v53  ;;  %v20723_v52 = vsub.f32 %v16472_v37, %v16757_v40  ;;  %v20725_v37 = vsub.f32 %v16539_v9, %v16757_v40  ;;  %v20727_v9 = vsub.f32 %v20673_v4, %v16757_v40 }
 0xe89   : > { %20715 = vst [vmem:[#allocation40_spill] sm:$0xff] %v17053_v7  ;;  %v17060_v6 = vpop.eup %8584  ;;  %v6278_v17 = vadd.f32 %v16945_v10, %v6277_v45  ;;  %8604 = vpow2.f32 %v5948_v13  ;;  %v5964_v46 = vmul.f32 1.442695, %v20718_v23  ;;  %v20721_v13 = vsub.f32 %v20672_v42, %v16757_v40 }
 0xe8a   : > { %20717 = vst [vmem:[#allocation106_spill] sm:$0xff] %v17060_v6  ;;  %v17068_v53 = vpop.eup %8586  ;;  %8606 = vpow2.f32 %v5952_v24  ;;  %v20722_v24 = vsub.f32 %v16422_v28, %v16757_v40  ;;  %v5980_v22 = vmul.f32 1.442695, %v20723_v52  ;;  %v20724_v28 = vsub.f32 %v16490_v41, %v16757_v40 }
 0xe8b   : > { %20719 = vst [vmem:[#allocation175_spill] sm:$0xff] %v17068_v53  ;;  %v17073_v62 = vpop.eup %8588  ;;  %v6279_v47 = vadd.f32 %v16950_v39, %v6278_v17  ;;  %8608 = vpow2.f32 %v5956_v59  ;;  %v5972_v55 = vmul.f32 1.442695, %v20721_v13  ;;  %v5988_v52 = vmul.f32 1.442695, %v20725_v37 }
 0xe8c   : > { %v17081_v23 = vpop.eup %8590  ;;  %8610 = vpow2.f32 %v5960_v60  ;;  %v5976_v32 = vmul.f32 1.442695, %v20722_v24  ;;  %v5984_v24 = vmul.f32 1.442695, %v20724_v28  ;;  %v20726_v41 = vsub.f32 %v16558_v5, %v16757_v40 }
 0xe8d   : > { %v17089_v17 = vpop.eup %8592  ;;  %v6280_v59 = vadd.f32 %v16956_v1, %v6279_v47  ;;  %8612 = vpow2.f32 %v5964_v46  ;;  %v6301_v42 = vadd.f32 %v17081_v23, %v17073_v62  ;;  %v5996_v28 = vmul.f32 1.442695, %v20727_v9 }
 0xe8e   : > { %v17096_v60 = vpop.eup %8594  ;;  %8614 = vpow2.f32 %v5968_v57  ;;  %v5992_v57 = vmul.f32 1.442695, %v20726_v41  ;;  %v20728_v5 = vsub.f32 %v20674_v2, %v16757_v40  ;;  %v20729_v4 = vsub.f32 %v20675_v44, %v16757_v40 }
 0xe8f   : > { %v17104_v45 = vpop.eup %8596  ;;  %v6281_v47 = vadd.f32 %v16961_v15, %v6280_v59  ;;  %8616 = vpow2.f32 %v5972_v55  ;;  %v6302_v46 = vadd.f32 %v17089_v17, %v6301_v42  ;;  %v20730_v2 = vsub.f32 %v16661_v31, %v16757_v40 }
 0xe90   : > { %v17110_v13 = vpop.eup %8598  ;;  %8618 = vpow2.f32 %v5976_v32  ;;  %v6000_v32 = vmul.f32 1.442695, %v20728_v5  ;;  %v6004_v41 = vmul.f32 1.442695, %v20729_v4  ;;  %v20731_v44 = vsub.f32 %v16679_v35, %v16757_v40 }
 0xe91   : > { %v17118_v37 = vpop.eup %8600  ;;  %v6282_v55 = vadd.f32 %v16967_v33, %v6281_v47  ;;  %8620 = vpow2.f32 %v5980_v22  ;;  %v6303_v59 = vadd.f32 %v17096_v60, %v6302_v46 }
 0xe92   : > { %v17124_v43 = vpop.eup %8602  ;;  %8622 = vpow2.f32 %v5984_v24  ;;  %v6008_v24 = vmul.f32 1.442695, %v20730_v2  ;;  %v6012_v5 = vmul.f32 1.442695, %v20731_v44 }
 0xe93   : > { %v17132_v9 = vpop.eup %8604  ;;  %v6283_v22 = vadd.f32 %v16975_v27, %v6282_v55  ;;  %8624 = vpow2.f32 %v5988_v52  ;;  %v6304_v47 = vadd.f32 %v17104_v45, %v6303_v59  ;;  %v20734_v27 = vld [vmem:[#allocation15_spill] sm:$0xff] }
 0xe94   : > { %v17138_v42 = vpop.eup %8606  ;;  %8626 = vpow2.f32 %v5992_v57  ;;  %v20732_v57 = vld [vmem:[#allocation68_spill] sm:$0xff]  ;;  %v20735_v35 = vsub.f32 %v20734_v27, %v16757_v40  ;;  %v20738_v27 = vsub.f32 %v20678_v26, %v16757_v40  ;;  %v20740_v26 = vsub.f32 %v20680_v11, %v16757_v40 }
 0xe95   : > { %v17146_v4 = vpop.eup %8608  ;;  %v6284_v52 = vadd.f32 %v16984_v3, %v6283_v22  ;;  %8628 = vpow2.f32 %v5996_v28  ;;  %v6305_v55 = vadd.f32 %v17110_v13, %v6304_v47  ;;  %v20733_v31 = vsub.f32 %v20732_v57, %v16757_v40 }
 0xe96   : > { %v17152_v46 = vpop.eup %8610  ;;  %8630 = vpow2.f32 %v6000_v32  ;;  %v6020_v44 = vmul.f32 1.442695, %v20735_v35  ;;  %v20736_v32 = vld [vmem:[#allocation45_spill] sm:$0xff]  ;;  %v6028_v35 = vmul.f32 1.442695, %v20738_v27 }
 0xe97   : > { %v6016_v2 = vmul.f32 1.442695, %v20733_v31  ;;  %v17160_v15 = vpop.eup %8612  ;;  %v6285_v28 = vadd.f32 %v16995_v16, %v6284_v52  ;;  %8632 = vpow2.f32 %v6004_v41  ;;  %v6306_v22 = vadd.f32 %v17118_v37, %v6305_v55 }
 0xe98   : > { %v17166_v59 = vpop.eup %8614  ;;  %8634 = vpow2.f32 %v6008_v24  ;;  %v20737_v57 = vsub.f32 %v20736_v32, %v16757_v40  ;;  %v20739_v24 = vsub.f32 %v20679_v21, %v16757_v40 }
 0xe99   : > { %v17174_v3 = vpop.eup %8616  ;;  %v6286_v41 = vadd.f32 %v17004_v34, %v6285_v28  ;;  %8636 = vpow2.f32 %v6012_v5  ;;  %v6307_v52 = vadd.f32 %v17124_v43, %v6306_v22 }
 0xe9a   : > { %v6024_v31 = vmul.f32 1.442695, %v20737_v57  ;;  %v17180_v47 = vpop.eup %8618  ;;  %8638 = vpow2.f32 %v6016_v2  ;;  %v6032_v32 = vmul.f32 1.442695, %v20739_v24  ;;  %v6036_v57 = vmul.f32 1.442695, %v20740_v26 }
 0xe9b   : > { %v17188_v27 = vpop.eup %8620  ;;  %v6287_v5 = vadd.f32 %v17016_v58, %v6286_v41  ;;  %8640 = vpow2.f32 %v6020_v44  ;;  %v6308_v28 = vadd.f32 %v17132_v9, %v6307_v52  ;;  %v20741_v2 = vld [vmem:[#allocation159_spill] sm:$0xff] }
 0xe9c   : > { %v17194_v55 = vpop.eup %8622  ;;  %8642 = vpow2.f32 %v6024_v31  ;;  %v20742_v21 = vsub.f32 %v20741_v2, %v16757_v40 }
 0xe9d   : > { %v17199_v16 = vpop.eup %8624  ;;  %v6288_v11 = vadd.f32 %v17023_v29, %v6287_v5  ;;  %8644 = vpow2.f32 %v6028_v35  ;;  %v6309_v41 = vadd.f32 %v17138_v42, %v6308_v28 }
 0xe9e   : > { %v6040_v24 = vmul.f32 1.442695, %v20742_v21  ;;  %v17205_v52 = vpop.eup %8626  ;;  %8646 = vpow2.f32 %v6032_v32 }
 0xe9f   : > { %v17207_v26 = vpop.eup %8628  ;;  %v6289_v31 = vadd.f32 %v17031_v12, %v6288_v11  ;;  %8648 = vpow2.f32 %v6036_v57  ;;  %v6310_v40 = vadd.f32 %v17146_v4, %v6309_v41 }
 0xea0   : > { %v17213_v5 = vpop.eup %8630  ;;  %8650 = vpow2.f32 %v6040_v24 }
 0xea1   : > { %v17215_v35 = vpop.eup %8632  ;;  %v6290_v28 = vadd.f32 %v17038_v8, %v6289_v31  ;;  %v6311_v21 = vadd.f32 %v17152_v46, %v6310_v40 }
 0xea2   : > { %v17221_v44 = vpop.eup %8634 }
 0xea3   : > { %v17223_v57 = vpop.eup %8636  ;;  %v6291_v11 = vadd.f32 %v17046_v50, %v6290_v28  ;;  %v6312_v41 = vadd.f32 %v17160_v15, %v6311_v21 }
 0xea4   : > { %v17229_v2 = vpop.eup %8638 }
 0xea5   : > { %v17231_v22 = vpop.eup %8640  ;;  %v6292_v31 = vadd.f32 %v17053_v7, %v6291_v11  ;;  %v6313_v40 = vadd.f32 %v17166_v59, %v6312_v41 }
 0xea6   : > { %20743 = vst [vmem:[#allocation83_spill] sm:$0xff] %v17231_v22  ;;  %v17237_v12 = vpop.eup %8642 }
 0xea7   : > { %v17239_v8 = vpop.eup %8644  ;;  %v6293_v28 = vadd.f32 %v17060_v6, %v6292_v31  ;;  %v6314_v21 = vadd.f32 %v17174_v3, %v6313_v40 }
 0xea8   : > { %v17245_v50 = vpop.eup %8646 }
 0xea9   : > { %v17247_v58 = vpop.eup %8648  ;;  %v6294_v11 = vadd.f32 %v17068_v53, %v6293_v28  ;;  %v6315_v41 = vadd.f32 %v17180_v47, %v6314_v21 }
 0xeaa   : > { %v17253_v7 = vpop.eup %8650 }
 0xeab   : > { %v6295_v29 = vrot.slane %v6294_v11, 4  ;;  %v6316_v31 = vadd.f32 %v17188_v27, %v6315_v41 }
 0xead   : > { %v6296_v24 = vadd.f32 %v6295_v29, %v6294_v11  ;;  %v6317_v6 = vadd.f32 %v17194_v55, %v6316_v31 }
 0xeaf   : > { %v6297_v34 = vrot.slane %v6296_v24, 2  ;;  %v6318_v33 = vadd.f32 %v17199_v16, %v6317_v6 }
 0xeb1   : > { %v6298_v28 = vadd.f32 %v6297_v34, %v6296_v24  ;;  %v6319_v21 = vadd.f32 %v17205_v52, %v6318_v33  ;;  %v20744_v24 = vld [vmem:[#allocation151_spill] sm:$0xff] }
 0xeb3   : > { %v6299_v53 = vrot.slane %v6298_v28, 1  ;;  %v6320_v32 = vadd.f32 %v17207_v26, %v6319_v21 }
 0xeb5   : > { %v6300_v39 = vadd.f32 %v6299_v53, %v6298_v28  ;;  %v6321_v1 = vadd.f32 %v17213_v5, %v6320_v32 }
 0xeb7   : > { %8652 = vrcp.f32 %v6300_v39  ;;  %v6322_v41 = vadd.f32 %v17215_v35, %v6321_v1 }
 0xeb9   : > { %v6323_v40 = vadd.f32 %v17221_v44, %v6322_v41 }
 0xebb   : > { %v6324_v29 = vadd.f32 %v17223_v57, %v6323_v40 }
 0xebd   : > { %v6325_v11 = vadd.f32 %v17229_v2, %v6324_v29 }
 0xebf   : > { %v6326_v6 = vadd.f32 %v17231_v22, %v6325_v11 }
 0xec1   : > { %v8653_v34 = vpop.eup %8652  ;;  %v6327_v33 = vadd.f32 %v17237_v12, %v6326_v6 }
 0xec2   : > { %v6356_v31 = vsel %vm2907_vm3, %v8653_v34, %v20744_v24  ;;  %v20745_v34 = vld [vmem:[#allocation74_spill] sm:$0xff]  ;;  %v20747_v24 = vld [vmem:[#allocation47_spill] sm:$0xff] }
 0xec3   : > { %v6328_v53 = vadd.f32 %v17239_v8, %v6327_v33  ;;  %v20746_v33 = vld [vmem:[#allocation43_spill] sm:$0xff] }
 0xec5   : > { %v6329_v39 = vadd.f32 %v17245_v50, %v6328_v53  ;;  %v20748_v53 = vpack.c.bf16 %v20746_v33, %v20747_v24  ;;  %v20763_v24 = vld [vmem:[#allocation103_spill] sm:$0xff] }
 0xec7   : > { %v6330_v1 = vadd.f32 %v17247_v58, %v6329_v39  ;;  %v20749_v39 = vld [vmem:[#allocation191_spill] sm:$0xff] }
 0xec9   : > { %v6331_v32 = vadd.f32 %v17253_v7, %v6330_v1  ;;  %v20750_v1 = vld [vmem:[#allocation189_spill] sm:$0xff] }
 0xecb   : > { %v6332_v28 = vrot.slane %v6331_v32, 4 }
 0xecd   : > { %v6333_v40 = vadd.f32 %v6332_v28, %v6331_v32  ;;  %v20751_v32 = vpack.c.bf16 %v20749_v39, %v20750_v1  ;;  %v20752_v28 = vmov 0.0   ;;  %v20766_v1 = vld [vmem:[#allocation92_spill] sm:$0xff] }
 0xecf   : > { %v6334_v21 = vrot.slane %v6333_v40, 2 }
 0xed1   : > { %v6335_v41 = vadd.f32 %v6334_v21, %v6333_v40  ;;  %v20753_v40 = vld [vmem:[#allocation16_spill] sm:$0xff] }
 0xed2   : > { %v20754_v21 = vld [vmem:[#allocation84_spill] sm:$0xff] }
 0xed3   : > { %v6336_v29 = vrot.slane %v6335_v41, 1 }
 0xed5   : > { %v6337_v11 = vadd.f32 %v6336_v29, %v6335_v41  ;;  %v20758_v41 = vld [vmem:[#allocation5_spill] sm:$0xff] }
 0xed7   : > { %8654 = vrcp.f32 %v6337_v11  ;;  %v20760_v11 = vld [vmem:[#allocation78_spill] sm:$0xff] }
 0xee1   : > { %v8655_v22 = vpop.eup %8654 }
 0xee2   : > { %v6359_v6 = vsel %vm2907_vm3, %v8655_v22, %v17012_v54  ;;  %v20755_v54 = vpack.c.bf16 %v20753_v40, %v20754_v21  ;;  %v20756_v22 = vld [vmem:[#allocation72_spill] sm:$0xff]  ;;  %v20769_v40 = vld [vmem:[#allocation154_spill] sm:$0xff] }
 0xee3   : > { %7382 = vmatprep.subr.msk.mxu1 %vm2917_vm4, %v6359_v6  ;;  %v20761_v6 = vld [vmem:[#allocation23_spill] sm:$0xff]  ;;  %v20770_v21 = vld [vmem:[#allocation24_spill] sm:$0xff] }
 0xee4   : > { %7383 = vmatpush1.msk.msra.mxu1 %vm2917_vm4, %v6356_v31  ;;  %v20757_v31 = vld [vmem:[#allocation6_spill] sm:$0xff]  ;;  %v20762_v33 = vpack.c.bf16 %v20760_v11, %v20761_v6  ;;  %v20778_v6 = vld [vmem:[#allocation65_spill] sm:$0xff] }
 0xee5   : > { %7384 = vmatmul.mubr.msk.f32.vlgmr.msra.gmra.mrb[16].mxu1 %vm2912_vm5, %v20745_v34  ;;  %6636 = vmatprep.subr.bf16.mxu1 %v20748_v53  ;;  %v20759_v29 = vpack.c.bf16 %v20757_v31, %v20758_v41  ;;  %v20764_v53 = vld [vmem:[#allocation164_spill] sm:$0xff]  ;;  %v20775_v41 = vld [vmem:[#allocation122_spill] sm:$0xff] }
 0xee6   : > { %6637 = vmatpush1.bf16.msra.mxu1 %v20751_v32  ;;  %6434 = vmatprep.mubr.f32.mxu1 %v20752_v28  ;;  %v20765_v39 = vpack.c.bf16 %v20763_v24, %v20764_v53  ;;  %v20767_v32 = vld [vmem:[#allocation71_spill] sm:$0xff]  ;;  %v20773_v28 = vld [vmem:[#allocation76_spill] sm:$0xff] }
 0xee7   : > { %6638 = vmatprep.subr.bf16.mxu1 %v20755_v54  ;;  %v20768_v34 = vpack.c.bf16 %v20766_v1, %v20767_v32  ;;  %v20771_v54 = vpack.c.bf16 %v20769_v40, %v20770_v21  ;;  %v20781_v53 = vld [vmem:[#allocation100_spill] sm:$0xff]  ;;  %v20785_v32 = vld [vmem:[#allocation99_spill] sm:$0xff]  ;;  %v20787_v21 = vld [vmem:[#allocation37_spill] sm:$0xff] }
 0xee9   : > { %7385 = vmatmul.mubr.msk.f32.gmra.mrb[18].mxu1 %vm2912_vm5, %v20756_v22  ;;  %v20772_v22 = vld [vmem:[#allocation91_spill] sm:$0xff] }
 0xeea   : > { %6639 = vmatpush1.bf16.msra.mxu1 %v20759_v29  ;;  %6668 = vmatprep.mubr.bf16.mxu1 %v20762_v33  ;;  %v20774_v31 = vpack.c.bf16 %v20772_v22, %v20773_v28  ;;  %v20776_v29 = vld [vmem:[#allocation144_spill] sm:$0xff]  ;;  %v20779_v33 = vld [vmem:[#allocation9_spill] sm:$0xff] }
 0xeeb   : > { %6640 = vmatprep.subr.bf16.mxu1 %v20765_v39  ;;  %v20777_v11 = vpack.c.bf16 %v20775_v41, %v20776_v29  ;;  %v20780_v24 = vpack.c.bf16 %v20778_v6, %v20779_v33  ;;  %v20782_v39 = vld [vmem:[#allocation147_spill] sm:$0xff]  ;;  %v20790_v22 = vld [vmem:[#allocation48_spill] sm:$0xff]  ;;  %v20796_v33 = vld [vmem:[#allocation50_spill] sm:$0xff] }
 0xeec   : > { %v20783_v1 = vpack.c.bf16 %v20781_v53, %v20782_v39  ;;  %v20793_v29 = vld [vmem:[#allocation31_spill] sm:$0xff]  ;;  %v20799_v39 = vld [vmem:[#allocation178_spill] sm:$0xff] }
 0xeee   : > { %6641 = vmatpush1.bf16.msra.mxu1 %v20768_v34  ;;  %v20784_v34 = vld [vmem:[#allocation44_spill] sm:$0xff] }
 0xeef   : > { %6642 = vmatprep.subr.bf16.mxu1 %v20771_v54  ;;  %v20786_v40 = vpack.c.bf16 %v20784_v34, %v20785_v32  ;;  %v20788_v54 = vld [vmem:[#allocation38_spill] sm:$0xff]  ;;  %v20802_v32 = vld [vmem:[#allocation49_spill] sm:$0xff] }
 0xef0   : > { %v20789_v28 = vpack.c.bf16 %v20787_v21, %v20788_v54  ;;  %v20805_v54 = vld [vmem:[#allocation176_spill] sm:$0xff] }
 0xef2   : > { %6643 = vmatpush1.bf16.msra.mxu1 %v20774_v31  ;;  %v20791_v31 = vld [vmem:[#allocation56_spill] sm:$0xff] }
 0xef3   : > { %6644 = vmatprep.subr.bf16.mxu1 %v20777_v11  ;;  %v20792_v41 = vpack.c.bf16 %v20790_v22, %v20791_v31  ;;  %v20794_v11 = vld [vmem:[#allocation133_spill] sm:$0xff]  ;;  %v20808_v31 = vld [vmem:[#allocation82_spill] sm:$0xff] }
 0xef4   : > { %v20795_v6 = vpack.c.bf16 %v20793_v29, %v20794_v11  ;;  %v20811_v11 = vld [vmem:[#allocation129_spill] sm:$0xff] }
 0xef6   : > { %6645 = vmatpush1.bf16.msra.mxu1 %v20780_v24  ;;  %v20797_v24 = vld [vmem:[#allocation51_spill] sm:$0xff] }
 0xef7   : > { %6646 = vmatprep.subr.bf16.mxu1 %v20783_v1  ;;  %v20798_v53 = vpack.c.bf16 %v20796_v33, %v20797_v24  ;;  %v20800_v1 = vld [vmem:[#allocation57_spill] sm:$0xff]  ;;  %v20814_v24 = vld [vmem:[#allocation104_spill] sm:$0xff] }
 0xef8   : > { %v20801_v34 = vpack.c.bf16 %v20799_v39, %v20800_v1  ;;  %v20817_v1 = vld [vmem:[#allocation134_spill] sm:$0xff] }
 0xefa   : > { %6647 = vmatpush1.bf16.msra.mxu1 %v20786_v40  ;;  %v20803_v40 = vld [vmem:[#allocation101_spill] sm:$0xff] }
 0xefb   : > { %6648 = vmatprep.subr.bf16.mxu1 %v20789_v28  ;;  %v20804_v21 = vpack.c.bf16 %v20802_v32, %v20803_v40  ;;  %v20806_v28 = vld [vmem:[#allocation166_spill] sm:$0xff] }
 0xefc   : > { %v20807_v22 = vpack.c.bf16 %v20805_v54, %v20806_v28  ;;  %v20820_v40 = vld [vmem:[#allocation62_spill] sm:$0xff] }
 0xefd   : > { %v20823_v28 = vld [vmem:[#allocation46_spill] sm:$0xff] }
 0xefe   : > { %6649 = vmatpush1.bf16.msra.mxu1 %v20792_v41  ;;  %v20809_v41 = vld [vmem:[#allocation11_spill] sm:$0xff] }
 0xeff   : > { %6650 = vmatprep.subr.bf16.mxu1 %v20795_v6  ;;  %v20810_v29 = vpack.c.bf16 %v20808_v31, %v20809_v41  ;;  %v20812_v6 = vld [vmem:[#allocation163_spill] sm:$0xff]  ;;  %v20826_v41 = vld [vmem:[#allocation132_spill] sm:$0xff] }
 0xf00   : > { %v20813_v33 = vpack.c.bf16 %v20811_v11, %v20812_v6  ;;  %v20829_v6 = vld [vmem:[#allocation22_spill] sm:$0xff] }
 0xf02   : > { %6651 = vmatpush1.bf16.msra.mxu1 %v20798_v53  ;;  %v20815_v53 = vld [vmem:[#allocation34_spill] sm:$0xff] }
 0xf03   : > { %6652 = vmatprep.subr.bf16.mxu1 %v20801_v34  ;;  %v20816_v39 = vpack.c.bf16 %v20814_v24, %v20815_v53  ;;  %v20818_v34 = vld [vmem:[#allocation180_spill] sm:$0xff]  ;;  %v20832_v53 = vld [vmem:[#allocation90_spill] sm:$0xff] }
 0xf04   : > { %v20819_v32 = vpack.c.bf16 %v20817_v1, %v20818_v34  ;;  %v20835_v34 = vld [vmem:[#allocation169_spill] sm:$0xff] }
 0xf06   : > { %6653 = vmatpush1.bf16.msra.mxu1 %v20804_v21  ;;  %v20821_v21 = vld [vmem:[#allocation63_spill] sm:$0xff] }
 0xf07   : > { %6654 = vmatprep.subr.bf16.mxu1 %v20807_v22  ;;  %v20822_v54 = vpack.c.bf16 %v20820_v40, %v20821_v21  ;;  %v20824_v22 = vld [vmem:[#allocation105_spill] sm:$0xff] }
 0xf08   : > { %v20825_v31 = vpack.c.bf16 %v20823_v28, %v20824_v22  ;;  %v20838_v21 = vld [vmem:[#allocation33_spill] sm:$0xff]  ;;  %v20841_v22 = vld [vmem:[#allocation156_spill] sm:$0xff] }
 0xf0a   : > { %6655 = vmatpush1.bf16.msra.mxu1 %v20810_v29  ;;  %v20827_v29 = vld [vmem:[#allocation79_spill] sm:$0xff] }
 0xf0b   : > { %6656 = vmatprep.subr.bf16.mxu1 %v20813_v33  ;;  %v20828_v11 = vpack.c.bf16 %v20826_v41, %v20827_v29  ;;  %v20830_v33 = vld [vmem:[#allocation167_spill] sm:$0xff]  ;;  %v20844_v29 = vld [vmem:[#allocation30_spill] sm:$0xff] }
 0xf0c   : > { %v20831_v24 = vpack.c.bf16 %v20829_v6, %v20830_v33  ;;  %v20847_v33 = vld [vmem:[#allocation32_spill] sm:$0xff] }
 0xf0e   : > { %6657 = vmatpush1.bf16.msra.mxu1 %v20816_v39  ;;  %v20833_v39 = vld [vmem:[#allocation98_spill] sm:$0xff] }
 0xf0f   : > { %6658 = vmatprep.subr.bf16.mxu1 %v20819_v32  ;;  %v20834_v1 = vpack.c.bf16 %v20832_v53, %v20833_v39  ;;  %v20836_v32 = vld [vmem:[#allocation64_spill] sm:$0xff]  ;;  %v20850_v39 = vld [vmem:[#allocation29_spill] sm:$0xff] }
 0xf10   : > { %v20837_v40 = vpack.c.bf16 %v20835_v34, %v20836_v32  ;;  %v20853_v32 = vld [vmem:[#allocation138_spill] sm:$0xff] }
 0xf12   : > { %6659 = vmatpush1.bf16.msra.mxu1 %v20822_v54  ;;  %v20839_v54 = vld [vmem:[#allocation87_spill] sm:$0xff] }
 0xf13   : > { %6660 = vmatprep.subr.bf16.mxu1 %v20825_v31  ;;  %v20840_v28 = vpack.c.bf16 %v20838_v21, %v20839_v54  ;;  %v20842_v31 = vld [vmem:[#allocation173_spill] sm:$0xff] }
 0xf14   : > { %v20843_v41 = vpack.c.bf16 %v20841_v22, %v20842_v31  ;;  %v20856_v54 = vld [vmem:[#allocation85_spill] sm:$0xff]  ;;  %v20859_v31 = vld [vmem:[#allocation14_spill] sm:$0xff] }
 0xf16   : > { %6661 = vmatpush1.bf16.msra.mxu1 %v20828_v11  ;;  %v20845_v11 = vld [vmem:[#allocation20_spill] sm:$0xff] }
 0xf17   : > { %6662 = vmatprep.subr.bf16.mxu1 %v20831_v24  ;;  %v20846_v6 = vpack.c.bf16 %v20844_v29, %v20845_v11  ;;  %v20848_v24 = vld [vmem:[#allocation128_spill] sm:$0xff]  ;;  %v20862_v11 = vld [vmem:[#allocation145_spill] sm:$0xff] }
 0xf18   : > { %v20849_v53 = vpack.c.bf16 %v20847_v33, %v20848_v24  ;;  %v20865_v24 = vld [vmem:[#allocation25_spill] sm:$0xff] }
 0xf1a   : > { %6663 = vmatpush1.bf16.msra.mxu1 %v20834_v1  ;;  %v20851_v1 = vld [vmem:[#allocation183_spill] sm:$0xff] }
 0xf1b   : > { %6664 = vmatprep.subr.bf16.mxu1 %v20837_v40  ;;  %v20852_v34 = vpack.c.bf16 %v20850_v39, %v20851_v1  ;;  %v20854_v40 = vld [vmem:[#allocation136_spill] sm:$0xff]  ;;  %v20868_v1 = vld [vmem:[#allocation174_spill] sm:$0xff] }
 0xf1c   : > { %v20855_v21 = vpack.c.bf16 %v20853_v32, %v20854_v40  ;;  %v20871_v40 = vld [vmem:[#allocation109_spill] sm:$0xff] }
 0xf1e   : > { %6665 = vmatpush1.bf16.msra.mxu1 %v20840_v28  ;;  %v20857_v28 = vld [vmem:[#allocation35_spill] sm:$0xff] }
 0xf1f   : > { %6666 = vmatprep.subr.bf16.mxu1 %v20843_v41  ;;  %v20858_v22 = vpack.c.bf16 %v20856_v54, %v20857_v28  ;;  %v20860_v41 = vld [vmem:[#allocation102_spill] sm:$0xff]  ;;  %v20874_v28 = vld [vmem:[#allocation137_spill] sm:$0xff] }
 0xf20   : > { %v20861_v29 = vpack.c.bf16 %v20859_v31, %v20860_v41  ;;  %v20877_v41 = vld [vmem:[#allocation17_spill] sm:$0xff] }
 0xf22   : > { %6667 = vmatpush1.bf16.msra.mxu1 %v20846_v6  ;;  %v20863_v6 = vld [vmem:[#allocation140_spill] sm:$0xff] }
 0xf23   : > { %6679 = vmatprep.subr.bf16.mxu1 %v20849_v53  ;;  %v20864_v33 = vpack.c.bf16 %v20862_v11, %v20863_v6  ;;  %v20866_v53 = vld [vmem:[#allocation111_spill] sm:$0xff] }
 0xf24   : > { %v20867_v39 = vpack.c.bf16 %v20865_v24, %v20866_v53  ;;  %v20880_v6 = vld [vmem:[#allocation139_spill] sm:$0xff]  ;;  %v20883_v53 = vld [vmem:[#allocation146_spill] sm:$0xff] }
 0xf25   : > { %6669 = vmatmul.mubr.bf16.vlgmr.msra.gmra.mrb[20].mxu1 %v20852_v34  ;;  %v20869_v34 = vld [vmem:[#allocation148_spill] sm:$0xff] }
 0xf26   : > { %6680 = vmatpush1.bf16.msra.mxu1 %v20855_v21  ;;  %6711 = vmatprep.mubr.bf16.mxu1 %v20858_v22  ;;  %v20870_v32 = vpack.c.bf16 %v20868_v1, %v20869_v34  ;;  %v20872_v21 = vld [vmem:[#allocation54_spill] sm:$0xff]  ;;  %v20875_v22 = vld [vmem:[#allocation41_spill] sm:$0xff] }
 0xf27   : > { %6681 = vmatprep.subr.bf16.mxu1 %v20861_v29  ;;  %v20873_v54 = vpack.c.bf16 %v20871_v40, %v20872_v21  ;;  %v20876_v31 = vpack.c.bf16 %v20874_v28, %v20875_v22  ;;  %v20878_v29 = vld [vmem:[#allocation127_spill] sm:$0xff]  ;;  %v20886_v34 = vld [vmem:[#allocation142_spill] sm:$0xff]  ;;  %v20889_v21 = vld [vmem:[#allocation97_spill] sm:$0xff] }
 0xf28   : > { %v20879_v11 = vpack.c.bf16 %v20877_v41, %v20878_v29  ;;  %v20892_v22 = vld [vmem:[#allocation157_spill] sm:$0xff]  ;;  %v20895_v29 = vld [vmem:[#allocation55_spill] sm:$0xff] }
 0xf2a   : > { %6682 = vmatpush1.bf16.msra.mxu1 %v20864_v33  ;;  %v20881_v33 = vld [vmem:[#allocation110_spill] sm:$0xff] }
 0xf2b   : > { %6683 = vmatprep.subr.bf16.mxu1 %v20867_v39  ;;  %v20882_v24 = vpack.c.bf16 %v20880_v6, %v20881_v33  ;;  %v20884_v39 = vld [vmem:[#allocation118_spill] sm:$0xff]  ;;  %v20898_v33 = vld [vmem:[#allocation28_spill] sm:$0xff] }
 0xf2c   : > { %v20885_v1 = vpack.c.bf16 %v20883_v53, %v20884_v39  ;;  %v20901_v39 = vld [vmem:[#allocation123_spill] sm:$0xff] }
 0xf2e   : > { %6684 = vmatpush1.bf16.msra.mxu1 %v20870_v32  ;;  %v20887_v32 = vld [vmem:[#allocation153_spill] sm:$0xff] }
 0xf2f   : > { %6685 = vmatprep.subr.bf16.mxu1 %v20873_v54  ;;  %v20888_v40 = vpack.c.bf16 %v20886_v34, %v20887_v32  ;;  %v20890_v54 = vld [vmem:[#allocation126_spill] sm:$0xff]  ;;  %v20904_v32 = vld [vmem:[#allocation171_spill] sm:$0xff] }
 0xf30   : > { %v20891_v28 = vpack.c.bf16 %v20889_v21, %v20890_v54  ;;  %v20907_v54 = vld [vmem:[#allocation73_spill] sm:$0xff] }
 0xf32   : > { %6686 = vmatpush1.bf16.msra.mxu1 %v20876_v31  ;;  %v20893_v31 = vld [vmem:[#allocation120_spill] sm:$0xff] }
 0xf33   : > { %6687 = vmatprep.subr.bf16.mxu1 %v20879_v11  ;;  %v20894_v41 = vpack.c.bf16 %v20892_v22, %v20893_v31  ;;  %v20896_v11 = vld [vmem:[#allocation155_spill] sm:$0xff] }
 0xf34   : > { %v20897_v6 = vpack.c.bf16 %v20895_v29, %v20896_v11  ;;  %v20910_v31 = vld [vmem:[#allocation179_spill] sm:$0xff]  ;;  %v20913_v11 = vld [vmem:[#allocation13_spill] sm:$0xff] }
 0xf36   : > { %6688 = vmatpush1.bf16.msra.mxu1 %v20882_v24  ;;  %v20899_v24 = vld [vmem:[#allocation168_spill] sm:$0xff] }
 0xf37   : > { %6689 = vmatprep.subr.bf16.mxu1 %v20885_v1  ;;  %v20900_v53 = vpack.c.bf16 %v20898_v33, %v20899_v24  ;;  %v20902_v1 = vld [vmem:[#allocation160_spill] sm:$0xff]  ;;  %v20916_v24 = vld [vmem:[#allocation86_spill] sm:$0xff] }
 0xf38   : > { %v20903_v34 = vpack.c.bf16 %v20901_v39, %v20902_v1  ;;  %v20919_v1 = vld [vmem:[#allocation77_spill] sm:$0xff] }
 0xf3a   : > { %6690 = vmatpush1.bf16.msra.mxu1 %v20888_v40  ;;  %v20905_v40 = vld [vmem:[#allocation150_spill] sm:$0xff] }
 0xf3b   : > { %6691 = vmatprep.subr.bf16.mxu1 %v20891_v28  ;;  %v20906_v21 = vpack.c.bf16 %v20904_v32, %v20905_v40  ;;  %v20908_v28 = vld [vmem:[#allocation184_spill] sm:$0xff]  ;;  %v20922_v40 = vld [vmem:[#allocation70_spill] sm:$0xff] }
 0xf3c   : > { %v20909_v22 = vpack.c.bf16 %v20907_v54, %v20908_v28  ;;  %v20925_v28 = vld [vmem:[#allocation108_spill] sm:$0xff] }
 0xf3e   : > { %6692 = vmatpush1.bf16.msra.mxu1 %v20894_v41  ;;  %v20911_v41 = vld [vmem:[#allocation161_spill] sm:$0xff] }
 0xf3f   : > { %6693 = vmatprep.subr.bf16.mxu1 %v20897_v6  ;;  %v20912_v29 = vpack.c.bf16 %v20910_v31, %v20911_v41  ;;  %v20914_v6 = vld [vmem:[#allocation88_spill] sm:$0xff]  ;;  %v20928_v41 = vld [vmem:[#allocation95_spill] sm:$0xff] }
 0xf40   : > { %v20915_v33 = vpack.c.bf16 %v20913_v11, %v20914_v6  ;;  %v20931_v6 = vld [vmem:[#allocation69_spill] sm:$0xff] }
 0xf42   : > { %6694 = vmatpush1.bf16.msra.mxu1 %v20900_v53  ;;  %v20917_v53 = vld [vmem:[#allocation131_spill] sm:$0xff] }
 0xf43   : > { %6695 = vmatprep.subr.bf16.mxu1 %v20903_v34  ;;  %v20918_v39 = vpack.c.bf16 %v20916_v24, %v20917_v53  ;;  %v20920_v34 = vld [vmem:[#allocation18_spill] sm:$0xff] }
 0xf44   : > { %v20921_v32 = vpack.c.bf16 %v20919_v1, %v20920_v34  ;;  %v20934_v53 = vld [vmem:[#allocation190_spill] sm:$0xff] }
 0xf45   : > { %v20937_v34 = vld [vmem:[#allocation42_spill] sm:$0xff] }
 0xf46   : > { %6696 = vmatpush1.bf16.msra.mxu1 %v20906_v21  ;;  %v20923_v21 = vld [vmem:[#allocation96_spill] sm:$0xff] }
 0xf47   : > { %6697 = vmatprep.subr.bf16.mxu1 %v20909_v22  ;;  %v20924_v54 = vpack.c.bf16 %v20922_v40, %v20923_v21  ;;  %v20926_v22 = vld [vmem:[#allocation66_spill] sm:$0xff]  ;;  %v20940_v21 = vld [vmem:[#allocation75_spill] sm:$0xff] }
 0xf48   : > { %v20927_v31 = vpack.c.bf16 %v20925_v28, %v20926_v22  ;;  %v20943_v22 = vld [vmem:[#allocation39_spill] sm:$0xff] }
 0xf4a   : > { %6698 = vmatpush1.bf16.msra.mxu1 %v20912_v29  ;;  %v20929_v29 = vld [vmem:[#allocation177_spill] sm:$0xff] }
 0xf4b   : > { %6699 = vmatprep.subr.bf16.mxu1 %v20915_v33  ;;  %v20930_v11 = vpack.c.bf16 %v20928_v41, %v20929_v29  ;;  %v20932_v33 = vld [vmem:[#allocation53_spill] sm:$0xff] }
 0xf4c   : > { %v20933_v24 = vpack.c.bf16 %v20931_v6, %v20932_v33  ;;  %v20946_v29 = vld [vmem:[#allocation125_spill] sm:$0xff]  ;;  %v20949_v33 = vpack.c.bf16 %v17081_v23, %v17073_v62  ;;  %v20958_v62 = vpack.c.bf16 %v16859_v48, %v16851_v19  ;;  %v20959_v23 = vpack.c.bf16 %v17110_v13, %v17104_v45  ;;  %v20981_v13 = vld [vmem:[#allocation124_spill] sm:$0xff] }
 0xf4d   : > { %v20963_v19 = vpack.c.bf16 %v17138_v42, %v17132_v9  ;;  %v20964_v48 = vpack.c.bf16 %v16904_v51, %v16897_v0  ;;  %v20969_v51 = vpack.c.bf16 %v17180_v47, %v17174_v3  ;;  %v20970_v0 = vpack.c.bf16 %v16945_v10, %v16939_v14  ;;  %v20977_v45 = vld [vmem:[#allocation89_spill] sm:$0xff]  ;;  %v20980_v10 = vld [vmem:[#allocation158_spill] sm:$0xff]  ;;  %v20984_v42 = vld [vmem:[#allocation80_spill] sm:$0xff] }
 0xf4e   : > { %6700 = vmatpush1.bf16.msra.mxu1 %v20918_v39  ;;  %v20935_v39 = vld [vmem:[#allocation188_spill] sm:$0xff]  ;;  %v20979_v14 = vpack.c.bf16 %v17213_v5, %v17207_v26  ;;  %v20985_v9 = vld [vmem:[#allocation141_spill] sm:$0xff]  ;;  %v20994_v26 = vld [vmem:[#allocation114_spill] sm:$0xff]  ;;  %v20996_v5 = vpack.c.bf16 %v17245_v50, %v17239_v8  ;;  %v21008_v8 = vmov 0.0  }
 0xf4f   : > { %6701 = vmatprep.subr.bf16.mxu1 %v20921_v32  ;;  %v20936_v1 = vpack.c.bf16 %v20934_v53, %v20935_v39  ;;  %v20938_v32 = vld [vmem:[#allocation165_spill] sm:$0xff]  ;;  %v20951_v53 = vld [vmem:[#allocation187_spill] sm:$0xff] }
 0xf50   : > { %v20939_v40 = vpack.c.bf16 %v20937_v34, %v20938_v32  ;;  %v20954_v34 = vld [vmem:[#allocation67_spill] sm:$0xff]  ;;  %v20955_v32 = vld [vmem:[#allocation26_spill] sm:$0xff] }
 0xf52   : > { %6702 = vmatpush1.bf16.msra.mxu1 %v20924_v54  ;;  %v20941_v54 = vld [vmem:[#allocation7_spill] sm:$0xff] }
 0xf53   : > { %6703 = vmatprep.subr.bf16.mxu1 %v20927_v31  ;;  %v20942_v28 = vpack.c.bf16 %v20940_v21, %v20941_v54  ;;  %v20944_v31 = vld [vmem:[#allocation19_spill] sm:$0xff]  ;;  %v20957_v21 = vpack.c.bf16 %v17096_v60, %v17089_v17  ;;  %v20962_v17 = vpack.c.bf16 %v16889_v18, %v16882_v63  ;;  %v20967_v18 = vpack.c.bf16 %v17166_v59, %v17160_v15  ;;  %v20989_v59 = vld [vmem:[#allocation182_spill] sm:$0xff] }
 0xf54   : > { %v20945_v41 = vpack.c.bf16 %v20943_v22, %v20944_v31  ;;  %v20968_v63 = vpack.c.bf16 %v16933_v38, %v16926_v56  ;;  %v20975_v56 = vpack.c.bf16 %v17205_v52, %v17199_v16  ;;  %v20976_v38 = vld [vmem:[#allocation94_spill] sm:$0xff]  ;;  %v20982_v60 = vpack.c.bf16 %v20980_v10, %v20981_v13  ;;  %v20993_v52 = vld [vmem:[#allocation172_spill] sm:$0xff] }
 0xf55   : > { %v20978_v3 = vpack.c.bf16 %v20976_v38, %v20977_v45  ;;  %v20986_v16 = vpack.c.bf16 %v20984_v42, %v20985_v9  ;;  %v20998_v54 = vld [vmem:[#allocation58_spill] sm:$0xff]  ;;  %v21004_v31 = vmov 0.0|0.0   ;;  %v8740_v13 = vmov 4  }
 0xf56   : > { %6704 = vmatpush1.bf16.msra.mxu1 %v20930_v11  ;;  %v20947_v11 = vld [vmem:[#allocation81_spill] sm:$0xff]  ;;  %v21002_v22 = vld [vmem:[#allocation106_spill] sm:$0xff]  ;;  %7587 = vset.pattern.permute.xlu1 %v8740_v13 }
 0xf57   : > { %6705 = vmatprep.subr.bf16.mxu1 %v20933_v24  ;;  %v20948_v6 = vpack.c.bf16 %v20946_v29, %v20947_v11  ;;  %v20950_v24 = vld [vmem:[#allocation107_spill] sm:$0xff]  ;;  %v21006_v29 = vld [vmem:[#allocation121_spill] sm:$0xff]  ;;  %v21013_v10 = vld [vmem:[#allocation74_spill] sm:$0xff] }
 0xf58   : > { %v20952_v39 = vpack.c.bf16 %v20950_v24, %v20951_v53 }
 0xf5a   : > { %6706 = vmatpush1.bf16.msra.mxu1 %v20936_v1  ;;  %v20953_v1 = vpack.c.bf16 %v16843_v25, %v16835_v36  ;;  %v20960_v36 = vpack.c.bf16 %v16874_v20, %v16867_v49  ;;  %v20961_v25 = vpack.c.bf16 %v17124_v43, %v17118_v37  ;;  %v20965_v20 = vpack.c.bf16 %v17152_v46, %v17146_v4  ;;  %v20973_v43 = vld [vmem:[#allocation117_spill] sm:$0xff]  ;;  %v20988_v4 = vld [vmem:[#allocation12_spill] sm:$0xff] }
 0xf5b   : > { %6707 = vmatprep.subr.bf16.mxu1 %v20939_v40  ;;  %v20956_v40 = vpack.c.bf16 %v20954_v34, %v20955_v32  ;;  %v20966_v49 = vpack.c.bf16 %v16920_v30, %v16912_v61  ;;  %v20971_v61 = vpack.c.bf16 %v17194_v55, %v17188_v27  ;;  %v20972_v30 = vld [vmem:[#allocation27_spill] sm:$0xff]  ;;  %v20983_v37 = vpack.c.bf16 %v17221_v44, %v17215_v35  ;;  %v20997_v35 = vld [vmem:[#allocation40_spill] sm:$0xff] }
 0xf5c   : > { %v20974_v15 = vpack.c.bf16 %v20972_v30, %v20973_v43  ;;  %v20987_v46 = vpack.c.bf16 %v17229_v2, %v17223_v57  ;;  %v20990_v47 = vpack.c.bf16 %v20988_v4, %v20989_v59  ;;  %v20991_v55 = vld [vmem:[#allocation83_spill] sm:$0xff]  ;;  %v20995_v44 = vpack.c.bf16 %v20993_v52, %v20994_v26 }
 0xf5d   : > { %v20992_v27 = vpack.c.bf16 %v17237_v12, %v20991_v55  ;;  %v20999_v2 = vpack.c.bf16 %v20997_v35, %v20998_v54  ;;  %v21000_v57 = vpack.c.bf16 %v17253_v7, %v17247_v58  ;;  %v21009_v58 = vld [vmem:[#allocation152_spill] sm:$0xff]  ;;  %v8741_v35 = vmov 5  }
 0xf5e   : > { %6708 = vmatpush1.bf16.msra.mxu1 %v20942_v28  ;;  %v21001_v28 = vld [vmem:[#allocation175_spill] sm:$0xff] }
 0xf5f   : > { %6709 = vmatprep.subr.bf16.mxu1 %v20945_v41  ;;  %v21003_v12 = vpack.c.bf16 %v21001_v28, %v21002_v22  ;;  %v21005_v41 = vld [vmem:[#allocation61_spill] sm:$0xff] }
 0xf60   : > { %v21007_v11 = vpack.c.bf16 %v21005_v41, %v21006_v29 }
 0xf62   : > { %6710 = vmatpush1.bf16.msra.mxu1 %v20948_v6 }
 0xf63   : > { %6722 = vmatprep.subr.bf16.mxu1 %v20949_v33 }
 0xf65   : > { %6712 = vmatmul.mubr.bf16.vlgmr.msra.gmra.mrb[20].mxu1 %v20952_v39 }
 0xf66   : > { %6723 = vmatpush1.bf16.msra.mxu1 %v20953_v1  ;;  %6754 = vmatprep.mubr.bf16.mxu1 %v20956_v40  ;;  %v21010_v1 = vld [vmem:[#allocation112_spill] sm:$0xff] }
 0xf67   : > { %6724 = vmatprep.subr.bf16.mxu1 %v20957_v21  ;;  %v21011_v21 = vld [vmem:[#allocation115_spill] sm:$0xff] }
 0xf6a   : > { %6725 = vmatpush1.bf16.msra.mxu1 %v20958_v62 }
 0xf6b   : > { %6726 = vmatprep.subr.bf16.mxu1 %v20959_v23 }
 0xf6e   : > { %6727 = vmatpush1.bf16.msra.mxu1 %v20960_v36 }
 0xf6f   : > { %6728 = vmatprep.subr.bf16.mxu1 %v20961_v25  ;;  %v21012_v25 = vld [vmem:[#allocation113_spill] sm:$0xff] }
 0xf72   : > { %6729 = vmatpush1.bf16.msra.mxu1 %v20962_v17 }
 0xf73   : > { %6730 = vmatprep.subr.bf16.mxu1 %v20963_v19 }
 0xf76   : > { %6731 = vmatpush1.bf16.msra.mxu1 %v20964_v48 }
 0xf77   : > { %6732 = vmatprep.subr.bf16.mxu1 %v20965_v20 }
 0xf7a   : > { %6733 = vmatpush1.bf16.msra.mxu1 %v20966_v49 }
 0xf7b   : > { %6734 = vmatprep.subr.bf16.mxu1 %v20967_v18 }
 0xf7e   : > { %6735 = vmatpush1.bf16.msra.mxu1 %v20968_v63 }
 0xf7f   : > { %6736 = vmatprep.subr.bf16.mxu1 %v20969_v51 }
 0xf82   : > { %6737 = vmatpush1.bf16.msra.mxu1 %v20970_v0 }
 0xf83   : > { %6738 = vmatprep.subr.bf16.mxu1 %v20971_v61 }
 0xf86   : > { %6739 = vmatpush1.bf16.msra.mxu1 %v20974_v15 }
 0xf87   : > { %6740 = vmatprep.subr.bf16.mxu1 %v20975_v56 }
 0xf8a   : > { %6741 = vmatpush1.bf16.msra.mxu1 %v20978_v3 }
 0xf8b   : > { %6742 = vmatprep.subr.bf16.mxu1 %v20979_v14  ;;  %v8661_v14 = vld [vmem:[%s17709_s2 + $0x60] sm:$0xf] }
 0xf8e   : > { %6743 = vmatpush1.bf16.msra.mxu1 %v20982_v60  ;;  %v8662_v60 = vld [vmem:[%s17708_s1] sm:$0xff] }
 0xf8f   : > { %6744 = vmatprep.subr.bf16.mxu1 %v20983_v37  ;;  %v21014_v37 = vmov 0  }
 0xf92   : > { %6745 = vmatpush1.bf16.msra.mxu1 %v20986_v16 }
 0xf93   : > { %6746 = vmatprep.subr.bf16.mxu1 %v20987_v46 }
 0xf96   : > { %6747 = vmatpush1.bf16.msra.mxu1 %v20990_v47  ;;  %v21015_v47 = vld [vmem:[#allocation72_spill] sm:$0xff] }
 0xf97   : > { %6748 = vmatprep.subr.bf16.mxu1 %v20992_v27 }
 0xf9a   : > { %6749 = vmatpush1.bf16.msra.mxu1 %v20995_v44 }
 0xf9b   : > { %6750 = vmatprep.subr.bf16.mxu1 %v20996_v5 }
 0xf9e   : > { %6751 = vmatpush1.bf16.msra.mxu1 %v20999_v2 }
 0xf9f   : > { %6752 = vmatprep.subr.bf16.mxu1 %v21000_v57  ;;  %v8663_v57 = vld [vmem:[%s17708_s1 + $0x8] sm:$0xff] }
 0xfa2   : > { %6753 = vmatpush1.bf16.msra.mxu1 %v21003_v12 }
 0xfa3   : > { %7487 = vmatprep.subr.bf16.mxu1 %v21004_v31 }
 0xfa5   : > { %6755 = vmatmul.mubr.bf16.vlgmr.msra.gmra.mrb[20].mxu1 %v21007_v11 }
 0xfa6   : > { %7453 = vmatprep.mubr.msk.f32.mxu1 %vm8737_vm6, %v21008_v8 }
 0xfb8   : > { %v6430_v50 = vpop.f32.mrb[16].mxu1 }
 0xfb9   : > { %v6432_v6 = vpop.f32.mrb[17].mxu1 }
 0xfbc   : > { %v6436_v33 = vpop.f32.mrb[18].mxu1 }
 0xfbd   : > { %v6438_v24 = vpop.f32.mrb[19].mxu1 }
0x1078   : > { %v6756_v53 = vpop.f32.mrb[20].mxu1 }
0x1079   : > { %v7497_v7 = vadd.f32 %v6756_v53, %v21009_v58  ;;  %v6758_v39 = vpop.f32.mrb[21].mxu1 }
0x107a   : > { %v7498_v34 = vadd.f32 %v6758_v39, %v21010_v1  ;;  %v6760_v32 = vpop.f32.mrb[22].mxu1 }
0x107b   : > { %v17595_v40 = vmul.f32 %v7497_v7, %v6430_v50  ;;  %v7499_v62 = vadd.f32 %v6760_v32, %v21011_v21  ;;  %v6762_v23 = vpop.f32.mrb[23].mxu1 }
0x107c   : > { %v17598_v36 = vmul.f32 %v7498_v34, %v6432_v6  ;;  %v7500_v17 = vadd.f32 %v6762_v23, %v21012_v25  ;;  %v21016_v23 = vld [vmem:[#allocation185_spill] sm:$0xff]  ;;  %v21017_v25 = vld [vmem:[#allocation186_spill] sm:$0xff] }
0x107d   : > { %v17601_v19 = vmul.f32 %v7499_v62, %v6436_v33  ;;  %v6775_v49 = vmul.f32 %v17595_v40, %v17595_v40 }
0x107e   : > { %v17603_v48 = vmul.f32 %v7500_v17, %v6438_v24  ;;  %v6769_v20 = vadd.f32 %v17598_v36, %v17595_v40  ;;  %v6776_v18 = vmul.f32 %v17598_v36, %v17598_v36 }
0x107f   : > { %v6777_v51 = vmul.f32 %v17601_v19, %v17601_v19 }
0x1080   : > { %6770 = vadd.xlane.f32.xlu0 %v6769_v20  ;;  %v6772_v63 = vadd.f32 %v17603_v48, %v17601_v19  ;;  %v6778_v0 = vmul.f32 %v17603_v48, %v17603_v48  ;;  %v6779_v61 = vadd.f32 %v6776_v18, %v6775_v49  ;;  %v21018_v20 = vld [vmem:[#allocation130_spill] sm:$0xff]  ;;  %v21019_v18 = vld [vmem:[#allocation181_spill] sm:$0xff] }
0x1082   : > { %6773 = vadd.xlane.f32.xlu1 %v6772_v63  ;;  %v6782_v30 = vadd.f32 %v6778_v0, %v6777_v51 }
0x1084   : > { %6780 = vadd.xlane.f32.xlu0 %v6779_v61 }
0x1086   : > { %6783 = vadd.xlane.f32.xlu1 %v6782_v30 }
0x1097   : > { %7116 = vperm.xlu1 %7587, %v8662_v60  }
0x109b   : > { %7588 = vset.pattern.permute.xlu1 %v21014_v37 }
0x110d   : > { %v6771_v43 = vpop.xlane.xlu0 %6770 }
0x110f   : > { %v6774_v15 = vpop.xlane.xlu1 %6773 }
0x1110   : > { %v7488_v56 = vpack.c.bf16 %v6774_v15, %v6771_v43 }
0x1111   : > { %v6781_v38 = vpop.xlane.xlu0 %6780 }
0x1112   : > { %7489 = vmatpush3.bf16.msra.mxu1 %v7488_v56 }
0x1113   : > { %v6784_v45 = vpop.xlane.xlu1 %6783  ;;  %7490 = vmatprep.subr.bf16.mxu1 %v21004_v31 }
0x1114   : > { %v7491_v3 = vpack.c.bf16 %v6784_v45, %v6781_v38 }
0x1115   : > { %7454 = vmatmul.mubr.msk.f32.vlgmr.msra.gmra.mrb[24].mxu1 %vm264_vm0, %v8661_v14 }
0x1116   : > { %7492 = vmatpush3.bf16.msra.mxu1 %v7491_v3  ;;  %7460 = vmatprep.mubr.msk.f32.mxu1 %vm8737_vm6, %v21008_v8 }
0x1117   : > { %v7117_v28 = vpop.permute.xlu1 %7116 }
0x1119   : > { %7461 = vmatmul.mubr.msk.f32.vlgmr.msra.gmra.mrb[26].mxu1 %vm264_vm0, %v8661_v14 }
0x111a   : > { %7465 = vmatprep.mubr.msk.f32.mxu1 %vm2912_vm5, %v21013_v10 }
0x11e8   : > { %v6851_v42 = vpop.f32.mrb[24].mxu1 }
0x11e9   : > { %v6855_v9 = vmul.f32 0.0009765625, %v6851_v42  ;;  %v7455_v16 = vpop.f32.mrb[25].mxu1 }
0x11eb   : > { %7463 = vmatprep.subr.msk.mxu1 %vm2917_vm4, %v6855_v9  ;;  %v6927_v59 = vmul.f32 %v6855_v9, %v6855_v9 }
0x11ec   : > { %v6922_v46 = vpop.f32.mrb[26].mxu1  ;;  %7464 = vmatpush3.msk.msra.mxu1 %vm2917_vm4, %v6855_v9 }
0x11ed   : > { %v6926_v4 = vmul.f32 0.0009765625, %v6922_v46  ;;  %7466 = vmatmul.mubr.msk.f32.vlgmr.msra.gmra.mrb[28].mxu1 %vm2912_vm5, %v21015_v47  ;;  %v7462_v55 = vpop.f32.mrb[27].mxu1 }
0x11ee   : > { %7470 = vmatprep.mubr.msk.f32.mxu1 %vm2912_vm5, %v21013_v10 }
0x11ef   : > { %v6928_v27 = vsub.f32 %v6926_v4, %v6927_v59 }
0x11f1   : > { %v6929_v52 = vadd.f32 1e-05, %v6928_v27 }
0x11f3   : > { %8656 = vrsqrt.f32 %v6929_v52 }
0x11fd   : > { %v8657_v26 = vpop.eup %8656 }
0x11fe   : > { %7468 = vmatprep.subr.msk.mxu1 %vm2917_vm4, %v8657_v26 }
0x11ff   : > { %7469 = vmatpush3.msk.msra.mxu1 %vm2917_vm4, %v8657_v26 }
0x1200   : > { %7471 = vmatmul.mubr.msk.f32.vlgmr.msra.gmra.mrb[30].mxu1 %vm2912_vm5, %v21015_v47 }
0x12c0   : > { %v7467_v44 = vpop.f32.mrb[28].mxu1 }
0x12c1   : > { %7094 = vperm.xlu1 %7588, %v7467_v44   ;;  %v7000_v5 = vpop.f32.mrb[29].mxu1 }
0x12c2   : > { %7089 = vperm.xlu0 %7581, %v7000_v5  }
0x12c5   : > { %7590 = vset.pattern.permute.xlu1 %v8741_v35 }
0x12c6   : > { %7128 = vperm.xlu1 %7590, %v8662_v60  }
0x12ca   : > { %7591 = vset.pattern.permute.xlu1 %v21014_v37 }
0x12d3   : > { %v7472_v54 = vpop.f32.mrb[30].mxu1 }
0x12d4   : > { %7108 = vperm.xlu0 %7581, %v7472_v54   ;;  %v7078_v2 = vpop.f32.mrb[31].mxu1 }
0x12d5   : > { %7103 = vperm.xlu1 %7591, %v7078_v2  }
0x12d8   : > { %7589 = vset.pattern.permute.xlu0 %v8740_v13 }
0x12d9   : > { %7120 = vperm.xlu0 %7589, %v8663_v57   ;;  %7592 = vset.pattern.permute.xlu1 %v8741_v35 }
0x12da   : > { %7132 = vperm.xlu1 %7592, %v8663_v57  }
0x12dd   : > { %7593 = vset.pattern.permute.xlu0 %v8741_v35 }
0x1340   : > { %v7095_v22 = vpop.permute.xlu1 %7094 }
0x1341   : > { %v7090_v31 = vpop.permute.xlu0 %7089  ;;  %v7099_v50 = vsub.f32 %v17601_v19, %v7095_v22  ;;  %v7100_v6 = vsub.f32 %v17603_v48, %v7095_v22 }
0x1342   : > { %v7097_v41 = vsub.f32 %v17595_v40, %v7090_v31  ;;  %v7098_v29 = vsub.f32 %v17598_v36, %v7090_v31 }
0x1345   : > { %v7129_v12 = vpop.permute.xlu1 %7128 }
0x1353   : > { %v7109_v11 = vpop.permute.xlu0 %7108 }
0x1354   : > { %v7104_v8 = vpop.permute.xlu1 %7103  ;;  %v7113_v53 = vmul.f32 %v7109_v11, %v7099_v50  ;;  %v7114_v58 = vmul.f32 %v7109_v11, %v7100_v6 }
0x1355   : > { %v7111_v33 = vmul.f32 %v7104_v8, %v7097_v41  ;;  %v7112_v24 = vmul.f32 %v7104_v8, %v7098_v29 }
0x1357   : > { %v7123_v7 = vmul.f32 %v7117_v28, %v7111_v33  ;;  %v7124_v39 = vmul.f32 %v7117_v28, %v7112_v24 }
0x1358   : > { %v7121_v1 = vpop.permute.xlu0 %7120 }
0x1359   : > { %v7135_v34 = vadd.f32 %v7129_v12, %v7123_v7  ;;  %v7136_v32 = vadd.f32 %v7129_v12, %v7124_v39  ;;  %v7125_v40 = vmul.f32 %v7121_v1, %v7113_v53  ;;  %v7126_v21 = vmul.f32 %v7121_v1, %v7114_v58  ;;  %v7133_v62 = vpop.permute.xlu1 %7132 }
0x135b   : > { %v7139_v36 = vadd.f32 %v7135_v34, %v21016_v23  ;;  %v7140_v17 = vadd.f32 %v7136_v32, %v21017_v25  ;;  %v7137_v19 = vadd.f32 %v7133_v62, %v7125_v40  ;;  %v7138_v48 = vadd.f32 %v7133_v62, %v7126_v21 }
0x135d   : > { %7143 = vst [vmem:[%s163_s17] sm:$0xff] %v7139_v36  ;;  %7144 = vst [vmem:[%s163_s17 + $0x8] sm:$0xff] %v7140_v17  ;;  %v7141_v49 = vadd.f32 %v7137_v19, %v21018_v20  ;;  %v7142_v63 = vadd.f32 %v7138_v48, %v21019_v18 }
0x135f   : > { %7145 = vst [vmem:[%s163_s17 + $0x10] sm:$0xff] %v7141_v49  ;;  %7146 = vst [vmem:[%s163_s17 + $0x18] sm:$0xff] %v7142_v63 }
0x1360   : > { %8677 = shalt.err (!%p8674_p3)
}
0x1361   : > { %s8678_s30 = scalar_lea.hbm %s17658_s25, 512  ;;  %s8682_s6 = scalar_lea.hbm %s17710_s3, 1024 }
0x1362   : > { %p8679_p4 = scmp.ne.s32.totalorder %s17658_s25, %s8678_s30  ;;  %p8683_p9 = scmp.lt.u32.totalorder %s17658_s25, %s17710_s3 }
0x1363   : > { %p8684_p10 = scmp.lt.u32.totalorder %s8682_s6, %s8678_s30  ;;  %p8686_p12 = scmp.lt.u32.totalorder %s8678_s30, %s17658_s25 }
0x1364   : > { %p8680_p7 = pnand %p8679_p4, %p8803_p5 }
0x1365   : > { %p8685_p11 = por %p8684_p10, %p8683_p9 }
0x1366   : > { %p8681_p8 = pneg %p8680_p7 }
0x1367   : > { %p8687_p13 = por %p8686_p12, %p8685_p11 }
0x1369   : > { %p8688_p0 = pnand %p8687_p13, %p8681_p8 }
0x136b   : > { %8691 = shalt.err (!%p8688_p0)
}
0x136c   : > { %s8743_s9 = smov 256   ;;  %s8744_s10 = smov 16  }
0x136d   : > { %7517 = dma.vmem_to_hbm [thread:$0]  (%p8803_p5), %s17660_s19, 512, %s17658_s25, %s17666_s16, %s8743_s9, %s8743_s9, %s8744_s10  }
0x136e PF: > { %p7523_p1 = scmp.ge.s32.totalorder %s8726_s15, 2  ;;  %s7176_s11 = sand.u32 1, %s8714_s12  }
0x136f   : > { %s7177_s17 = scalar_lea.sflag [#allocation3], %s7176_s11 }
0x1370   : > { %p7520_p2 = pnand %p7523_p1, %p8807_p6 }
0x1372   : > { %8709 = dma.done.wait (!%p7520_p2), %s7177_s17, 512  }
0x1373   : > { %8711 = vsyncadd (!%p7520_p2), %s7177_s17, 4294966784  ;;  %p13_p3 = scmp.ge.s32.totalorder %s8790_s18, 4   ;;  %s21020_s12 = smov %s8718_s13 }
0x1374   : > { %s21021_s13 = smov %s8722_s14  ;;  %s21022_s14 = smov %s8801_s21 }
0x1375   : > { %s21023_s15 = smov %s8790_s18  ;;  %15 = sbr.rel (!%p13_p3) target bundleno = 3 (0x3), region = 67 }
0x137c   :  { %7182 = vsyncpa [#allocation3], 1 }
0x137d   :  { %7184 = vsyncpa [#allocation3 + $0x1], 1 }

</bundles_post_ra>
